<compile_context>
chip_gen: v7x
topology: tpu7x:2x2x1
jax: 0.10.0
libtpu: 0.0.40
codegen_flags: <defaults>
</compile_context>

<pallas_src>
import functools
import math

import jax
import jax.numpy as jnp
from jax.experimental import pallas as pl
from jax.experimental.pallas import tpu as pltpu

NEG_SLOPE = 1.0   # nn.LeakyReLU(True) -> negative_slope = 1.0 (identity)
LN_EPS = 1e-5
BN_EPS = 1e-5
NHEAD = 2
_CONV_PAD = 8     # sublane-aligned padding offset for the in-kernel conv2 halo


def _fullspec(shape):
    nd = len(shape)
    return pl.BlockSpec(shape, lambda i, nd=nd: (0,) * nd)


def _leaky(v):
    return jnp.where(v >= 0, v, NEG_SLOPE * v)


# ----------------------------------------------------------------------------
# Kernel 1: fused TransformerEncoderLayer
# ----------------------------------------------------------------------------
def _encoder_kernel(x_ref, mask_ref, w_in_ref, b_in_ref, w_out_ref, b_out_ref,
                    ln1_g_ref, ln1_b_ref, w_ff1_ref, b_ff1_ref,
                    w_ff2_ref, b_ff2_ref, ln2_g_ref, ln2_b_ref, o_ref, *, E, H):
    f32 = jnp.float32
    Dh = E // H
    scale = 1.0 / math.sqrt(Dh)

    def layernorm(v, g, b):
        mu = jnp.mean(v, axis=-1, keepdims=True)
        var = jnp.mean((v - mu) ** 2, axis=-1, keepdims=True)
        return (v - mu) * jax.lax.rsqrt(var + LN_EPS) * g + b

    x = x_ref[...]                                   # (R, E), R = S*N (pos-enc added)
    mask = mask_ref[...]                             # (R, R) causal + same-batch mask

    qkv = jnp.dot(x, w_in_ref[...], preferred_element_type=f32) + b_in_ref[...]

    heads = []
    for h in range(H):                               # static unroll, H == 2
        q = qkv[:, h * Dh:(h + 1) * Dh] * scale
        k = qkv[:, E + h * Dh:E + (h + 1) * Dh]
        v = qkv[:, 2 * E + h * Dh:2 * E + (h + 1) * Dh]
        s = jax.lax.dot_general(q, k, (((1,), (1,)), ((), ())),
                                preferred_element_type=f32)        # q @ k.T : (R, R)
        s = s + mask
        m = jnp.max(s, axis=-1, keepdims=True)
        p = jnp.exp(s - m)
        denom = jnp.sum(p, axis=-1, keepdims=True)
        p = p * pl.reciprocal(denom, approx=True)                  # EUP, frees VALU
        heads.append(jnp.dot(p, v, preferred_element_type=f32))    # (R, Dh)
    ao = jnp.concatenate(heads, axis=-1)                           # (R, E)

    ao = jnp.dot(ao, w_out_ref[...], preferred_element_type=f32) + b_out_ref[...]
    x1 = layernorm(x + ao, ln1_g_ref[...], ln1_b_ref[...])

    ff = jnp.dot(x1, w_ff1_ref[...], preferred_element_type=f32) + b_ff1_ref[...]
    ff = jnp.maximum(ff, 0.0)                                      # ReLU (torch default)
    ff = jnp.dot(ff, w_ff2_ref[...], preferred_element_type=f32) + b_ff2_ref[...]
    x2 = layernorm(x1 + ff, ln2_g_ref[...], ln2_b_ref[...])

    o_ref[...] = x2.astype(o_ref.dtype)


def encoder_fused(x, mask, p, *, E):
    args = (x, mask,
            p["w_in"], p["b_in"].reshape(1, -1),
            p["w_out"], p["b_out"].reshape(1, -1),
            p["ln1_g"].reshape(1, -1), p["ln1_b"].reshape(1, -1),
            p["w_ff1"], p["b_ff1"].reshape(1, -1),
            p["w_ff2"], p["b_ff2"].reshape(1, -1),
            p["ln2_g"].reshape(1, -1), p["ln2_b"].reshape(1, -1))
    R = x.shape[0]
    return pl.pallas_call(
        functools.partial(_encoder_kernel, E=E, H=NHEAD),
        grid=(1,),
        in_specs=[_fullspec(a.shape) for a in args],
        out_specs=_fullspec((R, E)),
        out_shape=jax.ShapeDtypeStruct((R, E), jnp.float32),
        compiler_params=pltpu.CompilerParams(dimension_semantics=("arbitrary",)),
    )(*args)


# ----------------------------------------------------------------------------
# Kernel 2: fused Conv1d stack + 2-layer LSTM + MLP head
# ----------------------------------------------------------------------------
def _conv_lstm_head_kernel(xp_ref, cw1_ref, cb1_ref, cw2_ref, cb2_ref,
                           wih0_ref, whh0_ref, lb0_ref, wih1_ref, whh1_ref, lb1_ref,
                           hw1_ref, hb1_ref, hw2_ref, hb2_ref,
                           o_ref,
                           h1pad_ref, xp0_ref, y1_ref, xp1_ref,
                           *, B, L, C1, C2, T, HID):
    f32 = jnp.float32
    cin = xp_ref.shape[-1]

    # ---- Conv1 + BN + act (BN folded into weights/bias by the wrapper) --------
    # input is pre-padded along length by 1 in the wrapper: taps are plain slices
    acc = jnp.zeros((B * L, C1), f32)
    for k in range(3):
        tap = xp_ref[:, k:k + L, :].reshape(B * L, cin)
        acc = acc + jnp.dot(tap, cw1_ref[k], preferred_element_type=f32)
    h1 = _leaky(acc + cb1_ref[...])                          # (B*L, C1), stays in VMEM

    # ---- Conv2 + BN + act: halo handled via a zero-padded VMEM scratch --------
    h1pad_ref[...] = jnp.zeros((B, L + 2 * _CONV_PAD, C1), f32)
    h1pad_ref[:, _CONV_PAD:_CONV_PAD + L, :] = h1.reshape(B, L, C1)
    acc2 = jnp.zeros((B * L, C2), f32)
    for k in range(3):
        s = _CONV_PAD - 1 + k
        tap = h1pad_ref[:, s:s + L, :].reshape(B * L, C1)
        acc2 = acc2 + jnp.dot(tap, cw2_ref[k], preferred_element_type=f32)
    y2 = _leaky(acc2 + cb2_ref[...])                         # (B*L, C2); row = b*L + f

    # ---- LSTM layer-0 input projection, hoisted out of the recurrence ---------
    # xp0[t, b, :] = sum_f conv2_out[b, t, f] * W_ih0[f, :] + (b_ih0 + b_hh0)
    wih0 = wih0_ref[...]
    lb0 = lb0_ref[...]
    for b in range(B):                                       # static unroll, B == 8
        blk = y2[b * L:(b + 1) * L, :]                       # (F=L, T)
        pj = jax.lax.dot_general(blk, wih0, (((0,), (0,)), ((), ())),
                                 preferred_element_type=f32)  # (T, 4*HID)
        xp0_ref[:, b, :] = pj + lb0

    # ---- LSTM layer 0 recurrence (only h @ W_hh left on the serial path) ------
    whh0 = whh0_ref[...]
    zero_h = jnp.zeros((B, HID), f32)

    def step0(t, carry):
        h, c = carry
        g = xp0_ref[t] + jnp.dot(h, whh0, preferred_element_type=f32)   # (B, 4H)
        sg = jax.nn.sigmoid(g)                                          # one full-vreg pass
        th = jnp.tanh(g)                                                # one full-vreg pass
        i_g = sg[:, 0:HID]
        f_g = sg[:, HID:2 * HID]
        g_g = th[:, 2 * HID:3 * HID]
        o_g = sg[:, 3 * HID:4 * HID]
        c = f_g * c + i_g * g_g
        h = o_g * jnp.tanh(c)
        y1_ref[t] = h                                                   # VMEM scratch write
        return (h, c)

    jax.lax.fori_loop(0, T, step0, (zero_h, zero_h))

    # ---- LSTM layer-1 input projection as one batched matmul ------------------
    xp1 = jnp.dot(y1_ref[...].reshape(T * B, HID), wih1_ref[...],
                  preferred_element_type=f32) + lb1_ref[...]
    xp1_ref[...] = xp1.reshape(T, B, 4 * HID)

    # ---- LSTM layer 1 recurrence (only the final hidden state is needed) ------
    whh1 = whh1_ref[...]

    def step1(t, carry):
        h, c = carry
        g = xp1_ref[t] + jnp.dot(h, whh1, preferred_element_type=f32)
        sg = jax.nn.sigmoid(g)
        th = jnp.tanh(g)
        i_g = sg[:, 0:HID]
        f_g = sg[:, HID:2 * HID]
        g_g = th[:, 2 * HID:3 * HID]
        o_g = sg[:, 3 * HID:4 * HID]
        c = f_g * c + i_g * g_g
        h = o_g * jnp.tanh(c)
        return (h, c)

    h_last, _ = jax.lax.fori_loop(0, T, step1, (zero_h, zero_h))

    # ---- MLP head: act -> Linear(H,256) -> act -> Linear(256,1) ---------------
    z = _leaky(h_last)
    z = _leaky(jnp.dot(z, hw1_ref[...], preferred_element_type=f32) + hb1_ref[...])
    out = jnp.dot(z, hw2_ref[...], preferred_element_type=f32) + hb2_ref[...]
    o_ref[...] = out.astype(o_ref.dtype)


def conv_lstm_head_fused(args, *, B, L, C1, C2, T, HID):
    return pl.pallas_call(
        functools.partial(_conv_lstm_head_kernel,
                          B=B, L=L, C1=C1, C2=C2, T=T, HID=HID),
        grid=(1,),
        in_specs=[_fullspec(a.shape) for a in args],
        out_specs=_fullspec((B, 1)),
        out_shape=jax.ShapeDtypeStruct((B, 1), jnp.float32),
        scratch_shapes=[
            pltpu.VMEM((B, L + 2 * _CONV_PAD, C1), jnp.float32),  # padded conv1 output
            pltpu.VMEM((T, B, 4 * HID), jnp.float32),             # LSTM-0 input projection
            pltpu.VMEM((T, B, HID), jnp.float32),                 # LSTM-0 hidden states
            pltpu.VMEM((T, B, 4 * HID), jnp.float32),             # LSTM-1 input projection
        ],
        compiler_params=pltpu.CompilerParams(dimension_semantics=("arbitrary",)),
    )(*args)


# ----------------------------------------------------------------------------
# Glue (constants, parameter preprocessing)
# ----------------------------------------------------------------------------
def positional_encoding(max_len, d_model):
    position = jnp.arange(max_len, dtype=jnp.float32)[:, None]
    div_term = jnp.exp(jnp.arange(0, d_model, 2, dtype=jnp.float32)
                       * (-math.log(10000.0) / d_model))
    pe = jnp.zeros((max_len, d_model), jnp.float32)
    pe = pe.at[:, 0::2].set(jnp.sin(position * div_term))
    pe = pe.at[:, 1::2].set(jnp.cos(position * div_term))
    return pe[:, None, :]          # (max_len, 1, d_model)


def combined_attn_mask(S, N):
    """Additive mask on the flat (S*N) row layout: causal over S, block-diag over N."""
    r = jnp.arange(S * N)
    s = r // N
    n = r % N
    valid = (n[:, None] == n[None, :]) & (s[None, :] <= s[:, None])
    return jnp.where(valid, 0.0, -jnp.inf).astype(jnp.float32)


def transam_forward(src, p):
    """src: (S, N=stackNum, E=feature_size), like PyTorch's (seq, batch, d_model)."""
    S, N, E = src.shape
    R = S * N

    # PositionalEncoding (wrapper add; the 5000-row table never enters a kernel)
    x = (src + p["pe"][:S]).reshape(R, E)
    mask = combined_attn_mask(S, N)

    # --- Kernel 1: full TransformerEncoderLayer ---
    enc = encoder_fused(x, mask, p, E=E)                       # (R, E)

    # --- Conv decoder input: NCL (batch=S, channels=N, length=E) -> NLC, padded ---
    C1 = p["conv1_w"].shape[0]
    C2 = p["conv2_w"].shape[0]
    HID = p["lstm_whh0"].shape[0]
    cin_p = ((N + 7) // 8) * 8                                 # pad contraction dim to 8
    x_nlc = enc.reshape(S, N, E).transpose(0, 2, 1)            # (S, E, N)
    x_pad = jnp.pad(x_nlc, ((0, 0), (1, 1), (0, cin_p - N)))   # (S, E+2, cin_p)

    # Fold eval-mode BatchNorm into conv weights / bias; reshape weights into taps.
    scale1 = p["bn1_g"] / jnp.sqrt(p["bn1_v"] + BN_EPS)
    shift1 = p["bn1_b"] - p["bn1_m"] * scale1
    cw1 = jnp.transpose(p["conv1_w"], (2, 1, 0)) * scale1[None, None, :]   # (3, N, C1)
    cw1 = jnp.pad(cw1, ((0, 0), (0, cin_p - N), (0, 0)))                   # (3, cin_p, C1)
    cb1 = (p["conv1_b"] * scale1 + shift1).reshape(1, -1)

    scale2 = p["bn2_g"] / jnp.sqrt(p["bn2_v"] + BN_EPS)
    shift2 = p["bn2_b"] - p["bn2_m"] * scale2
    cw2 = jnp.transpose(p["conv2_w"], (2, 1, 0)) * scale2[None, None, :]   # (3, C1, C2)
    cb2 = (p["conv2_b"] * scale2 + shift2).reshape(1, -1)

    lb0 = (p["lstm_bih0"] + p["lstm_bhh0"]).reshape(1, -1)
    lb1 = (p["lstm_bih1"] + p["lstm_bhh1"]).reshape(1, -1)

    args = (x_pad, cw1, cb1, cw2, cb2,
            p["lstm_wih0"], p["lstm_whh0"], lb0,
            p["lstm_wih1"], p["lstm_whh1"], lb1,
            p["head_w1"], p["head_b1"].reshape(1, -1),
            p["head_w2"], p["head_b2"].reshape(1, -1))

    # --- Kernel 2: conv stack + 2-layer LSTM + head ---
    out = conv_lstm_head_fused(args, B=S, L=E, C1=C1, C2=C2, T=C2, HID=HID)
    return out                                                  # (S, 1)


def init_params(key, E=128, dff=256, channels=(32, 18), H_lstm=32, stackNum=2):
    keys = jax.random.split(key, 12)

    def nrm(k, shape, s=0.05):
        return (s * jax.random.normal(k, shape)).astype(jnp.float32)

    z = lambda *s: jnp.zeros(s, jnp.float32)
    o = lambda *s: jnp.ones(s, jnp.float32)
    c1, c2 = channels
    p = {
        "pe": positional_encoding(5000, E),
        # MHA in/out projections (stored pre-transposed: (in, out))
        "w_in": nrm(keys[0], (E, 3 * E)), "b_in": z(3 * E),
        "w_out": nrm(keys[1], (E, E)), "b_out": z(E),
        "ln1_g": o(E), "ln1_b": z(E),
        "w_ff1": nrm(keys[2], (E, dff)), "b_ff1": z(dff),
        "w_ff2": nrm(keys[3], (dff, E)), "b_ff2": z(E),
        "ln2_g": o(E), "ln2_b": z(E),
        # Conv1d weights in PyTorch layout (C_out, C_in, K)
        "conv1_w": nrm(keys[4], (c1, stackNum, 3)), "conv1_b": z(c1),
        "bn1_g": o(c1), "bn1_b": z(c1), "bn1_m": z(c1), "bn1_v": o(c1),
        "conv2_w": nrm(keys[5], (c2, c1, 3)), "conv2_b": z(c2),
        "bn2_g": o(c2), "bn2_b": z(c2), "bn2_m": z(c2), "bn2_v": o(c2),
        # LSTM weights stored pre-transposed: W_ih (F, 4H), W_hh (H, 4H); gates i,f,g,o
        "lstm_wih0": nrm(keys[6], (E, 4 * H_lstm)),
        "lstm_whh0": nrm(keys[7], (H_lstm, 4 * H_lstm)),
        "lstm_bih0": z(4 * H_lstm), "lstm_bhh0": z(4 * H_lstm),
        "lstm_wih1": nrm(keys[8], (H_lstm, 4 * H_lstm)),
        "lstm_whh1": nrm(keys[9], (H_lstm, 4 * H_lstm)),
        "lstm_bih1": z(4 * H_lstm), "lstm_bhh1": z(4 * H_lstm),
        "head_w1": nrm(keys[10], (H_lstm, 256)), "head_b1": z(256),
        "head_w2": nrm(keys[11], (256, 1)), "head_b2": z(1),
    }
    return p


if __name__ == "__main__":
    # Small shapes consistent with the module's forward:
    #   seq S=8, transformer batch N=stackNum=2, feature_size E=128
    S, N, E = 8, 2, 128
    key = jax.random.PRNGKey(0)
    k_in, k_p = jax.random.split(key)
    src = jax.random.normal(k_in, (S, N, E), dtype=jnp.float32)
    params = init_params(k_p, E=E)

    out = jax.jit(transam_forward)(src, params)
    out = jax.block_until_ready(out)
    assert out.shape == (S, 1) and out.dtype == jnp.float32
    assert bool(jnp.all(jnp.isfinite(out)))
    print("KERNEL_OK")
</pallas_src>

<mosaic_0001>
module attributes {stable_mosaic.version = 11 : i64} {
  func.func @_encoder_kernel(%arg0: i32, %arg1: memref<16x128xf32, #tpu.memory_space<vmem>>, %arg2: memref<16x16xf32, #tpu.memory_space<vmem>>, %arg3: memref<128x384xf32, #tpu.memory_space<vmem>>, %arg4: memref<1x384xf32, #tpu.memory_space<vmem>>, %arg5: memref<128x128xf32, #tpu.memory_space<vmem>>, %arg6: memref<1x128xf32, #tpu.memory_space<vmem>>, %arg7: memref<1x128xf32, #tpu.memory_space<vmem>>, %arg8: memref<1x128xf32, #tpu.memory_space<vmem>>, %arg9: memref<128x256xf32, #tpu.memory_space<vmem>>, %arg10: memref<1x256xf32, #tpu.memory_space<vmem>>, %arg11: memref<256x128xf32, #tpu.memory_space<vmem>>, %arg12: memref<1x128xf32, #tpu.memory_space<vmem>>, %arg13: memref<1x128xf32, #tpu.memory_space<vmem>>, %arg14: memref<1x128xf32, #tpu.memory_space<vmem>>, %arg15: memref<16x128xf32, #tpu.memory_space<vmem>>) attributes {dimension_semantics = [#tpu.dimension_semantics<arbitrary>], iteration_bounds = array<i64: 1>, scalar_prefetch = 0 : i64, scratch_operands = 0 : i64, tpu.core_type = #tpu.core_type<tc>, window_params = [{pipeline_mode = #tpu.pipeline_mode<synchronous>, transform_indices = @transform_0, window_bounds = array<i64: 16, 128>}, {pipeline_mode = #tpu.pipeline_mode<synchronous>, transform_indices = @transform_1, window_bounds = array<i64: 16, 16>}, {pipeline_mode = #tpu.pipeline_mode<synchronous>, transform_indices = @transform_2, window_bounds = array<i64: 128, 384>}, {pipeline_mode = #tpu.pipeline_mode<synchronous>, transform_indices = @transform_3, window_bounds = array<i64: 1, 384>}, {pipeline_mode = #tpu.pipeline_mode<synchronous>, transform_indices = @transform_4, window_bounds = array<i64: 128, 128>}, {pipeline_mode = #tpu.pipeline_mode<synchronous>, transform_indices = @transform_5, window_bounds = array<i64: 1, 128>}, {pipeline_mode = #tpu.pipeline_mode<synchronous>, transform_indices = @transform_6, window_bounds = array<i64: 1, 128>}, {pipeline_mode = #tpu.pipeline_mode<synchronous>, transform_indices = @transform_7, window_bounds = array<i64: 1, 128>}, {pipeline_mode = #tpu.pipeline_mode<synchronous>, transform_indices = @transform_8, window_bounds = array<i64: 128, 256>}, {pipeline_mode = #tpu.pipeline_mode<synchronous>, transform_indices = @transform_9, window_bounds = array<i64: 1, 256>}, {pipeline_mode = #tpu.pipeline_mode<synchronous>, transform_indices = @transform_10, window_bounds = array<i64: 256, 128>}, {pipeline_mode = #tpu.pipeline_mode<synchronous>, transform_indices = @transform_11, window_bounds = array<i64: 1, 128>}, {pipeline_mode = #tpu.pipeline_mode<synchronous>, transform_indices = @transform_12, window_bounds = array<i64: 1, 128>}, {pipeline_mode = #tpu.pipeline_mode<synchronous>, transform_indices = @transform_13, window_bounds = array<i64: 1, 128>}, {pipeline_mode = #tpu.pipeline_mode<synchronous>, transform_indices = @transform_14, window_bounds = array<i64: 16, 128>}]} {
    %c0 = arith.constant 0 : index
    %c0_0 = arith.constant 0 : index
    %0 = vector.load %arg1[%c0, %c0_0] : memref<16x128xf32, #tpu.memory_space<vmem>>, vector<16x128xf32>
    %c0_1 = arith.constant 0 : index
    %c0_2 = arith.constant 0 : index
    %1 = vector.load %arg2[%c0_1, %c0_2] : memref<16x16xf32, #tpu.memory_space<vmem>>, vector<16x16xf32>
    %c0_3 = arith.constant 0 : index
    %c0_4 = arith.constant 0 : index
    %2 = vector.load %arg3[%c0_3, %c0_4] : memref<128x384xf32, #tpu.memory_space<vmem>>, vector<128x384xf32>
    %cst = arith.constant dense<0.000000e+00> : vector<16x384xf32>
    %3 = tpu.matmul %0, %2, %cst {dimension_numbers = #tpu.dot_dimension_numbers<[1], [0], [0], [1], [0, 0, 1, 1], [], []>} : vector<16x128xf32>, vector<128x384xf32>, vector<16x384xf32> -> vector<16x384xf32>
    %c0_5 = arith.constant 0 : index
    %c0_6 = arith.constant 0 : index
    %4 = vector.load %arg4[%c0_5, %c0_6] : memref<1x384xf32, #tpu.memory_space<vmem>>, vector<1x384xf32>
    %5 = vector.broadcast %4 : vector<1x384xf32> to vector<16x384xf32>
    %6 = arith.addf %3, %5 : vector<16x384xf32>
    %7 = vector.extract_strided_slice %6 {offsets = [0, 0], sizes = [16, 64], strides = [1, 1]} : vector<16x384xf32> to vector<16x64xf32>
    %cst_7 = arith.constant 1.250000e-01 : f32
    %8 = vector.broadcast %cst_7 : f32 to vector<16x64xf32>
    %9 = arith.mulf %7, %8 : vector<16x64xf32>
    %10 = vector.extract_strided_slice %6 {offsets = [0, 128], sizes = [16, 64], strides = [1, 1]} : vector<16x384xf32> to vector<16x64xf32>
    %11 = vector.extract_strided_slice %6 {offsets = [0, 256], sizes = [16, 64], strides = [1, 1]} : vector<16x384xf32> to vector<16x64xf32>
    %cst_8 = arith.constant dense<0.000000e+00> : vector<16x16xf32>
    %12 = tpu.matmul %9, %10, %cst_8 {dimension_numbers = #tpu.dot_dimension_numbers<[1], [1], [0], [0], [0, 0, 1, 0], [], []>} : vector<16x64xf32>, vector<16x64xf32>, vector<16x16xf32> -> vector<16x16xf32>
    %13 = arith.addf %12, %1 : vector<16x16xf32>
    %cst_9 = arith.constant dense<0xFF800000> : vector<16xf32>
    %14 = vector.multi_reduction <maximumf>, %13, %cst_9 [1] : vector<16x16xf32> to vector<16xf32>
    %15 = vector.shape_cast %14 : vector<16xf32> to vector<16x1xf32>
    %16 = vector.broadcast %15 : vector<16x1xf32> to vector<16x16xf32>
    %17 = arith.subf %13, %16 : vector<16x16xf32>
    %18 = math.exp %17 : vector<16x16xf32>
    %cst_10 = arith.constant dense<0.000000e+00> : vector<16xf32>
    %19 = vector.multi_reduction <add>, %18, %cst_10 [1] : vector<16x16xf32> to vector<16xf32>
    %20 = vector.shape_cast %19 : vector<16xf32> to vector<16x1xf32>
    %21 = tpu.reciprocal %20 {approx = true} : vector<16x1xf32> -> vector<16x1xf32>
    %22 = vector.broadcast %21 : vector<16x1xf32> to vector<16x16xf32>
    %23 = arith.mulf %18, %22 : vector<16x16xf32>
    %cst_11 = arith.constant dense<0.000000e+00> : vector<16x64xf32>
    %24 = tpu.matmul %23, %11, %cst_11 {dimension_numbers = #tpu.dot_dimension_numbers<[1], [0], [0], [1], [0, 0, 1, 1], [], []>} : vector<16x16xf32>, vector<16x64xf32>, vector<16x64xf32> -> vector<16x64xf32>
    %25 = vector.extract_strided_slice %6 {offsets = [0, 64], sizes = [16, 64], strides = [1, 1]} : vector<16x384xf32> to vector<16x64xf32>
    %cst_12 = arith.constant 1.250000e-01 : f32
    %26 = vector.broadcast %cst_12 : f32 to vector<16x64xf32>
    %27 = arith.mulf %25, %26 : vector<16x64xf32>
    %28 = vector.extract_strided_slice %6 {offsets = [0, 192], sizes = [16, 64], strides = [1, 1]} : vector<16x384xf32> to vector<16x64xf32>
    %29 = vector.extract_strided_slice %6 {offsets = [0, 320], sizes = [16, 64], strides = [1, 1]} : vector<16x384xf32> to vector<16x64xf32>
    %cst_13 = arith.constant dense<0.000000e+00> : vector<16x16xf32>
    %30 = tpu.matmul %27, %28, %cst_13 {dimension_numbers = #tpu.dot_dimension_numbers<[1], [1], [0], [0], [0, 0, 1, 0], [], []>} : vector<16x64xf32>, vector<16x64xf32>, vector<16x16xf32> -> vector<16x16xf32>
    %31 = arith.addf %30, %1 : vector<16x16xf32>
    %cst_14 = arith.constant dense<0xFF800000> : vector<16xf32>
    %32 = vector.multi_reduction <maximumf>, %31, %cst_14 [1] : vector<16x16xf32> to vector<16xf32>
    %33 = vector.shape_cast %32 : vector<16xf32> to vector<16x1xf32>
    %34 = vector.broadcast %33 : vector<16x1xf32> to vector<16x16xf32>
    %35 = arith.subf %31, %34 : vector<16x16xf32>
    %36 = math.exp %35 : vector<16x16xf32>
    %cst_15 = arith.constant dense<0.000000e+00> : vector<16xf32>
    %37 = vector.multi_reduction <add>, %36, %cst_15 [1] : vector<16x16xf32> to vector<16xf32>
    %38 = vector.shape_cast %37 : vector<16xf32> to vector<16x1xf32>
    %39 = tpu.reciprocal %38 {approx = true} : vector<16x1xf32> -> vector<16x1xf32>
    %40 = vector.broadcast %39 : vector<16x1xf32> to vector<16x16xf32>
    %41 = arith.mulf %36, %40 : vector<16x16xf32>
    %cst_16 = arith.constant dense<0.000000e+00> : vector<16x64xf32>
    %42 = tpu.matmul %41, %29, %cst_16 {dimension_numbers = #tpu.dot_dimension_numbers<[1], [0], [0], [1], [0, 0, 1, 1], [], []>} : vector<16x16xf32>, vector<16x64xf32>, vector<16x64xf32> -> vector<16x64xf32>
    %43 = tpu.concatenate %24, %42 in 1 : vector<16x64xf32>, vector<16x64xf32> -> vector<16x128xf32>
    %c0_17 = arith.constant 0 : index
    %c0_18 = arith.constant 0 : index
    %44 = vector.load %arg5[%c0_17, %c0_18] : memref<128x128xf32, #tpu.memory_space<vmem>>, vector<128x128xf32>
    %cst_19 = arith.constant dense<0.000000e+00> : vector<16x128xf32>
    %45 = tpu.matmul %43, %44, %cst_19 {dimension_numbers = #tpu.dot_dimension_numbers<[1], [0], [0], [1], [0, 0, 1, 1], [], []>} : vector<16x128xf32>, vector<128x128xf32>, vector<16x128xf32> -> vector<16x128xf32>
    %c0_20 = arith.constant 0 : index
    %c0_21 = arith.constant 0 : index
    %46 = vector.load %arg6[%c0_20, %c0_21] : memref<1x128xf32, #tpu.memory_space<vmem>>, vector<1x128xf32>
    %47 = vector.broadcast %46 : vector<1x128xf32> to vector<16x128xf32>
    %48 = arith.addf %45, %47 : vector<16x128xf32>
    %49 = arith.addf %0, %48 : vector<16x128xf32>
    %c0_22 = arith.constant 0 : index
    %c0_23 = arith.constant 0 : index
    %50 = vector.load %arg7[%c0_22, %c0_23] : memref<1x128xf32, #tpu.memory_space<vmem>>, vector<1x128xf32>
    %c0_24 = arith.constant 0 : index
    %c0_25 = arith.constant 0 : index
    %51 = vector.load %arg8[%c0_24, %c0_25] : memref<1x128xf32, #tpu.memory_space<vmem>>, vector<1x128xf32>
    %cst_26 = arith.constant dense<0.000000e+00> : vector<16xf32>
    %52 = vector.multi_reduction <add>, %49, %cst_26 [1] : vector<16x128xf32> to vector<16xf32>
    %53 = vector.shape_cast %52 : vector<16xf32> to vector<16x1xf32>
    %cst_27 = arith.constant 1.280000e+02 : f32
    %54 = vector.broadcast %cst_27 : f32 to vector<16x1xf32>
    %55 = arith.divf %53, %54 : vector<16x1xf32>
    %56 = vector.broadcast %55 : vector<16x1xf32> to vector<16x128xf32>
    %57 = arith.subf %49, %56 : vector<16x128xf32>
    %58 = arith.mulf %57, %57 : vector<16x128xf32>
    %cst_28 = arith.constant dense<0.000000e+00> : vector<16xf32>
    %59 = vector.multi_reduction <add>, %58, %cst_28 [1] : vector<16x128xf32> to vector<16xf32>
    %60 = vector.shape_cast %59 : vector<16xf32> to vector<16x1xf32>
    %cst_29 = arith.constant 1.280000e+02 : f32
    %61 = vector.broadcast %cst_29 : f32 to vector<16x1xf32>
    %62 = arith.divf %60, %61 : vector<16x1xf32>
    %63 = vector.broadcast %55 : vector<16x1xf32> to vector<16x128xf32>
    %64 = arith.subf %49, %63 : vector<16x128xf32>
    %cst_30 = arith.constant 9.99999974E-6 : f32
    %65 = vector.broadcast %cst_30 : f32 to vector<16x1xf32>
    %66 = arith.addf %62, %65 : vector<16x1xf32>
    %67 = math.rsqrt %66 : vector<16x1xf32>
    %68 = vector.broadcast %67 : vector<16x1xf32> to vector<16x128xf32>
    %69 = arith.mulf %64, %68 : vector<16x128xf32>
    %70 = vector.broadcast %50 : vector<1x128xf32> to vector<16x128xf32>
    %71 = arith.mulf %69, %70 : vector<16x128xf32>
    %72 = vector.broadcast %51 : vector<1x128xf32> to vector<16x128xf32>
    %73 = arith.addf %71, %72 : vector<16x128xf32>
    %c0_31 = arith.constant 0 : index
    %c0_32 = arith.constant 0 : index
    %74 = vector.load %arg9[%c0_31, %c0_32] : memref<128x256xf32, #tpu.memory_space<vmem>>, vector<128x256xf32>
    %cst_33 = arith.constant dense<0.000000e+00> : vector<16x256xf32>
    %75 = tpu.matmul %73, %74, %cst_33 {dimension_numbers = #tpu.dot_dimension_numbers<[1], [0], [0], [1], [0, 0, 1, 1], [], []>} : vector<16x128xf32>, vector<128x256xf32>, vector<16x256xf32> -> vector<16x256xf32>
    %c0_34 = arith.constant 0 : index
    %c0_35 = arith.constant 0 : index
    %76 = vector.load %arg10[%c0_34, %c0_35] : memref<1x256xf32, #tpu.memory_space<vmem>>, vector<1x256xf32>
    %77 = vector.broadcast %76 : vector<1x256xf32> to vector<16x256xf32>
    %78 = arith.addf %75, %77 : vector<16x256xf32>
    %cst_36 = arith.constant 0.000000e+00 : f32
    %79 = vector.broadcast %cst_36 : f32 to vector<16x256xf32>
    %80 = arith.maximumf %78, %79 : vector<16x256xf32>
    %c0_37 = arith.constant 0 : index
    %c0_38 = arith.constant 0 : index
    %81 = vector.load %arg11[%c0_37, %c0_38] : memref<256x128xf32, #tpu.memory_space<vmem>>, vector<256x128xf32>
    %cst_39 = arith.constant dense<0.000000e+00> : vector<16x128xf32>
    %82 = tpu.matmul %80, %81, %cst_39 {dimension_numbers = #tpu.dot_dimension_numbers<[1], [0], [0], [1], [0, 0, 1, 1], [], []>} : vector<16x256xf32>, vector<256x128xf32>, vector<16x128xf32> -> vector<16x128xf32>
    %c0_40 = arith.constant 0 : index
    %c0_41 = arith.constant 0 : index
    %83 = vector.load %arg12[%c0_40, %c0_41] : memref<1x128xf32, #tpu.memory_space<vmem>>, vector<1x128xf32>
    %84 = vector.broadcast %83 : vector<1x128xf32> to vector<16x128xf32>
    %85 = arith.addf %82, %84 : vector<16x128xf32>
    %86 = arith.addf %73, %85 : vector<16x128xf32>
    %c0_42 = arith.constant 0 : index
    %c0_43 = arith.constant 0 : index
    %87 = vector.load %arg13[%c0_42, %c0_43] : memref<1x128xf32, #tpu.memory_space<vmem>>, vector<1x128xf32>
    %c0_44 = arith.constant 0 : index
    %c0_45 = arith.constant 0 : index
    %88 = vector.load %arg14[%c0_44, %c0_45] : memref<1x128xf32, #tpu.memory_space<vmem>>, vector<1x128xf32>
    %cst_46 = arith.constant dense<0.000000e+00> : vector<16xf32>
    %89 = vector.multi_reduction <add>, %86, %cst_46 [1] : vector<16x128xf32> to vector<16xf32>
    %90 = vector.shape_cast %89 : vector<16xf32> to vector<16x1xf32>
    %cst_47 = arith.constant 1.280000e+02 : f32
    %91 = vector.broadcast %cst_47 : f32 to vector<16x1xf32>
    %92 = arith.divf %90, %91 : vector<16x1xf32>
    %93 = vector.broadcast %92 : vector<16x1xf32> to vector<16x128xf32>
    %94 = arith.subf %86, %93 : vector<16x128xf32>
    %95 = arith.mulf %94, %94 : vector<16x128xf32>
    %cst_48 = arith.constant dense<0.000000e+00> : vector<16xf32>
    %96 = vector.multi_reduction <add>, %95, %cst_48 [1] : vector<16x128xf32> to vector<16xf32>
    %97 = vector.shape_cast %96 : vector<16xf32> to vector<16x1xf32>
    %cst_49 = arith.constant 1.280000e+02 : f32
    %98 = vector.broadcast %cst_49 : f32 to vector<16x1xf32>
    %99 = arith.divf %97, %98 : vector<16x1xf32>
    %100 = vector.broadcast %92 : vector<16x1xf32> to vector<16x128xf32>
    %101 = arith.subf %86, %100 : vector<16x128xf32>
    %cst_50 = arith.constant 9.99999974E-6 : f32
    %102 = vector.broadcast %cst_50 : f32 to vector<16x1xf32>
    %103 = arith.addf %99, %102 : vector<16x1xf32>
    %104 = math.rsqrt %103 : vector<16x1xf32>
    %105 = vector.broadcast %104 : vector<16x1xf32> to vector<16x128xf32>
    %106 = arith.mulf %101, %105 : vector<16x128xf32>
    %107 = vector.broadcast %87 : vector<1x128xf32> to vector<16x128xf32>
    %108 = arith.mulf %106, %107 : vector<16x128xf32>
    %109 = vector.broadcast %88 : vector<1x128xf32> to vector<16x128xf32>
    %110 = arith.addf %108, %109 : vector<16x128xf32>
    %c0_51 = arith.constant 0 : index
    %c0_52 = arith.constant 0 : index
    %111 = vector.load %arg15[%c0_51, %c0_52] : memref<16x128xf32, #tpu.memory_space<vmem>>, vector<16x128xf32>
    tpu.vector_store %arg15[%c0_51, %c0_52], %110 {strides = array<i32>} : memref<16x128xf32, #tpu.memory_space<vmem>>, vector<16x128xf32>,
    return
  }
  func.func @transform_0(%arg0: i32) -> (i32, i32) {
    %c0_i32 = arith.constant 0 : i32
    %c0_i32_0 = arith.constant 0 : i32
    %c0_i32_1 = arith.constant 0 : i32
    return %c0_i32, %c0_i32_0 : i32, i32
  }
  func.func @transform_1(%arg0: i32) -> (i32, i32) {
    %c0_i32 = arith.constant 0 : i32
    %c0_i32_0 = arith.constant 0 : i32
    %c0_i32_1 = arith.constant 0 : i32
    return %c0_i32, %c0_i32_0 : i32, i32
  }
  func.func @transform_2(%arg0: i32) -> (i32, i32) {
    %c0_i32 = arith.constant 0 : i32
    %c0_i32_0 = arith.constant 0 : i32
    %c0_i32_1 = arith.constant 0 : i32
    return %c0_i32, %c0_i32_0 : i32, i32
  }
  func.func @transform_3(%arg0: i32) -> (i32, i32) {
    %c0_i32 = arith.constant 0 : i32
    %c0_i32_0 = arith.constant 0 : i32
    %c0_i32_1 = arith.constant 0 : i32
    return %c0_i32, %c0_i32_0 : i32, i32
  }
  func.func @transform_4(%arg0: i32) -> (i32, i32) {
    %c0_i32 = arith.constant 0 : i32
    %c0_i32_0 = arith.constant 0 : i32
    %c0_i32_1 = arith.constant 0 : i32
    return %c0_i32, %c0_i32_0 : i32, i32
  }
  func.func @transform_5(%arg0: i32) -> (i32, i32) {
    %c0_i32 = arith.constant 0 : i32
    %c0_i32_0 = arith.constant 0 : i32
    %c0_i32_1 = arith.constant 0 : i32
    return %c0_i32, %c0_i32_0 : i32, i32
  }
  func.func @transform_6(%arg0: i32) -> (i32, i32) {
    %c0_i32 = arith.constant 0 : i32
    %c0_i32_0 = arith.constant 0 : i32
    %c0_i32_1 = arith.constant 0 : i32
    return %c0_i32, %c0_i32_0 : i32, i32
  }
  func.func @transform_7(%arg0: i32) -> (i32, i32) {
    %c0_i32 = arith.constant 0 : i32
    %c0_i32_0 = arith.constant 0 : i32
    %c0_i32_1 = arith.constant 0 : i32
    return %c0_i32, %c0_i32_0 : i32, i32
  }
  func.func @transform_8(%arg0: i32) -> (i32, i32) {
    %c0_i32 = arith.constant 0 : i32
    %c0_i32_0 = arith.constant 0 : i32
    %c0_i32_1 = arith.constant 0 : i32
    return %c0_i32, %c0_i32_0 : i32, i32
  }
  func.func @transform_9(%arg0: i32) -> (i32, i32) {
    %c0_i32 = arith.constant 0 : i32
    %c0_i32_0 = arith.constant 0 : i32
    %c0_i32_1 = arith.constant 0 : i32
    return %c0_i32, %c0_i32_0 : i32, i32
  }
  func.func @transform_10(%arg0: i32) -> (i32, i32) {
    %c0_i32 = arith.constant 0 : i32
    %c0_i32_0 = arith.constant 0 : i32
    %c0_i32_1 = arith.constant 0 : i32
    return %c0_i32, %c0_i32_0 : i32, i32
  }
  func.func @transform_11(%arg0: i32) -> (i32, i32) {
    %c0_i32 = arith.constant 0 : i32
    %c0_i32_0 = arith.constant 0 : i32
    %c0_i32_1 = arith.constant 0 : i32
    return %c0_i32, %c0_i32_0 : i32, i32
  }
  func.func @transform_12(%arg0: i32) -> (i32, i32) {
    %c0_i32 = arith.constant 0 : i32
    %c0_i32_0 = arith.constant 0 : i32
    %c0_i32_1 = arith.constant 0 : i32
    return %c0_i32, %c0_i32_0 : i32, i32
  }
  func.func @transform_13(%arg0: i32) -> (i32, i32) {
    %c0_i32 = arith.constant 0 : i32
    %c0_i32_0 = arith.constant 0 : i32
    %c0_i32_1 = arith.constant 0 : i32
    return %c0_i32, %c0_i32_0 : i32, i32
  }
  func.func @transform_14(%arg0: i32) -> (i32, i32) {
    %c0_i32 = arith.constant 0 : i32
    %c0_i32_0 = arith.constant 0 : i32
    %c0_i32_1 = arith.constant 0 : i32
    return %c0_i32, %c0_i32_0 : i32, i32
  }
}

module attributes {stable_mosaic.version = 11 : i64} {
  func.func @_conv_lstm_head_kernel(%arg0: i32, %arg1: memref<8x130x8xf32, #tpu.memory_space<vmem>>, %arg2: memref<3x8x32xf32, #tpu.memory_space<vmem>>, %arg3: memref<1x32xf32, #tpu.memory_space<vmem>>, %arg4: memref<3x32x18xf32, #tpu.memory_space<vmem>>, %arg5: memref<1x18xf32, #tpu.memory_space<vmem>>, %arg6: memref<128x128xf32, #tpu.memory_space<vmem>>, %arg7: memref<32x128xf32, #tpu.memory_space<vmem>>, %arg8: memref<1x128xf32, #tpu.memory_space<vmem>>, %arg9: memref<32x128xf32, #tpu.memory_space<vmem>>, %arg10: memref<32x128xf32, #tpu.memory_space<vmem>>, %arg11: memref<1x128xf32, #tpu.memory_space<vmem>>, %arg12: memref<32x256xf32, #tpu.memory_space<vmem>>, %arg13: memref<1x256xf32, #tpu.memory_space<vmem>>, %arg14: memref<256x1xf32, #tpu.memory_space<vmem>>, %arg15: memref<1x1xf32, #tpu.memory_space<vmem>>, %arg16: memref<8x1xf32, #tpu.memory_space<vmem>>, %arg17: memref<8x144x32xf32, #tpu.memory_space<vmem>>, %arg18: memref<18x8x128xf32, #tpu.memory_space<vmem>>, %arg19: memref<18x8x32xf32, #tpu.memory_space<vmem>>, %arg20: memref<18x8x128xf32, #tpu.memory_space<vmem>>) attributes {dimension_semantics = [#tpu.dimension_semantics<arbitrary>], iteration_bounds = array<i64: 1>, scalar_prefetch = 0 : i64, scratch_operands = 4 : i64, tpu.core_type = #tpu.core_type<tc>, window_params = [{pipeline_mode = #tpu.pipeline_mode<synchronous>, transform_indices = @transform_0, window_bounds = array<i64: 8, 130, 8>}, {pipeline_mode = #tpu.pipeline_mode<synchronous>, transform_indices = @transform_1, window_bounds = array<i64: 3, 8, 32>}, {pipeline_mode = #tpu.pipeline_mode<synchronous>, transform_indices = @transform_2, window_bounds = array<i64: 1, 32>}, {pipeline_mode = #tpu.pipeline_mode<synchronous>, transform_indices = @transform_3, window_bounds = array<i64: 3, 32, 18>}, {pipeline_mode = #tpu.pipeline_mode<synchronous>, transform_indices = @transform_4, window_bounds = array<i64: 1, 18>}, {pipeline_mode = #tpu.pipeline_mode<synchronous>, transform_indices = @transform_5, window_bounds = array<i64: 128, 128>}, {pipeline_mode = #tpu.pipeline_mode<synchronous>, transform_indices = @transform_6, window_bounds = array<i64: 32, 128>}, {pipeline_mode = #tpu.pipeline_mode<synchronous>, transform_indices = @transform_7, window_bounds = array<i64: 1, 128>}, {pipeline_mode = #tpu.pipeline_mode<synchronous>, transform_indices = @transform_8, window_bounds = array<i64: 32, 128>}, {pipeline_mode = #tpu.pipeline_mode<synchronous>, transform_indices = @transform_9, window_bounds = array<i64: 32, 128>}, {pipeline_mode = #tpu.pipeline_mode<synchronous>, transform_indices = @transform_10, window_bounds = array<i64: 1, 128>}, {pipeline_mode = #tpu.pipeline_mode<synchronous>, transform_indices = @transform_11, window_bounds = array<i64: 32, 256>}, {pipeline_mode = #tpu.pipeline_mode<synchronous>, transform_indices = @transform_12, window_bounds = array<i64: 1, 256>}, {pipeline_mode = #tpu.pipeline_mode<synchronous>, transform_indices = @transform_13, window_bounds = array<i64: 256, 1>}, {pipeline_mode = #tpu.pipeline_mode<synchronous>, transform_indices = @transform_14, window_bounds = array<i64: 1, 1>}, {pipeline_mode = #tpu.pipeline_mode<synchronous>, transform_indices = @transform_15, window_bounds = array<i64: 8, 1>}]} {
    %cst = arith.constant 0.000000e+00 : f32
    %0 = vector.broadcast %cst : f32 to vector<1024x32xf32>
    %c0 = arith.constant 0 : index
    %c0_0 = arith.constant 0 : index
    %c0_1 = arith.constant 0 : index
    %1 = vector.load %arg1[%c0, %c0_0, %c0_1] : memref<8x130x8xf32, #tpu.memory_space<vmem>>, vector<8x128x8xf32>
    %2 = vector.shape_cast %1 : vector<8x128x8xf32> to vector<1024x8xf32>
    %c0_2 = arith.constant 0 : index
    %c0_3 = arith.constant 0 : index
    %c0_4 = arith.constant 0 : index
    %3 = vector.load %arg2[%c0_2, %c0_3, %c0_4] : memref<3x8x32xf32, #tpu.memory_space<vmem>>, vector<1x8x32xf32>
    %4 = vector.shape_cast %3 : vector<1x8x32xf32> to vector<8x32xf32>
    %cst_5 = arith.constant dense<0.000000e+00> : vector<1024x32xf32>
    %5 = tpu.matmul %2, %4, %cst_5 {dimension_numbers = #tpu.dot_dimension_numbers<[1], [0], [0], [1], [0, 0, 1, 1], [], []>} : vector<1024x8xf32>, vector<8x32xf32>, vector<1024x32xf32> -> vector<1024x32xf32>
    %6 = arith.addf %0, %5 : vector<1024x32xf32>
    %c0_6 = arith.constant 0 : index
    %c1 = arith.constant 1 : index
    %c0_7 = arith.constant 0 : index
    %7 = vector.load %arg1[%c0_6, %c1, %c0_7] : memref<8x130x8xf32, #tpu.memory_space<vmem>>, vector<8x128x8xf32>
    %8 = vector.shape_cast %7 : vector<8x128x8xf32> to vector<1024x8xf32>
    %c1_8 = arith.constant 1 : index
    %c0_9 = arith.constant 0 : index
    %c0_10 = arith.constant 0 : index
    %9 = vector.load %arg2[%c1_8, %c0_9, %c0_10] : memref<3x8x32xf32, #tpu.memory_space<vmem>>, vector<1x8x32xf32>
    %10 = vector.shape_cast %9 : vector<1x8x32xf32> to vector<8x32xf32>
    %cst_11 = arith.constant dense<0.000000e+00> : vector<1024x32xf32>
    %11 = tpu.matmul %8, %10, %cst_11 {dimension_numbers = #tpu.dot_dimension_numbers<[1], [0], [0], [1], [0, 0, 1, 1], [], []>} : vector<1024x8xf32>, vector<8x32xf32>, vector<1024x32xf32> -> vector<1024x32xf32>
    %12 = arith.addf %6, %11 : vector<1024x32xf32>
    %c0_12 = arith.constant 0 : index
    %c2 = arith.constant 2 : index
    %c0_13 = arith.constant 0 : index
    %13 = vector.load %arg1[%c0_12, %c2, %c0_13] : memref<8x130x8xf32, #tpu.memory_space<vmem>>, vector<8x128x8xf32>
    %14 = vector.shape_cast %13 : vector<8x128x8xf32> to vector<1024x8xf32>
    %c2_14 = arith.constant 2 : index
    %c0_15 = arith.constant 0 : index
    %c0_16 = arith.constant 0 : index
    %15 = vector.load %arg2[%c2_14, %c0_15, %c0_16] : memref<3x8x32xf32, #tpu.memory_space<vmem>>, vector<1x8x32xf32>
    %16 = vector.shape_cast %15 : vector<1x8x32xf32> to vector<8x32xf32>
    %cst_17 = arith.constant dense<0.000000e+00> : vector<1024x32xf32>
    %17 = tpu.matmul %14, %16, %cst_17 {dimension_numbers = #tpu.dot_dimension_numbers<[1], [0], [0], [1], [0, 0, 1, 1], [], []>} : vector<1024x8xf32>, vector<8x32xf32>, vector<1024x32xf32> -> vector<1024x32xf32>
    %18 = arith.addf %12, %17 : vector<1024x32xf32>
    %c0_18 = arith.constant 0 : index
    %c0_19 = arith.constant 0 : index
    %19 = vector.load %arg3[%c0_18, %c0_19] : memref<1x32xf32, #tpu.memory_space<vmem>>, vector<1x32xf32>
    %20 = vector.broadcast %19 : vector<1x32xf32> to vector<1024x32xf32>
    %21 = arith.addf %18, %20 : vector<1024x32xf32>
    %cst_20 = arith.constant 0.000000e+00 : f32
    %22 = vector.broadcast %cst_20 : f32 to vector<1024x32xf32>
    %23 = arith.cmpf oge, %21, %22 : vector<1024x32xf32>
    %cst_21 = arith.constant 1.000000e+00 : f32
    %24 = vector.broadcast %cst_21 : f32 to vector<1024x32xf32>
    %25 = arith.mulf %24, %21 : vector<1024x32xf32>
    %26 = arith.select %23, %21, %25 : vector<1024x32xi1>, vector<1024x32xf32>
    %cst_22 = arith.constant 0.000000e+00 : f32
    %27 = vector.broadcast %cst_22 : f32 to vector<8x144x32xf32>
    %c0_23 = arith.constant 0 : index
    %c0_24 = arith.constant 0 : index
    %c0_25 = arith.constant 0 : index
    %28 = vector.load %arg17[%c0_23, %c0_24, %c0_25] : memref<8x144x32xf32, #tpu.memory_space<vmem>>, vector<8x144x32xf32>
    tpu.vector_store %arg17[%c0_23, %c0_24, %c0_25], %27 {strides = array<i32>} : memref<8x144x32xf32, #tpu.memory_space<vmem>>, vector<8x144x32xf32>,
    %29 = vector.shape_cast %26 : vector<1024x32xf32> to vector<8x128x32xf32>
    %c0_26 = arith.constant 0 : index
    %c8 = arith.constant 8 : index
    %c0_27 = arith.constant 0 : index
    %30 = vector.load %arg17[%c0_26, %c8, %c0_27] : memref<8x144x32xf32, #tpu.memory_space<vmem>>, vector<8x128x32xf32>
    tpu.vector_store %arg17[%c0_26, %c8, %c0_27], %29 {strides = array<i32>} : memref<8x144x32xf32, #tpu.memory_space<vmem>>, vector<8x128x32xf32>,
    %cst_28 = arith.constant 0.000000e+00 : f32
    %31 = vector.broadcast %cst_28 : f32 to vector<1024x18xf32>
    %c0_29 = arith.constant 0 : index
    %c7 = arith.constant 7 : index
    %c0_30 = arith.constant 0 : index
    %32 = vector.load %arg17[%c0_29, %c7, %c0_30] : memref<8x144x32xf32, #tpu.memory_space<vmem>>, vector<8x128x32xf32>
    %33 = vector.shape_cast %32 : vector<8x128x32xf32> to vector<1024x32xf32>
    %c0_31 = arith.constant 0 : index
    %c0_32 = arith.constant 0 : index
    %c0_33 = arith.constant 0 : index
    %34 = vector.load %arg4[%c0_31, %c0_32, %c0_33] : memref<3x32x18xf32, #tpu.memory_space<vmem>>, vector<1x32x18xf32>
    %35 = vector.shape_cast %34 : vector<1x32x18xf32> to vector<32x18xf32>
    %cst_34 = arith.constant dense<0.000000e+00> : vector<1024x18xf32>
    %36 = tpu.matmul %33, %35, %cst_34 {dimension_numbers = #tpu.dot_dimension_numbers<[1], [0], [0], [1], [0, 0, 1, 1], [], []>} : vector<1024x32xf32>, vector<32x18xf32>, vector<1024x18xf32> -> vector<1024x18xf32>
    %37 = arith.addf %31, %36 : vector<1024x18xf32>
    %c0_35 = arith.constant 0 : index
    %c8_36 = arith.constant 8 : index
    %c0_37 = arith.constant 0 : index
    %38 = vector.load %arg17[%c0_35, %c8_36, %c0_37] : memref<8x144x32xf32, #tpu.memory_space<vmem>>, vector<8x128x32xf32>
    %39 = vector.shape_cast %38 : vector<8x128x32xf32> to vector<1024x32xf32>
    %c1_38 = arith.constant 1 : index
    %c0_39 = arith.constant 0 : index
    %c0_40 = arith.constant 0 : index
    %40 = vector.load %arg4[%c1_38, %c0_39, %c0_40] : memref<3x32x18xf32, #tpu.memory_space<vmem>>, vector<1x32x18xf32>
    %41 = vector.shape_cast %40 : vector<1x32x18xf32> to vector<32x18xf32>
    %cst_41 = arith.constant dense<0.000000e+00> : vector<1024x18xf32>
    %42 = tpu.matmul %39, %41, %cst_41 {dimension_numbers = #tpu.dot_dimension_numbers<[1], [0], [0], [1], [0, 0, 1, 1], [], []>} : vector<1024x32xf32>, vector<32x18xf32>, vector<1024x18xf32> -> vector<1024x18xf32>
    %43 = arith.addf %37, %42 : vector<1024x18xf32>
    %c0_42 = arith.constant 0 : index
    %c9 = arith.constant 9 : index
    %c0_43 = arith.constant 0 : index
    %44 = vector.load %arg17[%c0_42, %c9, %c0_43] : memref<8x144x32xf32, #tpu.memory_space<vmem>>, vector<8x128x32xf32>
    %45 = vector.shape_cast %44 : vector<8x128x32xf32> to vector<1024x32xf32>
    %c2_44 = arith.constant 2 : index
    %c0_45 = arith.constant 0 : index
    %c0_46 = arith.constant 0 : index
    %46 = vector.load %arg4[%c2_44, %c0_45, %c0_46] : memref<3x32x18xf32, #tpu.memory_space<vmem>>, vector<1x32x18xf32>
    %47 = vector.shape_cast %46 : vector<1x32x18xf32> to vector<32x18xf32>
    %cst_47 = arith.constant dense<0.000000e+00> : vector<1024x18xf32>
    %48 = tpu.matmul %45, %47, %cst_47 {dimension_numbers = #tpu.dot_dimension_numbers<[1], [0], [0], [1], [0, 0, 1, 1], [], []>} : vector<1024x32xf32>, vector<32x18xf32>, vector<1024x18xf32> -> vector<1024x18xf32>
    %49 = arith.addf %43, %48 : vector<1024x18xf32>
    %c0_48 = arith.constant 0 : index
    %c0_49 = arith.constant 0 : index
    %50 = vector.load %arg5[%c0_48, %c0_49] : memref<1x18xf32, #tpu.memory_space<vmem>>, vector<1x18xf32>
    %51 = vector.broadcast %50 : vector<1x18xf32> to vector<1024x18xf32>
    %52 = arith.addf %49, %51 : vector<1024x18xf32>
    %cst_50 = arith.constant 0.000000e+00 : f32
    %53 = vector.broadcast %cst_50 : f32 to vector<1024x18xf32>
    %54 = arith.cmpf oge, %52, %53 : vector<1024x18xf32>
    %cst_51 = arith.constant 1.000000e+00 : f32
    %55 = vector.broadcast %cst_51 : f32 to vector<1024x18xf32>
    %56 = arith.mulf %55, %52 : vector<1024x18xf32>
    %57 = arith.select %54, %52, %56 : vector<1024x18xi1>, vector<1024x18xf32>
    %c0_52 = arith.constant 0 : index
    %c0_53 = arith.constant 0 : index
    %58 = vector.load %arg6[%c0_52, %c0_53] : memref<128x128xf32, #tpu.memory_space<vmem>>, vector<128x128xf32>
    %c0_54 = arith.constant 0 : index
    %c0_55 = arith.constant 0 : index
    %59 = vector.load %arg8[%c0_54, %c0_55] : memref<1x128xf32, #tpu.memory_space<vmem>>, vector<1x128xf32>
    %60 = vector.extract_strided_slice %57 {offsets = [0, 0], sizes = [128, 18], strides = [1, 1]} : vector<1024x18xf32> to vector<128x18xf32>
    %cst_56 = arith.constant dense<0.000000e+00> : vector<18x128xf32>
    %61 = tpu.matmul %60, %58, %cst_56 {dimension_numbers = #tpu.dot_dimension_numbers<[0], [0], [1], [1], [0, 1, 1, 1], [], []>} : vector<128x18xf32>, vector<128x128xf32>, vector<18x128xf32> -> vector<18x128xf32>
    %62 = vector.broadcast %59 : vector<1x128xf32> to vector<18x128xf32>
    %63 = arith.addf %61, %62 : vector<18x128xf32>
    %c0_57 = arith.constant 0 : index
    %c0_58 = arith.constant 0 : index
    %c0_59 = arith.constant 0 : index
    %64 = vector.load %arg18[%c0_57, %c0_58, %c0_59] : memref<18x8x128xf32, #tpu.memory_space<vmem>>, vector<18x1x128xf32>
    %65 = vector.shape_cast %64 : vector<18x1x128xf32> to vector<18x128xf32>
    %66 = vector.shape_cast %63 : vector<18x128xf32> to vector<18x1x128xf32>
    tpu.vector_store %arg18[%c0_57, %c0_58, %c0_59], %66 {strides = array<i32>} : memref<18x8x128xf32, #tpu.memory_space<vmem>>, vector<18x1x128xf32>,
    %67 = vector.extract_strided_slice %57 {offsets = [128, 0], sizes = [128, 18], strides = [1, 1]} : vector<1024x18xf32> to vector<128x18xf32>
    %cst_60 = arith.constant dense<0.000000e+00> : vector<18x128xf32>
    %68 = tpu.matmul %67, %58, %cst_60 {dimension_numbers = #tpu.dot_dimension_numbers<[0], [0], [1], [1], [0, 1, 1, 1], [], []>} : vector<128x18xf32>, vector<128x128xf32>, vector<18x128xf32> -> vector<18x128xf32>
    %69 = vector.broadcast %59 : vector<1x128xf32> to vector<18x128xf32>
    %70 = arith.addf %68, %69 : vector<18x128xf32>
    %c0_61 = arith.constant 0 : index
    %c1_62 = arith.constant 1 : index
    %c0_63 = arith.constant 0 : index
    %71 = vector.load %arg18[%c0_61, %c1_62, %c0_63] : memref<18x8x128xf32, #tpu.memory_space<vmem>>, vector<18x1x128xf32>
    %72 = vector.shape_cast %71 : vector<18x1x128xf32> to vector<18x128xf32>
    %73 = vector.shape_cast %70 : vector<18x128xf32> to vector<18x1x128xf32>
    tpu.vector_store %arg18[%c0_61, %c1_62, %c0_63], %73 {strides = array<i32>} : memref<18x8x128xf32, #tpu.memory_space<vmem>>, vector<18x1x128xf32>,
    %74 = vector.extract_strided_slice %57 {offsets = [256, 0], sizes = [128, 18], strides = [1, 1]} : vector<1024x18xf32> to vector<128x18xf32>
    %cst_64 = arith.constant dense<0.000000e+00> : vector<18x128xf32>
    %75 = tpu.matmul %74, %58, %cst_64 {dimension_numbers = #tpu.dot_dimension_numbers<[0], [0], [1], [1], [0, 1, 1, 1], [], []>} : vector<128x18xf32>, vector<128x128xf32>, vector<18x128xf32> -> vector<18x128xf32>
    %76 = vector.broadcast %59 : vector<1x128xf32> to vector<18x128xf32>
    %77 = arith.addf %75, %76 : vector<18x128xf32>
    %c0_65 = arith.constant 0 : index
    %c2_66 = arith.constant 2 : index
    %c0_67 = arith.constant 0 : index
    %78 = vector.load %arg18[%c0_65, %c2_66, %c0_67] : memref<18x8x128xf32, #tpu.memory_space<vmem>>, vector<18x1x128xf32>
    %79 = vector.shape_cast %78 : vector<18x1x128xf32> to vector<18x128xf32>
    %80 = vector.shape_cast %77 : vector<18x128xf32> to vector<18x1x128xf32>
    tpu.vector_store %arg18[%c0_65, %c2_66, %c0_67], %80 {strides = array<i32>} : memref<18x8x128xf32, #tpu.memory_space<vmem>>, vector<18x1x128xf32>,
    %81 = vector.extract_strided_slice %57 {offsets = [384, 0], sizes = [128, 18], strides = [1, 1]} : vector<1024x18xf32> to vector<128x18xf32>
    %cst_68 = arith.constant dense<0.000000e+00> : vector<18x128xf32>
    %82 = tpu.matmul %81, %58, %cst_68 {dimension_numbers = #tpu.dot_dimension_numbers<[0], [0], [1], [1], [0, 1, 1, 1], [], []>} : vector<128x18xf32>, vector<128x128xf32>, vector<18x128xf32> -> vector<18x128xf32>
    %83 = vector.broadcast %59 : vector<1x128xf32> to vector<18x128xf32>
    %84 = arith.addf %82, %83 : vector<18x128xf32>
    %c0_69 = arith.constant 0 : index
    %c3 = arith.constant 3 : index
    %c0_70 = arith.constant 0 : index
    %85 = vector.load %arg18[%c0_69, %c3, %c0_70] : memref<18x8x128xf32, #tpu.memory_space<vmem>>, vector<18x1x128xf32>
    %86 = vector.shape_cast %85 : vector<18x1x128xf32> to vector<18x128xf32>
    %87 = vector.shape_cast %84 : vector<18x128xf32> to vector<18x1x128xf32>
    tpu.vector_store %arg18[%c0_69, %c3, %c0_70], %87 {strides = array<i32>} : memref<18x8x128xf32, #tpu.memory_space<vmem>>, vector<18x1x128xf32>,
    %88 = vector.extract_strided_slice %57 {offsets = [512, 0], sizes = [128, 18], strides = [1, 1]} : vector<1024x18xf32> to vector<128x18xf32>
    %cst_71 = arith.constant dense<0.000000e+00> : vector<18x128xf32>
    %89 = tpu.matmul %88, %58, %cst_71 {dimension_numbers = #tpu.dot_dimension_numbers<[0], [0], [1], [1], [0, 1, 1, 1], [], []>} : vector<128x18xf32>, vector<128x128xf32>, vector<18x128xf32> -> vector<18x128xf32>
    %90 = vector.broadcast %59 : vector<1x128xf32> to vector<18x128xf32>
    %91 = arith.addf %89, %90 : vector<18x128xf32>
    %c0_72 = arith.constant 0 : index
    %c4 = arith.constant 4 : index
    %c0_73 = arith.constant 0 : index
    %92 = vector.load %arg18[%c0_72, %c4, %c0_73] : memref<18x8x128xf32, #tpu.memory_space<vmem>>, vector<18x1x128xf32>
    %93 = vector.shape_cast %92 : vector<18x1x128xf32> to vector<18x128xf32>
    %94 = vector.shape_cast %91 : vector<18x128xf32> to vector<18x1x128xf32>
    tpu.vector_store %arg18[%c0_72, %c4, %c0_73], %94 {strides = array<i32>} : memref<18x8x128xf32, #tpu.memory_space<vmem>>, vector<18x1x128xf32>,
    %95 = vector.extract_strided_slice %57 {offsets = [640, 0], sizes = [128, 18], strides = [1, 1]} : vector<1024x18xf32> to vector<128x18xf32>
    %cst_74 = arith.constant dense<0.000000e+00> : vector<18x128xf32>
    %96 = tpu.matmul %95, %58, %cst_74 {dimension_numbers = #tpu.dot_dimension_numbers<[0], [0], [1], [1], [0, 1, 1, 1], [], []>} : vector<128x18xf32>, vector<128x128xf32>, vector<18x128xf32> -> vector<18x128xf32>
    %97 = vector.broadcast %59 : vector<1x128xf32> to vector<18x128xf32>
    %98 = arith.addf %96, %97 : vector<18x128xf32>
    %c0_75 = arith.constant 0 : index
    %c5 = arith.constant 5 : index
    %c0_76 = arith.constant 0 : index
    %99 = vector.load %arg18[%c0_75, %c5, %c0_76] : memref<18x8x128xf32, #tpu.memory_space<vmem>>, vector<18x1x128xf32>
    %100 = vector.shape_cast %99 : vector<18x1x128xf32> to vector<18x128xf32>
    %101 = vector.shape_cast %98 : vector<18x128xf32> to vector<18x1x128xf32>
    tpu.vector_store %arg18[%c0_75, %c5, %c0_76], %101 {strides = array<i32>} : memref<18x8x128xf32, #tpu.memory_space<vmem>>, vector<18x1x128xf32>,
    %102 = vector.extract_strided_slice %57 {offsets = [768, 0], sizes = [128, 18], strides = [1, 1]} : vector<1024x18xf32> to vector<128x18xf32>
    %cst_77 = arith.constant dense<0.000000e+00> : vector<18x128xf32>
    %103 = tpu.matmul %102, %58, %cst_77 {dimension_numbers = #tpu.dot_dimension_numbers<[0], [0], [1], [1], [0, 1, 1, 1], [], []>} : vector<128x18xf32>, vector<128x128xf32>, vector<18x128xf32> -> vector<18x128xf32>
    %104 = vector.broadcast %59 : vector<1x128xf32> to vector<18x128xf32>
    %105 = arith.addf %103, %104 : vector<18x128xf32>
    %c0_78 = arith.constant 0 : index
    %c6 = arith.constant 6 : index
    %c0_79 = arith.constant 0 : index
    %106 = vector.load %arg18[%c0_78, %c6, %c0_79] : memref<18x8x128xf32, #tpu.memory_space<vmem>>, vector<18x1x128xf32>
    %107 = vector.shape_cast %106 : vector<18x1x128xf32> to vector<18x128xf32>
    %108 = vector.shape_cast %105 : vector<18x128xf32> to vector<18x1x128xf32>
    tpu.vector_store %arg18[%c0_78, %c6, %c0_79], %108 {strides = array<i32>} : memref<18x8x128xf32, #tpu.memory_space<vmem>>, vector<18x1x128xf32>,
    %109 = vector.extract_strided_slice %57 {offsets = [896, 0], sizes = [128, 18], strides = [1, 1]} : vector<1024x18xf32> to vector<128x18xf32>
    %cst_80 = arith.constant dense<0.000000e+00> : vector<18x128xf32>
    %110 = tpu.matmul %109, %58, %cst_80 {dimension_numbers = #tpu.dot_dimension_numbers<[0], [0], [1], [1], [0, 1, 1, 1], [], []>} : vector<128x18xf32>, vector<128x128xf32>, vector<18x128xf32> -> vector<18x128xf32>
    %111 = vector.broadcast %59 : vector<1x128xf32> to vector<18x128xf32>
    %112 = arith.addf %110, %111 : vector<18x128xf32>
    %c0_81 = arith.constant 0 : index
    %c7_82 = arith.constant 7 : index
    %c0_83 = arith.constant 0 : index
    %113 = vector.load %arg18[%c0_81, %c7_82, %c0_83] : memref<18x8x128xf32, #tpu.memory_space<vmem>>, vector<18x1x128xf32>
    %114 = vector.shape_cast %113 : vector<18x1x128xf32> to vector<18x128xf32>
    %115 = vector.shape_cast %112 : vector<18x128xf32> to vector<18x1x128xf32>
    tpu.vector_store %arg18[%c0_81, %c7_82, %c0_83], %115 {strides = array<i32>} : memref<18x8x128xf32, #tpu.memory_space<vmem>>, vector<18x1x128xf32>,
    %c0_84 = arith.constant 0 : index
    %c0_85 = arith.constant 0 : index
    %116 = vector.load %arg7[%c0_84, %c0_85] : memref<32x128xf32, #tpu.memory_space<vmem>>, vector<32x128xf32>
    %cst_86 = arith.constant 0.000000e+00 : f32
    %117 = vector.broadcast %cst_86 : f32 to vector<8x32xf32>
    %c0_i32 = arith.constant 0 : i32
    %c18_i32 = arith.constant 18 : i32
    %118 = arith.addi %c0_i32, %c18_i32 : i32
    %c1_i32 = arith.constant 1 : i32
    %119:2 = scf.for %arg21 = %c0_i32 to %118 step %c1_i32 iter_args(%arg22 = %117, %arg23 = %117) -> (vector<8x32xf32>, vector<8x32xf32>)  : i32 {
      %153 = arith.index_cast %arg21 : i32 to index
      %c0_121 = arith.constant 0 : index
      %c0_122 = arith.constant 0 : index
      %154 = vector.load %arg18[%153, %c0_121, %c0_122] : memref<18x8x128xf32, #tpu.memory_space<vmem>>, vector<1x8x128xf32>
      %155 = vector.shape_cast %154 : vector<1x8x128xf32> to vector<8x128xf32>
      %cst_123 = arith.constant dense<0.000000e+00> : vector<8x128xf32>
      %156 = tpu.matmul %arg22, %116, %cst_123 {dimension_numbers = #tpu.dot_dimension_numbers<[1], [0], [0], [1], [0, 0, 1, 1], [], []>} : vector<8x32xf32>, vector<32x128xf32>, vector<8x128xf32> -> vector<8x128xf32>
      %157 = arith.addf %155, %156 : vector<8x128xf32>
      %158 = arith.negf %157 : vector<8x128xf32>
      %159 = math.exp %158 : vector<8x128xf32>
      %cst_124 = arith.constant 1.000000e+00 : f32
      %160 = vector.broadcast %cst_124 : f32 to vector<8x128xf32>
      %161 = arith.addf %160, %159 : vector<8x128xf32>
      %162 = arith.divf %160, %161 : vector<8x128xf32>
      %163 = math.tanh %157 : vector<8x128xf32>
      %164 = vector.extract_strided_slice %162 {offsets = [0, 0], sizes = [8, 32], strides = [1, 1]} : vector<8x128xf32> to vector<8x32xf32>
      %165 = vector.extract_strided_slice %162 {offsets = [0, 32], sizes = [8, 32], strides = [1, 1]} : vector<8x128xf32> to vector<8x32xf32>
      %166 = vector.extract_strided_slice %163 {offsets = [0, 64], sizes = [8, 32], strides = [1, 1]} : vector<8x128xf32> to vector<8x32xf32>
      %167 = vector.extract_strided_slice %162 {offsets = [0, 96], sizes = [8, 32], strides = [1, 1]} : vector<8x128xf32> to vector<8x32xf32>
      %168 = arith.mulf %165, %arg23 : vector<8x32xf32>
      %169 = arith.mulf %164, %166 : vector<8x32xf32>
      %170 = arith.addf %168, %169 : vector<8x32xf32>
      %171 = math.tanh %170 : vector<8x32xf32>
      %172 = arith.mulf %167, %171 : vector<8x32xf32>
      %173 = arith.index_cast %arg21 : i32 to index
      %c0_125 = arith.constant 0 : index
      %c0_126 = arith.constant 0 : index
      %174 = vector.load %arg19[%173, %c0_125, %c0_126] : memref<18x8x32xf32, #tpu.memory_space<vmem>>, vector<1x8x32xf32>
      %175 = vector.shape_cast %174 : vector<1x8x32xf32> to vector<8x32xf32>
      %176 = vector.shape_cast %172 : vector<8x32xf32> to vector<1x8x32xf32>
      tpu.vector_store %arg19[%173, %c0_125, %c0_126], %176 {strides = array<i32>} : memref<18x8x32xf32, #tpu.memory_space<vmem>>, vector<1x8x32xf32>,
      scf.yield %172, %170 : vector<8x32xf32>, vector<8x32xf32>
    }
    %c18_i32_87 = arith.constant 18 : i32
    %c0_88 = arith.constant 0 : index
    %c0_89 = arith.constant 0 : index
    %c0_90 = arith.constant 0 : index
    %120 = vector.load %arg19[%c0_88, %c0_89, %c0_90] : memref<18x8x32xf32, #tpu.memory_space<vmem>>, vector<18x8x32xf32>
    %121 = vector.shape_cast %120 : vector<18x8x32xf32> to vector<144x32xf32>
    %c0_91 = arith.constant 0 : index
    %c0_92 = arith.constant 0 : index
    %122 = vector.load %arg9[%c0_91, %c0_92] : memref<32x128xf32, #tpu.memory_space<vmem>>, vector<32x128xf32>
    %cst_93 = arith.constant dense<0.000000e+00> : vector<144x128xf32>
    %123 = tpu.matmul %121, %122, %cst_93 {dimension_numbers = #tpu.dot_dimension_numbers<[1], [0], [0], [1], [0, 0, 1, 1], [], []>} : vector<144x32xf32>, vector<32x128xf32>, vector<144x128xf32> -> vector<144x128xf32>
    %c0_94 = arith.constant 0 : index
    %c0_95 = arith.constant 0 : index
    %124 = vector.load %arg11[%c0_94, %c0_95] : memref<1x128xf32, #tpu.memory_space<vmem>>, vector<1x128xf32>
    %125 = vector.broadcast %124 : vector<1x128xf32> to vector<144x128xf32>
    %126 = arith.addf %123, %125 : vector<144x128xf32>
    %127 = vector.shape_cast %126 : vector<144x128xf32> to vector<18x8x128xf32>
    %c0_96 = arith.constant 0 : index
    %c0_97 = arith.constant 0 : index
    %c0_98 = arith.constant 0 : index
    %128 = vector.load %arg20[%c0_96, %c0_97, %c0_98] : memref<18x8x128xf32, #tpu.memory_space<vmem>>, vector<18x8x128xf32>
    tpu.vector_store %arg20[%c0_96, %c0_97, %c0_98], %127 {strides = array<i32>} : memref<18x8x128xf32, #tpu.memory_space<vmem>>, vector<18x8x128xf32>,
    %c0_99 = arith.constant 0 : index
    %c0_100 = arith.constant 0 : index
    %129 = vector.load %arg10[%c0_99, %c0_100] : memref<32x128xf32, #tpu.memory_space<vmem>>, vector<32x128xf32>
    %c0_i32_101 = arith.constant 0 : i32
    %c18_i32_102 = arith.constant 18 : i32
    %130 = arith.addi %c0_i32_101, %c18_i32_102 : i32
    %c1_i32_103 = arith.constant 1 : i32
    %131:2 = scf.for %arg21 = %c0_i32_101 to %130 step %c1_i32_103 iter_args(%arg22 = %117, %arg23 = %117) -> (vector<8x32xf32>, vector<8x32xf32>)  : i32 {
      %153 = arith.index_cast %arg21 : i32 to index
      %c0_121 = arith.constant 0 : index
      %c0_122 = arith.constant 0 : index
      %154 = vector.load %arg20[%153, %c0_121, %c0_122] : memref<18x8x128xf32, #tpu.memory_space<vmem>>, vector<1x8x128xf32>
      %155 = vector.shape_cast %154 : vector<1x8x128xf32> to vector<8x128xf32>
      %cst_123 = arith.constant dense<0.000000e+00> : vector<8x128xf32>
      %156 = tpu.matmul %arg22, %129, %cst_123 {dimension_numbers = #tpu.dot_dimension_numbers<[1], [0], [0], [1], [0, 0, 1, 1], [], []>} : vector<8x32xf32>, vector<32x128xf32>, vector<8x128xf32> -> vector<8x128xf32>
      %157 = arith.addf %155, %156 : vector<8x128xf32>
      %158 = arith.negf %157 : vector<8x128xf32>
      %159 = math.exp %158 : vector<8x128xf32>
      %cst_124 = arith.constant 1.000000e+00 : f32
      %160 = vector.broadcast %cst_124 : f32 to vector<8x128xf32>
      %161 = arith.addf %160, %159 : vector<8x128xf32>
      %162 = arith.divf %160, %161 : vector<8x128xf32>
      %163 = math.tanh %157 : vector<8x128xf32>
      %164 = vector.extract_strided_slice %162 {offsets = [0, 0], sizes = [8, 32], strides = [1, 1]} : vector<8x128xf32> to vector<8x32xf32>
      %165 = vector.extract_strided_slice %162 {offsets = [0, 32], sizes = [8, 32], strides = [1, 1]} : vector<8x128xf32> to vector<8x32xf32>
      %166 = vector.extract_strided_slice %163 {offsets = [0, 64], sizes = [8, 32], strides = [1, 1]} : vector<8x128xf32> to vector<8x32xf32>
      %167 = vector.extract_strided_slice %162 {offsets = [0, 96], sizes = [8, 32], strides = [1, 1]} : vector<8x128xf32> to vector<8x32xf32>
      %168 = arith.mulf %165, %arg23 : vector<8x32xf32>
      %169 = arith.mulf %164, %166 : vector<8x32xf32>
      %170 = arith.addf %168, %169 : vector<8x32xf32>
      %171 = math.tanh %170 : vector<8x32xf32>
      %172 = arith.mulf %167, %171 : vector<8x32xf32>
      scf.yield %172, %170 : vector<8x32xf32>, vector<8x32xf32>
    }
    %c18_i32_104 = arith.constant 18 : i32
    %cst_105 = arith.constant 0.000000e+00 : f32
    %132 = vector.broadcast %cst_105 : f32 to vector<8x32xf32>
    %133 = arith.cmpf oge, %131#0, %132 : vector<8x32xf32>
    %cst_106 = arith.constant 1.000000e+00 : f32
    %134 = vector.broadcast %cst_106 : f32 to vector<8x32xf32>
    %135 = arith.mulf %134, %131#0 : vector<8x32xf32>
    %136 = arith.select %133, %131#0, %135 : vector<8x32xi1>, vector<8x32xf32>
    %c0_107 = arith.constant 0 : index
    %c0_108 = arith.constant 0 : index
    %137 = vector.load %arg12[%c0_107, %c0_108] : memref<32x256xf32, #tpu.memory_space<vmem>>, vector<32x256xf32>
    %cst_109 = arith.constant dense<0.000000e+00> : vector<8x256xf32>
    %138 = tpu.matmul %136, %137, %cst_109 {dimension_numbers = #tpu.dot_dimension_numbers<[1], [0], [0], [1], [0, 0, 1, 1], [], []>} : vector<8x32xf32>, vector<32x256xf32>, vector<8x256xf32> -> vector<8x256xf32>
    %c0_110 = arith.constant 0 : index
    %c0_111 = arith.constant 0 : index
    %139 = vector.load %arg13[%c0_110, %c0_111] : memref<1x256xf32, #tpu.memory_space<vmem>>, vector<1x256xf32>
    %140 = vector.broadcast %139 : vector<1x256xf32> to vector<8x256xf32>
    %141 = arith.addf %138, %140 : vector<8x256xf32>
    %cst_112 = arith.constant 0.000000e+00 : f32
    %142 = vector.broadcast %cst_112 : f32 to vector<8x256xf32>
    %143 = arith.cmpf oge, %141, %142 : vector<8x256xf32>
    %cst_113 = arith.constant 1.000000e+00 : f32
    %144 = vector.broadcast %cst_113 : f32 to vector<8x256xf32>
    %145 = arith.mulf %144, %141 : vector<8x256xf32>
    %146 = arith.select %143, %141, %145 : vector<8x256xi1>, vector<8x256xf32>
    %c0_114 = arith.constant 0 : index
    %c0_115 = arith.constant 0 : index
    %147 = vector.load %arg14[%c0_114, %c0_115] : memref<256x1xf32, #tpu.memory_space<vmem>>, vector<256x1xf32>
    %cst_116 = arith.constant dense<0.000000e+00> : vector<8x1xf32>
    %148 = tpu.matmul %146, %147, %cst_116 {dimension_numbers = #tpu.dot_dimension_numbers<[1], [0], [0], [1], [0, 0, 1, 1], [], []>} : vector<8x256xf32>, vector<256x1xf32>, vector<8x1xf32> -> vector<8x1xf32>
    %c0_117 = arith.constant 0 : index
    %c0_118 = arith.constant 0 : index
    %149 = vector.load %arg15[%c0_117, %c0_118] : memref<1x1xf32, #tpu.memory_space<vmem>>, vector<1x1xf32>
    %150 = vector.broadcast %149 : vector<1x1xf32> to vector<8x1xf32>
    %151 = arith.addf %148, %150 : vector<8x1xf32>
    %c0_119 = arith.constant 0 : index
    %c0_120 = arith.constant 0 : index
    %152 = vector.load %arg16[%c0_119, %c0_120] : memref<8x1xf32, #tpu.memory_space<vmem>>, vector<8x1xf32>
    tpu.vector_store %arg16[%c0_119, %c0_120], %151 {strides = array<i32>} : memref<8x1xf32, #tpu.memory_space<vmem>>, vector<8x1xf32>,
    return
  }
  func.func @transform_0(%arg0: i32) -> (i32, i32, i32) {
    %c0_i32 = arith.constant 0 : i32
    %c0_i32_0 = arith.constant 0 : i32
    %c0_i32_1 = arith.constant 0 : i32
    %c0_i32_2 = arith.constant 0 : i32
    return %c0_i32, %c0_i32_0, %c0_i32_1 : i32, i32, i32
  }
  func.func @transform_1(%arg0: i32) -> (i32, i32, i32) {
    %c0_i32 = arith.constant 0 : i32
    %c0_i32_0 = arith.constant 0 : i32
    %c0_i32_1 = arith.constant 0 : i32
    %c0_i32_2 = arith.constant 0 : i32
    return %c0_i32, %c0_i32_0, %c0_i32_1 : i32, i32, i32
  }
  func.func @transform_2(%arg0: i32) -> (i32, i32) {
    %c0_i32 = arith.constant 0 : i32
    %c0_i32_0 = arith.constant 0 : i32
    %c0_i32_1 = arith.constant 0 : i32
    return %c0_i32, %c0_i32_0 : i32, i32
  }
  func.func @transform_3(%arg0: i32) -> (i32, i32, i32) {
    %c0_i32 = arith.constant 0 : i32
    %c0_i32_0 = arith.constant 0 : i32
    %c0_i32_1 = arith.constant 0 : i32
    %c0_i32_2 = arith.constant 0 : i32
    return %c0_i32, %c0_i32_0, %c0_i32_1 : i32, i32, i32
  }
  func.func @transform_4(%arg0: i32) -> (i32, i32) {
    %c0_i32 = arith.constant 0 : i32
    %c0_i32_0 = arith.constant 0 : i32
    %c0_i32_1 = arith.constant 0 : i32
    return %c0_i32, %c0_i32_0 : i32, i32
  }
  func.func @transform_5(%arg0: i32) -> (i32, i32) {
    %c0_i32 = arith.constant 0 : i32
    %c0_i32_0 = arith.constant 0 : i32
    %c0_i32_1 = arith.constant 0 : i32
    return %c0_i32, %c0_i32_0 : i32, i32
  }
  func.func @transform_6(%arg0: i32) -> (i32, i32) {
    %c0_i32 = arith.constant 0 : i32
    %c0_i32_0 = arith.constant 0 : i32
    %c0_i32_1 = arith.constant 0 : i32
    return %c0_i32, %c0_i32_0 : i32, i32
  }
  func.func @transform_7(%arg0: i32) -> (i32, i32) {
    %c0_i32 = arith.constant 0 : i32
    %c0_i32_0 = arith.constant 0 : i32
    %c0_i32_1 = arith.constant 0 : i32
    return %c0_i32, %c0_i32_0 : i32, i32
  }
  func.func @transform_8(%arg0: i32) -> (i32, i32) {
    %c0_i32 = arith.constant 0 : i32
    %c0_i32_0 = arith.constant 0 : i32
    %c0_i32_1 = arith.constant 0 : i32
    return %c0_i32, %c0_i32_0 : i32, i32
  }
  func.func @transform_9(%arg0: i32) -> (i32, i32) {
    %c0_i32 = arith.constant 0 : i32
    %c0_i32_0 = arith.constant 0 : i32
    %c0_i32_1 = arith.constant 0 : i32
    return %c0_i32, %c0_i32_0 : i32, i32
  }
  func.func @transform_10(%arg0: i32) -> (i32, i32) {
    %c0_i32 = arith.constant 0 : i32
    %c0_i32_0 = arith.constant 0 : i32
    %c0_i32_1 = arith.constant 0 : i32
    return %c0_i32, %c0_i32_0 : i32, i32
  }
  func.func @transform_11(%arg0: i32) -> (i32, i32) {
    %c0_i32 = arith.constant 0 : i32
    %c0_i32_0 = arith.constant 0 : i32
    %c0_i32_1 = arith.constant 0 : i32
    return %c0_i32, %c0_i32_0 : i32, i32
  }
  func.func @transform_12(%arg0: i32) -> (i32, i32) {
    %c0_i32 = arith.constant 0 : i32
    %c0_i32_0 = arith.constant 0 : i32
    %c0_i32_1 = arith.constant 0 : i32
    return %c0_i32, %c0_i32_0 : i32, i32
  }
  func.func @transform_13(%arg0: i32) -> (i32, i32) {
    %c0_i32 = arith.constant 0 : i32
    %c0_i32_0 = arith.constant 0 : i32
    %c0_i32_1 = arith.constant 0 : i32
    return %c0_i32, %c0_i32_0 : i32, i32
  }
  func.func @transform_14(%arg0: i32) -> (i32, i32) {
    %c0_i32 = arith.constant 0 : i32
    %c0_i32_0 = arith.constant 0 : i32
    %c0_i32_1 = arith.constant 0 : i32
    return %c0_i32, %c0_i32_0 : i32, i32
  }
  func.func @transform_15(%arg0: i32) -> (i32, i32) {
    %c0_i32 = arith.constant 0 : i32
    %c0_i32_0 = arith.constant 0 : i32
    %c0_i32_1 = arith.constant 0 : i32
    return %c0_i32, %c0_i32_0 : i32, i32
  }
}

</mosaic_0001>

<bundles_post_ra>
// kernel: transam_forward.2
= control target key start
LH: loop header
LB: loop body
LE: loop exit
PB: predicated region body
PF: predicated region fallthrough
CT: control target
= control target key end

     0   :  { %19 = vsyncpa [#allocation3], 0  ;;  %s2278_s0 = inlined_call_operand.vmem [shape: f32[16,128], index: 0, kind: input, shape index: {}]   ;;  %s2279_s1 = inlined_call_operand.vmem [shape: f32[16,16], index: 1, kind: input, shape index: {}]   ;;  %s2280_s2 = inlined_call_operand.hbm [shape: f32[128,384], index: 2, kind: input, shape index: {}]   ;;  %s2281_s3 = inlined_call_operand.vmem [shape: f32[1,384], index: 3, kind: input, shape index: {}]   ;;  %s2282_s4 = inlined_call_operand.hbm [shape: f32[128,128], index: 4, kind: input, shape index: {}]   ;;  %s2283_s5 = inlined_call_operand.hbm [shape: f32[1,128], index: 5, kind: input, shape index: {}]   ;;  %s2284_s6 = inlined_call_operand.hbm [shape: f32[1,128], index: 6, kind: input, shape index: {}]   ;;  %s2285_s7 = inlined_call_operand.hbm [shape: f32[1,128], index: 7, kind: input, shape index: {}]   ;;  %s2286_s8 = inlined_call_operand.hbm [shape: f32[128,256], index: 8, kind: input, shape index: {}]   ;;  %s2287_s9 = inlined_call_operand.hbm [shape: f32[1,256], index: 9, kind: input, shape index: {}]   ;;  %s2288_s10 = inlined_call_operand.hbm [shape: f32[256,128], index: 10, kind: input, shape index: {}]   ;;  %s2289_s11 = inlined_call_operand.hbm [shape: f32[1,128], index: 11, kind: input, shape index: {}]   ;;  %s2290_s12 = inlined_call_operand.hbm [shape: f32[1,128], index: 12, kind: input, shape index: {}]   ;;  %s2291_s13 = inlined_call_operand.hbm [shape: f32[1,128], index: 13, kind: input, shape index: {}]   ;;  %s2292_s14 = inlined_call_operand.vmem [shape: f32[16,128], index: 14, kind: output, shape index: {}]  }
   0x1   :  { %20 = vsyncpa [#allocation5], 0 }
   0x2   :  { %21 = vsyncpa [#allocation8], 0 }
   0x3   :  { %22 = vsyncpa [#allocation11], 0 }
   0x4   :  { %23 = vsyncpa [#allocation14], 0 }
   0x5   :  { %24 = vsyncpa [#allocation17], 0  ;;  %s1941_s29 = smov [#allocation4]   ;;  %s1687_s17 = scalar_lea.hbm %s2282_s4, 2048 }
   0x6   :  { %s48_s30 = sshll.u32 %s1941_s29, 4  ;;  %p1688_p0 = scmp.ne.s32.totalorder %s2282_s4, %s1687_s17  ;;  %s49_s30 = int_to_ptr.vmem [resolvable:$true] %s48_s30 }
   0x7   :  { %p1691_p1 = scmp.lt.u32.totalorder %s1687_s17, %s2282_s4 }
   0x9   :  { %p1693_p2 = pnand %p1691_p1, %p1688_p0 }
   0xb   :  { %1696 = shalt.err (!%p1693_p2)
}
   0xc   :  { %s1697_s22 = scalar_lea.vmem %s49_s30, 2048  ;;  %p1702_p4 = scmp.lt.s32.totalorder %s49_s30, %s49_s30 }
   0xd   :  { %p1698_p3 = scmp.ne.s32.totalorder %s49_s30, %s1697_s22  ;;  %p1703_p5 = scmp.lt.s32.totalorder %s1697_s22, %s1697_s22 }
   0xf   :  { %p1704_p6 = por %p1703_p5, %p1702_p4 }
  0x11   :  { %p1705_p7 = pnand %p1704_p6, %p1698_p3 }
  0x13   :  { %1708 = shalt.err (!%p1705_p7)
}
  0x14   :  { %s1942_s23 = smov 128   ;;  %s1943_s24 = smov 8  }
  0x15   :  { %54 = dma.hbm_to_vmem [thread:$0]  %s2282_s4, 2048, %s49_s30, [#allocation5], %s1942_s23, %s1942_s23, %s1943_s24  }
  0x16   :  { %s1944_s27 = smov [#allocation7]   ;;  %s1945_s29 = smov [#allocation10]  }
  0x17   :  { %s71_s28 = sshll.u32 %s1944_s27, 4  ;;  %s90_s15 = sshll.u32 %s1945_s29, 4  ;;  %s72_s28 = int_to_ptr.vmem [resolvable:$true] %s71_s28  ;;  %s91_s15 = int_to_ptr.vmem [resolvable:$true] %s90_s15 }
  0x18   :  { %s1709_s18 = scalar_lea.hbm %s2284_s6, 16 }
  0x19   :  { %p1710_p8 = scmp.ne.s32.totalorder %s2284_s6, %s1709_s18  ;;  %p1713_p9 = scmp.lt.u32.totalorder %s1709_s18, %s2284_s6 }
  0x1b   :  { %p1715_p10 = pnand %p1713_p9, %p1710_p8 }
  0x1d   :  { %1718 = shalt.err (!%p1715_p10)
}
  0x1e   :  { %s1719_s4 = scalar_lea.vmem %s72_s28, 16  ;;  %s1723_s30 = scalar_lea.vmem %s72_s28, 32 }
  0x1f   :  { %p1720_p11 = scmp.ne.s32.totalorder %s72_s28, %s1719_s4  ;;  %p1724_p12 = scmp.lt.s32.totalorder %s72_s28, %s72_s28 }
  0x20   :  { %p1725_p13 = scmp.lt.s32.totalorder %s1723_s30, %s1719_s4 }
  0x22   :  { %p1726_p0 = por %p1725_p13, %p1724_p12 }
  0x24   :  { %p1727_p1 = pnand %p1726_p0, %p1720_p11 }
  0x26   :  { %1730 = shalt.err (!%p1727_p1)
}
  0x27   :  { %74 = dma.hbm_to_vmem [thread:$0]  %s2284_s6, 16, %s72_s28, [#allocation8]  }
  0x28   :  { %s1731_s16 = scalar_lea.hbm %s2286_s8, 4096 }
  0x29   :  { %p1732_p2 = scmp.ne.s32.totalorder %s2286_s8, %s1731_s16  ;;  %p1735_p3 = scmp.lt.u32.totalorder %s1731_s16, %s2286_s8 }
  0x2b   :  { %p1737_p4 = pnand %p1735_p3, %p1732_p2 }
  0x2d   :  { %1740 = shalt.err (!%p1737_p4)
}
  0x2e   :  { %s1741_s21 = scalar_lea.vmem %s91_s15, 4096  ;;  %p1746_p6 = scmp.lt.s32.totalorder %s91_s15, %s91_s15 }
  0x2f   :  { %p1742_p5 = scmp.ne.s32.totalorder %s91_s15, %s1741_s21  ;;  %p1747_p7 = scmp.lt.s32.totalorder %s1741_s21, %s1741_s21 }
  0x31   :  { %p1748_p8 = por %p1747_p7, %p1746_p6 }
  0x33   :  { %p1749_p9 = pnand %p1748_p8, %p1742_p5 }
  0x35   :  { %1752 = shalt.err (!%p1749_p9)
}
  0x36   :  { %s1946_s6 = smov 256   ;;  %s1947_s28 = smov 16  }
  0x37   :  { %96 = dma.hbm_to_vmem [thread:$0]  %s2286_s8, 4096, %s91_s15, [#allocation11], %s1946_s6, %s1946_s6, %s1947_s28  }
  0x38   :  { %s1948_s30 = smov [#allocation13]   ;;  %s1949_s26 = smov [#allocation16]  }
  0x39   :  { %s112_s25 = sshll.u32 %s1948_s30, 4  ;;  %s135_s27 = sshll.u32 %s1949_s26, 4  ;;  %s113_s25 = int_to_ptr.vmem [resolvable:$true] %s112_s25  ;;  %s136_s27 = int_to_ptr.vmem [resolvable:$true] %s135_s27 }
  0x3a   :  { %s1753_s17 = scalar_lea.hbm %s2288_s10, 4096 }
  0x3b   :  { %p1754_p10 = scmp.ne.s32.totalorder %s2288_s10, %s1753_s17  ;;  %p1757_p11 = scmp.lt.u32.totalorder %s1753_s17, %s2288_s10 }
  0x3d   :  { %p1759_p12 = pnand %p1757_p11, %p1754_p10 }
  0x3f   :  { %1762 = shalt.err (!%p1759_p12)
}
  0x40   :  { %s1763_s8 = scalar_lea.vmem %s113_s25, 4096  ;;  %p1768_p0 = scmp.lt.s32.totalorder %s113_s25, %s113_s25 }
  0x41   :  { %p1764_p13 = scmp.ne.s32.totalorder %s113_s25, %s1763_s8  ;;  %p1769_p1 = scmp.lt.s32.totalorder %s1763_s8, %s1763_s8 }
  0x43   :  { %p1770_p2 = por %p1769_p1, %p1768_p0 }
  0x45   :  { %p1771_p3 = pnand %p1770_p2, %p1764_p13 }
  0x47   :  { %1774 = shalt.err (!%p1771_p3)
}
  0x48   :  { %118 = dma.hbm_to_vmem [thread:$0]  %s2288_s10, 4096, %s113_s25, [#allocation14], %s1942_s23, %s1942_s23, %s1943_s24  }
  0x49   :  { %s1775_s4 = scalar_lea.hbm %s2290_s12, 16 }
  0x4a   :  { %p1776_p4 = scmp.ne.s32.totalorder %s2290_s12, %s1775_s4  ;;  %p1779_p5 = scmp.lt.u32.totalorder %s1775_s4, %s2290_s12 }
  0x4c   :  { %p1781_p6 = pnand %p1779_p5, %p1776_p4 }
  0x4e   :  { %1784 = shalt.err (!%p1781_p6)
}
  0x4f   :  { %s1785_s17 = scalar_lea.vmem %s136_s27, 16  ;;  %s1789_s18 = scalar_lea.vmem %s136_s27, 32 }
  0x50   :  { %p1786_p7 = scmp.ne.s32.totalorder %s136_s27, %s1785_s17  ;;  %p1790_p8 = scmp.lt.s32.totalorder %s136_s27, %s136_s27 }
  0x51   :  { %p1791_p9 = scmp.lt.s32.totalorder %s1789_s18, %s1785_s17 }
  0x53   :  { %p1792_p10 = por %p1791_p9, %p1790_p8 }
  0x55   :  { %p1793_p11 = pnand %p1792_p10, %p1786_p7 }
  0x57   :  { %1796 = shalt.err (!%p1793_p11)
}
  0x58   :  { %138 = dma.hbm_to_vmem [thread:$0]  %s2290_s12, 16, %s136_s27, [#allocation17]  }
  0x59   :  { %s1950_s24 = smov [#allocation2]   ;;  %s1797_s21 = scalar_lea.hbm %s2280_s2, 6144 }
  0x5a   :  { %s34_s25 = sshll.u32 %s1950_s24, 4  ;;  %p1798_p12 = scmp.ne.s32.totalorder %s2280_s2, %s1797_s21  ;;  %s35_s25 = int_to_ptr.vmem [resolvable:$true] %s34_s25 }
  0x5b   :  { %p1801_p13 = scmp.lt.u32.totalorder %s1797_s21, %s2280_s2 }
  0x5d   :  { %p1803_p0 = pnand %p1801_p13, %p1798_p12 }
  0x5f   :  { %1806 = shalt.err (!%p1803_p0)
}
  0x60   :  { %s1807_s22 = scalar_lea.vmem %s35_s25, 6144  ;;  %p1812_p2 = scmp.lt.s32.totalorder %s35_s25, %s35_s25 }
  0x61   :  { %p1808_p1 = scmp.ne.s32.totalorder %s35_s25, %s1807_s22  ;;  %p1813_p3 = scmp.lt.s32.totalorder %s1807_s22, %s1807_s22 }
  0x63   :  { %p1814_p4 = por %p1813_p3, %p1812_p2 }
  0x65   :  { %p1815_p5 = pnand %p1814_p4, %p1808_p1 }
  0x67   :  { %1818 = shalt.err (!%p1815_p5)
}
  0x68   :  { %s1951_s12 = smov 384   ;;  %s1952_s27 = smov 24  }
  0x69   :  { %40 = dma.hbm_to_vmem [thread:$0]  %s2280_s2, 6144, %s35_s25, [#allocation3], %s1951_s12, %s1951_s12, %s1952_s27  }
  0x6a   :  { %s1953_s26 = smov [#allocation6]   ;;  %s1954_s16 = smov [#allocation9]  }
  0x6b   :  { %s61_s29 = sshll.u32 %s1953_s26, 4  ;;  %s81_s17 = sshll.u32 %s1954_s16, 4  ;;  %s62_s29 = int_to_ptr.vmem [resolvable:$true] %s61_s29  ;;  %s82_s17 = int_to_ptr.vmem [resolvable:$true] %s81_s17 }
  0x6c   :  { %s1819_s23 = scalar_lea.hbm %s2283_s5, 16 }
  0x6d   :  { %p1820_p6 = scmp.ne.s32.totalorder %s2283_s5, %s1819_s23  ;;  %p1823_p7 = scmp.lt.u32.totalorder %s1819_s23, %s2283_s5 }
  0x6f   :  { %p1825_p8 = pnand %p1823_p7, %p1820_p6 }
  0x71   :  { %1828 = shalt.err (!%p1825_p8)
}
  0x72   :  { %s1829_s2 = scalar_lea.vmem %s62_s29, 16  ;;  %s1833_s25 = scalar_lea.vmem %s62_s29, 32 }
  0x73   :  { %p1830_p9 = scmp.ne.s32.totalorder %s62_s29, %s1829_s2  ;;  %p1834_p10 = scmp.lt.s32.totalorder %s62_s29, %s62_s29 }
  0x74   :  { %p1835_p11 = scmp.lt.s32.totalorder %s1833_s25, %s1829_s2 }
  0x76   :  { %p1836_p12 = por %p1835_p11, %p1834_p10 }
  0x78   :  { %p1837_p13 = pnand %p1836_p12, %p1830_p9 }
  0x7a   :  { %1840 = shalt.err (!%p1837_p13)
}
  0x7b   :  { %64 = dma.hbm_to_vmem [thread:$0]  %s2283_s5, 16, %s62_s29, [#allocation5]  }
  0x7c   :  { %s1841_s22 = scalar_lea.hbm %s2285_s7, 16 }
  0x7d   :  { %p1842_p0 = scmp.ne.s32.totalorder %s2285_s7, %s1841_s22  ;;  %p1845_p1 = scmp.lt.u32.totalorder %s1841_s22, %s2285_s7 }
  0x7f   :  { %p1847_p2 = pnand %p1845_p1, %p1842_p0 }
  0x81   :  { %1850 = shalt.err (!%p1847_p2)
}
  0x82   :  { %s1851_s26 = scalar_lea.vmem %s82_s17, 16  ;;  %s1855_s16 = scalar_lea.vmem %s82_s17, 32 }
  0x83   :  { %p1852_p3 = scmp.ne.s32.totalorder %s82_s17, %s1851_s26  ;;  %p1856_p4 = scmp.lt.s32.totalorder %s82_s17, %s82_s17 }
  0x84   :  { %p1857_p5 = scmp.lt.s32.totalorder %s1855_s16, %s1851_s26 }
  0x86   :  { %p1858_p6 = por %p1857_p5, %p1856_p4 }
  0x88   :  { %p1859_p7 = pnand %p1858_p6, %p1852_p3 }
  0x8a   :  { %1862 = shalt.err (!%p1859_p7)
}
  0x8b   :  { %84 = dma.hbm_to_vmem [thread:$0]  %s2285_s7, 16, %s82_s17, [#allocation8]  }
  0x8c   :  { %s1955_s18 = smov [#allocation12]   ;;  %s1956_s23 = smov [#allocation15]  }
  0x8d   :  { %s103_s10 = sshll.u32 %s1955_s18, 4  ;;  %s125_s24 = sshll.u32 %s1956_s23, 4  ;;  %s104_s10 = int_to_ptr.vmem [resolvable:$true] %s103_s10  ;;  %s126_s24 = int_to_ptr.vmem [resolvable:$true] %s125_s24 }
  0x8e   :  { %s1863_s21 = scalar_lea.hbm %s2287_s9, 32 }
  0x8f   :  { %p1864_p8 = scmp.ne.s32.totalorder %s2287_s9, %s1863_s21  ;;  %p1867_p9 = scmp.lt.u32.totalorder %s1863_s21, %s2287_s9 }
  0x91   :  { %p1869_p10 = pnand %p1867_p9, %p1864_p8 }
  0x93   :  { %1872 = shalt.err (!%p1869_p10)
}
  0x94   :  { %s1873_s7 = scalar_lea.vmem %s104_s10, 32  ;;  %p1878_p12 = scmp.lt.s32.totalorder %s104_s10, %s104_s10 }
  0x95   :  { %p1874_p11 = scmp.ne.s32.totalorder %s104_s10, %s1873_s7  ;;  %p1879_p13 = scmp.lt.s32.totalorder %s1873_s7, %s1873_s7 }
  0x97   :  { %p1880_p0 = por %p1879_p13, %p1878_p12 }
  0x99   :  { %p1881_p1 = pnand %p1880_p0, %p1874_p11 }
  0x9b   :  { %1884 = shalt.err (!%p1881_p1)
}
  0x9c   :  { %106 = dma.hbm_to_vmem [thread:$0]  %s2287_s9, 32, %s104_s10, [#allocation11]  }
  0x9d   :  { %s1885_s12 = scalar_lea.hbm %s2289_s11, 16 }
  0x9e   :  { %p1886_p2 = scmp.ne.s32.totalorder %s2289_s11, %s1885_s12  ;;  %p1889_p3 = scmp.lt.u32.totalorder %s1885_s12, %s2289_s11 }
  0xa0   :  { %p1891_p4 = pnand %p1889_p3, %p1886_p2 }
  0xa2   :  { %1894 = shalt.err (!%p1891_p4)
}
  0xa3   :  { %s1895_s16 = scalar_lea.vmem %s126_s24, 16  ;;  %s1899_s5 = scalar_lea.vmem %s126_s24, 32 }
  0xa4   :  { %p1896_p5 = scmp.ne.s32.totalorder %s126_s24, %s1895_s16  ;;  %p1900_p6 = scmp.lt.s32.totalorder %s126_s24, %s126_s24 }
  0xa5   :  { %p1901_p7 = scmp.lt.s32.totalorder %s1899_s5, %s1895_s16 }
  0xa7   :  { %p1902_p8 = por %p1901_p7, %p1900_p6 }
  0xa9   :  { %p1903_p9 = pnand %p1902_p8, %p1896_p5 }
  0xab   :  { %1906 = shalt.err (!%p1903_p9)
}
  0xac   :  { %128 = dma.hbm_to_vmem [thread:$0]  %s2289_s11, 16, %s126_s24, [#allocation14]  }
  0xad   :  { %s1957_s18 = smov [#allocation18]   ;;  %s1907_s20 = scalar_lea.hbm %s2291_s13, 16 }
  0xae   :  { %s145_s10 = sshll.u32 %s1957_s18, 4  ;;  %p1908_p10 = scmp.ne.s32.totalorder %s2291_s13, %s1907_s20  ;;  %s146_s10 = int_to_ptr.vmem [resolvable:$true] %s145_s10 }
  0xaf   :  { %p1911_p11 = scmp.lt.u32.totalorder %s1907_s20, %s2291_s13 }
  0xb1   :  { %p1913_p12 = pnand %p1911_p11, %p1908_p10 }
  0xb3   :  { %1916 = shalt.err (!%p1913_p12)
}
  0xb4   :  { %s1917_s15 = scalar_lea.vmem %s146_s10, 16  ;;  %s1921_s11 = scalar_lea.vmem %s146_s10, 32 }
  0xb5   :  { %p1918_p13 = scmp.ne.s32.totalorder %s146_s10, %s1917_s15  ;;  %p1922_p0 = scmp.lt.s32.totalorder %s146_s10, %s146_s10 }
  0xb6   :  { %p1923_p1 = scmp.lt.s32.totalorder %s1921_s11, %s1917_s15 }
  0xb8   :  { %p1924_p2 = por %p1923_p1, %p1922_p0 }
  0xba   :  { %p1925_p3 = pnand %p1924_p2, %p1918_p13 }
  0xbc   :  { %1928 = shalt.err (!%p1925_p3)
}
  0xbd   :  { %148 = dma.hbm_to_vmem [thread:$0]  %s2291_s13, 16, %s146_s10, [#allocation17]  }
  0xbe   :  { %1929 = dma.done.wait [#allocation3], 6144  }
  0xbf   :  { %1930 = vsyncadd [#allocation3], 4294961152 }
  0xc0   :  { %1931 = dma.done.wait [#allocation5], 2064  }
  0xc1   :  { %1932 = vsyncadd [#allocation5], 4294965232 }
  0xc2   :  { %1933 = dma.done.wait [#allocation8], 32  }
  0xc3   :  { %1934 = vsyncadd [#allocation8], 4294967264 }
  0xc4   :  { %1935 = dma.done.wait [#allocation11], 4128  }
  0xc5   :  { %1936 = vsyncadd [#allocation11], 4294963168 }
  0xc6   :  { %1937 = dma.done.wait [#allocation14], 4112  }
  0xc7   :  { %1938 = vsyncadd [#allocation14], 4294963184 }
  0xc8   :  { %1939 = dma.done.wait [#allocation17], 32  }
  0xc9   :  { %1940 = vsyncadd [#allocation17], 4294967264  ;;  %v1958_v0 = vmov 0.0   ;;  %v187_v1 = vld [vmem:[#allocation2 + $0x8] sm:$0xff]  ;;  %v190_v2 = vld [vmem:[#allocation2 + $0x20] sm:$0xff]  ;;  %vm405_vm0 = vcmask 523264  }
  0xca   :  { %315 = vmatprep.mubr.f32.mxu0 %v1958_v0  ;;  %v186_v3 = vld [vmem:[#allocation2] sm:$0xff]  ;;  %v1449_v4 = vpack.c.bf16 %v190_v2, %v187_v1  ;;  %v189_v5 = vld [vmem:[#allocation2 + $0x18] sm:$0xff]  ;;  %v196_v7 = vld [vmem:[#allocation2 + $0x50] sm:$0xff]  ;;  %vm493_vm2 = vcmask 130048  }
  0xcb   :  { %v193_v6 = vld [vmem:[#allocation2 + $0x38] sm:$0xff]  ;;  %v1451_v8 = vpack.c.bf16 %v189_v5, %v186_v3  ;;  %v192_v10 = vld [vmem:[#allocation2 + $0x30] sm:$0xff]  ;;  %v195_v11 = vld [vmem:[#allocation2 + $0x48] sm:$0xff] }
  0xcc   :  { %v1453_v9 = vpack.c.bf16 %v196_v7, %v193_v6  ;;  %v199_v12 = vld [vmem:[#allocation2 + $0x68] sm:$0xff]  ;;  %1450 = vmatprep.subr.bf16.mxu0 %v1449_v4  ;;  %v202_v13 = vld [vmem:[#allocation2 + $0x80] sm:$0xff]  ;;  %v1455_v14 = vpack.c.bf16 %v195_v11, %v192_v10  ;;  %v201_v17 = vld [vmem:[#allocation2 + $0x78] sm:$0xff] }
  0xcd   :  { %1452 = vmatpush1.bf16.msra.mxu0 %v1451_v8  ;;  %v1457_v15 = vpack.c.bf16 %v202_v13, %v199_v12  ;;  %v198_v16 = vld [vmem:[#allocation2 + $0x60] sm:$0xff]  ;;  %v205_v18 = vld [vmem:[#allocation2 + $0x98] sm:$0xff]  ;;  %v208_v19 = vld [vmem:[#allocation2 + $0xb0] sm:$0xff]  ;;  %v236_v12 = vlaneseq }
  0xce   :  { %1454 = vmatprep.subr.bf16.mxu0 %v1453_v9  ;;  %v1459_v20 = vpack.c.bf16 %v201_v17, %v198_v16  ;;  %v1461_v21 = vpack.c.bf16 %v208_v19, %v205_v18  ;;  %v204_v22 = vld [vmem:[#allocation2 + $0x90] sm:$0xff]  ;;  %v207_v23 = vld [vmem:[#allocation2 + $0xa8] sm:$0xff]  ;;  %v214_v25 = vld [vmem:[#allocation2 + $0xe0] sm:$0xff] }
  0xcf   :  { %v211_v24 = vld [vmem:[#allocation2 + $0xc8] sm:$0xff]  ;;  %v2177_v26 = vld [vmem:[%s2278_s0] sm:$0xff]  ;;  %v188_v27 = vld [vmem:[#allocation2 + $0x10] sm:$0xff]  ;;  %v1463_v29 = vpack.c.bf16 %v207_v23, %v204_v22  ;;  %v2189_v13 = vshrl.u32 %v236_v12, 7 }
  0xd0   :  { %v191_v28 = vld [vmem:[#allocation2 + $0x28] sm:$0xff]  ;;  %1383 = vmatprep.mubr.f32.mxu1 %v2177_v26  ;;  %v210_v30 = vld [vmem:[#allocation2 + $0xc0] sm:$0xff]  ;;  %v197_v33 = vld [vmem:[#allocation2 + $0x58] sm:$0xff]  ;;  %v1465_v34 = vpack.c.bf16 %v214_v25, %v211_v24 }
  0xd1   :  { %1456 = vmatpush1.bf16.msra.mxu0 %v1455_v14  ;;  %v1481_v31 = vpack.c.bf16 %v191_v28, %v188_v27  ;;  %v194_v32 = vld [vmem:[#allocation2 + $0x40] sm:$0xff]  ;;  %v213_v35 = vld [vmem:[#allocation2 + $0xd8] sm:$0xff]  ;;  %v200_v37 = vld [vmem:[#allocation2 + $0x70] sm:$0xff]  ;;  %v238_v14 = vsub.s32 0, %v2189_v13  ;;  %v242_v17 = vsub.s32 1, %v2189_v13 }
  0xd2   :  { %1458 = vmatprep.subr.bf16.mxu0 %v1457_v15  ;;  %v1485_v36 = vpack.c.bf16 %v197_v33, %v194_v32  ;;  %v203_v38 = vld [vmem:[#allocation2 + $0x88] sm:$0xff]  ;;  %v217_v39 = vld [vmem:[#allocation2 + $0xf8] sm:$0xff]  ;;  %v220_v40 = vld [vmem:[#allocation2 + $0x110] sm:$0xff]  ;;  %v1467_v41 = vpack.c.bf16 %v213_v35, %v210_v30  ;;  %v246_v33 = vsub.s32 2, %v2189_v13 }
  0xd3   :  { %1482 = vmatprep.subr.bf16.mxu1 %v1481_v31  ;;  %v216_v42 = vld [vmem:[#allocation2 + $0xf0] sm:$0xff]  ;;  %v1489_v43 = vpack.c.bf16 %v203_v38, %v200_v37  ;;  %v1469_v44 = vpack.c.bf16 %v220_v40, %v217_v39  ;;  %v219_v45 = vld [vmem:[#allocation2 + $0x108] sm:$0xff]  ;;  %v206_v46 = vld [vmem:[#allocation2 + $0xa0] sm:$0xff] }
  0xd4   :  { %1484 = vmatpush3.bf16.msra.mxu1 %v1481_v31  ;;  %v209_v47 = vld [vmem:[#allocation2 + $0xb8] sm:$0xff]  ;;  %v223_v48 = vld [vmem:[#allocation2 + $0x128] sm:$0xff]  ;;  %v226_v49 = vld [vmem:[#allocation2 + $0x140] sm:$0xff]  ;;  %v1471_v50 = vpack.c.bf16 %v219_v45, %v216_v42 }
  0xd5   :  { %1460 = vmatpush1.bf16.msra.mxu0 %v1459_v20  ;;  %1486 = vmatprep.subr.bf16.mxu1 %v1485_v36  ;;  %v222_v51 = vld [vmem:[#allocation2 + $0x120] sm:$0xff]  ;;  %v1493_v52 = vpack.c.bf16 %v209_v47, %v206_v46  ;;  %v1473_v53 = vpack.c.bf16 %v226_v49, %v223_v48  ;;  %v225_v54 = vld [vmem:[#allocation2 + $0x138] sm:$0xff]  ;;  %v212_v55 = vld [vmem:[#allocation2 + $0xd0] sm:$0xff] }
  0xd6   :  { %1462 = vmatprep.subr.bf16.mxu0 %v1461_v21  ;;  %v215_v56 = vld [vmem:[#allocation2 + $0xe8] sm:$0xff]  ;;  %v229_v57 = vld [vmem:[#allocation2 + $0x158] sm:$0xff]  ;;  %v232_v58 = vld [vmem:[#allocation2 + $0x170] sm:$0xff]  ;;  %v1475_v59 = vpack.c.bf16 %v225_v54, %v222_v51 }
  0xd7   :  { %v228_v60 = vld [vmem:[#allocation2 + $0x150] sm:$0xff]  ;;  %v1497_v61 = vpack.c.bf16 %v215_v56, %v212_v55  ;;  %v1477_v62 = vpack.c.bf16 %v232_v58, %v229_v57  ;;  %v231_v63 = vld [vmem:[#allocation2 + $0x168] sm:$0xff]  ;;  %v218_v1 = vld [vmem:[#allocation2 + $0x100] sm:$0xff] }
  0xd8   :  { %1488 = vmatpush3.bf16.msra.mxu1 %v1485_v36  ;;  %v221_v2 = vld [vmem:[#allocation2 + $0x118] sm:$0xff]  ;;  %v1479_v3 = vpack.c.bf16 %v231_v63, %v228_v60  ;;  %v224_v5 = vld [vmem:[#allocation2 + $0x130] sm:$0xff]  ;;  %v227_v6 = vld [vmem:[#allocation2 + $0x148] sm:$0xff] }
  0xd9   :  { %1464 = vmatpush1.bf16.msra.mxu0 %v1463_v29  ;;  %1490 = vmatprep.subr.bf16.mxu1 %v1489_v43  ;;  %v1501_v4 = vpack.c.bf16 %v221_v2, %v218_v1  ;;  %v1505_v7 = vpack.c.bf16 %v227_v6, %v224_v5  ;;  %v2185_v8 = vld [vmem:[%s2278_s0 + $0x8] sm:$0xff]  ;;  %v230_v9 = vld [vmem:[#allocation2 + $0x160] sm:$0xff]  ;;  %v233_v10 = vld [vmem:[#allocation2 + $0x178] sm:$0xff]  ;;  %s1959_s0 = smov 64  }
  0xda   :  { %1466 = vmatprep.subr.bf16.mxu0 %v1465_v34  ;;  %v1509_v11 = vpack.c.bf16 %v233_v10, %v230_v9  ;;  %v234_v15 = vld [vmem:[%s2281_s3] sm:$0x7]  ;;  %vm2204_vm1 = vmpackc.low %vm405_vm0, %vm405_vm0 }
  0xdb   :  { %v239_v16 = vrot.slane %v234_v15, %v238_v14  ;;  %v243_v21 = vrot.slane %v234_v15, %v242_v17  ;;  %v247_v34 = vrot.slane %v234_v15, %v246_v33 }
  0xdc   :  { %1492 = vmatpush3.bf16.msra.mxu1 %v1489_v43  ;;  %v185_v43 = vld [vmem:[%s2279_s1 + $0x8] sm:$0xff] }
  0xdd   :  { %1468 = vmatpush1.bf16.msra.mxu0 %v1467_v41  ;;  %1494 = vmatprep.subr.bf16.mxu1 %v1493_v52  ;;  %v184_v41 = vld [vmem:[%s2279_s1] sm:$0xff] }
  0xde   :  { %1470 = vmatprep.subr.bf16.mxu0 %v1469_v44 }
  0xe0   :  { %1496 = vmatpush3.bf16.msra.mxu1 %v1493_v52 }
  0xe1   :  { %1472 = vmatpush1.bf16.msra.mxu0 %v1471_v50  ;;  %1498 = vmatprep.subr.bf16.mxu1 %v1497_v61 }
  0xe2   :  { %1474 = vmatprep.subr.bf16.mxu0 %v1473_v53 }
  0xe4   :  { %1500 = vmatpush3.bf16.msra.mxu1 %v1497_v61 }
  0xe5   :  { %1476 = vmatpush1.bf16.msra.mxu0 %v1475_v59  ;;  %1502 = vmatprep.subr.bf16.mxu1 %v1501_v4 }
  0xe6   :  { %1478 = vmatprep.subr.bf16.mxu0 %v1477_v62 }
  0xe8   :  { %1504 = vmatpush3.bf16.msra.mxu1 %v1501_v4 }
  0xe9   :  { %1480 = vmatpush1.bf16.msra.mxu0 %v1479_v3  ;;  %1506 = vmatprep.subr.bf16.mxu1 %v1505_v7 }
  0xec   :  { %316 = vmatmul.mubr.f32.vlgmr.msra.gmra.mrb[0].mxu0 %v2177_v26  ;;  %1508 = vmatpush3.bf16.msra.mxu1 %v1505_v7 }
  0xed   :  { %321 = vmatprep.mubr.f32.mxu0 %v1958_v0  ;;  %1510 = vmatprep.subr.bf16.mxu1 %v1509_v11 }
  0xf0   :  { %322 = vmatmul.mubr.f32.gmra.mrb[2].mxu0 %v2185_v8  ;;  %1512 = vmatpush3.bf16.msra.mxu1 %v1509_v11 }
  0xf3   :  { %1384 = vmatmul.mubr.f32.vlgmr.msra.gmra.mrb[0].mxu1 %v2185_v8 }
 0x1bf   :  { %v317_v18 = vpop.f32.mrb[0].mxu0 }
 0x1c0   :  { %v318_v19 = vadd.f32 %v317_v18, %v239_v16  ;;  %v319_v20 = vpop.f32.mrb[1].mxu0 }
 0x1c1   :  { %v320_v25 = vadd.f32 %v319_v20, %v243_v21 }
 0x1c2   :  { %v403_v22 = vmul.f32 0.125, %v318_v19 }
 0x1c3   :  { %v323_v23 = vpop.f32.mrb[2].mxu0 }
 0x1c4   :  { %v325_v24 = vpop.f32.mrb[3].mxu0  ;;  %597 = vrot.lane.b32.xlu1 %v403_v22, %s1959_s0  ;;  %1390 = vmatprep.mubr.msk.f32.mxu1 %vm405_vm0, %v403_v22  ;;  %v324_v31 = vadd.f32 %v323_v23, %v239_v16 }
 0x1c5   :  { %v326_v27 = vadd.f32 %v325_v24, %v243_v21 }
 0x1c6   :  { %v404_v32 = vmul.f32 0.125, %v324_v31  ;;  %v1385_v35 = vpop.f32.mrb[0].mxu1 }
 0x1c7   :  { %v1648_v29 = vpack.i.bf16 %v326_v27, %v320_v25  ;;  %v1513_v30 = vpack.c.bf16 %v326_v27, %v320_v25  ;;  %v2214_v36 = vadd.f32 %v1385_v35, %v247_v34  ;;  %v394_v37 = vpop.f32.mrb[1].mxu1 }
 0x1c8   :  { %v395_v38 = vadd.f32 %v394_v37, %v247_v34 }
 0x1c9   :  { %1515 = vmatprep.subr.msk.bf16.mxu1 %vm2204_vm1, %v1513_v30 }
 0x1ca   :  { %1518 = vmatpush3.bf16.xpose.msk.msra.mxu1 %vm2204_vm1, %v1513_v30  ;;  %v1653_v39 = vpack.i.bf16 %v2214_v36, %v395_v38  ;;  %v1519_v40 = vpack.c.bf16 %v2214_v36, %v395_v38 }
 0x1cc   :  { %1520 = vmatprep.subr.bf16.mxu1 %v1519_v40 }
 0x1d1   :  { %1391 = vmatmul.mubr.msk.f32.vlgmr.msra.gmra.mrb[2].mxu1 %vm405_vm0, %v404_v32 }
 0x1d2   :  { %1522 = vmatpush3.bf16.msra.mxu1 %v1519_v40 }
 0x236   :  { %v598_v63 = vpop.permute.xlu1 %597 }
 0x2a4   :  { %v1392_v42 = vpop.f32.mrb[2].mxu1 }
 0x2a5   :  { %v484_v44 = vpop.f32.mrb[3].mxu1  ;;  %v490_v46 = vadd.f32 %v1392_v42, %v185_v43  ;;  %v810_v42 = vld [vmem:[#allocation4 + $0x8] sm:$0xff] }
 0x2a6   :  { %v485_v45 = vadd.f32 %v484_v44, %v184_v41 }
 0x2a7   :  { %v497_v48 = vsel %vm493_vm2, %v490_v46, -inf }
 0x2a8   :  { %v494_v47 = vsel %vm493_vm2, %v485_v45, -inf }
 0x2a9   :  { %495 = vmax.xlane.f32.xlu0 %v494_v47  ;;  %v813_v47 = vld [vmem:[#allocation4 + $0x20] sm:$0xff] }
 0x2ad   :  { %498 = vmax.xlane.f32.xlu0 %v497_v48  ;;  %v814_v48 = vld [vmem:[#allocation4 + $0x28] sm:$0xff] }
 0x2c3   :  { %1649 = vrot.lane.b32.xlu0 %v1648_v29, %s1959_s0 }
 0x336   :  { %v496_v49 = vpop.xlane.xlu0 %495 }
 0x337   :  { %v500_v50 = vsub.f32 %v485_v45, %v496_v49  ;;  %v812_v45 = vld [vmem:[#allocation4 + $0x18] sm:$0xff]  ;;  %v1541_v49 = vpack.c.bf16 %v814_v48, %v813_v47 }
 0x338   :  { %v965_v47 = vld [vmem:[#allocation10 + $0x78] sm:$0xff] }
 0x339   :  { %v502_v53 = vmul.f32 1.442695, %v500_v50  ;;  %v815_v50 = vld [vmem:[#allocation4 + $0x30] sm:$0xff] }
 0x33a   :  { %v499_v51 = vpop.xlane.xlu0 %498 }
 0x33b   :  { %v501_v52 = vsub.f32 %v490_v46, %v499_v51  ;;  %v816_v51 = vld [vmem:[#allocation4 + $0x38] sm:$0xff] }
 0x33d   :  { %v504_v54 = vmul.f32 1.442695, %v501_v52  ;;  %v1545_v52 = vpack.c.bf16 %v816_v51, %v815_v50  ;;  %v964_v50 = vld [vmem:[#allocation10 + $0x70] sm:$0xff] }
 0x33e   :  { %v1650_v55 = vpop.permute.xlu0 %1649 }
 0x33f   :  { %1663 = vpow2.f32 %v504_v54  ;;  %v1652_v56 = vunpack.i.h.bf16 %v1650_v55  ;;  %v1651_v57 = vunpack.i.l.bf16 %v1650_v55  ;;  %v818_v54 = vld [vmem:[#allocation4 + $0x48] sm:$0xff] }
 0x340   :  { %1665 = vpow2.f32 %v502_v53  ;;  %v817_v53 = vld [vmem:[#allocation4 + $0x40] sm:$0xff] }
 0x341   :  { %v1523_v58 = vpack.c.bf16 %v1652_v56, %v1651_v57  ;;  %v1549_v55 = vpack.c.bf16 %v818_v54, %v817_v53  ;;  %v819_v56 = vld [vmem:[#allocation4 + $0x50] sm:$0xff]  ;;  %v820_v57 = vld [vmem:[#allocation4 + $0x58] sm:$0xff] }
 0x342   :  { %v969_v53 = vld [vmem:[#allocation10 + $0x98] sm:$0xff] }
 0x343   :  { %1525 = vmatprep.subr.msk.bf16.mxu1 %vm2204_vm1, %v1523_v58 }
 0x349   :  { %v1664_v59 = vpop.eup %1663 }
 0x34a   :  { %v509_v60 = vsel %vm493_vm2, %v1664_v59, 0.0  ;;  %v1666_v61 = vpop.eup %1665 }
 0x34b   :  { %510 = vadd.xlane.f32.xlu1 %v509_v60  ;;  %v506_v62 = vsel %vm493_vm2, %v1666_v61, 0.0  ;;  %v822_v60 = vld [vmem:[#allocation4 + $0x68] sm:$0xff] }
 0x34f   :  { %507 = vadd.xlane.f32.xlu1 %v506_v62  ;;  %v823_v62 = vld [vmem:[#allocation4 + $0x70] sm:$0xff] }
 0x360   :  { %599 = vrot.lane.b32.xlu1 %v404_v32, %s1959_s0 }
 0x3d8   :  { %v511_v1 = vpop.xlane.xlu1 %510 }
 0x3d9   :  { %1667 = vrcp.f32 %v511_v1 }
 0x3dc   :  { %v508_v2 = vpop.xlane.xlu1 %507 }
 0x3dd   :  { %1669 = vrcp.f32 %v508_v2 }
 0x3e0   :  { %v600_v7 = vpop.permute.xlu1 %599 }
 0x3e3   :  { %v1668_v3 = vpop.eup %1667 }
 0x3e4   :  { %v515_v6 = vmul.f32 %v1668_v3, %v1664_v59  ;;  %v821_v59 = vld [vmem:[#allocation4 + $0x60] sm:$0xff] }
 0x3e7   :  { %v1670_v4 = vpop.eup %1669 }
 0x3e8   :  { %v514_v5 = vmul.f32 %v1670_v4, %v1666_v61  ;;  %v1557_v61 = vpack.c.bf16 %v822_v60, %v821_v59  ;;  %v973_v59 = vld [vmem:[#allocation10 + $0xb8] sm:$0xff]  ;;  %v970_v60 = vld [vmem:[#allocation10 + $0xa0] sm:$0xff] }
 0x3ea   :  { %1397 = vmatprep.mubr.msk.f32.mxu1 %vm493_vm2, %v514_v5 }
 0x3eb   :  { %1398 = vmatmul.mubr.msk.f32.vlgmr.msra.gmra.mrb[4].mxu1 %vm493_vm2, %v515_v6 }
 0x3ec   :  { %1528 = vmatpush3.bf16.xpose.msk.msra.mxu1 %vm2204_vm1, %v1523_v58  ;;  %1404 = vmatprep.mubr.msk.f32.mxu1 %vm405_vm0, %v598_v63  ;;  %v1553_v58 = vpack.c.bf16 %v820_v57, %v819_v56  ;;  %v824_v63 = vld [vmem:[#allocation4 + $0x78] sm:$0xff] }
 0x3ed   :  { %v1561_v1 = vpack.c.bf16 %v824_v63, %v823_v62  ;;  %v968_v56 = vld [vmem:[#allocation10 + $0x90] sm:$0xff]  ;;  %v975_v63 = vld [vmem:[#allocation10 + $0xc8] sm:$0xff] }
 0x3ee   :  { %v972_v62 = vld [vmem:[#allocation10 + $0xb0] sm:$0xff] }
 0x3f3   :  { %1405 = vmatmul.mubr.msk.f32.vlgmr.msra.gmra.mrb[6].mxu1 %vm405_vm0, %v600_v7 }
 0x4be   :  { %v2238_v9 = vpop.f32.mrb[4].mxu1 }
 0x4bf   :  { %v2240_v10 = vpop.f32.mrb[5].mxu1 }
 0x4c6   :  { %v1406_v11 = vpop.f32.mrb[6].mxu1 }
 0x4c7   :  { %v685_v12 = vadd.f32 %v1406_v11, %v185_v43  ;;  %v679_v15 = vpop.f32.mrb[7].mxu1  ;;  %v811_v43 = vld [vmem:[#allocation4 + $0x10] sm:$0xff] }
 0x4c8   :  { %v680_v16 = vadd.f32 %v679_v15, %v184_v41  ;;  %v809_v41 = vld [vmem:[#allocation4] sm:$0xff]  ;;  %v1537_v46 = vpack.c.bf16 %v812_v45, %v811_v43 }
 0x4c9   :  { %v691_v18 = vsel %vm493_vm2, %v685_v12, -inf  ;;  %v1533_v44 = vpack.c.bf16 %v810_v42, %v809_v41  ;;  %v1255_v15 = vld [vmem:[#allocation6] ss:$0 sm:$0xff] }
 0x4ca   :  { %692 = vmax.xlane.f32.xlu0 %v691_v18  ;;  %v688_v19 = vsel %vm493_vm2, %v680_v16, -inf }
 0x4cb   :  { %689 = vmax.xlane.f32.xlu1 %v688_v19  ;;  %1534 = vmatprep.subr.bf16.mxu0 %v1533_v44 }
 0x4cc   :  { %1536 = vmatpush3.bf16.msra.mxu0 %v1533_v44 }
 0x4cd   :  { %1538 = vmatprep.subr.bf16.mxu0 %v1537_v46 }
 0x4d0   :  { %1540 = vmatpush3.bf16.msra.mxu0 %v1537_v46  ;;  %v963_v46 = vld [vmem:[#allocation10 + $0x68] sm:$0xff] }
 0x4d1   :  { %1542 = vmatprep.subr.bf16.mxu0 %v1541_v49  ;;  %v1577_v48 = vpack.c.bf16 %v965_v47, %v963_v46  ;;  %v1084_v46 = vld [vmem:[#allocation13 + $0x48] sm:$0xff]  ;;  %v1101_v47 = vld [vmem:[#allocation13 + $0xd0] sm:$0xff] }
 0x4d4   :  { %1544 = vmatpush3.bf16.msra.mxu0 %v1541_v49  ;;  %v962_v49 = vld [vmem:[#allocation10 + $0x60] sm:$0xff] }
 0x4d5   :  { %1546 = vmatprep.subr.bf16.mxu0 %v1545_v52  ;;  %v1579_v51 = vpack.c.bf16 %v964_v50, %v962_v49 }
 0x4d8   :  { %1548 = vmatpush3.bf16.msra.mxu0 %v1545_v52  ;;  %v967_v52 = vld [vmem:[#allocation10 + $0x88] sm:$0xff] }
 0x4d9   :  { %1550 = vmatprep.subr.bf16.mxu0 %v1549_v55  ;;  %v1581_v54 = vpack.c.bf16 %v969_v53, %v967_v52  ;;  %v1086_v52 = vld [vmem:[#allocation13 + $0x58] sm:$0xff]  ;;  %v1103_v53 = vld [vmem:[#allocation13 + $0xe0] sm:$0xff] }
 0x4dc   :  { %1654 = vrot.lane.b32.xlu1 %v1653_v39, %s1959_s0  ;;  %1552 = vmatpush3.bf16.msra.mxu0 %v1549_v55  ;;  %v966_v55 = vld [vmem:[#allocation10 + $0x80] sm:$0xff] }
 0x4dd   :  { %1554 = vmatprep.subr.bf16.mxu0 %v1553_v58  ;;  %v1583_v57 = vpack.c.bf16 %v968_v56, %v966_v55 }
 0x4e0   :  { %1556 = vmatpush3.bf16.msra.mxu0 %v1553_v58  ;;  %v971_v58 = vld [vmem:[#allocation10 + $0xa8] sm:$0xff] }
 0x4e1   :  { %1558 = vmatprep.subr.bf16.mxu0 %v1557_v61 }
 0x4e4   :  { %1560 = vmatpush3.bf16.msra.mxu0 %v1557_v61  ;;  %v1585_v61 = vpack.c.bf16 %v973_v59, %v971_v58 }
 0x4e5   :  { %1562 = vmatprep.subr.bf16.mxu0 %v1561_v1 }
 0x4e8   :  { %1564 = vmatpush3.bf16.msra.mxu0 %v1561_v1  ;;  %v977_v1 = vld [vmem:[#allocation10 + $0xd8] sm:$0xff] }
 0x557   :  { %v693_v20 = vpop.xlane.xlu0 %692 }
 0x558   :  { %v695_v21 = vsub.f32 %v685_v12, %v693_v20  ;;  %v690_v22 = vpop.xlane.xlu1 %689 }
 0x559   :  { %v694_v23 = vsub.f32 %v680_v16, %v690_v22 }
 0x55a   :  { %v698_v24 = vmul.f32 1.442695, %v695_v21 }
 0x55b   :  { %v696_v25 = vmul.f32 1.442695, %v694_v23  ;;  %v951_v23 = vld [vmem:[#allocation10 + $0x8] sm:$0xff] }
 0x55c   :  { %v1655_v27 = vpop.permute.xlu1 %1654 }
 0x55d   :  { %1671 = vpow2.f32 %v696_v25  ;;  %v1657_v28 = vunpack.i.h.bf16 %v1655_v27  ;;  %v1656_v29 = vunpack.i.l.bf16 %v1655_v27  ;;  %v950_v25 = vld [vmem:[#allocation10] sm:$0xff]  ;;  %v952_v27 = vld [vmem:[#allocation10 + $0x10] sm:$0xff] }
 0x55e   :  { %1673 = vpow2.f32 %v698_v24  ;;  %v953_v24 = vld [vmem:[#allocation10 + $0x18] sm:$0xff] }
 0x55f   :  { %v1529_v30 = vpack.c.bf16 %v1657_v28, %v1656_v29  ;;  %v955_v28 = vld [vmem:[#allocation10 + $0x28] sm:$0xff]  ;;  %v1567_v29 = vpack.c.bf16 %v952_v27, %v950_v25  ;;  %v1094_v25 = vld [vmem:[#allocation13 + $0x98] sm:$0xff] }
 0x561   :  { %1530 = vmatprep.subr.bf16.mxu1 %v1529_v30 }
 0x562   :  { %1532 = vmatpush3.bf16.msra.mxu1 %v1529_v30 }
 0x567   :  { %v1672_v31 = vpop.eup %1671 }
 0x568   :  { %v700_v32 = vsel %vm493_vm2, %v1672_v31, 0.0  ;;  %v1674_v33 = vpop.eup %1673 }
 0x569   :  { %701 = vadd.xlane.f32.xlu0 %v700_v32  ;;  %v703_v34 = vsel %vm493_vm2, %v1674_v33, 0.0  ;;  %v956_v32 = vld [vmem:[#allocation10 + $0x30] sm:$0xff] }
 0x56d   :  { %704 = vadd.xlane.f32.xlu0 %v703_v34  ;;  %v961_v34 = vld [vmem:[#allocation10 + $0x58] sm:$0xff] }
 0x5f6   :  { %v702_v35 = vpop.xlane.xlu0 %701 }
 0x5f7   :  { %1675 = vrcp.f32 %v702_v35  ;;  %v958_v35 = vld [vmem:[#allocation10 + $0x40] sm:$0xff] }
 0x5fa   :  { %v705_v36 = vpop.xlane.xlu0 %704 }
 0x5fb   :  { %1677 = vrcp.f32 %v705_v36  ;;  %v960_v36 = vld [vmem:[#allocation10 + $0x50] sm:$0xff] }
 0x601   :  { %v1676_v37 = vpop.eup %1675 }
 0x602   :  { %v708_v38 = vmul.f32 %v1676_v37, %v1672_v31  ;;  %v954_v31 = vld [vmem:[#allocation10 + $0x20] sm:$0xff]  ;;  %v1575_v37 = vpack.c.bf16 %v960_v36, %v958_v35 }
 0x604   :  { %1411 = vmatprep.mubr.msk.f32.mxu1 %vm493_vm2, %v708_v38 }
 0x605   :  { %v1678_v39 = vpop.eup %1677 }
 0x606   :  { %v709_v40 = vmul.f32 %v1678_v39, %v1674_v33  ;;  %v959_v33 = vld [vmem:[#allocation10 + $0x48] sm:$0xff] }
 0x608   :  { %1412 = vmatmul.mubr.msk.f32.vlgmr.msra.gmra.mrb[8].mxu1 %vm493_vm2, %v709_v40 }
 0x609   :  { %1058 = vmatprep.mubr.f32.mxu1 %v1958_v0 }
 0x6db   :  { %v1413_v2 = vpop.f32.mrb[8].mxu1 }
 0x6dc   :  { %v790_v3 = vpop.f32.mrb[9].mxu1 }
 0x6dd   :  { %v1658_v4 = vpack.i.bf16 %v1413_v2, %v790_v3  ;;  %v1587_v2 = vpack.c.bf16 %v972_v62, %v970_v60  ;;  %v1589_v3 = vpack.c.bf16 %v977_v1, %v975_v63 }
 0x6df   :  { %1659 = vrot.lane.b32.xlu0 %v1658_v4, %s1959_s0  ;;  %v974_v4 = vld [vmem:[#allocation10 + $0xc0] sm:$0xff] }
 0x751   :  { %v1660_v5 = vpop.permute.xlu0 %1659 }
 0x752   :  { %v1662_v6 = vunpack.i.h.bf16 %v1660_v5  ;;  %v1661_v7 = vunpack.i.l.bf16 %v1660_v5  ;;  %v976_v5 = vld [vmem:[#allocation10 + $0xd0] sm:$0xff] }
 0x754   :  { %v807_v11 = vsel %vm405_vm0, %v2240_v10, %v1661_v7  ;;  %v808_v12 = vsel %vm405_vm0, %v2238_v9, %v1662_v6  ;;  %v1565_v10 = vpack.c.bf16 %v953_v24, %v951_v23  ;;  %v957_v9 = vld [vmem:[#allocation10 + $0x38] sm:$0xff]  ;;  %v979_v6 = vld [vmem:[#allocation10 + $0xe8] sm:$0xff] }
 0x755   :  { %1446 = vmatprep.mubr.f32.mxu0 %v807_v11  ;;  %v1569_v30 = vpack.c.bf16 %v957_v9, %v955_v28  ;;  %v981_v7 = vld [vmem:[#allocation10 + $0xf8] sm:$0xff]  ;;  %v1591_v11 = vpack.c.bf16 %v976_v5, %v974_v4  ;;  %v1076_v23 = vld [vmem:[#allocation13 + $0x8] sm:$0xff] }
 0x756   :  { %1447 = vmatmul.mubr.f32.vlgmr.msra.gmra.mrb[4].mxu0 %v808_v12  ;;  %1566 = vmatprep.subr.bf16.mxu1 %v1565_v10  ;;  %v1593_v12 = vpack.c.bf16 %v981_v7, %v979_v6  ;;  %v1093_v24 = vld [vmem:[#allocation13 + $0x90] sm:$0xff]  ;;  %v1078_v9 = vld [vmem:[#allocation13 + $0x18] sm:$0xff] }
 0x757   :  { %1568 = vmatpush1.bf16.msra.mxu1 %v1567_v29  ;;  %v1601_v27 = vpack.c.bf16 %v1094_v25, %v1093_v24  ;;  %v1077_v28 = vld [vmem:[#allocation13 + $0x10] sm:$0xff]  ;;  %v1095_v29 = vld [vmem:[#allocation13 + $0xa0] sm:$0xff]  ;;  %v1257_v5 = vld [vmem:[#allocation9] ss:$0 sm:$0xff] }
 0x758   :  { %1570 = vmatprep.subr.bf16.mxu1 %v1569_v30  ;;  %v1096_v30 = vld [vmem:[#allocation13 + $0xa8] sm:$0xff] }
 0x829   :  { %v1448_v16 = vpop.f32.mrb[4].mxu0 }
 0x82a   :  { %v904_v18 = vadd.f32 %v1448_v16, %v1255_v15  ;;  %v898_v19 = vpop.f32.mrb[5].mxu0  ;;  %v980_v16 = vld [vmem:[#allocation10 + $0xf0] sm:$0xff] }
 0x82b   :  { %v899_v20 = vadd.f32 %v1255_v15, %v898_v19  ;;  %v978_v15 = vld [vmem:[#allocation10 + $0xe0] sm:$0xff] }
 0x82c   :  { %v908_v21 = vadd.f32 %v904_v18, %v2185_v8  ;;  %v1571_v8 = vpack.c.bf16 %v956_v32, %v954_v31  ;;  %v1595_v18 = vpack.c.bf16 %v980_v16, %v978_v15  ;;  %v1091_v19 = vld [vmem:[#allocation13 + $0x80] sm:$0xff]  ;;  %v1603_v31 = vpack.c.bf16 %v1078_v9, %v1077_v28  ;;  %v1088_v16 = vld [vmem:[#allocation13 + $0x68] sm:$0xff] }
 0x82d   :  { %v907_v22 = vadd.f32 %v899_v20, %v2177_v26  ;;  %v1573_v26 = vpack.c.bf16 %v961_v34, %v959_v33  ;;  %v1092_v20 = vld [vmem:[#allocation13 + $0x88] sm:$0xff]  ;;  %v1605_v32 = vpack.c.bf16 %v1096_v30, %v1095_v29  ;;  %v1079_v33 = vld [vmem:[#allocation13 + $0x20] sm:$0xff] }
 0x82e   :  { %913 = vadd.xlane.f32.xlu0 %v908_v21  ;;  %1572 = vmatpush1.bf16.msra.mxu1 %v1571_v8  ;;  %v1080_v34 = vld [vmem:[#allocation13 + $0x28] sm:$0xff]  ;;  %v1097_v8 = vld [vmem:[#allocation13 + $0xb0] sm:$0xff]  ;;  %v1087_v15 = vld [vmem:[#allocation13 + $0x60] sm:$0xff] }
 0x82f   :  { %911 = vadd.xlane.f32.xlu1 %v907_v22  ;;  %1574 = vmatprep.subr.bf16.mxu1 %v1573_v26  ;;  %v1098_v26 = vld [vmem:[#allocation13 + $0xb8] sm:$0xff]  ;;  %v1607_v35 = vpack.c.bf16 %v1080_v34, %v1079_v33 }
 0x830   :  { %v1609_v36 = vpack.c.bf16 %v1098_v26, %v1097_v8  ;;  %v1258_v26 = vld [vmem:[#allocation15] ss:$0 sm:$0xff] }
 0x832   :  { %1576 = vmatpush1.bf16.msra.mxu1 %v1575_v37  ;;  %v1081_v37 = vld [vmem:[#allocation13 + $0x30] sm:$0xff] }
 0x833   :  { %1578 = vmatprep.subr.bf16.mxu1 %v1577_v48  ;;  %v1102_v48 = vld [vmem:[#allocation13 + $0xd8] sm:$0xff] }
 0x834   :  { %v1617_v50 = vpack.c.bf16 %v1102_v48, %v1101_v47 }
 0x836   :  { %1580 = vmatpush1.bf16.msra.mxu1 %v1579_v51  ;;  %v1085_v51 = vld [vmem:[#allocation13 + $0x50] sm:$0xff] }
 0x837   :  { %1582 = vmatprep.subr.bf16.mxu1 %v1581_v54  ;;  %v1104_v54 = vld [vmem:[#allocation13 + $0xe8] sm:$0xff]  ;;  %v1619_v55 = vpack.c.bf16 %v1086_v52, %v1085_v51 }
 0x838   :  { %v1621_v56 = vpack.c.bf16 %v1104_v54, %v1103_v53 }
 0x83a   :  { %1584 = vmatpush1.bf16.msra.mxu1 %v1583_v57 }
 0x83b   :  { %1586 = vmatprep.subr.bf16.mxu1 %v1585_v61 }
 0x83e   :  { %1588 = vmatpush1.bf16.msra.mxu1 %v1587_v2  ;;  %v1256_v2 = vld [vmem:[#allocation7] ss:$0 sm:$0xff] }
 0x83f   :  { %1590 = vmatprep.subr.bf16.mxu1 %v1589_v3 }
 0x842   :  { %1592 = vmatpush1.bf16.msra.mxu1 %v1591_v11 }
 0x843   :  { %1594 = vmatprep.subr.bf16.mxu1 %v1593_v12 }
 0x846   :  { %1596 = vmatpush1.bf16.msra.mxu1 %v1595_v18  ;;  %v1623_v18 = vpack.c.bf16 %v1088_v16, %v1087_v15 }
 0x8bb   :  { %v914_v38 = vpop.xlane.xlu0 %913 }
 0x8bc   :  { %v917_v39 = vmul.f32 0.0078125, %v914_v38  ;;  %v912_v40 = vpop.xlane.xlu1 %911  ;;  %v1082_v38 = vld [vmem:[#allocation13 + $0x38] sm:$0xff] }
 0x8bd   :  { %v916_v41 = vmul.f32 0.0078125, %v912_v40  ;;  %v1100_v40 = vld [vmem:[#allocation13 + $0xc8] sm:$0xff] }
 0x8be   :  { %v2257_v42 = vsub.f32 %v908_v21, %v917_v39  ;;  %v1075_v21 = vld [vmem:[#allocation13] sm:$0xff] }
 0x8bf   :  { %v2259_v43 = vsub.f32 %v907_v22, %v916_v41  ;;  %v1597_v22 = vpack.c.bf16 %v1092_v20, %v1091_v19  ;;  %v1599_v10 = vpack.c.bf16 %v1076_v23, %v1075_v21  ;;  %v1099_v39 = vld [vmem:[#allocation13 + $0xc0] sm:$0xff]  ;;  %v1611_v41 = vpack.c.bf16 %v1082_v38, %v1081_v37  ;;  %v1105_v19 = vld [vmem:[#allocation13 + $0xf0] sm:$0xff]  ;;  %v1106_v20 = vld [vmem:[#allocation13 + $0xf8] sm:$0xff] }
 0x8c0   :  { %v921_v44 = vmul.f32 %v2257_v42, %v2257_v42  ;;  %v1625_v21 = vpack.c.bf16 %v1106_v20, %v1105_v19 }
 0x8c1   :  { %v920_v45 = vmul.f32 %v2259_v43, %v2259_v43  ;;  %1598 = vmatprep.subr.bf16.mxu0 %v1597_v22  ;;  %v1089_v22 = vld [vmem:[#allocation13 + $0x70] sm:$0xff] }
 0x8c2   :  { %924 = vadd.xlane.f32.xlu0 %v921_v44  ;;  %1600 = vmatpush3.bf16.msra.mxu0 %v1599_v10  ;;  %v1613_v44 = vpack.c.bf16 %v1100_v40, %v1099_v39 }
 0x8c3   :  { %922 = vadd.xlane.f32.xlu1 %v920_v45  ;;  %1602 = vmatprep.subr.bf16.mxu0 %v1601_v27  ;;  %v1083_v45 = vld [vmem:[#allocation13 + $0x40] sm:$0xff] }
 0x8c4   :  { %v1615_v49 = vpack.c.bf16 %v1084_v46, %v1083_v45 }
 0x8c6   :  { %1604 = vmatpush3.bf16.msra.mxu0 %v1603_v31 }
 0x8c7   :  { %1606 = vmatprep.subr.bf16.mxu0 %v1605_v32 }
 0x8ca   :  { %1608 = vmatpush3.bf16.msra.mxu0 %v1607_v35 }
 0x8cb   :  { %1610 = vmatprep.subr.bf16.mxu0 %v1609_v36 }
 0x8ce   :  { %1612 = vmatpush3.bf16.msra.mxu0 %v1611_v41 }
 0x8cf   :  { %1614 = vmatprep.subr.bf16.mxu0 %v1613_v44 }
 0x8d2   :  { %1616 = vmatpush3.bf16.msra.mxu0 %v1615_v49 }
 0x8d3   :  { %1618 = vmatprep.subr.bf16.mxu0 %v1617_v50 }
 0x8d6   :  { %1620 = vmatpush3.bf16.msra.mxu0 %v1619_v55 }
 0x8d7   :  { %1622 = vmatprep.subr.bf16.mxu0 %v1621_v56 }
 0x8da   :  { %1624 = vmatpush3.bf16.msra.mxu0 %v1623_v18 }
 0x8db   :  { %1626 = vmatprep.subr.bf16.mxu0 %v1625_v21 }
 0x94f   :  { %v925_v57 = vpop.xlane.xlu0 %924 }
 0x950   :  { %v927_v58 = vmul.f32 0.0078125, %v925_v57  ;;  %v923_v59 = vpop.xlane.xlu1 %922 }
 0x951   :  { %v926_v60 = vmul.f32 0.0078125, %v923_v59  ;;  %v1259_v59 = vld [vmem:[#allocation16] ss:$0 sm:$0xff] }
 0x952   :  { %v929_v61 = vadd.f32 1e-05, %v927_v58 }
 0x953   :  { %v928_v62 = vadd.f32 1e-05, %v926_v60 }
 0x954   :  { %1679 = vrsqrt.f32 %v929_v61  ;;  %v1260_v61 = vld [vmem:[#allocation18] ss:$0 sm:$0xff] }
 0x955   :  { %1681 = vrsqrt.f32 %v928_v62 }
 0x95e   :  { %v1680_v63 = vpop.eup %1679 }
 0x95f   :  { %v1682_v1 = vpop.eup %1681  ;;  %v933_v4 = vmul.f32 %v1680_v63, %v2257_v42  ;;  %v982_v42 = vld [vmem:[#allocation12] sm:$0x3] }
 0x960   :  { %v932_v3 = vmul.f32 %v1682_v1, %v2259_v43  ;;  %v1090_v43 = vld [vmem:[#allocation13 + $0x78] sm:$0xff]  ;;  %v987_v24 = vrot.slane %v982_v42, %v238_v14 }
 0x961   :  { %v941_v11 = vmul.f32 %v1256_v2, %v933_v4  ;;  %v1627_v23 = vpack.c.bf16 %v1090_v43, %v1089_v22 }
 0x962   :  { %v940_v6 = vmul.f32 %v1256_v2, %v932_v3 }
 0x963   :  { %v949_v12 = vadd.f32 %v1257_v5, %v941_v11  ;;  %1628 = vmatpush3.bf16.msra.mxu0 %v1627_v23 }
 0x964   :  { %v948_v7 = vadd.f32 %v1257_v5, %v940_v6 }
 0x966   :  { %1059 = vmatmul.mubr.f32.vlgmr.msra.gmra.mrb[10].mxu1 %v948_v7 }
 0x967   :  { %1064 = vmatprep.mubr.f32.mxu1 %v1958_v0  ;;  %v991_v0 = vrot.slane %v982_v42, %v242_v17 }
 0x96a   :  { %1065 = vmatmul.mubr.f32.gmra.mrb[12].mxu1 %v949_v12 }
 0xa39   :  { %v1060_v25 = vpop.f32.mrb[10].mxu1 }
 0xa3a   :  { %v1061_v10 = vadd.f32 %v1060_v25, %v987_v24  ;;  %v1062_v27 = vpop.f32.mrb[11].mxu1 }
 0xa3b   :  { %v1063_v28 = vadd.f32 %v1062_v27, %v991_v0 }
 0xa3c   :  { %v1071_v30 = vmax.f32 %v1061_v10, 0.0 }
 0xa3d   :  { %v1072_v9 = vmax.f32 %v1063_v28, 0.0  ;;  %v1066_v29 = vpop.f32.mrb[12].mxu1 }
 0xa3e   :  { %v1067_v31 = vadd.f32 %v1066_v29, %v987_v24  ;;  %v1068_v32 = vpop.f32.mrb[13].mxu1 }
 0xa3f   :  { %v1069_v33 = vadd.f32 %v1068_v32, %v991_v0  ;;  %1178 = vmatprep.mubr.f32.mxu0 %v1072_v9 }
 0xa40   :  { %1179 = vmatmul.mubr.f32.vlgmr.msra.gmra.mrb[6].mxu0 %v1071_v30  ;;  %v1073_v8 = vmax.f32 %v1067_v31, 0.0 }
 0xa41   :  { %v1074_v34 = vmax.f32 %v1069_v33, 0.0 }
 0xa43   :  { %1183 = vmatprep.mubr.f32.mxu0 %v1074_v34 }
 0xa44   :  { %1184 = vmatmul.mubr.f32.gmra.mrb[8].mxu0 %v1073_v8 }
 0xb13   :  { %v1345_v14 = vpop.f32.mrb[6].mxu0 }
 0xb14   :  { %v1346_v13 = vpop.f32.mrb[7].mxu0 }
 0xb15   :  { %v1347_v17 = vadd.f32 %v1346_v13, %v1345_v14 }
 0xb17   :  { %v1181_v35 = vadd.f32 %v1347_v17, %v1258_v26  ;;  %v1348_v36 = vpop.f32.mrb[8].mxu0 }
 0xb18   :  { %v1349_v37 = vpop.f32.mrb[9].mxu0 }
 0xb19   :  { %v1350_v38 = vadd.f32 %v1349_v37, %v1348_v36  ;;  %v1189_v39 = vadd.f32 %v1181_v35, %v948_v7 }
 0xb1b   :  { %v1186_v40 = vadd.f32 %v1350_v38, %v1258_v26  ;;  %1193 = vadd.xlane.f32.xlu1 %v1189_v39 }
 0xb1d   :  { %v1190_v41 = vadd.f32 %v1186_v40, %v949_v12 }
 0xb1f   :  { %1195 = vadd.xlane.f32.xlu0 %v1190_v41 }
 0xba8   :  { %v1194_v44 = vpop.xlane.xlu1 %1193 }
 0xba9   :  { %v1197_v45 = vmul.f32 0.0078125, %v1194_v44 }
 0xbab   :  { %v1199_v46 = vsub.f32 %v1189_v39, %v1197_v45 }
 0xbac   :  { %v1196_v47 = vpop.xlane.xlu0 %1195 }
 0xbad   :  { %v1198_v48 = vmul.f32 0.0078125, %v1196_v47  ;;  %v1201_v49 = vmul.f32 %v1199_v46, %v1199_v46 }
 0xbaf   :  { %v1200_v50 = vsub.f32 %v1190_v41, %v1198_v48  ;;  %1203 = vadd.xlane.f32.xlu1 %v1201_v49 }
 0xbb1   :  { %v1202_v51 = vmul.f32 %v1200_v50, %v1200_v50 }
 0xbb3   :  { %1205 = vadd.xlane.f32.xlu0 %v1202_v51 }
 0xc3c   :  { %v1204_v52 = vpop.xlane.xlu1 %1203 }
 0xc3d   :  { %v1207_v53 = vmul.f32 0.0078125, %v1204_v52 }
 0xc3f   :  { %v1209_v54 = vadd.f32 1e-05, %v1207_v53 }
 0xc40   :  { %v1206_v55 = vpop.xlane.xlu0 %1205 }
 0xc41   :  { %1683 = vrsqrt.f32 %v1209_v54  ;;  %v1208_v56 = vmul.f32 0.0078125, %v1206_v55 }
 0xc43   :  { %v1210_v57 = vadd.f32 1e-05, %v1208_v56 }
 0xc45   :  { %1685 = vrsqrt.f32 %v1210_v57 }
 0xc4b   :  { %v1684_v58 = vpop.eup %1683 }
 0xc4c   :  { %v1213_v60 = vmul.f32 %v1684_v58, %v1199_v46 }
 0xc4e   :  { %v1221_v62 = vmul.f32 %v1259_v59, %v1213_v60 }
 0xc4f   :  { %v1686_v63 = vpop.eup %1685 }
 0xc50   :  { %v1229_v1 = vadd.f32 %v1260_v61, %v1221_v62  ;;  %v1214_v2 = vmul.f32 %v1686_v63, %v1200_v50 }
 0xc52   :  { %1231 = vst [vmem:[%s2292_s14] sm:$0xff] %v1229_v1  ;;  %v1222_v3 = vmul.f32 %v1259_v59, %v1214_v2 }
 0xc54   :  { %v1230_v4 = vadd.f32 %v1260_v61, %v1222_v3 }
 0xc56   :  { %1232 = vst [vmem:[%s2292_s14 + $0x8] sm:$0xff] %v1230_v4 }
 0xc57   :  { %1237 = vsyncpa [#allocation3], 1 }
 0xc58   :  { %1238 = vsyncpa [#allocation5], 1 }
 0xc59   :  { %1239 = vsyncpa [#allocation8], 1 }
 0xc5a   :  { %1240 = vsyncpa [#allocation11], 1 }
 0xc5b   :  { %1241 = vsyncpa [#allocation14], 1 }
 0xc5c   :  { %1242 = vsyncpa [#allocation17], 1 }

// kernel: transam_forward.3
= control target key start
LH: loop header
LB: loop body
LE: loop exit
PB: predicated region body
PF: predicated region fallthrough
CT: control target
= control target key end

     0   :  { %vm311_vm0 = vcmask 64512   ;;  %vm3972_vm1 = vcmask 261120   ;;  %vm15662_vm2 = vmmov 0   ;;  %s19212_s1 = inlined_call_operand.vmem [shape: f32[3,8,32], index: 1, kind: input, shape index: {}]   ;;  %s19213_s8 = inlined_call_operand.vmem [shape: f32[32,128], index: 8, kind: input, shape index: {}]   ;;  %s19214_s9 = inlined_call_operand.vmem [shape: f32[32,128], index: 9, kind: input, shape index: {}]   ;;  %s19215_s10 = inlined_call_operand.vmem [shape: f32[1,128], index: 10, kind: input, shape index: {}]   ;;  %s19216_s11 = inlined_call_operand.vmem [shape: f32[32,256], index: 11, kind: input, shape index: {}]   ;;  %s19217_s12 = inlined_call_operand.vmem [shape: f32[1,256], index: 12, kind: input, shape index: {}]   ;;  %s19218_s13 = inlined_call_operand.vmem [shape: f32[256,1], index: 13, kind: input, shape index: {}]   ;;  %s19219_s14 = inlined_call_operand.<no memory space> [shape: f32[1,1], index: 14, kind: input, shape index: {}]   ;;  %s19220_s15 = inlined_call_operand.vmem [shape: f32[8,1], index: 15, kind: output, shape index: {}]   ;;  %s19221_s0 = inlined_call_operand.vmem [shape: f32[8,130,8], index: 0, kind: input, shape index: {}]   ;;  %s19222_s3 = inlined_call_operand.vmem [shape: f32[3,32,18], index: 3, kind: input, shape index: {}]   ;;  %s19223_s2 = inlined_call_operand.vmem [shape: f32[1,32], index: 2, kind: input, shape index: {}]   ;;  %s19224_s5 = inlined_call_operand.vmem [shape: f32[128,128], index: 5, kind: input, shape index: {}]   ;;  %s19225_s4 = inlined_call_operand.vmem [shape: f32[1,18], index: 4, kind: input, shape index: {}]   ;;  %s19226_s7 = inlined_call_operand.vmem [shape: f32[1,128], index: 7, kind: input, shape index: {}]   ;;  %s19227_s6 = inlined_call_operand.vmem [shape: f32[32,128], index: 6, kind: input, shape index: {}]  }
   0x1   :  { %v20_v0 = vstv %s19219_s14  ;;  %v11095_v1 = vld [vmem:[%s19212_s1 + $0x8] sm:$0xff]  ;;  %v180_v4 = vld [vmem:[%s19212_s1] sm:$0xff]  ;;  %v183_v5 = vld [vmem:[%s19221_s0 + $0x11] sm:$0xff] }
   0x2   :  { %v181_v2 = vld [vmem:[%s19221_s0 + $0x1] sm:$0xff]  ;;  %v182_v3 = vld [vmem:[%s19221_s0 + $0x9] sm:$0xff]  ;;  %21 = vst [vmem:[#allocation6] sm:$0x1] %v20_v0  ;;  %12985 = vmatprep.subr.mxu0 %v11095_v1  ;;  %v184_v6 = vld [vmem:[%s19221_s0 + $0x19] sm:$0xff] }
   0x3   :  { %12987 = vmatprep.mubr.msk.f32.mxu0 %vm311_vm0, %v181_v2  ;;  %12986 = vmatpush3.msra.mxu0 %v11095_v1  ;;  %v185_v7 = vld [vmem:[%s19221_s0 + $0x21] sm:$0xff]  ;;  %v186_v8 = vld [vmem:[%s19221_s0 + $0x29] sm:$0xff]  ;;  %v187_v9 = vld [vmem:[%s19221_s0 + $0x31] sm:$0xff] }
   0x4   :  { %12988 = vmatmul.mubr.msk.f32.vlgmr.msra.gmra.mrb[0].mxu0 %vm311_vm0, %v182_v3  ;;  %13179 = vmatprep.subr.mxu0 %v180_v4  ;;  %v188_v10 = vld [vmem:[%s19221_s0 + $0x39] sm:$0xff]  ;;  %v189_v11 = vld [vmem:[%s19221_s0 + $0x41] sm:$0xff]  ;;  %v190_v12 = vld [vmem:[%s19221_s0 + $0x49] sm:$0xff] }
   0x5   :  { %13180 = vmatpush3.msra.mxu0 %v180_v4  ;;  %12990 = vmatprep.mubr.msk.f32.mxu0 %vm311_vm0, %v183_v5  ;;  %v191_v13 = vld [vmem:[%s19221_s0 + $0x51] sm:$0xff]  ;;  %v192_v14 = vld [vmem:[%s19221_s0 + $0x59] sm:$0xff]  ;;  %v193_v15 = vld [vmem:[%s19221_s0 + $0x61] sm:$0xff] }
   0x6   :  { %v194_v16 = vld [vmem:[%s19221_s0 + $0x69] sm:$0xff]  ;;  %v195_v17 = vld [vmem:[%s19221_s0 + $0x71] sm:$0xff]  ;;  %v196_v18 = vld [vmem:[%s19221_s0 + $0x79] sm:$0xff] }
   0x7   :  { %v197_v19 = vld [vmem:[%s19221_s0 + $0x89] sm:$0xff]  ;;  %v198_v20 = vld [vmem:[%s19221_s0 + $0x91] sm:$0xff]  ;;  %v199_v21 = vld [vmem:[%s19221_s0 + $0x99] sm:$0xff] }
   0x8   :  { %12991 = vmatmul.mubr.msk.f32.gmra.mrb[2].mxu0 %vm311_vm0, %v184_v6  ;;  %v200_v22 = vld [vmem:[%s19221_s0 + $0xa1] sm:$0xff]  ;;  %v201_v23 = vld [vmem:[%s19221_s0 + $0xa9] sm:$0xff]  ;;  %v202_v24 = vld [vmem:[%s19221_s0 + $0xb1] sm:$0xff] }
   0x9   :  { %12993 = vmatprep.mubr.msk.f32.mxu0 %vm311_vm0, %v185_v7  ;;  %v203_v25 = vld [vmem:[%s19221_s0 + $0xb9] sm:$0xff]  ;;  %v204_v26 = vld [vmem:[%s19221_s0 + $0xc1] sm:$0xff]  ;;  %v205_v27 = vld [vmem:[%s19221_s0 + $0xc9] sm:$0xff] }
   0xa   :  { %v206_v28 = vld [vmem:[%s19221_s0 + $0xd1] sm:$0xff]  ;;  %v207_v29 = vld [vmem:[%s19221_s0 + $0xd9] sm:$0xff]  ;;  %v208_v30 = vld [vmem:[%s19221_s0 + $0xe1] sm:$0xff] }
   0xb   :  { %v209_v31 = vld [vmem:[%s19221_s0 + $0xe9] sm:$0xff]  ;;  %v210_v32 = vld [vmem:[%s19221_s0 + $0xf1] sm:$0xff]  ;;  %v211_v33 = vld [vmem:[%s19221_s0 + $0xf9] sm:$0xff] }
   0xc   :  { %12994 = vmatmul.mubr.msk.f32.gmra.mrb[4].mxu0 %vm311_vm0, %v186_v8  ;;  %v212_v34 = vld [vmem:[%s19221_s0 + $0x101] sm:$0xff]  ;;  %v213_v35 = vld [vmem:[%s19221_s0 + $0x111] sm:$0xff]  ;;  %v214_v36 = vld [vmem:[%s19221_s0 + $0x119] sm:$0xff] }
   0xd   :  { %12996 = vmatprep.mubr.msk.f32.mxu0 %vm311_vm0, %v187_v9  ;;  %v215_v37 = vld [vmem:[%s19221_s0 + $0x121] sm:$0xff]  ;;  %v216_v38 = vld [vmem:[%s19221_s0 + $0x129] sm:$0xff]  ;;  %v217_v39 = vld [vmem:[%s19221_s0 + $0x131] sm:$0xff] }
   0xe   :  { %v218_v40 = vld [vmem:[%s19221_s0 + $0x139] sm:$0xff]  ;;  %v219_v41 = vld [vmem:[%s19221_s0 + $0x141] sm:$0xff]  ;;  %v220_v42 = vld [vmem:[%s19221_s0 + $0x149] sm:$0xff] }
   0xf   :  { %v221_v43 = vld [vmem:[%s19221_s0 + $0x151] sm:$0xff]  ;;  %v222_v44 = vld [vmem:[%s19221_s0 + $0x159] sm:$0xff]  ;;  %v223_v45 = vld [vmem:[%s19221_s0 + $0x161] sm:$0xff] }
  0x10   :  { %12997 = vmatmul.mubr.msk.f32.gmra.mrb[6].mxu0 %vm311_vm0, %v188_v10  ;;  %v224_v46 = vld [vmem:[%s19221_s0 + $0x169] sm:$0xff]  ;;  %v225_v47 = vld [vmem:[%s19221_s0 + $0x171] sm:$0xff]  ;;  %v226_v48 = vld [vmem:[%s19221_s0 + $0x179] sm:$0xff] }
  0x11   :  { %12999 = vmatprep.mubr.msk.f32.mxu0 %vm311_vm0, %v189_v11  ;;  %v227_v49 = vld [vmem:[%s19221_s0 + $0x181] sm:$0xff]  ;;  %v228_v50 = vld [vmem:[%s19221_s0 + $0x189] sm:$0xff]  ;;  %v229_v51 = vld [vmem:[%s19221_s0 + $0x199] sm:$0xff] }
  0x12   :  { %v230_v52 = vld [vmem:[%s19221_s0 + $0x1a1] sm:$0xff]  ;;  %v231_v53 = vld [vmem:[%s19221_s0 + $0x1a9] sm:$0xff]  ;;  %v232_v54 = vld [vmem:[%s19221_s0 + $0x1b1] sm:$0xff] }
  0x13   :  { %v233_v55 = vld [vmem:[%s19221_s0 + $0x1b9] sm:$0xff]  ;;  %v234_v56 = vld [vmem:[%s19221_s0 + $0x1c1] sm:$0xff]  ;;  %v235_v57 = vld [vmem:[%s19221_s0 + $0x1c9] sm:$0xff] }
  0x14   :  { %13000 = vmatmul.mubr.msk.f32.gmra.mrb[8].mxu0 %vm311_vm0, %v190_v12  ;;  %v236_v58 = vld [vmem:[%s19221_s0 + $0x1d1] sm:$0xff]  ;;  %v237_v59 = vld [vmem:[%s19221_s0 + $0x1d9] sm:$0xff]  ;;  %v238_v60 = vld [vmem:[%s19221_s0 + $0x1e1] sm:$0xff] }
  0x15   :  { %13002 = vmatprep.mubr.msk.f32.mxu0 %vm311_vm0, %v191_v13  ;;  %v239_v61 = vld [vmem:[%s19221_s0 + $0x1e9] sm:$0xff]  ;;  %v240_v62 = vld [vmem:[%s19221_s0 + $0x1f1] sm:$0xff]  ;;  %v241_v63 = vld [vmem:[%s19221_s0 + $0x1f9] sm:$0xff] }
  0x16   :  { %v242_v0 = vld [vmem:[%s19221_s0 + $0x201] sm:$0xff]  ;;  %v243_v1 = vld [vmem:[%s19221_s0 + $0x209] sm:$0xff]  ;;  %v244_v2 = vld [vmem:[%s19221_s0 + $0x211] sm:$0xff] }
  0x17   :  { %v245_v3 = vld [vmem:[%s19221_s0 + $0x221] sm:$0xff]  ;;  %v246_v4 = vld [vmem:[%s19221_s0 + $0x229] sm:$0xff]  ;;  %v247_v5 = vld [vmem:[%s19221_s0 + $0x231] sm:$0xff] }
  0x18   :  { %13003 = vmatmul.mubr.msk.f32.gmra.mrb[10].mxu0 %vm311_vm0, %v192_v14  ;;  %v16034_v6 = vld [vmem:[%s19212_s1 + $0x10] sm:$0xff]  ;;  %v248_v7 = vld [vmem:[%s19221_s0 + $0x239] sm:$0xff]  ;;  %v249_v8 = vld [vmem:[%s19221_s0 + $0x241] sm:$0xff] }
  0x19   :  { %13005 = vmatprep.mubr.msk.f32.mxu0 %vm311_vm0, %v193_v15  ;;  %13373 = vmatprep.subr.mxu0 %v16034_v6  ;;  %v250_v9 = vld [vmem:[%s19221_s0 + $0x249] sm:$0xff]  ;;  %v251_v10 = vld [vmem:[%s19221_s0 + $0x251] sm:$0xff]  ;;  %v252_v11 = vld [vmem:[%s19221_s0 + $0x259] sm:$0xff] }
  0x1a   :  { %v253_v12 = vld [vmem:[%s19221_s0 + $0x261] sm:$0xff]  ;;  %v254_v13 = vld [vmem:[%s19221_s0 + $0x269] sm:$0xff]  ;;  %v255_v14 = vld [vmem:[%s19221_s0 + $0x271] sm:$0xff] }
  0x1b   :  { %v256_v15 = vld [vmem:[%s19221_s0 + $0x279] sm:$0xff] }
  0x1c   :  { %13006 = vmatmul.mubr.msk.f32.gmra.mrb[12].mxu0 %vm311_vm0, %v194_v16  ;;  %v257_v16 = vld [vmem:[%s19221_s0 + $0x281] sm:$0xff] }
  0x1d   :  { %13008 = vmatprep.mubr.msk.f32.mxu0 %vm311_vm0, %v195_v17  ;;  %v258_v17 = vld [vmem:[%s19221_s0 + $0x289] sm:$0xff] }
  0x20   :  { %13009 = vmatmul.mubr.msk.f32.gmra.mrb[14].mxu0 %vm311_vm0, %v196_v18  ;;  %v259_v18 = vld [vmem:[%s19221_s0 + $0x291] sm:$0xff] }
  0x21   :  { %13011 = vmatprep.mubr.msk.f32.mxu0 %vm311_vm0, %v197_v19  ;;  %v260_v19 = vld [vmem:[%s19221_s0 + $0x299] sm:$0xff] }
  0x24   :  { %13012 = vmatmul.mubr.msk.f32.gmra.mrb[16].mxu0 %vm311_vm0, %v198_v20  ;;  %v261_v20 = vld [vmem:[%s19221_s0 + $0x2a9] sm:$0xff] }
  0x25   :  { %13014 = vmatprep.mubr.msk.f32.mxu0 %vm311_vm0, %v199_v21  ;;  %v262_v21 = vld [vmem:[%s19221_s0 + $0x2b1] sm:$0xff] }
  0x28   :  { %13015 = vmatmul.mubr.msk.f32.gmra.mrb[18].mxu0 %vm311_vm0, %v200_v22  ;;  %v263_v22 = vld [vmem:[%s19221_s0 + $0x2b9] sm:$0xff] }
  0x29   :  { %13017 = vmatprep.mubr.msk.f32.mxu0 %vm311_vm0, %v201_v23  ;;  %v264_v23 = vld [vmem:[%s19221_s0 + $0x2c1] sm:$0xff] }
  0x2c   :  { %13018 = vmatmul.mubr.msk.f32.gmra.mrb[20].mxu0 %vm311_vm0, %v202_v24  ;;  %v265_v24 = vld [vmem:[%s19221_s0 + $0x2c9] sm:$0xff] }
  0x2d   :  { %13020 = vmatprep.mubr.msk.f32.mxu0 %vm311_vm0, %v203_v25  ;;  %v266_v25 = vld [vmem:[%s19221_s0 + $0x2d1] sm:$0xff] }
  0x30   :  { %13021 = vmatmul.mubr.msk.f32.gmra.mrb[22].mxu0 %vm311_vm0, %v204_v26  ;;  %v267_v26 = vld [vmem:[%s19221_s0 + $0x2d9] sm:$0xff] }
  0x31   :  { %13023 = vmatprep.mubr.msk.f32.mxu0 %vm311_vm0, %v205_v27  ;;  %v268_v27 = vld [vmem:[%s19221_s0 + $0x2e1] sm:$0xff] }
  0x34   :  { %13024 = vmatmul.mubr.msk.f32.gmra.mrb[24].mxu0 %vm311_vm0, %v206_v28  ;;  %v269_v28 = vld [vmem:[%s19221_s0 + $0x2e9] sm:$0xff] }
  0x35   :  { %13026 = vmatprep.mubr.msk.f32.mxu0 %vm311_vm0, %v207_v29  ;;  %v270_v29 = vld [vmem:[%s19221_s0 + $0x2f1] sm:$0xff] }
  0x38   :  { %13027 = vmatmul.mubr.msk.f32.gmra.mrb[26].mxu0 %vm311_vm0, %v208_v30  ;;  %v271_v30 = vld [vmem:[%s19221_s0 + $0x2f9] sm:$0xff] }
  0x39   :  { %13029 = vmatprep.mubr.msk.f32.mxu0 %vm311_vm0, %v209_v31  ;;  %v272_v31 = vld [vmem:[%s19221_s0 + $0x301] sm:$0xff] }
  0x3c   :  { %13030 = vmatmul.mubr.msk.f32.gmra.mrb[28].mxu0 %vm311_vm0, %v210_v32  ;;  %v273_v32 = vld [vmem:[%s19221_s0 + $0x309] sm:$0xff] }
  0x3d   :  { %13032 = vmatprep.mubr.msk.f32.mxu0 %vm311_vm0, %v211_v33  ;;  %v274_v33 = vld [vmem:[%s19221_s0 + $0x311] sm:$0xff] }
  0x40   :  { %13033 = vmatmul.mubr.msk.f32.gmra.mrb[30].mxu0 %vm311_vm0, %v212_v34  ;;  %v275_v34 = vld [vmem:[%s19221_s0 + $0x319] sm:$0xff] }
  0x41   :  { %13035 = vmatprep.mubr.msk.f32.mxu0 %vm311_vm0, %v213_v35  ;;  %v276_v35 = vld [vmem:[%s19221_s0 + $0x321] sm:$0xff] }
  0x44   :  { %13036 = vmatmul.mubr.msk.f32.gmra.mrb[32].mxu0 %vm311_vm0, %v214_v36  ;;  %v277_v36 = vld [vmem:[%s19221_s0 + $0x331] sm:$0xff] }
  0x45   :  { %13038 = vmatprep.mubr.msk.f32.mxu0 %vm311_vm0, %v215_v37  ;;  %v278_v37 = vld [vmem:[%s19221_s0 + $0x339] sm:$0xff] }
  0x48   :  { %13039 = vmatmul.mubr.msk.f32.gmra.mrb[34].mxu0 %vm311_vm0, %v216_v38  ;;  %v279_v38 = vld [vmem:[%s19221_s0 + $0x341] sm:$0xff] }
  0x49   :  { %13041 = vmatprep.mubr.msk.f32.mxu0 %vm311_vm0, %v217_v39  ;;  %v280_v39 = vld [vmem:[%s19221_s0 + $0x349] sm:$0xff] }
  0x4c   :  { %13042 = vmatmul.mubr.msk.f32.gmra.mrb[36].mxu0 %vm311_vm0, %v218_v40  ;;  %v281_v40 = vld [vmem:[%s19221_s0 + $0x351] sm:$0xff] }
  0x4d   :  { %13044 = vmatprep.mubr.msk.f32.mxu0 %vm311_vm0, %v219_v41  ;;  %v282_v41 = vld [vmem:[%s19221_s0 + $0x359] sm:$0xff] }
  0x50   :  { %13045 = vmatmul.mubr.msk.f32.gmra.mrb[38].mxu0 %vm311_vm0, %v220_v42  ;;  %v283_v42 = vld [vmem:[%s19221_s0 + $0x361] sm:$0xff] }
  0x51   :  { %13047 = vmatprep.mubr.msk.f32.mxu0 %vm311_vm0, %v221_v43  ;;  %v284_v43 = vld [vmem:[%s19221_s0 + $0x369] sm:$0xff] }
  0x54   :  { %13048 = vmatmul.mubr.msk.f32.gmra.mrb[40].mxu0 %vm311_vm0, %v222_v44  ;;  %v285_v44 = vld [vmem:[%s19221_s0 + $0x371] sm:$0xff] }
  0x55   :  { %13050 = vmatprep.mubr.msk.f32.mxu0 %vm311_vm0, %v223_v45  ;;  %v286_v45 = vld [vmem:[%s19221_s0 + $0x379] sm:$0xff] }
  0x58   :  { %13051 = vmatmul.mubr.msk.f32.gmra.mrb[42].mxu0 %vm311_vm0, %v224_v46  ;;  %v287_v46 = vld [vmem:[%s19221_s0 + $0x381] sm:$0xff] }
  0x59   :  { %13053 = vmatprep.mubr.msk.f32.mxu0 %vm311_vm0, %v225_v47  ;;  %v288_v47 = vld [vmem:[%s19221_s0 + $0x389] sm:$0xff] }
  0x5c   :  { %13054 = vmatmul.mubr.msk.f32.gmra.mrb[44].mxu0 %vm311_vm0, %v226_v48  ;;  %v289_v48 = vld [vmem:[%s19221_s0 + $0x391] sm:$0xff] }
  0x5d   :  { %13056 = vmatprep.mubr.msk.f32.mxu0 %vm311_vm0, %v227_v49  ;;  %v290_v49 = vld [vmem:[%s19221_s0 + $0x399] sm:$0xff] }
  0x60   :  { %13057 = vmatmul.mubr.msk.f32.gmra.mrb[46].mxu0 %vm311_vm0, %v228_v50  ;;  %v291_v50 = vld [vmem:[%s19221_s0 + $0x3a1] sm:$0xff] }
  0x61   :  { %13059 = vmatprep.mubr.msk.f32.mxu0 %vm311_vm0, %v229_v51  ;;  %v292_v51 = vld [vmem:[%s19221_s0 + $0x3a9] sm:$0xff] }
  0x64   :  { %13060 = vmatmul.mubr.msk.f32.gmra.mrb[48].mxu0 %vm311_vm0, %v230_v52  ;;  %v293_v52 = vld [vmem:[%s19221_s0 + $0x3b9] sm:$0xff] }
  0x65   :  { %13062 = vmatprep.mubr.msk.f32.mxu0 %vm311_vm0, %v231_v53  ;;  %v294_v53 = vld [vmem:[%s19221_s0 + $0x3c1] sm:$0xff] }
  0x68   :  { %13063 = vmatmul.mubr.msk.f32.gmra.mrb[50].mxu0 %vm311_vm0, %v232_v54  ;;  %v295_v54 = vld [vmem:[%s19221_s0 + $0x3c9] sm:$0xff] }
  0x69   :  { %13065 = vmatprep.mubr.msk.f32.mxu0 %vm311_vm0, %v233_v55  ;;  %v296_v55 = vld [vmem:[%s19221_s0 + $0x3d1] sm:$0xff] }
  0x6c   :  { %13066 = vmatmul.mubr.msk.f32.gmra.mrb[52].mxu0 %vm311_vm0, %v234_v56  ;;  %v297_v56 = vld [vmem:[%s19221_s0 + $0x3d9] sm:$0xff] }
  0x6d   :  { %13068 = vmatprep.mubr.msk.f32.mxu0 %vm311_vm0, %v235_v57  ;;  %v298_v57 = vld [vmem:[%s19221_s0 + $0x3e1] sm:$0xff] }
  0x70   :  { %13069 = vmatmul.mubr.msk.f32.gmra.mrb[54].mxu0 %vm311_vm0, %v236_v58  ;;  %v299_v58 = vld [vmem:[%s19221_s0 + $0x3e9] sm:$0xff] }
  0x71   :  { %13071 = vmatprep.mubr.msk.f32.mxu0 %vm311_vm0, %v237_v59  ;;  %v300_v59 = vld [vmem:[%s19221_s0 + $0x3f1] sm:$0xff] }
  0x74   :  { %13072 = vmatmul.mubr.msk.f32.gmra.mrb[56].mxu0 %vm311_vm0, %v238_v60  ;;  %v301_v60 = vld [vmem:[%s19221_s0 + $0x3f9] sm:$0xff] }
  0x75   :  { %13074 = vmatprep.mubr.msk.f32.mxu0 %vm311_vm0, %v239_v61  ;;  %v302_v61 = vld [vmem:[%s19221_s0 + $0x401] sm:$0xff] }
  0x78   :  { %13075 = vmatmul.mubr.msk.f32.gmra.mrb[58].mxu0 %vm311_vm0, %v240_v62  ;;  %v303_v62 = vld [vmem:[%s19221_s0 + $0x409] sm:$0xff] }
  0x79   :  { %13077 = vmatprep.mubr.msk.f32.mxu0 %vm311_vm0, %v241_v63  ;;  %v304_v63 = vld [vmem:[%s19221_s0 + $0x411] sm:$0xff] }
  0x7c   :  { %13078 = vmatmul.mubr.msk.f32.gmra.mrb[60].mxu0 %vm311_vm0, %v242_v0  ;;  %v305_v0 = vld [vmem:[%s19221_s0 + $0x419] sm:$0xff] }
  0x7d   :  { %13080 = vmatprep.mubr.msk.f32.mxu0 %vm311_vm0, %v243_v1  ;;  %v306_v1 = vld [vmem:[%s19221_s0 + $0x421] sm:$0xff] }
  0x80   :  { %13081 = vmatmul.mubr.msk.f32.gmra.mrb[62].mxu0 %vm311_vm0, %v244_v2  ;;  %v307_v2 = vld [vmem:[%s19221_s0 + $0x429] sm:$0xff] }
  0x81   :  { %13083 = vmatprep.mubr.msk.f32.mxu0 %vm311_vm0, %v245_v3  ;;  %v308_v3 = vld [vmem:[%s19221_s0 + $0x431] sm:$0xff] }
  0x84   :  { %13084 = vmatmul.mubr.msk.f32.gmra.mrb[64].mxu0 %vm311_vm0, %v246_v4  ;;  %v52_v4 = vld [vmem:[%s19221_s0] sm:$0xff] }
  0x85   :  { %13086 = vmatprep.mubr.msk.f32.mxu0 %vm311_vm0, %v247_v5  ;;  %v53_v5 = vld [vmem:[%s19221_s0 + $0x8] sm:$0xff] }
  0x88   :  { %13087 = vmatmul.mubr.msk.f32.gmra.mrb[66].mxu0 %vm311_vm0, %v248_v7  ;;  %v54_v7 = vld [vmem:[%s19221_s0 + $0x10] sm:$0xff] }
  0x89   :  { %13089 = vmatprep.mubr.msk.f32.mxu0 %vm311_vm0, %v249_v8  ;;  %v55_v8 = vld [vmem:[%s19221_s0 + $0x18] sm:$0xff] }
  0x8c   :  { %13090 = vmatmul.mubr.msk.f32.gmra.mrb[68].mxu0 %vm311_vm0, %v250_v9  ;;  %v56_v9 = vld [vmem:[%s19221_s0 + $0x20] sm:$0xff] }
  0x8d   :  { %13092 = vmatprep.mubr.msk.f32.mxu0 %vm311_vm0, %v251_v10  ;;  %v57_v10 = vld [vmem:[%s19221_s0 + $0x28] sm:$0xff] }
  0x90   :  { %13093 = vmatmul.mubr.msk.f32.gmra.mrb[70].mxu0 %vm311_vm0, %v252_v11  ;;  %v59_v11 = vld [vmem:[%s19221_s0 + $0x38] sm:$0xff] }
  0x91   :  { %13095 = vmatprep.mubr.msk.f32.mxu0 %vm311_vm0, %v253_v12  ;;  %v60_v12 = vld [vmem:[%s19221_s0 + $0x40] sm:$0xff] }
  0x94   :  { %13096 = vmatmul.mubr.msk.f32.gmra.mrb[72].mxu0 %vm311_vm0, %v254_v13  ;;  %v61_v13 = vld [vmem:[%s19221_s0 + $0x48] sm:$0xff] }
  0x95   :  { %13098 = vmatprep.mubr.msk.f32.mxu0 %vm311_vm0, %v255_v14  ;;  %v62_v14 = vld [vmem:[%s19221_s0 + $0x50] sm:$0xff] }
  0x98   :  { %13099 = vmatmul.mubr.msk.f32.gmra.mrb[74].mxu0 %vm311_vm0, %v256_v15  ;;  %v63_v15 = vld [vmem:[%s19221_s0 + $0x58] sm:$0xff] }
  0x99   :  { %13101 = vmatprep.mubr.msk.f32.mxu0 %vm311_vm0, %v257_v16  ;;  %v64_v16 = vld [vmem:[%s19221_s0 + $0x60] sm:$0xff] }
  0x9c   :  { %13102 = vmatmul.mubr.msk.f32.gmra.mrb[76].mxu0 %vm311_vm0, %v258_v17  ;;  %v65_v17 = vld [vmem:[%s19221_s0 + $0x68] sm:$0xff] }
  0x9d   :  { %13104 = vmatprep.mubr.msk.f32.mxu0 %vm311_vm0, %v259_v18  ;;  %v66_v18 = vld [vmem:[%s19221_s0 + $0x70] sm:$0xff] }
  0xa0   :  { %13105 = vmatmul.mubr.msk.f32.gmra.mrb[78].mxu0 %vm311_vm0, %v260_v19  ;;  %v67_v19 = vld [vmem:[%s19221_s0 + $0x78] sm:$0xff] }
  0xa1   :  { %13107 = vmatprep.mubr.msk.f32.mxu0 %vm311_vm0, %v261_v20  ;;  %v68_v20 = vld [vmem:[%s19221_s0 + $0x88] sm:$0xff] }
  0xa4   :  { %13108 = vmatmul.mubr.msk.f32.gmra.mrb[80].mxu0 %vm311_vm0, %v262_v21  ;;  %v69_v21 = vld [vmem:[%s19221_s0 + $0x90] sm:$0xff] }
  0xa5   :  { %13110 = vmatprep.mubr.msk.f32.mxu0 %vm311_vm0, %v263_v22  ;;  %v70_v22 = vld [vmem:[%s19221_s0 + $0x98] sm:$0xff] }
  0xa8   :  { %13111 = vmatmul.mubr.msk.f32.gmra.mrb[82].mxu0 %vm311_vm0, %v264_v23  ;;  %v71_v23 = vld [vmem:[%s19221_s0 + $0xa0] sm:$0xff] }
  0xa9   :  { %13113 = vmatprep.mubr.msk.f32.mxu0 %vm311_vm0, %v265_v24  ;;  %v72_v24 = vld [vmem:[%s19221_s0 + $0xa8] sm:$0xff] }
  0xac   :  { %13114 = vmatmul.mubr.msk.f32.gmra.mrb[84].mxu0 %vm311_vm0, %v266_v25  ;;  %v73_v25 = vld [vmem:[%s19221_s0 + $0xb0] sm:$0xff] }
  0xad   :  { %13116 = vmatprep.mubr.msk.f32.mxu0 %vm311_vm0, %v267_v26  ;;  %v74_v26 = vld [vmem:[%s19221_s0 + $0xb8] sm:$0xff] }
  0xb0   :  { %13117 = vmatmul.mubr.msk.f32.gmra.mrb[86].mxu0 %vm311_vm0, %v268_v27  ;;  %v75_v27 = vld [vmem:[%s19221_s0 + $0xc0] sm:$0xff] }
  0xb1   :  { %13119 = vmatprep.mubr.msk.f32.mxu0 %vm311_vm0, %v269_v28  ;;  %v76_v28 = vld [vmem:[%s19221_s0 + $0xc8] sm:$0xff] }
  0xb4   :  { %13120 = vmatmul.mubr.msk.f32.gmra.mrb[88].mxu0 %vm311_vm0, %v270_v29  ;;  %v77_v29 = vld [vmem:[%s19221_s0 + $0xd0] sm:$0xff] }
  0xb5   :  { %13122 = vmatprep.mubr.msk.f32.mxu0 %vm311_vm0, %v271_v30  ;;  %v78_v30 = vld [vmem:[%s19221_s0 + $0xd8] sm:$0xff] }
  0xb8   :  { %13123 = vmatmul.mubr.msk.f32.gmra.mrb[90].mxu0 %vm311_vm0, %v272_v31  ;;  %v79_v31 = vld [vmem:[%s19221_s0 + $0xe0] sm:$0xff] }
  0xb9   :  { %13125 = vmatprep.mubr.msk.f32.mxu0 %vm311_vm0, %v273_v32  ;;  %v80_v32 = vld [vmem:[%s19221_s0 + $0xe8] sm:$0xff] }
  0xbc   :  { %13126 = vmatmul.mubr.msk.f32.gmra.mrb[92].mxu0 %vm311_vm0, %v274_v33  ;;  %v81_v33 = vld [vmem:[%s19221_s0 + $0xf0] sm:$0xff] }
  0xbd   :  { %13128 = vmatprep.mubr.msk.f32.mxu0 %vm311_vm0, %v275_v34  ;;  %v82_v34 = vld [vmem:[%s19221_s0 + $0xf8] sm:$0xff] }
  0xc0   :  { %13129 = vmatmul.mubr.msk.f32.gmra.mrb[94].mxu0 %vm311_vm0, %v276_v35  ;;  %v83_v35 = vld [vmem:[%s19221_s0 + $0x100] sm:$0xff] }
  0xc1   :  { %13131 = vmatprep.mubr.msk.f32.mxu0 %vm311_vm0, %v277_v36  ;;  %v84_v36 = vld [vmem:[%s19221_s0 + $0x110] sm:$0xff] }
  0xc4   :  { %13132 = vmatmul.mubr.msk.f32.gmra.mrb[96].mxu0 %vm311_vm0, %v278_v37  ;;  %v85_v37 = vld [vmem:[%s19221_s0 + $0x118] sm:$0xff] }
  0xc5   :  { %13134 = vmatprep.mubr.msk.f32.mxu0 %vm311_vm0, %v279_v38  ;;  %v86_v38 = vld [vmem:[%s19221_s0 + $0x120] sm:$0xff] }
  0xc8   :  { %13135 = vmatmul.mubr.msk.f32.gmra.mrb[98].mxu0 %vm311_vm0, %v280_v39  ;;  %v87_v39 = vld [vmem:[%s19221_s0 + $0x128] sm:$0xff] }
  0xc9   :  { %13137 = vmatprep.mubr.msk.f32.mxu0 %vm311_vm0, %v281_v40  ;;  %v88_v40 = vld [vmem:[%s19221_s0 + $0x130] sm:$0xff] }
  0xcc   :  { %13138 = vmatmul.mubr.msk.f32.gmra.mrb[100].mxu0 %vm311_vm0, %v282_v41  ;;  %v89_v41 = vld [vmem:[%s19221_s0 + $0x138] sm:$0xff] }
  0xcd   :  { %13140 = vmatprep.mubr.msk.f32.mxu0 %vm311_vm0, %v283_v42  ;;  %v90_v42 = vld [vmem:[%s19221_s0 + $0x140] sm:$0xff] }
  0xd0   :  { %13141 = vmatmul.mubr.msk.f32.gmra.mrb[102].mxu0 %vm311_vm0, %v284_v43  ;;  %v91_v43 = vld [vmem:[%s19221_s0 + $0x148] sm:$0xff] }
  0xd1   :  { %13143 = vmatprep.mubr.msk.f32.mxu0 %vm311_vm0, %v285_v44  ;;  %v92_v44 = vld [vmem:[%s19221_s0 + $0x150] sm:$0xff] }
  0xd4   :  { %13144 = vmatmul.mubr.msk.f32.gmra.mrb[104].mxu0 %vm311_vm0, %v286_v45  ;;  %v93_v45 = vld [vmem:[%s19221_s0 + $0x158] sm:$0xff] }
  0xd5   :  { %13146 = vmatprep.mubr.msk.f32.mxu0 %vm311_vm0, %v287_v46  ;;  %v94_v46 = vld [vmem:[%s19221_s0 + $0x160] sm:$0xff] }
  0xd8   :  { %13147 = vmatmul.mubr.msk.f32.gmra.mrb[106].mxu0 %vm311_vm0, %v288_v47  ;;  %v95_v47 = vld [vmem:[%s19221_s0 + $0x168] sm:$0xff] }
  0xd9   :  { %13149 = vmatprep.mubr.msk.f32.mxu0 %vm311_vm0, %v289_v48  ;;  %v96_v48 = vld [vmem:[%s19221_s0 + $0x170] sm:$0xff] }
  0xdc   :  { %13150 = vmatmul.mubr.msk.f32.gmra.mrb[108].mxu0 %vm311_vm0, %v290_v49  ;;  %v97_v49 = vld [vmem:[%s19221_s0 + $0x178] sm:$0xff] }
  0xdd   :  { %13152 = vmatprep.mubr.msk.f32.mxu0 %vm311_vm0, %v291_v50  ;;  %v98_v50 = vld [vmem:[%s19221_s0 + $0x180] sm:$0xff] }
  0xe0   :  { %13153 = vmatmul.mubr.msk.f32.gmra.mrb[110].mxu0 %vm311_vm0, %v292_v51  ;;  %v99_v51 = vld [vmem:[%s19221_s0 + $0x188] sm:$0xff] }
  0xe1   :  { %13155 = vmatprep.mubr.msk.f32.mxu0 %vm311_vm0, %v293_v52  ;;  %v100_v52 = vld [vmem:[%s19221_s0 + $0x198] sm:$0xff] }
  0xe4   :  { %13156 = vmatmul.mubr.msk.f32.gmra.mrb[112].mxu0 %vm311_vm0, %v294_v53  ;;  %v101_v53 = vld [vmem:[%s19221_s0 + $0x1a0] sm:$0xff] }
  0xe5   :  { %13158 = vmatprep.mubr.msk.f32.mxu0 %vm311_vm0, %v295_v54  ;;  %v102_v54 = vld [vmem:[%s19221_s0 + $0x1a8] sm:$0xff] }
  0xe8   :  { %13159 = vmatmul.mubr.msk.f32.gmra.mrb[114].mxu0 %vm311_vm0, %v296_v55  ;;  %v103_v55 = vld [vmem:[%s19221_s0 + $0x1b0] sm:$0xff] }
  0xe9   :  { %13161 = vmatprep.mubr.msk.f32.mxu0 %vm311_vm0, %v297_v56  ;;  %v104_v56 = vld [vmem:[%s19221_s0 + $0x1b8] sm:$0xff] }
  0xec   :  { %13162 = vmatmul.mubr.msk.f32.gmra.mrb[116].mxu0 %vm311_vm0, %v298_v57  ;;  %v105_v57 = vld [vmem:[%s19221_s0 + $0x1c0] sm:$0xff] }
  0xed   :  { %13164 = vmatprep.mubr.msk.f32.mxu0 %vm311_vm0, %v299_v58  ;;  %v106_v58 = vld [vmem:[%s19221_s0 + $0x1c8] sm:$0xff] }
  0xf0   :  { %13165 = vmatmul.mubr.msk.f32.gmra.mrb[118].mxu0 %vm311_vm0, %v300_v59  ;;  %v107_v59 = vld [vmem:[%s19221_s0 + $0x1d0] sm:$0xff] }
  0xf1   :  { %13167 = vmatprep.mubr.msk.f32.mxu0 %vm311_vm0, %v301_v60  ;;  %v108_v60 = vld [vmem:[%s19221_s0 + $0x1d8] sm:$0xff] }
  0xf4   :  { %13168 = vmatmul.mubr.msk.f32.gmra.mrb[120].mxu0 %vm311_vm0, %v302_v61  ;;  %v109_v61 = vld [vmem:[%s19221_s0 + $0x1e0] sm:$0xff] }
  0xf5   :  { %13170 = vmatprep.mubr.msk.f32.mxu0 %vm311_vm0, %v303_v62  ;;  %v110_v62 = vld [vmem:[%s19221_s0 + $0x1e8] sm:$0xff] }
  0xf8   :  { %13171 = vmatmul.mubr.msk.f32.gmra.mrb[122].mxu0 %vm311_vm0, %v304_v63  ;;  %v111_v63 = vld [vmem:[%s19221_s0 + $0x1f0] sm:$0xff] }
  0xf9   :  { %13173 = vmatprep.mubr.msk.f32.mxu0 %vm311_vm0, %v305_v0  ;;  %v112_v0 = vld [vmem:[%s19221_s0 + $0x1f8] sm:$0xff] }
  0xfc   :  { %13174 = vmatmul.mubr.msk.f32.gmra.mrb[124].mxu0 %vm311_vm0, %v306_v1  ;;  %v113_v1 = vld [vmem:[%s19221_s0 + $0x200] sm:$0xff] }
  0xfd   :  { %13176 = vmatprep.mubr.msk.f32.mxu0 %vm311_vm0, %v307_v2  ;;  %v114_v2 = vld [vmem:[%s19221_s0 + $0x208] sm:$0xff] }
 0x100   :  { %13177 = vmatmul.mubr.msk.f32.gmra.mrb[126].mxu0 %vm311_vm0, %v308_v3  ;;  %v115_v3 = vld [vmem:[%s19221_s0 + $0x210] sm:$0xff] }
 0x101   :  { %13181 = vmatprep.mubr.msk.f32.mxu0 %vm311_vm0, %v52_v4  ;;  %v116_v4 = vld [vmem:[%s19221_s0 + $0x220] sm:$0xff] }
 0x104   :  { %13182 = vmatmul.mubr.msk.f32.vlgmr.msra.gmra.mrb[0].mxu0 %vm311_vm0, %v53_v5  ;;  %v117_v5 = vld [vmem:[%s19221_s0 + $0x228] sm:$0xff] }
 0x105   :  { %13374 = vmatpush3.msra.mxu0 %v16034_v6  ;;  %13184 = vmatprep.mubr.msk.f32.mxu0 %vm311_vm0, %v54_v7  ;;  %v58_v6 = vld [vmem:[%s19221_s0 + $0x30] sm:$0xff] }
 0x106   :  { %v118_v7 = vld [vmem:[%s19221_s0 + $0x230] sm:$0xff] }
 0x108   :  { %13185 = vmatmul.mubr.msk.f32.gmra.mrb[2].mxu0 %vm311_vm0, %v55_v8  ;;  %v119_v8 = vld [vmem:[%s19221_s0 + $0x238] sm:$0xff] }
 0x109   :  { %13187 = vmatprep.mubr.msk.f32.mxu0 %vm311_vm0, %v56_v9  ;;  %v120_v9 = vld [vmem:[%s19221_s0 + $0x240] sm:$0xff] }
 0x10c   :  { %13188 = vmatmul.mubr.msk.f32.gmra.mrb[4].mxu0 %vm311_vm0, %v57_v10  ;;  %v121_v10 = vld [vmem:[%s19221_s0 + $0x248] sm:$0xff] }
 0x10d   :  { %13190 = vmatprep.mubr.msk.f32.mxu0 %vm311_vm0, %v58_v6  ;;  %v122_v6 = vld [vmem:[%s19221_s0 + $0x250] sm:$0xff] }
 0x110   :  { %13191 = vmatmul.mubr.msk.f32.gmra.mrb[6].mxu0 %vm311_vm0, %v59_v11  ;;  %v123_v11 = vld [vmem:[%s19221_s0 + $0x258] sm:$0xff] }
 0x111   :  { %13193 = vmatprep.mubr.msk.f32.mxu0 %vm311_vm0, %v60_v12  ;;  %v124_v12 = vld [vmem:[%s19221_s0 + $0x260] sm:$0xff] }
 0x114   :  { %13194 = vmatmul.mubr.msk.f32.gmra.mrb[8].mxu0 %vm311_vm0, %v61_v13  ;;  %v125_v13 = vld [vmem:[%s19221_s0 + $0x268] sm:$0xff] }
 0x115   :  { %13196 = vmatprep.mubr.msk.f32.mxu0 %vm311_vm0, %v62_v14  ;;  %v126_v14 = vld [vmem:[%s19221_s0 + $0x270] sm:$0xff] }
 0x118   :  { %13197 = vmatmul.mubr.msk.f32.gmra.mrb[10].mxu0 %vm311_vm0, %v63_v15  ;;  %v127_v15 = vld [vmem:[%s19221_s0 + $0x278] sm:$0xff] }
 0x119   :  { %13199 = vmatprep.mubr.msk.f32.mxu0 %vm311_vm0, %v64_v16  ;;  %v128_v16 = vld [vmem:[%s19221_s0 + $0x280] sm:$0xff] }
 0x11c   :  { %13200 = vmatmul.mubr.msk.f32.gmra.mrb[12].mxu0 %vm311_vm0, %v65_v17  ;;  %v129_v17 = vld [vmem:[%s19221_s0 + $0x288] sm:$0xff] }
 0x11d   :  { %13202 = vmatprep.mubr.msk.f32.mxu0 %vm311_vm0, %v66_v18  ;;  %v130_v18 = vld [vmem:[%s19221_s0 + $0x290] sm:$0xff] }
 0x120   :  { %13203 = vmatmul.mubr.msk.f32.gmra.mrb[14].mxu0 %vm311_vm0, %v67_v19  ;;  %v131_v19 = vld [vmem:[%s19221_s0 + $0x298] sm:$0xff] }
 0x121   :  { %13205 = vmatprep.mubr.msk.f32.mxu0 %vm311_vm0, %v68_v20  ;;  %v132_v20 = vld [vmem:[%s19221_s0 + $0x2a8] sm:$0xff] }
 0x124   :  { %13206 = vmatmul.mubr.msk.f32.gmra.mrb[16].mxu0 %vm311_vm0, %v69_v21  ;;  %v133_v21 = vld [vmem:[%s19221_s0 + $0x2b0] sm:$0xff] }
 0x125   :  { %13208 = vmatprep.mubr.msk.f32.mxu0 %vm311_vm0, %v70_v22  ;;  %v134_v22 = vld [vmem:[%s19221_s0 + $0x2b8] sm:$0xff] }
 0x128   :  { %13209 = vmatmul.mubr.msk.f32.gmra.mrb[18].mxu0 %vm311_vm0, %v71_v23  ;;  %v135_v23 = vld [vmem:[%s19221_s0 + $0x2c0] sm:$0xff] }
 0x129   :  { %13211 = vmatprep.mubr.msk.f32.mxu0 %vm311_vm0, %v72_v24  ;;  %v136_v24 = vld [vmem:[%s19221_s0 + $0x2c8] sm:$0xff] }
 0x12c   :  { %13212 = vmatmul.mubr.msk.f32.gmra.mrb[20].mxu0 %vm311_vm0, %v73_v25  ;;  %v137_v25 = vld [vmem:[%s19221_s0 + $0x2d0] sm:$0xff] }
 0x12d   :  { %13214 = vmatprep.mubr.msk.f32.mxu0 %vm311_vm0, %v74_v26  ;;  %v138_v26 = vld [vmem:[%s19221_s0 + $0x2d8] sm:$0xff] }
 0x130   :  { %13215 = vmatmul.mubr.msk.f32.gmra.mrb[22].mxu0 %vm311_vm0, %v75_v27  ;;  %v139_v27 = vld [vmem:[%s19221_s0 + $0x2e0] sm:$0xff] }
 0x131   :  { %13217 = vmatprep.mubr.msk.f32.mxu0 %vm311_vm0, %v76_v28  ;;  %v140_v28 = vld [vmem:[%s19221_s0 + $0x2e8] sm:$0xff] }
 0x134   :  { %13218 = vmatmul.mubr.msk.f32.gmra.mrb[24].mxu0 %vm311_vm0, %v77_v29  ;;  %v141_v29 = vld [vmem:[%s19221_s0 + $0x2f0] sm:$0xff] }
 0x135   :  { %13220 = vmatprep.mubr.msk.f32.mxu0 %vm311_vm0, %v78_v30  ;;  %v142_v30 = vld [vmem:[%s19221_s0 + $0x2f8] sm:$0xff] }
 0x138   :  { %13221 = vmatmul.mubr.msk.f32.gmra.mrb[26].mxu0 %vm311_vm0, %v79_v31  ;;  %v143_v31 = vld [vmem:[%s19221_s0 + $0x300] sm:$0xff] }
 0x139   :  { %13223 = vmatprep.mubr.msk.f32.mxu0 %vm311_vm0, %v80_v32  ;;  %v144_v32 = vld [vmem:[%s19221_s0 + $0x308] sm:$0xff] }
 0x13c   :  { %13224 = vmatmul.mubr.msk.f32.gmra.mrb[28].mxu0 %vm311_vm0, %v81_v33  ;;  %v145_v33 = vld [vmem:[%s19221_s0 + $0x310] sm:$0xff] }
 0x13d   :  { %13226 = vmatprep.mubr.msk.f32.mxu0 %vm311_vm0, %v82_v34  ;;  %v146_v34 = vld [vmem:[%s19221_s0 + $0x318] sm:$0xff] }
 0x140   :  { %13227 = vmatmul.mubr.msk.f32.gmra.mrb[30].mxu0 %vm311_vm0, %v83_v35  ;;  %v147_v35 = vld [vmem:[%s19221_s0 + $0x320] sm:$0xff] }
 0x141   :  { %13229 = vmatprep.mubr.msk.f32.mxu0 %vm311_vm0, %v84_v36  ;;  %v148_v36 = vld [vmem:[%s19221_s0 + $0x330] sm:$0xff] }
 0x144   :  { %13230 = vmatmul.mubr.msk.f32.gmra.mrb[32].mxu0 %vm311_vm0, %v85_v37  ;;  %v149_v37 = vld [vmem:[%s19221_s0 + $0x338] sm:$0xff] }
 0x145   :  { %13232 = vmatprep.mubr.msk.f32.mxu0 %vm311_vm0, %v86_v38  ;;  %v150_v38 = vld [vmem:[%s19221_s0 + $0x340] sm:$0xff] }
 0x148   :  { %13233 = vmatmul.mubr.msk.f32.gmra.mrb[34].mxu0 %vm311_vm0, %v87_v39  ;;  %v151_v39 = vld [vmem:[%s19221_s0 + $0x348] sm:$0xff] }
 0x149   :  { %13235 = vmatprep.mubr.msk.f32.mxu0 %vm311_vm0, %v88_v40  ;;  %v152_v40 = vld [vmem:[%s19221_s0 + $0x350] sm:$0xff] }
 0x14c   :  { %13236 = vmatmul.mubr.msk.f32.gmra.mrb[36].mxu0 %vm311_vm0, %v89_v41  ;;  %v153_v41 = vld [vmem:[%s19221_s0 + $0x358] sm:$0xff] }
 0x14d   :  { %13238 = vmatprep.mubr.msk.f32.mxu0 %vm311_vm0, %v90_v42  ;;  %v154_v42 = vld [vmem:[%s19221_s0 + $0x360] sm:$0xff] }
 0x150   :  { %13239 = vmatmul.mubr.msk.f32.gmra.mrb[38].mxu0 %vm311_vm0, %v91_v43  ;;  %v155_v43 = vld [vmem:[%s19221_s0 + $0x368] sm:$0xff] }
 0x151   :  { %13241 = vmatprep.mubr.msk.f32.mxu0 %vm311_vm0, %v92_v44  ;;  %v156_v44 = vld [vmem:[%s19221_s0 + $0x370] sm:$0xff] }
 0x154   :  { %13242 = vmatmul.mubr.msk.f32.gmra.mrb[40].mxu0 %vm311_vm0, %v93_v45  ;;  %v157_v45 = vld [vmem:[%s19221_s0 + $0x378] sm:$0xff] }
 0x155   :  { %13244 = vmatprep.mubr.msk.f32.mxu0 %vm311_vm0, %v94_v46  ;;  %v158_v46 = vld [vmem:[%s19221_s0 + $0x380] sm:$0xff] }
 0x158   :  { %13245 = vmatmul.mubr.msk.f32.gmra.mrb[42].mxu0 %vm311_vm0, %v95_v47  ;;  %v159_v47 = vld [vmem:[%s19221_s0 + $0x388] sm:$0xff] }
 0x159   :  { %13247 = vmatprep.mubr.msk.f32.mxu0 %vm311_vm0, %v96_v48  ;;  %v160_v48 = vld [vmem:[%s19221_s0 + $0x390] sm:$0xff] }
 0x15c   :  { %13248 = vmatmul.mubr.msk.f32.gmra.mrb[44].mxu0 %vm311_vm0, %v97_v49  ;;  %v161_v49 = vld [vmem:[%s19221_s0 + $0x398] sm:$0xff] }
 0x15d   :  { %13250 = vmatprep.mubr.msk.f32.mxu0 %vm311_vm0, %v98_v50  ;;  %v162_v50 = vld [vmem:[%s19221_s0 + $0x3a0] sm:$0xff] }
 0x160   :  { %13251 = vmatmul.mubr.msk.f32.gmra.mrb[46].mxu0 %vm311_vm0, %v99_v51  ;;  %v163_v51 = vld [vmem:[%s19221_s0 + $0x3a8] sm:$0xff] }
 0x161   :  { %13253 = vmatprep.mubr.msk.f32.mxu0 %vm311_vm0, %v100_v52  ;;  %v164_v52 = vld [vmem:[%s19221_s0 + $0x3b8] sm:$0xff] }
 0x164   :  { %13254 = vmatmul.mubr.msk.f32.gmra.mrb[48].mxu0 %vm311_vm0, %v101_v53  ;;  %v165_v53 = vld [vmem:[%s19221_s0 + $0x3c0] sm:$0xff] }
 0x165   :  { %13256 = vmatprep.mubr.msk.f32.mxu0 %vm311_vm0, %v102_v54  ;;  %v166_v54 = vld [vmem:[%s19221_s0 + $0x3c8] sm:$0xff] }
 0x168   :  { %13257 = vmatmul.mubr.msk.f32.gmra.mrb[50].mxu0 %vm311_vm0, %v103_v55  ;;  %v167_v55 = vld [vmem:[%s19221_s0 + $0x3d0] sm:$0xff] }
 0x169   :  { %13259 = vmatprep.mubr.msk.f32.mxu0 %vm311_vm0, %v104_v56  ;;  %v168_v56 = vld [vmem:[%s19221_s0 + $0x3d8] sm:$0xff] }
 0x16c   :  { %13260 = vmatmul.mubr.msk.f32.gmra.mrb[52].mxu0 %vm311_vm0, %v105_v57  ;;  %v169_v57 = vld [vmem:[%s19221_s0 + $0x3e0] sm:$0xff] }
 0x16d   :  { %13262 = vmatprep.mubr.msk.f32.mxu0 %vm311_vm0, %v106_v58  ;;  %v170_v58 = vld [vmem:[%s19221_s0 + $0x3e8] sm:$0xff] }
 0x170   :  { %13263 = vmatmul.mubr.msk.f32.gmra.mrb[54].mxu0 %vm311_vm0, %v107_v59  ;;  %v171_v59 = vld [vmem:[%s19221_s0 + $0x3f0] sm:$0xff] }
 0x171   :  { %13265 = vmatprep.mubr.msk.f32.mxu0 %vm311_vm0, %v108_v60  ;;  %v172_v60 = vld [vmem:[%s19221_s0 + $0x3f8] sm:$0xff] }
 0x174   :  { %13266 = vmatmul.mubr.msk.f32.gmra.mrb[56].mxu0 %vm311_vm0, %v109_v61  ;;  %v173_v61 = vld [vmem:[%s19221_s0 + $0x400] sm:$0xff] }
 0x175   :  { %13268 = vmatprep.mubr.msk.f32.mxu0 %vm311_vm0, %v110_v62  ;;  %v174_v62 = vld [vmem:[%s19221_s0 + $0x408] sm:$0xff] }
 0x178   :  { %13269 = vmatmul.mubr.msk.f32.gmra.mrb[58].mxu0 %vm311_vm0, %v111_v63  ;;  %v175_v63 = vld [vmem:[%s19221_s0 + $0x410] sm:$0xff] }
 0x179   :  { %13271 = vmatprep.mubr.msk.f32.mxu0 %vm311_vm0, %v112_v0  ;;  %v176_v0 = vld [vmem:[%s19221_s0 + $0x418] sm:$0xff] }
 0x17c   :  { %13272 = vmatmul.mubr.msk.f32.gmra.mrb[60].mxu0 %vm311_vm0, %v113_v1  ;;  %v177_v1 = vld [vmem:[%s19221_s0 + $0x420] sm:$0xff] }
 0x17d   :  { %13274 = vmatprep.mubr.msk.f32.mxu0 %vm311_vm0, %v114_v2  ;;  %v178_v2 = vld [vmem:[%s19221_s0 + $0x428] sm:$0xff] }
 0x180   :  { %13275 = vmatmul.mubr.msk.f32.gmra.mrb[62].mxu0 %vm311_vm0, %v115_v3  ;;  %v179_v3 = vld [vmem:[%s19221_s0 + $0x430] sm:$0xff] }
 0x181   :  { %13277 = vmatprep.mubr.msk.f32.mxu0 %vm311_vm0, %v116_v4  ;;  %v2490_v4 = vld [vmem:[%s19221_s0 + $0x2] sm:$0xff] }
 0x184   :  { %13278 = vmatmul.mubr.msk.f32.gmra.mrb[64].mxu0 %vm311_vm0, %v117_v5  ;;  %v2491_v5 = vld [vmem:[%s19221_s0 + $0xa] sm:$0xff] }
 0x185   :  { %13280 = vmatprep.mubr.msk.f32.mxu0 %vm311_vm0, %v118_v7  ;;  %v2492_v7 = vld [vmem:[%s19221_s0 + $0x12] sm:$0xff] }
 0x188   :  { %13281 = vmatmul.mubr.msk.f32.gmra.mrb[66].mxu0 %vm311_vm0, %v119_v8  ;;  %v2493_v8 = vld [vmem:[%s19221_s0 + $0x1a] sm:$0xff] }
 0x189   :  { %13283 = vmatprep.mubr.msk.f32.mxu0 %vm311_vm0, %v120_v9  ;;  %v2494_v9 = vld [vmem:[%s19221_s0 + $0x22] sm:$0xff] }
 0x18c   :  { %13284 = vmatmul.mubr.msk.f32.gmra.mrb[68].mxu0 %vm311_vm0, %v121_v10  ;;  %v2495_v10 = vld [vmem:[%s19221_s0 + $0x2a] sm:$0xff] }
 0x18d   :  { %13286 = vmatprep.mubr.msk.f32.mxu0 %vm311_vm0, %v122_v6  ;;  %v2496_v6 = vld [vmem:[%s19221_s0 + $0x32] sm:$0xff] }
 0x190   :  { %13287 = vmatmul.mubr.msk.f32.gmra.mrb[70].mxu0 %vm311_vm0, %v123_v11  ;;  %v2497_v11 = vld [vmem:[%s19221_s0 + $0x3a] sm:$0xff] }
 0x191   :  { %13289 = vmatprep.mubr.msk.f32.mxu0 %vm311_vm0, %v124_v12  ;;  %v2498_v12 = vld [vmem:[%s19221_s0 + $0x42] sm:$0xff] }
 0x194   :  { %13290 = vmatmul.mubr.msk.f32.gmra.mrb[72].mxu0 %vm311_vm0, %v125_v13  ;;  %v2499_v13 = vld [vmem:[%s19221_s0 + $0x4a] sm:$0xff] }
 0x195   :  { %13292 = vmatprep.mubr.msk.f32.mxu0 %vm311_vm0, %v126_v14  ;;  %v2500_v14 = vld [vmem:[%s19221_s0 + $0x52] sm:$0xff] }
 0x198   :  { %13293 = vmatmul.mubr.msk.f32.gmra.mrb[74].mxu0 %vm311_vm0, %v127_v15  ;;  %v2501_v15 = vld [vmem:[%s19221_s0 + $0x5a] sm:$0xff] }
 0x199   :  { %13295 = vmatprep.mubr.msk.f32.mxu0 %vm311_vm0, %v128_v16  ;;  %v2502_v16 = vld [vmem:[%s19221_s0 + $0x62] sm:$0xff] }
 0x19c   :  { %13296 = vmatmul.mubr.msk.f32.gmra.mrb[76].mxu0 %vm311_vm0, %v129_v17  ;;  %v2503_v17 = vld [vmem:[%s19221_s0 + $0x6a] sm:$0xff] }
 0x19d   :  { %13298 = vmatprep.mubr.msk.f32.mxu0 %vm311_vm0, %v130_v18  ;;  %v2504_v18 = vld [vmem:[%s19221_s0 + $0x72] sm:$0xff] }
 0x1a0   :  { %13299 = vmatmul.mubr.msk.f32.gmra.mrb[78].mxu0 %vm311_vm0, %v131_v19  ;;  %v2505_v19 = vld [vmem:[%s19221_s0 + $0x7a] sm:$0xff] }
 0x1a1   :  { %13301 = vmatprep.mubr.msk.f32.mxu0 %vm311_vm0, %v132_v20  ;;  %v2506_v20 = vld [vmem:[%s19221_s0 + $0x8a] sm:$0xff] }
 0x1a4   :  { %13302 = vmatmul.mubr.msk.f32.gmra.mrb[80].mxu0 %vm311_vm0, %v133_v21  ;;  %v2507_v21 = vld [vmem:[%s19221_s0 + $0x92] sm:$0xff] }
 0x1a5   :  { %13304 = vmatprep.mubr.msk.f32.mxu0 %vm311_vm0, %v134_v22  ;;  %v2508_v22 = vld [vmem:[%s19221_s0 + $0x9a] sm:$0xff] }
 0x1a8   :  { %13305 = vmatmul.mubr.msk.f32.gmra.mrb[82].mxu0 %vm311_vm0, %v135_v23  ;;  %v2509_v23 = vld [vmem:[%s19221_s0 + $0xa2] sm:$0xff] }
 0x1a9   :  { %13307 = vmatprep.mubr.msk.f32.mxu0 %vm311_vm0, %v136_v24  ;;  %v2510_v24 = vld [vmem:[%s19221_s0 + $0xaa] sm:$0xff] }
 0x1ac   :  { %13308 = vmatmul.mubr.msk.f32.gmra.mrb[84].mxu0 %vm311_vm0, %v137_v25  ;;  %v2511_v25 = vld [vmem:[%s19221_s0 + $0xb2] sm:$0xff] }
 0x1ad   :  { %13310 = vmatprep.mubr.msk.f32.mxu0 %vm311_vm0, %v138_v26  ;;  %v2512_v26 = vld [vmem:[%s19221_s0 + $0xba] sm:$0xff] }
 0x1b0   :  { %13311 = vmatmul.mubr.msk.f32.gmra.mrb[86].mxu0 %vm311_vm0, %v139_v27  ;;  %v2513_v27 = vld [vmem:[%s19221_s0 + $0xc2] sm:$0xff] }
 0x1b1   :  { %13313 = vmatprep.mubr.msk.f32.mxu0 %vm311_vm0, %v140_v28  ;;  %v2514_v28 = vld [vmem:[%s19221_s0 + $0xca] sm:$0xff] }
 0x1b4   :  { %13314 = vmatmul.mubr.msk.f32.gmra.mrb[88].mxu0 %vm311_vm0, %v141_v29  ;;  %v2515_v29 = vld [vmem:[%s19221_s0 + $0xd2] sm:$0xff] }
 0x1b5   :  { %13316 = vmatprep.mubr.msk.f32.mxu0 %vm311_vm0, %v142_v30  ;;  %v2516_v30 = vld [vmem:[%s19221_s0 + $0xda] sm:$0xff] }
 0x1b8   :  { %13317 = vmatmul.mubr.msk.f32.gmra.mrb[90].mxu0 %vm311_vm0, %v143_v31  ;;  %v2517_v31 = vld [vmem:[%s19221_s0 + $0xe2] sm:$0xff] }
 0x1b9   :  { %13319 = vmatprep.mubr.msk.f32.mxu0 %vm311_vm0, %v144_v32  ;;  %v2518_v32 = vld [vmem:[%s19221_s0 + $0xea] sm:$0xff] }
 0x1bc   :  { %13320 = vmatmul.mubr.msk.f32.gmra.mrb[92].mxu0 %vm311_vm0, %v145_v33  ;;  %v2519_v33 = vld [vmem:[%s19221_s0 + $0xf2] sm:$0xff] }
 0x1bd   :  { %13322 = vmatprep.mubr.msk.f32.mxu0 %vm311_vm0, %v146_v34  ;;  %v2520_v34 = vld [vmem:[%s19221_s0 + $0xfa] sm:$0xff] }
 0x1c0   :  { %13323 = vmatmul.mubr.msk.f32.gmra.mrb[94].mxu0 %vm311_vm0, %v147_v35  ;;  %v2521_v35 = vld [vmem:[%s19221_s0 + $0x102] sm:$0xff] }
 0x1c1   :  { %13325 = vmatprep.mubr.msk.f32.mxu0 %vm311_vm0, %v148_v36  ;;  %v2522_v36 = vld [vmem:[%s19221_s0 + $0x112] sm:$0xff] }
 0x1c4   :  { %13326 = vmatmul.mubr.msk.f32.gmra.mrb[96].mxu0 %vm311_vm0, %v149_v37  ;;  %v2523_v37 = vld [vmem:[%s19221_s0 + $0x11a] sm:$0xff] }
 0x1c5   :  { %13328 = vmatprep.mubr.msk.f32.mxu0 %vm311_vm0, %v150_v38  ;;  %v2524_v38 = vld [vmem:[%s19221_s0 + $0x122] sm:$0xff] }
 0x1c8   :  { %13329 = vmatmul.mubr.msk.f32.gmra.mrb[98].mxu0 %vm311_vm0, %v151_v39  ;;  %v2525_v39 = vld [vmem:[%s19221_s0 + $0x12a] sm:$0xff] }
 0x1c9   :  { %13331 = vmatprep.mubr.msk.f32.mxu0 %vm311_vm0, %v152_v40  ;;  %v2526_v40 = vld [vmem:[%s19221_s0 + $0x132] sm:$0xff] }
 0x1cc   :  { %13332 = vmatmul.mubr.msk.f32.gmra.mrb[100].mxu0 %vm311_vm0, %v153_v41  ;;  %v2527_v41 = vld [vmem:[%s19221_s0 + $0x13a] sm:$0xff] }
 0x1cd   :  { %13334 = vmatprep.mubr.msk.f32.mxu0 %vm311_vm0, %v154_v42  ;;  %v2528_v42 = vld [vmem:[%s19221_s0 + $0x142] sm:$0xff] }
 0x1d0   :  { %13335 = vmatmul.mubr.msk.f32.gmra.mrb[102].mxu0 %vm311_vm0, %v155_v43  ;;  %v2529_v43 = vld [vmem:[%s19221_s0 + $0x14a] sm:$0xff] }
 0x1d1   :  { %13337 = vmatprep.mubr.msk.f32.mxu0 %vm311_vm0, %v156_v44  ;;  %v2530_v44 = vld [vmem:[%s19221_s0 + $0x152] sm:$0xff] }
 0x1d4   :  { %13338 = vmatmul.mubr.msk.f32.gmra.mrb[104].mxu0 %vm311_vm0, %v157_v45  ;;  %v2531_v45 = vld [vmem:[%s19221_s0 + $0x15a] sm:$0xff] }
 0x1d5   :  { %13340 = vmatprep.mubr.msk.f32.mxu0 %vm311_vm0, %v158_v46  ;;  %v2532_v46 = vld [vmem:[%s19221_s0 + $0x162] sm:$0xff] }
 0x1d8   :  { %13341 = vmatmul.mubr.msk.f32.gmra.mrb[106].mxu0 %vm311_vm0, %v159_v47  ;;  %v2533_v47 = vld [vmem:[%s19221_s0 + $0x16a] sm:$0xff] }
 0x1d9   :  { %13343 = vmatprep.mubr.msk.f32.mxu0 %vm311_vm0, %v160_v48  ;;  %v2534_v48 = vld [vmem:[%s19221_s0 + $0x172] sm:$0xff] }
 0x1dc   :  { %13344 = vmatmul.mubr.msk.f32.gmra.mrb[108].mxu0 %vm311_vm0, %v161_v49  ;;  %v16978_v49 = vld [vmem:[%s19221_s0 + $0x17a] sm:$0xff] }
 0x1dd   :  { %13346 = vmatprep.mubr.msk.f32.mxu0 %vm311_vm0, %v162_v50  ;;  %v15660_v50 = vmov 0.0  }
 0x1de   :  { %3975 = vst.msk [vmem:[#allocation2 + $0x10] sm:$0xff] %vm3972_vm1, %v15660_v50  ;;  %3973 = vst.msk [vmem:[#allocation2] sm:$0xff] %vm3972_vm1, %v15660_v50 }
 0x1df   :  { %3974 = vst.msk [vmem:[#allocation2 + $0x8] sm:$0xff] %vm3972_vm1, %v15660_v50  ;;  %3976 = vst.msk [vmem:[#allocation2 + $0x18] sm:$0xff] %vm3972_vm1, %v15660_v50 }
 0x1e0   :  { %13347 = vmatmul.mubr.msk.f32.gmra.mrb[110].mxu0 %vm311_vm0, %v163_v51  ;;  %3977 = vst.msk [vmem:[#allocation2 + $0x20] sm:$0xff] %vm3972_vm1, %v15660_v50  ;;  %3978 = vst.msk [vmem:[#allocation2 + $0x28] sm:$0xff] %vm3972_vm1, %v15660_v50  ;;  %v11482_v51 = vld [vmem:[%s19222_s3 + $0x20] sm:$0xff] }
 0x1e1   :  { %13349 = vmatprep.mubr.msk.f32.mxu0 %vm311_vm0, %v164_v52  ;;  %3979 = vst.msk [vmem:[#allocation2 + $0x30] sm:$0xff] %vm3972_vm1, %v15660_v50  ;;  %3980 = vst.msk [vmem:[#allocation2 + $0x38] sm:$0xff] %vm3972_vm1, %v15660_v50  ;;  %v11483_v52 = vld [vmem:[%s19222_s3 + $0x28] sm:$0xff] }
 0x1e2   :  { %3981 = vst.msk [vmem:[#allocation2 + $0x40] sm:$0xff] %vm3972_vm1, %v15660_v50  ;;  %3982 = vst.msk [vmem:[#allocation2 + $0x48] sm:$0xff] %vm3972_vm1, %v15660_v50 }
 0x1e3   :  { %3983 = vst.msk [vmem:[#allocation2 + $0x50] sm:$0xff] %vm3972_vm1, %v15660_v50  ;;  %3984 = vst.msk [vmem:[#allocation2 + $0x58] sm:$0xff] %vm3972_vm1, %v15660_v50 }
 0x1e4   :  { %13350 = vmatmul.mubr.msk.f32.gmra.mrb[112].mxu0 %vm311_vm0, %v165_v53  ;;  %3985 = vst.msk [vmem:[#allocation2 + $0x60] sm:$0xff] %vm3972_vm1, %v15660_v50  ;;  %3986 = vst.msk [vmem:[#allocation2 + $0x68] sm:$0xff] %vm3972_vm1, %v15660_v50  ;;  %v2536_v53 = vld [vmem:[%s19221_s0 + $0x182] sm:$0xff] }
 0x1e5   :  { %13352 = vmatprep.mubr.msk.f32.mxu0 %vm311_vm0, %v166_v54  ;;  %3987 = vst.msk [vmem:[#allocation2 + $0x70] sm:$0xff] %vm3972_vm1, %v15660_v50  ;;  %3988 = vst.msk [vmem:[#allocation2 + $0x78] sm:$0xff] %vm3972_vm1, %v15660_v50  ;;  %v14552_v54 = vpack.c.bf16 %v11483_v52, %v11482_v51  ;;  %v2590_v51 = vld [vmem:[%s19221_s0 + $0x352] sm:$0xff]  ;;  %v2591_v52 = vld [vmem:[%s19221_s0 + $0x35a] sm:$0xff] }
 0x1e6   :  { %3989 = vst.msk [vmem:[#allocation2 + $0x80] sm:$0xff] %vm3972_vm1, %v15660_v50  ;;  %3990 = vst.msk [vmem:[#allocation2 + $0x88] sm:$0xff] %vm3972_vm1, %v15660_v50 }
 0x1e7   :  { %3991 = vst.msk [vmem:[#allocation2 + $0x90] sm:$0xff] %vm3972_vm1, %v15660_v50  ;;  %3992 = vst.msk [vmem:[#allocation2 + $0x98] sm:$0xff] %vm3972_vm1, %v15660_v50  ;;  %14553 = vmatprep.subr.bf16.mxu1 %v14552_v54 }
 0x1e8   :  { %13353 = vmatmul.mubr.msk.f32.gmra.mrb[114].mxu0 %vm311_vm0, %v167_v55  ;;  %3993 = vst.msk [vmem:[#allocation2 + $0xa0] sm:$0xff] %vm3972_vm1, %v15660_v50  ;;  %3994 = vst.msk [vmem:[#allocation2 + $0xa8] sm:$0xff] %vm3972_vm1, %v15660_v50  ;;  %v2537_v55 = vld [vmem:[%s19221_s0 + $0x18a] sm:$0xff]  ;;  %14555 = vmatpush3.bf16.msra.mxu1 %v14552_v54 }
 0x1e9   :  { %13355 = vmatprep.mubr.msk.f32.mxu0 %vm311_vm0, %v168_v56  ;;  %3995 = vst.msk [vmem:[#allocation2 + $0xb0] sm:$0xff] %vm3972_vm1, %v15660_v50  ;;  %3996 = vst.msk [vmem:[#allocation2 + $0xb8] sm:$0xff] %vm3972_vm1, %v15660_v50  ;;  %v11484_v56 = vld [vmem:[%s19222_s3 + $0x30] sm:$0xff] }
 0x1ea   :  { %3997 = vst.msk [vmem:[#allocation2 + $0xc0] sm:$0xff] %vm3972_vm1, %v15660_v50  ;;  %3998 = vst.msk [vmem:[#allocation2 + $0xc8] sm:$0xff] %vm3972_vm1, %v15660_v50  ;;  %v2593_v54 = vld [vmem:[%s19221_s0 + $0x36a] sm:$0xff] }
 0x1eb   :  { %3999 = vst.msk [vmem:[#allocation2 + $0xd0] sm:$0xff] %vm3972_vm1, %v15660_v50  ;;  %4000 = vst.msk [vmem:[#allocation2 + $0xd8] sm:$0xff] %vm3972_vm1, %v15660_v50 }
 0x1ec   :  { %13356 = vmatmul.mubr.msk.f32.gmra.mrb[116].mxu0 %vm311_vm0, %v169_v57  ;;  %4001 = vst.msk [vmem:[#allocation2 + $0xe0] sm:$0xff] %vm3972_vm1, %v15660_v50  ;;  %4002 = vst.msk [vmem:[#allocation2 + $0xe8] sm:$0xff] %vm3972_vm1, %v15660_v50  ;;  %v11485_v57 = vld [vmem:[%s19222_s3 + $0x38] sm:$0xff] }
 0x1ed   :  { %13358 = vmatprep.mubr.msk.f32.mxu0 %vm311_vm0, %v170_v58  ;;  %4003 = vst.msk [vmem:[#allocation2 + $0xf0] sm:$0xff] %vm3972_vm1, %v15660_v50  ;;  %4004 = vst.msk [vmem:[#allocation2 + $0xf8] sm:$0xff] %vm3972_vm1, %v15660_v50  ;;  %v2538_v58 = vld [vmem:[%s19221_s0 + $0x19a] sm:$0xff] }
 0x1ee   :  { %4005 = vst.msk [vmem:[#allocation2 + $0x100] sm:$0xff] %vm3972_vm1, %v15660_v50  ;;  %4006 = vst.msk [vmem:[#allocation2 + $0x108] sm:$0xff] %vm3972_vm1, %v15660_v50 }
 0x1ef   :  { %4007 = vst.msk [vmem:[#allocation2 + $0x110] sm:$0xff] %vm3972_vm1, %v15660_v50  ;;  %4008 = vst.msk [vmem:[#allocation2 + $0x118] sm:$0xff] %vm3972_vm1, %v15660_v50 }
 0x1f0   :  { %13359 = vmatmul.mubr.msk.f32.gmra.mrb[118].mxu0 %vm311_vm0, %v171_v59  ;;  %4009 = vst.msk [vmem:[#allocation2 + $0x120] sm:$0xff] %vm3972_vm1, %v15660_v50  ;;  %4010 = vst.msk [vmem:[#allocation2 + $0x128] sm:$0xff] %vm3972_vm1, %v15660_v50  ;;  %v14556_v59 = vpack.c.bf16 %v11485_v57, %v11484_v56  ;;  %v2595_v56 = vld [vmem:[%s19221_s0 + $0x37a] sm:$0xff]  ;;  %v2596_v57 = vld [vmem:[%s19221_s0 + $0x382] sm:$0xff] }
 0x1f1   :  { %13361 = vmatprep.mubr.msk.f32.mxu0 %vm311_vm0, %v172_v60  ;;  %4011 = vst.msk [vmem:[#allocation2 + $0x130] sm:$0xff] %vm3972_vm1, %v15660_v50  ;;  %4012 = vst.msk [vmem:[#allocation2 + $0x138] sm:$0xff] %vm3972_vm1, %v15660_v50  ;;  %v2539_v60 = vld [vmem:[%s19221_s0 + $0x1a2] sm:$0xff] }
 0x1f2   :  { %4013 = vst.msk [vmem:[#allocation2 + $0x140] sm:$0xff] %vm3972_vm1, %v15660_v50  ;;  %4014 = vst.msk [vmem:[#allocation2 + $0x148] sm:$0xff] %vm3972_vm1, %v15660_v50  ;;  %14557 = vmatprep.subr.bf16.mxu1 %v14556_v59 }
 0x1f3   :  { %4015 = vst.msk [vmem:[#allocation2 + $0x150] sm:$0xff] %vm3972_vm1, %v15660_v50  ;;  %4016 = vst.msk [vmem:[#allocation2 + $0x158] sm:$0xff] %vm3972_vm1, %v15660_v50  ;;  %14559 = vmatpush3.bf16.msra.mxu1 %v14556_v59  ;;  %v2597_v59 = vld [vmem:[%s19221_s0 + $0x38a] sm:$0xff] }
 0x1f4   :  { %13362 = vmatmul.mubr.msk.f32.gmra.mrb[120].mxu0 %vm311_vm0, %v173_v61  ;;  %4017 = vst.msk [vmem:[#allocation2 + $0x160] sm:$0xff] %vm3972_vm1, %v15660_v50  ;;  %4018 = vst.msk [vmem:[#allocation2 + $0x168] sm:$0xff] %vm3972_vm1, %v15660_v50  ;;  %v2540_v61 = vld [vmem:[%s19221_s0 + $0x1aa] sm:$0xff] }
 0x1f5   :  { %13364 = vmatprep.mubr.msk.f32.mxu0 %vm311_vm0, %v174_v62  ;;  %4019 = vst.msk [vmem:[#allocation2 + $0x170] sm:$0xff] %vm3972_vm1, %v15660_v50  ;;  %4020 = vst.msk [vmem:[#allocation2 + $0x178] sm:$0xff] %vm3972_vm1, %v15660_v50  ;;  %v2541_v62 = vld [vmem:[%s19221_s0 + $0x1b2] sm:$0xff] }
 0x1f6   :  { %4021 = vst.msk [vmem:[#allocation2 + $0x180] sm:$0xff] %vm3972_vm1, %v15660_v50  ;;  %4022 = vst.msk [vmem:[#allocation2 + $0x188] sm:$0xff] %vm3972_vm1, %v15660_v50 }
 0x1f7   :  { %4023 = vst.msk [vmem:[#allocation2 + $0x190] sm:$0xff] %vm3972_vm1, %v15660_v50  ;;  %4024 = vst.msk [vmem:[#allocation2 + $0x198] sm:$0xff] %vm3972_vm1, %v15660_v50 }
 0x1f8   :  { %13365 = vmatmul.mubr.msk.f32.gmra.mrb[122].mxu0 %vm311_vm0, %v175_v63  ;;  %4025 = vst.msk [vmem:[#allocation2 + $0x1a0] sm:$0xff] %vm3972_vm1, %v15660_v50  ;;  %4026 = vst.msk [vmem:[#allocation2 + $0x1a8] sm:$0xff] %vm3972_vm1, %v15660_v50  ;;  %v2542_v63 = vld [vmem:[%s19221_s0 + $0x1ba] sm:$0xff] }
 0x1f9   :  { %13367 = vmatprep.mubr.msk.f32.mxu0 %vm311_vm0, %v176_v0  ;;  %4027 = vst.msk [vmem:[#allocation2 + $0x1b0] sm:$0xff] %vm3972_vm1, %v15660_v50  ;;  %4028 = vst.msk [vmem:[#allocation2 + $0x1b8] sm:$0xff] %vm3972_vm1, %v15660_v50  ;;  %v4373_v0 = vld [vmem:[%s19222_s3] sm:$0xff] }
 0x1fa   :  { %4029 = vst.msk [vmem:[#allocation2 + $0x1c0] sm:$0xff] %vm3972_vm1, %v15660_v50  ;;  %4030 = vst.msk [vmem:[#allocation2 + $0x1c8] sm:$0xff] %vm3972_vm1, %v15660_v50 }
 0x1fb   :  { %4031 = vst.msk [vmem:[#allocation2 + $0x1d0] sm:$0xff] %vm3972_vm1, %v15660_v50  ;;  %4032 = vst.msk [vmem:[#allocation2 + $0x1d8] sm:$0xff] %vm3972_vm1, %v15660_v50 }
 0x1fc   :  { %13368 = vmatmul.mubr.msk.f32.gmra.mrb[124].mxu0 %vm311_vm0, %v177_v1  ;;  %4033 = vst.msk [vmem:[#allocation2 + $0x1e0] sm:$0xff] %vm3972_vm1, %v15660_v50  ;;  %4034 = vst.msk [vmem:[#allocation2 + $0x1e8] sm:$0xff] %vm3972_vm1, %v15660_v50  ;;  %v4374_v1 = vld [vmem:[%s19222_s3 + $0x8] sm:$0xff] }
 0x1fd   :  { %13370 = vmatprep.mubr.msk.f32.mxu0 %vm311_vm0, %v178_v2  ;;  %4035 = vst.msk [vmem:[#allocation2 + $0x1f0] sm:$0xff] %vm3972_vm1, %v15660_v50  ;;  %4036 = vst.msk [vmem:[#allocation2 + $0x1f8] sm:$0xff] %vm3972_vm1, %v15660_v50  ;;  %v17315_v2 = vpack.c.bf16 %v4374_v1, %v4373_v0  ;;  %v2599_v1 = vld [vmem:[%s19221_s0 + $0x39a] sm:$0xff] }
 0x1fe   :  { %4037 = vst.msk [vmem:[#allocation2 + $0x200] sm:$0xff] %vm3972_vm1, %v15660_v50  ;;  %4038 = vst.msk [vmem:[#allocation2 + $0x208] sm:$0xff] %vm3972_vm1, %v15660_v50 }
 0x1ff   :  { %4039 = vst.msk [vmem:[#allocation2 + $0x210] sm:$0xff] %vm3972_vm1, %v15660_v50  ;;  %4040 = vst.msk [vmem:[#allocation2 + $0x218] sm:$0xff] %vm3972_vm1, %v15660_v50  ;;  %14561 = vmatprep.subr.bf16.mxu1 %v17315_v2 }
 0x200   :  { %13371 = vmatmul.mubr.msk.f32.gmra.mrb[126].mxu0 %vm311_vm0, %v179_v3  ;;  %4041 = vst.msk [vmem:[#allocation2 + $0x220] sm:$0xff] %vm3972_vm1, %v15660_v50  ;;  %4042 = vst.msk [vmem:[#allocation2 + $0x228] sm:$0xff] %vm3972_vm1, %v15660_v50  ;;  %v2543_v3 = vld [vmem:[%s19221_s0 + $0x1c2] sm:$0xff] }
 0x201   :  { %13375 = vmatprep.mubr.msk.f32.mxu0 %vm311_vm0, %v2490_v4  ;;  %4043 = vst.msk [vmem:[#allocation2 + $0x230] sm:$0xff] %vm3972_vm1, %v15660_v50  ;;  %4044 = vst.msk [vmem:[#allocation2 + $0x238] sm:$0xff] %vm3972_vm1, %v15660_v50  ;;  %v2544_v4 = vld [vmem:[%s19221_s0 + $0x1ca] sm:$0xff] }
 0x202   :  { %4045 = vst.msk [vmem:[#allocation2 + $0x240] sm:$0xff] %vm3972_vm1, %v15660_v50  ;;  %4046 = vst.msk [vmem:[#allocation2 + $0x248] sm:$0xff] %vm3972_vm1, %v15660_v50 }
 0x203   :  { %4047 = vst.msk [vmem:[#allocation2 + $0x250] sm:$0xff] %vm3972_vm1, %v15660_v50  ;;  %4048 = vst.msk [vmem:[#allocation2 + $0x258] sm:$0xff] %vm3972_vm1, %v15660_v50 }
 0x204   :  { %13376 = vmatmul.mubr.msk.f32.vlgmr.msra.gmra.mrb[0].mxu0 %vm311_vm0, %v2491_v5  ;;  %4049 = vst.msk [vmem:[#allocation2 + $0x260] sm:$0xff] %vm3972_vm1, %v15660_v50  ;;  %4050 = vst.msk [vmem:[#allocation2 + $0x268] sm:$0xff] %vm3972_vm1, %v15660_v50  ;;  %v2545_v5 = vld [vmem:[%s19221_s0 + $0x1d2] sm:$0xff] }
 0x205   :  { %13378 = vmatprep.mubr.msk.f32.mxu0 %vm311_vm0, %v2492_v7  ;;  %4051 = vst.msk [vmem:[#allocation2 + $0x270] sm:$0xff] %vm3972_vm1, %v15660_v50  ;;  %4052 = vst.msk [vmem:[#allocation2 + $0x278] sm:$0xff] %vm3972_vm1, %v15660_v50  ;;  %v2546_v7 = vld [vmem:[%s19221_s0 + $0x1da] sm:$0xff] }
 0x206   :  { %4053 = vst.msk [vmem:[#allocation2 + $0x280] sm:$0xff] %vm3972_vm1, %v15660_v50  ;;  %4054 = vst.msk [vmem:[#allocation2 + $0x288] sm:$0xff] %vm3972_vm1, %v15660_v50 }
 0x207   :  { %4055 = vst.msk [vmem:[#allocation2 + $0x290] sm:$0xff] %vm3972_vm1, %v15660_v50  ;;  %4056 = vst.msk [vmem:[#allocation2 + $0x298] sm:$0xff] %vm3972_vm1, %v15660_v50 }
 0x208   :  { %13379 = vmatmul.mubr.msk.f32.gmra.mrb[2].mxu0 %vm311_vm0, %v2493_v8  ;;  %4057 = vst.msk [vmem:[#allocation2 + $0x2a0] sm:$0xff] %vm3972_vm1, %v15660_v50  ;;  %4058 = vst.msk [vmem:[#allocation2 + $0x2a8] sm:$0xff] %vm3972_vm1, %v15660_v50  ;;  %v2547_v8 = vld [vmem:[%s19221_s0 + $0x1e2] sm:$0xff] }
 0x209   :  { %13381 = vmatprep.mubr.msk.f32.mxu0 %vm311_vm0, %v2494_v9  ;;  %4059 = vst.msk [vmem:[#allocation2 + $0x2b0] sm:$0xff] %vm3972_vm1, %v15660_v50  ;;  %4060 = vst.msk [vmem:[#allocation2 + $0x2b8] sm:$0xff] %vm3972_vm1, %v15660_v50  ;;  %v2548_v9 = vld [vmem:[%s19221_s0 + $0x1ea] sm:$0xff] }
 0x20a   :  { %4061 = vst.msk [vmem:[#allocation2 + $0x2c0] sm:$0xff] %vm3972_vm1, %v15660_v50  ;;  %4062 = vst.msk [vmem:[#allocation2 + $0x2c8] sm:$0xff] %vm3972_vm1, %v15660_v50 }
 0x20b   :  { %4063 = vst.msk [vmem:[#allocation2 + $0x2d0] sm:$0xff] %vm3972_vm1, %v15660_v50  ;;  %4064 = vst.msk [vmem:[#allocation2 + $0x2d8] sm:$0xff] %vm3972_vm1, %v15660_v50 }
 0x20c   :  { %13382 = vmatmul.mubr.msk.f32.gmra.mrb[4].mxu0 %vm311_vm0, %v2495_v10  ;;  %4065 = vst.msk [vmem:[#allocation2 + $0x2e0] sm:$0xff] %vm3972_vm1, %v15660_v50  ;;  %4066 = vst.msk [vmem:[#allocation2 + $0x2e8] sm:$0xff] %vm3972_vm1, %v15660_v50  ;;  %v2549_v10 = vld [vmem:[%s19221_s0 + $0x1f2] sm:$0xff] }
 0x20d   :  { %13384 = vmatprep.mubr.msk.f32.mxu0 %vm311_vm0, %v2496_v6  ;;  %4067 = vst.msk [vmem:[#allocation2 + $0x2f0] sm:$0xff] %vm3972_vm1, %v15660_v50  ;;  %4068 = vst.msk [vmem:[#allocation2 + $0x2f8] sm:$0xff] %vm3972_vm1, %v15660_v50  ;;  %v2550_v6 = vld [vmem:[%s19221_s0 + $0x1fa] sm:$0xff] }
 0x20e   :  { %4069 = vst.msk [vmem:[#allocation2 + $0x300] sm:$0xff] %vm3972_vm1, %v15660_v50  ;;  %4070 = vst.msk [vmem:[#allocation2 + $0x308] sm:$0xff] %vm3972_vm1, %v15660_v50 }
 0x20f   :  { %4071 = vst.msk [vmem:[#allocation2 + $0x310] sm:$0xff] %vm3972_vm1, %v15660_v50  ;;  %4072 = vst.msk [vmem:[#allocation2 + $0x318] sm:$0xff] %vm3972_vm1, %v15660_v50 }
 0x210   :  { %13385 = vmatmul.mubr.msk.f32.gmra.mrb[6].mxu0 %vm311_vm0, %v2497_v11  ;;  %4073 = vst.msk [vmem:[#allocation2 + $0x320] sm:$0xff] %vm3972_vm1, %v15660_v50  ;;  %4074 = vst.msk [vmem:[#allocation2 + $0x328] sm:$0xff] %vm3972_vm1, %v15660_v50  ;;  %v2551_v11 = vld [vmem:[%s19221_s0 + $0x202] sm:$0xff] }
 0x211   :  { %13387 = vmatprep.mubr.msk.f32.mxu0 %vm311_vm0, %v2498_v12  ;;  %4075 = vst.msk [vmem:[#allocation2 + $0x330] sm:$0xff] %vm3972_vm1, %v15660_v50  ;;  %4076 = vst.msk [vmem:[#allocation2 + $0x338] sm:$0xff] %vm3972_vm1, %v15660_v50  ;;  %v2552_v12 = vld [vmem:[%s19221_s0 + $0x20a] sm:$0xff] }
 0x212   :  { %4077 = vst.msk [vmem:[#allocation2 + $0x340] sm:$0xff] %vm3972_vm1, %v15660_v50  ;;  %4078 = vst.msk [vmem:[#allocation2 + $0x348] sm:$0xff] %vm3972_vm1, %v15660_v50 }
 0x213   :  { %4079 = vst.msk [vmem:[#allocation2 + $0x350] sm:$0xff] %vm3972_vm1, %v15660_v50  ;;  %4080 = vst.msk [vmem:[#allocation2 + $0x358] sm:$0xff] %vm3972_vm1, %v15660_v50 }
 0x214   :  { %13388 = vmatmul.mubr.msk.f32.gmra.mrb[8].mxu0 %vm311_vm0, %v2499_v13  ;;  %4081 = vst.msk [vmem:[#allocation2 + $0x360] sm:$0xff] %vm3972_vm1, %v15660_v50  ;;  %4082 = vst.msk [vmem:[#allocation2 + $0x368] sm:$0xff] %vm3972_vm1, %v15660_v50  ;;  %v2553_v13 = vld [vmem:[%s19221_s0 + $0x212] sm:$0xff] }
 0x215   :  { %13390 = vmatprep.mubr.msk.f32.mxu0 %vm311_vm0, %v2500_v14  ;;  %4083 = vst.msk [vmem:[#allocation2 + $0x370] sm:$0xff] %vm3972_vm1, %v15660_v50  ;;  %4084 = vst.msk [vmem:[#allocation2 + $0x378] sm:$0xff] %vm3972_vm1, %v15660_v50  ;;  %v2554_v14 = vld [vmem:[%s19221_s0 + $0x222] sm:$0xff] }
 0x216   :  { %4085 = vst.msk [vmem:[#allocation2 + $0x380] sm:$0xff] %vm3972_vm1, %v15660_v50  ;;  %4086 = vst.msk [vmem:[#allocation2 + $0x388] sm:$0xff] %vm3972_vm1, %v15660_v50 }
 0x217   :  { %4087 = vst.msk [vmem:[#allocation2 + $0x390] sm:$0xff] %vm3972_vm1, %v15660_v50  ;;  %4088 = vst.msk [vmem:[#allocation2 + $0x398] sm:$0xff] %vm3972_vm1, %v15660_v50 }
 0x218   :  { %13391 = vmatmul.mubr.msk.f32.gmra.mrb[10].mxu0 %vm311_vm0, %v2501_v15  ;;  %4089 = vst.msk [vmem:[#allocation2 + $0x3a0] sm:$0xff] %vm3972_vm1, %v15660_v50  ;;  %4090 = vst.msk [vmem:[#allocation2 + $0x3a8] sm:$0xff] %vm3972_vm1, %v15660_v50  ;;  %v2555_v15 = vld [vmem:[%s19221_s0 + $0x22a] sm:$0xff] }
 0x219   :  { %13393 = vmatprep.mubr.msk.f32.mxu0 %vm311_vm0, %v2502_v16  ;;  %4091 = vst.msk [vmem:[#allocation2 + $0x3b0] sm:$0xff] %vm3972_vm1, %v15660_v50  ;;  %4092 = vst.msk [vmem:[#allocation2 + $0x3b8] sm:$0xff] %vm3972_vm1, %v15660_v50  ;;  %v2556_v16 = vld [vmem:[%s19221_s0 + $0x232] sm:$0xff] }
 0x21a   :  { %4093 = vst.msk [vmem:[#allocation2 + $0x3c0] sm:$0xff] %vm3972_vm1, %v15660_v50  ;;  %4094 = vst.msk [vmem:[#allocation2 + $0x3c8] sm:$0xff] %vm3972_vm1, %v15660_v50 }
 0x21b   :  { %4095 = vst.msk [vmem:[#allocation2 + $0x3d0] sm:$0xff] %vm3972_vm1, %v15660_v50  ;;  %4096 = vst.msk [vmem:[#allocation2 + $0x3d8] sm:$0xff] %vm3972_vm1, %v15660_v50 }
 0x21c   :  { %13394 = vmatmul.mubr.msk.f32.gmra.mrb[12].mxu0 %vm311_vm0, %v2503_v17  ;;  %4097 = vst.msk [vmem:[#allocation2 + $0x3e0] sm:$0xff] %vm3972_vm1, %v15660_v50  ;;  %4098 = vst.msk [vmem:[#allocation2 + $0x3e8] sm:$0xff] %vm3972_vm1, %v15660_v50  ;;  %v2557_v17 = vld [vmem:[%s19221_s0 + $0x23a] sm:$0xff] }
 0x21d   :  { %13396 = vmatprep.mubr.msk.f32.mxu0 %vm311_vm0, %v2504_v18  ;;  %4099 = vst.msk [vmem:[#allocation2 + $0x3f0] sm:$0xff] %vm3972_vm1, %v15660_v50  ;;  %4100 = vst.msk [vmem:[#allocation2 + $0x3f8] sm:$0xff] %vm3972_vm1, %v15660_v50  ;;  %v2558_v18 = vld [vmem:[%s19221_s0 + $0x242] sm:$0xff] }
 0x21e   :  { %4101 = vst.msk [vmem:[#allocation2 + $0x400] sm:$0xff] %vm3972_vm1, %v15660_v50  ;;  %4102 = vst.msk [vmem:[#allocation2 + $0x408] sm:$0xff] %vm3972_vm1, %v15660_v50 }
 0x21f   :  { %4103 = vst.msk [vmem:[#allocation2 + $0x410] sm:$0xff] %vm3972_vm1, %v15660_v50  ;;  %4104 = vst.msk [vmem:[#allocation2 + $0x418] sm:$0xff] %vm3972_vm1, %v15660_v50 }
 0x220   :  { %13397 = vmatmul.mubr.msk.f32.gmra.mrb[14].mxu0 %vm311_vm0, %v2505_v19  ;;  %4105 = vst.msk [vmem:[#allocation2 + $0x420] sm:$0xff] %vm3972_vm1, %v15660_v50  ;;  %4106 = vst.msk [vmem:[#allocation2 + $0x428] sm:$0xff] %vm3972_vm1, %v15660_v50  ;;  %v2559_v19 = vld [vmem:[%s19221_s0 + $0x24a] sm:$0xff] }
 0x221   :  { %13399 = vmatprep.mubr.msk.f32.mxu0 %vm311_vm0, %v2506_v20  ;;  %4107 = vst.msk [vmem:[#allocation2 + $0x430] sm:$0xff] %vm3972_vm1, %v15660_v50  ;;  %4108 = vst.msk [vmem:[#allocation2 + $0x438] sm:$0xff] %vm3972_vm1, %v15660_v50  ;;  %v2560_v20 = vld [vmem:[%s19221_s0 + $0x252] sm:$0xff] }
 0x222   :  { %4109 = vst.msk [vmem:[#allocation2 + $0x440] sm:$0xff] %vm3972_vm1, %v15660_v50  ;;  %4110 = vst.msk [vmem:[#allocation2 + $0x448] sm:$0xff] %vm3972_vm1, %v15660_v50 }
 0x223   :  { %4111 = vst.msk [vmem:[#allocation2 + $0x450] sm:$0xff] %vm3972_vm1, %v15660_v50  ;;  %4112 = vst.msk [vmem:[#allocation2 + $0x458] sm:$0xff] %vm3972_vm1, %v15660_v50 }
 0x224   :  { %13400 = vmatmul.mubr.msk.f32.gmra.mrb[16].mxu0 %vm311_vm0, %v2507_v21  ;;  %4113 = vst.msk [vmem:[#allocation2 + $0x460] sm:$0xff] %vm3972_vm1, %v15660_v50  ;;  %4114 = vst.msk [vmem:[#allocation2 + $0x468] sm:$0xff] %vm3972_vm1, %v15660_v50  ;;  %v2561_v21 = vld [vmem:[%s19221_s0 + $0x25a] sm:$0xff] }
 0x225   :  { %13402 = vmatprep.mubr.msk.f32.mxu0 %vm311_vm0, %v2508_v22  ;;  %4115 = vst.msk [vmem:[#allocation2 + $0x470] sm:$0xff] %vm3972_vm1, %v15660_v50  ;;  %4116 = vst.msk [vmem:[#allocation2 + $0x478] sm:$0xff] %vm3972_vm1, %v15660_v50  ;;  %v2562_v22 = vld [vmem:[%s19221_s0 + $0x262] sm:$0xff] }
 0x228   :  { %13403 = vmatmul.mubr.msk.f32.gmra.mrb[18].mxu0 %vm311_vm0, %v2509_v23  ;;  %v2563_v23 = vld [vmem:[%s19221_s0 + $0x26a] sm:$0xff] }
 0x229   :  { %13405 = vmatprep.mubr.msk.f32.mxu0 %vm311_vm0, %v2510_v24  ;;  %v2564_v24 = vld [vmem:[%s19221_s0 + $0x272] sm:$0xff] }
 0x22c   :  { %13406 = vmatmul.mubr.msk.f32.gmra.mrb[20].mxu0 %vm311_vm0, %v2511_v25  ;;  %v2565_v25 = vld [vmem:[%s19221_s0 + $0x27a] sm:$0xff] }
 0x22d   :  { %13408 = vmatprep.mubr.msk.f32.mxu0 %vm311_vm0, %v2512_v26  ;;  %v2566_v26 = vld [vmem:[%s19221_s0 + $0x282] sm:$0xff] }
 0x230   :  { %13409 = vmatmul.mubr.msk.f32.gmra.mrb[22].mxu0 %vm311_vm0, %v2513_v27  ;;  %v2567_v27 = vld [vmem:[%s19221_s0 + $0x28a] sm:$0xff] }
 0x231   :  { %13411 = vmatprep.mubr.msk.f32.mxu0 %vm311_vm0, %v2514_v28  ;;  %v2568_v28 = vld [vmem:[%s19221_s0 + $0x292] sm:$0xff] }
 0x234   :  { %13412 = vmatmul.mubr.msk.f32.gmra.mrb[24].mxu0 %vm311_vm0, %v2515_v29  ;;  %v2569_v29 = vld [vmem:[%s19221_s0 + $0x29a] sm:$0xff] }
 0x235   :  { %13414 = vmatprep.mubr.msk.f32.mxu0 %vm311_vm0, %v2516_v30  ;;  %v2570_v30 = vld [vmem:[%s19221_s0 + $0x2aa] sm:$0xff] }
 0x238   :  { %13415 = vmatmul.mubr.msk.f32.gmra.mrb[26].mxu0 %vm311_vm0, %v2517_v31  ;;  %v2571_v31 = vld [vmem:[%s19221_s0 + $0x2b2] sm:$0xff] }
 0x239   :  { %13417 = vmatprep.mubr.msk.f32.mxu0 %vm311_vm0, %v2518_v32  ;;  %v2572_v32 = vld [vmem:[%s19221_s0 + $0x2ba] sm:$0xff] }
 0x23c   :  { %13418 = vmatmul.mubr.msk.f32.gmra.mrb[28].mxu0 %vm311_vm0, %v2519_v33  ;;  %v2573_v33 = vld [vmem:[%s19221_s0 + $0x2c2] sm:$0xff] }
 0x23d   :  { %13420 = vmatprep.mubr.msk.f32.mxu0 %vm311_vm0, %v2520_v34  ;;  %v2574_v34 = vld [vmem:[%s19221_s0 + $0x2ca] sm:$0xff] }
 0x240   :  { %13421 = vmatmul.mubr.msk.f32.gmra.mrb[30].mxu0 %vm311_vm0, %v2521_v35  ;;  %v2575_v35 = vld [vmem:[%s19221_s0 + $0x2d2] sm:$0xff] }
 0x241   :  { %13423 = vmatprep.mubr.msk.f32.mxu0 %vm311_vm0, %v2522_v36  ;;  %v2576_v36 = vld [vmem:[%s19221_s0 + $0x2da] sm:$0xff] }
 0x244   :  { %13424 = vmatmul.mubr.msk.f32.gmra.mrb[32].mxu0 %vm311_vm0, %v2523_v37  ;;  %v2577_v37 = vld [vmem:[%s19221_s0 + $0x2e2] sm:$0xff] }
 0x245   :  { %13426 = vmatprep.mubr.msk.f32.mxu0 %vm311_vm0, %v2524_v38  ;;  %v2578_v38 = vld [vmem:[%s19221_s0 + $0x2ea] sm:$0xff] }
 0x248   :  { %13427 = vmatmul.mubr.msk.f32.gmra.mrb[34].mxu0 %vm311_vm0, %v2525_v39  ;;  %v2579_v39 = vld [vmem:[%s19221_s0 + $0x2f2] sm:$0xff] }
 0x249   :  { %13429 = vmatprep.mubr.msk.f32.mxu0 %vm311_vm0, %v2526_v40  ;;  %v2580_v40 = vld [vmem:[%s19221_s0 + $0x2fa] sm:$0xff] }
 0x24c   :  { %13430 = vmatmul.mubr.msk.f32.gmra.mrb[36].mxu0 %vm311_vm0, %v2527_v41  ;;  %v2581_v41 = vld [vmem:[%s19221_s0 + $0x302] sm:$0xff] }
 0x24d   :  { %13432 = vmatprep.mubr.msk.f32.mxu0 %vm311_vm0, %v2528_v42  ;;  %v2582_v42 = vld [vmem:[%s19221_s0 + $0x30a] sm:$0xff] }
 0x250   :  { %13433 = vmatmul.mubr.msk.f32.gmra.mrb[38].mxu0 %vm311_vm0, %v2529_v43  ;;  %v2583_v43 = vld [vmem:[%s19221_s0 + $0x312] sm:$0xff] }
 0x251   :  { %13435 = vmatprep.mubr.msk.f32.mxu0 %vm311_vm0, %v2530_v44  ;;  %v2584_v44 = vld [vmem:[%s19221_s0 + $0x31a] sm:$0xff] }
 0x254   :  { %13436 = vmatmul.mubr.msk.f32.gmra.mrb[40].mxu0 %vm311_vm0, %v2531_v45  ;;  %v2585_v45 = vld [vmem:[%s19221_s0 + $0x322] sm:$0xff] }
 0x255   :  { %13438 = vmatprep.mubr.msk.f32.mxu0 %vm311_vm0, %v2532_v46  ;;  %v2586_v46 = vld [vmem:[%s19221_s0 + $0x332] sm:$0xff] }
 0x258   :  { %13439 = vmatmul.mubr.msk.f32.gmra.mrb[42].mxu0 %vm311_vm0, %v2533_v47  ;;  %v2587_v47 = vld [vmem:[%s19221_s0 + $0x33a] sm:$0xff] }
 0x259   :  { %13441 = vmatprep.mubr.msk.f32.mxu0 %vm311_vm0, %v2534_v48  ;;  %v2588_v48 = vld [vmem:[%s19221_s0 + $0x342] sm:$0xff] }
 0x25c   :  { %13442 = vmatmul.mubr.msk.f32.gmra.mrb[44].mxu0 %vm311_vm0, %v16978_v49  ;;  %v2589_v49 = vld [vmem:[%s19221_s0 + $0x34a] sm:$0xff] }
 0x25d   :  { %13444 = vmatprep.mubr.msk.f32.mxu0 %vm311_vm0, %v2536_v53  ;;  %v2592_v53 = vld [vmem:[%s19221_s0 + $0x362] sm:$0xff] }
 0x260   :  { %13445 = vmatmul.mubr.msk.f32.gmra.mrb[46].mxu0 %vm311_vm0, %v2537_v55  ;;  %v2594_v55 = vld [vmem:[%s19221_s0 + $0x372] sm:$0xff] }
 0x261   :  { %13447 = vmatprep.mubr.msk.f32.mxu0 %vm311_vm0, %v2538_v58  ;;  %v17537_v58 = vld [vmem:[%s19223_s2] ss:$0 sm:$0xff] }
 0x264   :  { %13448 = vmatmul.mubr.msk.f32.gmra.mrb[48].mxu0 %vm311_vm0, %v2539_v60  ;;  %v2598_v60 = vld [vmem:[%s19221_s0 + $0x392] sm:$0xff] }
 0x265   :  { %13450 = vmatprep.mubr.msk.f32.mxu0 %vm311_vm0, %v2540_v61 }
 0x268   :  { %13451 = vmatmul.mubr.msk.f32.gmra.mrb[50].mxu0 %vm311_vm0, %v2541_v62 }
 0x269   :  { %13453 = vmatprep.mubr.msk.f32.mxu0 %vm311_vm0, %v2542_v63 }
 0x26c   :  { %13454 = vmatmul.mubr.msk.f32.gmra.mrb[52].mxu0 %vm311_vm0, %v2543_v3  ;;  %v2600_v3 = vld [vmem:[%s19221_s0 + $0x3a2] sm:$0xff] }
 0x26d   :  { %13456 = vmatprep.mubr.msk.f32.mxu0 %vm311_vm0, %v2544_v4 }
 0x270   :  { %13457 = vmatmul.mubr.msk.f32.gmra.mrb[54].mxu0 %vm311_vm0, %v2545_v5 }
 0x271   :  { %13459 = vmatprep.mubr.msk.f32.mxu0 %vm311_vm0, %v2546_v7 }
 0x274   :  { %13460 = vmatmul.mubr.msk.f32.gmra.mrb[56].mxu0 %vm311_vm0, %v2547_v8 }
 0x275   :  { %13462 = vmatprep.mubr.msk.f32.mxu0 %vm311_vm0, %v2548_v9  ;;  %v2601_v9 = vld [vmem:[%s19221_s0 + $0x3aa] sm:$0xff] }
 0x278   :  { %13463 = vmatmul.mubr.msk.f32.gmra.mrb[58].mxu0 %vm311_vm0, %v2549_v10  ;;  %v2602_v10 = vld [vmem:[%s19221_s0 + $0x3ba] sm:$0xff] }
 0x279   :  { %13465 = vmatprep.mubr.msk.f32.mxu0 %vm311_vm0, %v2550_v6 }
 0x27c   :  { %13466 = vmatmul.mubr.msk.f32.gmra.mrb[60].mxu0 %vm311_vm0, %v2551_v11 }
 0x27d   :  { %13468 = vmatprep.mubr.msk.f32.mxu0 %vm311_vm0, %v2552_v12 }
 0x280   :  { %13469 = vmatmul.mubr.msk.f32.gmra.mrb[62].mxu0 %vm311_vm0, %v2553_v13 }
 0x281   :  { %13471 = vmatprep.mubr.msk.f32.mxu0 %vm311_vm0, %v2554_v14  ;;  %v2603_v14 = vld [vmem:[%s19221_s0 + $0x3c2] sm:$0xff] }
 0x284   :  { %13472 = vmatmul.mubr.msk.f32.gmra.mrb[64].mxu0 %vm311_vm0, %v2555_v15 }
 0x285   :  { %13474 = vmatprep.mubr.msk.f32.mxu0 %vm311_vm0, %v2556_v16  ;;  %v2604_v16 = vld [vmem:[%s19221_s0 + $0x3ca] sm:$0xff] }
 0x288   :  { %13475 = vmatmul.mubr.msk.f32.gmra.mrb[66].mxu0 %vm311_vm0, %v2557_v17 }
 0x289   :  { %13477 = vmatprep.mubr.msk.f32.mxu0 %vm311_vm0, %v2558_v18 }
 0x28c   :  { %13478 = vmatmul.mubr.msk.f32.gmra.mrb[68].mxu0 %vm311_vm0, %v2559_v19 }
 0x28d   :  { %13480 = vmatprep.mubr.msk.f32.mxu0 %vm311_vm0, %v2560_v20 }
 0x290   :  { %13481 = vmatmul.mubr.msk.f32.gmra.mrb[70].mxu0 %vm311_vm0, %v2561_v21 }
 0x291   :  { %13483 = vmatprep.mubr.msk.f32.mxu0 %vm311_vm0, %v2562_v22  ;;  %v2605_v22 = vld [vmem:[%s19221_s0 + $0x3d2] sm:$0xff] }
 0x294   :  { %13484 = vmatmul.mubr.msk.f32.gmra.mrb[72].mxu0 %vm311_vm0, %v2563_v23 }
 0x295   :  { %13486 = vmatprep.mubr.msk.f32.mxu0 %vm311_vm0, %v2564_v24  ;;  %v2606_v24 = vld [vmem:[%s19221_s0 + $0x3da] sm:$0xff] }
 0x298   :  { %13487 = vmatmul.mubr.msk.f32.gmra.mrb[74].mxu0 %vm311_vm0, %v2565_v25 }
 0x299   :  { %13489 = vmatprep.mubr.msk.f32.mxu0 %vm311_vm0, %v2566_v26 }
 0x29c   :  { %13490 = vmatmul.mubr.msk.f32.gmra.mrb[76].mxu0 %vm311_vm0, %v2567_v27  ;;  %v4376_v27 = vld [vmem:[%s19222_s3 + $0x18] sm:$0xff] }
 0x29d   :  { %13492 = vmatprep.mubr.msk.f32.mxu0 %vm311_vm0, %v2568_v28 }
 0x2a0   :  { %13493 = vmatmul.mubr.msk.f32.gmra.mrb[78].mxu0 %vm311_vm0, %v2569_v29 }
 0x2a1   :  { %13495 = vmatprep.mubr.msk.f32.mxu0 %vm311_vm0, %v2570_v30 }
 0x2a4   :  { %13496 = vmatmul.mubr.msk.f32.gmra.mrb[80].mxu0 %vm311_vm0, %v2571_v31 }
 0x2a5   :  { %13498 = vmatprep.mubr.msk.f32.mxu0 %vm311_vm0, %v2572_v32  ;;  %v2607_v32 = vld [vmem:[%s19221_s0 + $0x3e2] sm:$0xff] }
 0x2a8   :  { %13499 = vmatmul.mubr.msk.f32.gmra.mrb[82].mxu0 %vm311_vm0, %v2573_v33 }
 0x2a9   :  { %13501 = vmatprep.mubr.msk.f32.mxu0 %vm311_vm0, %v2574_v34  ;;  %v2608_v34 = vld [vmem:[%s19221_s0 + $0x3ea] sm:$0xff] }
 0x2ac   :  { %13502 = vmatmul.mubr.msk.f32.gmra.mrb[84].mxu0 %vm311_vm0, %v2575_v35 }
 0x2ad   :  { %13504 = vmatprep.mubr.msk.f32.mxu0 %vm311_vm0, %v2576_v36 }
 0x2b0   :  { %13505 = vmatmul.mubr.msk.f32.gmra.mrb[86].mxu0 %vm311_vm0, %v2577_v37 }
 0x2b1   :  { %13507 = vmatprep.mubr.msk.f32.mxu0 %vm311_vm0, %v2578_v38 }
 0x2b4   :  { %13508 = vmatmul.mubr.msk.f32.gmra.mrb[88].mxu0 %vm311_vm0, %v2579_v39 }
 0x2b5   :  { %13510 = vmatprep.mubr.msk.f32.mxu0 %vm311_vm0, %v2580_v40  ;;  %v2609_v40 = vld [vmem:[%s19221_s0 + $0x3f2] sm:$0xff] }
 0x2b8   :  { %13511 = vmatmul.mubr.msk.f32.gmra.mrb[90].mxu0 %vm311_vm0, %v2581_v41 }
 0x2b9   :  { %13513 = vmatprep.mubr.msk.f32.mxu0 %vm311_vm0, %v2582_v42  ;;  %v2610_v42 = vld [vmem:[%s19221_s0 + $0x3fa] sm:$0xff] }
 0x2bc   :  { %13514 = vmatmul.mubr.msk.f32.gmra.mrb[92].mxu0 %vm311_vm0, %v2583_v43 }
 0x2bd   :  { %13516 = vmatprep.mubr.msk.f32.mxu0 %vm311_vm0, %v2584_v44 }
 0x2c0   :  { %13517 = vmatmul.mubr.msk.f32.gmra.mrb[94].mxu0 %vm311_vm0, %v2585_v45 }
 0x2c1   :  { %13519 = vmatprep.mubr.msk.f32.mxu0 %vm311_vm0, %v2586_v46 }
 0x2c4   :  { %13520 = vmatmul.mubr.msk.f32.gmra.mrb[96].mxu0 %vm311_vm0, %v2587_v47 }
 0x2c5   :  { %13522 = vmatprep.mubr.msk.f32.mxu0 %vm311_vm0, %v2588_v48  ;;  %v2611_v48 = vld [vmem:[%s19221_s0 + $0x402] sm:$0xff] }
 0x2c8   :  { %13523 = vmatmul.mubr.msk.f32.gmra.mrb[98].mxu0 %vm311_vm0, %v2589_v49 }
 0x2c9   :  { %13525 = vmatprep.mubr.msk.f32.mxu0 %vm311_vm0, %v2590_v51  ;;  %v2612_v51 = vld [vmem:[%s19221_s0 + $0x40a] sm:$0xff] }
 0x2cc   :  { %13526 = vmatmul.mubr.msk.f32.gmra.mrb[100].mxu0 %vm311_vm0, %v2591_v52 }
 0x2cd   :  { %13528 = vmatprep.mubr.msk.f32.mxu0 %vm311_vm0, %v2592_v53 }
 0x2d0   :  { %13529 = vmatmul.mubr.msk.f32.gmra.mrb[102].mxu0 %vm311_vm0, %v2593_v54 }
 0x2d1   :  { %13531 = vmatprep.mubr.msk.f32.mxu0 %vm311_vm0, %v2594_v55 }
 0x2d4   :  { %13532 = vmatmul.mubr.msk.f32.gmra.mrb[104].mxu0 %vm311_vm0, %v2595_v56 }
 0x2d5   :  { %13534 = vmatprep.mubr.msk.f32.mxu0 %vm311_vm0, %v2596_v57  ;;  %v2613_v57 = vld [vmem:[%s19221_s0 + $0x412] sm:$0xff] }
 0x2d7   :  { %v13377_v61 = vpop.f32.mrb[0].mxu0 }
 0x2d8   :  { %v3845_v62 = vadd.f32 %v13377_v61, %v17537_v58  ;;  %v3070_v63 = vpop.f32.mrb[1].mxu0  ;;  %13535 = vmatmul.mubr.msk.f32.gmra.mrb[106].mxu0 %vm311_vm0, %v2597_v59 }
 0x2d9   :  { %v3844_v0 = vadd.f32 %v17537_v58, %v3070_v63  ;;  %13537 = vmatprep.mubr.msk.f32.mxu0 %vm311_vm0, %v2598_v60  ;;  %v2614_v60 = vld [vmem:[%s19221_s0 + $0x41a] sm:$0xff] }
 0x2da   :  { %4118 = vst.msk [vmem:[#allocation2 + $0x10] sm:$0xff] %vm3972_vm1, %v3845_v62 }
 0x2db   :  { %4117 = vst.msk [vmem:[#allocation2 + $0x8] sm:$0xff] %vm3972_vm1, %v3844_v0  ;;  %v13380_v4 = vpop.f32.mrb[2].mxu0 }
 0x2dc   :  { %v3847_v5 = vadd.f32 %v13380_v4, %v17537_v58  ;;  %v3080_v7 = vpop.f32.mrb[3].mxu0  ;;  %13538 = vmatmul.mubr.msk.f32.gmra.mrb[108].mxu0 %vm311_vm0, %v2599_v1 }
 0x2dd   :  { %v3846_v8 = vadd.f32 %v17537_v58, %v3080_v7  ;;  %13540 = vmatprep.mubr.msk.f32.mxu0 %vm311_vm0, %v2600_v3  ;;  %v2615_v3 = vld [vmem:[%s19221_s0 + $0x422] sm:$0xff] }
 0x2de   :  { %4120 = vst.msk [vmem:[#allocation2 + $0x20] sm:$0xff] %vm3972_vm1, %v3847_v5  ;;  %v2616_v5 = vld [vmem:[%s19221_s0 + $0x42a] sm:$0xff] }
 0x2df   :  { %4119 = vst.msk [vmem:[#allocation2 + $0x18] sm:$0xff] %vm3972_vm1, %v3846_v8  ;;  %v13383_v6 = vpop.f32.mrb[4].mxu0 }
 0x2e0   :  { %v3849_v11 = vadd.f32 %v13383_v6, %v17537_v58  ;;  %v3090_v12 = vpop.f32.mrb[5].mxu0  ;;  %13541 = vmatmul.mubr.msk.f32.gmra.mrb[110].mxu0 %vm311_vm0, %v2601_v9 }
 0x2e1   :  { %v3848_v13 = vadd.f32 %v17537_v58, %v3090_v12  ;;  %13543 = vmatprep.mubr.msk.f32.mxu0 %vm311_vm0, %v2602_v10  ;;  %v4378_v18 = vld [vmem:[#allocation2 + $0x10] sm:$0xff] }
 0x2e2   :  { %4122 = vst.msk [vmem:[#allocation2 + $0x30] sm:$0xff] %vm3972_vm1, %v3849_v11  ;;  %v4377_v15 = vld [vmem:[#allocation2 + $0x8] sm:$0xff]  ;;  %v2617_v11 = vld [vmem:[%s19221_s0 + $0x432] sm:$0xff] }
 0x2e3   :  { %4121 = vst.msk [vmem:[#allocation2 + $0x28] sm:$0xff] %vm3972_vm1, %v3848_v13  ;;  %v13386_v17 = vpop.f32.mrb[6].mxu0  ;;  %13575 = vmatprep.mubr.msk.f32.mxu1 %vm3972_vm1, %v4377_v15 }
 0x2e4   :  { %v3851_v19 = vadd.f32 %v13386_v17, %v17537_v58  ;;  %v3100_v20 = vpop.f32.mrb[7].mxu0  ;;  %13544 = vmatmul.mubr.msk.f32.gmra.mrb[112].mxu0 %vm311_vm0, %v2603_v14  ;;  %13576 = vmatmul.mubr.msk.f32.vlgmr.msra.gmra.mrb[0].mxu1 %vm3972_vm1, %v4378_v18 }
 0x2e5   :  { %v3850_v21 = vadd.f32 %v17537_v58, %v3100_v20  ;;  %14563 = vmatpush3.bf16.msra.mxu1 %v17315_v2  ;;  %13546 = vmatprep.mubr.msk.f32.mxu0 %vm311_vm0, %v2604_v16  ;;  %v4380_v26 = vld [vmem:[#allocation2 + $0x20] sm:$0xff]  ;;  %v4375_v2 = vld [vmem:[%s19222_s3 + $0x10] sm:$0xff] }
 0x2e6   :  { %4124 = vst.msk [vmem:[#allocation2 + $0x40] sm:$0xff] %vm3972_vm1, %v3851_v19  ;;  %v4379_v23 = vld [vmem:[#allocation2 + $0x18] sm:$0xff]  ;;  %v14564_v30 = vpack.c.bf16 %v4376_v27, %v4375_v2 }
 0x2e7   :  { %4123 = vst.msk [vmem:[#allocation2 + $0x38] sm:$0xff] %vm3972_vm1, %v3850_v21  ;;  %v13389_v25 = vpop.f32.mrb[8].mxu0  ;;  %13578 = vmatprep.mubr.msk.f32.mxu1 %vm3972_vm1, %v4379_v23 }
 0x2e8   :  { %v3853_v28 = vadd.f32 %v13389_v25, %v17537_v58  ;;  %v3110_v29 = vpop.f32.mrb[9].mxu0  ;;  %13547 = vmatmul.mubr.msk.f32.gmra.mrb[114].mxu0 %vm311_vm0, %v2605_v22  ;;  %13579 = vmatmul.mubr.msk.f32.gmra.mrb[2].mxu1 %vm3972_vm1, %v4380_v26 }
 0x2e9   :  { %v3852_v31 = vadd.f32 %v17537_v58, %v3110_v29  ;;  %13549 = vmatprep.mubr.msk.f32.mxu0 %vm311_vm0, %v2606_v24  ;;  %14565 = vmatprep.subr.bf16.mxu1 %v14564_v30  ;;  %v4382_v36 = vld [vmem:[#allocation2 + $0x30] sm:$0xff] }
 0x2ea   :  { %4126 = vst.msk [vmem:[#allocation2 + $0x50] sm:$0xff] %vm3972_vm1, %v3853_v28  ;;  %v4381_v33 = vld [vmem:[#allocation2 + $0x28] sm:$0xff]  ;;  %14567 = vmatpush3.bf16.msra.mxu1 %v14564_v30 }
 0x2eb   :  { %4125 = vst.msk [vmem:[#allocation2 + $0x48] sm:$0xff] %vm3972_vm1, %v3852_v31  ;;  %v13392_v35 = vpop.f32.mrb[10].mxu0  ;;  %13581 = vmatprep.mubr.msk.f32.mxu1 %vm3972_vm1, %v4381_v33 }
 0x2ec   :  { %v3855_v37 = vadd.f32 %v13392_v35, %v17537_v58  ;;  %v3120_v38 = vpop.f32.mrb[11].mxu0  ;;  %13550 = vmatmul.mubr.msk.f32.gmra.mrb[116].mxu0 %vm311_vm0, %v2607_v32  ;;  %13582 = vmatmul.mubr.msk.f32.gmra.mrb[4].mxu1 %vm3972_vm1, %v4382_v36 }
 0x2ed   :  { %v3854_v39 = vadd.f32 %v17537_v58, %v3120_v38  ;;  %13552 = vmatprep.mubr.msk.f32.mxu0 %vm311_vm0, %v2608_v34  ;;  %v4384_v44 = vld [vmem:[#allocation2 + $0x40] sm:$0xff] }
 0x2ee   :  { %4128 = vst.msk [vmem:[#allocation2 + $0x60] sm:$0xff] %vm3972_vm1, %v3855_v37  ;;  %v4383_v41 = vld [vmem:[#allocation2 + $0x38] sm:$0xff] }
 0x2ef   :  { %4127 = vst.msk [vmem:[#allocation2 + $0x58] sm:$0xff] %vm3972_vm1, %v3854_v39  ;;  %v13395_v43 = vpop.f32.mrb[12].mxu0  ;;  %13584 = vmatprep.mubr.msk.f32.mxu1 %vm3972_vm1, %v4383_v41 }
 0x2f0   :  { %v3857_v45 = vadd.f32 %v13395_v43, %v17537_v58  ;;  %v3130_v46 = vpop.f32.mrb[13].mxu0  ;;  %13553 = vmatmul.mubr.msk.f32.gmra.mrb[118].mxu0 %vm311_vm0, %v2609_v40  ;;  %13585 = vmatmul.mubr.msk.f32.gmra.mrb[6].mxu1 %vm3972_vm1, %v4384_v44 }
 0x2f1   :  { %v3856_v47 = vadd.f32 %v17537_v58, %v3130_v46  ;;  %13555 = vmatprep.mubr.msk.f32.mxu0 %vm311_vm0, %v2610_v42  ;;  %v4386_v53 = vld [vmem:[#allocation2 + $0x50] sm:$0xff] }
 0x2f2   :  { %4130 = vst.msk [vmem:[#allocation2 + $0x70] sm:$0xff] %vm3972_vm1, %v3857_v45  ;;  %v4385_v49 = vld [vmem:[#allocation2 + $0x48] sm:$0xff] }
 0x2f3   :  { %4129 = vst.msk [vmem:[#allocation2 + $0x68] sm:$0xff] %vm3972_vm1, %v3856_v47  ;;  %v13398_v52 = vpop.f32.mrb[14].mxu0  ;;  %13587 = vmatprep.mubr.msk.f32.mxu1 %vm3972_vm1, %v4385_v49 }
 0x2f4   :  { %v3859_v54 = vadd.f32 %v13398_v52, %v17537_v58  ;;  %v3140_v55 = vpop.f32.mrb[15].mxu0  ;;  %13556 = vmatmul.mubr.msk.f32.gmra.mrb[120].mxu0 %vm311_vm0, %v2611_v48  ;;  %13588 = vmatmul.mubr.msk.f32.gmra.mrb[8].mxu1 %vm3972_vm1, %v4386_v53 }
 0x2f5   :  { %v3858_v56 = vadd.f32 %v17537_v58, %v3140_v55  ;;  %13558 = vmatprep.mubr.msk.f32.mxu0 %vm311_vm0, %v2612_v51  ;;  %v4388_v62 = vld [vmem:[#allocation2 + $0x60] sm:$0xff] }
 0x2f6   :  { %4132 = vst.msk [vmem:[#allocation2 + $0x80] sm:$0xff] %vm3972_vm1, %v3859_v54  ;;  %v4387_v59 = vld [vmem:[#allocation2 + $0x58] sm:$0xff] }
 0x2f7   :  { %4131 = vst.msk [vmem:[#allocation2 + $0x78] sm:$0xff] %vm3972_vm1, %v3858_v56  ;;  %v13401_v61 = vpop.f32.mrb[16].mxu0  ;;  %13590 = vmatprep.mubr.msk.f32.mxu1 %vm3972_vm1, %v4387_v59 }
 0x2f8   :  { %v3861_v63 = vadd.f32 %v13401_v61, %v17537_v58  ;;  %v3150_v0 = vpop.f32.mrb[17].mxu0  ;;  %13559 = vmatmul.mubr.msk.f32.gmra.mrb[122].mxu0 %vm311_vm0, %v2613_v57  ;;  %13591 = vmatmul.mubr.msk.f32.gmra.mrb[10].mxu1 %vm3972_vm1, %v4388_v62 }
 0x2f9   :  { %v3860_v1 = vadd.f32 %v17537_v58, %v3150_v0  ;;  %13561 = vmatprep.mubr.msk.f32.mxu0 %vm311_vm0, %v2614_v60  ;;  %v4390_v8 = vld [vmem:[#allocation2 + $0x70] sm:$0xff] }
 0x2fa   :  { %4134 = vst.msk [vmem:[#allocation2 + $0xa0] sm:$0xff] %vm3972_vm1, %v3861_v63  ;;  %v4389_v4 = vld [vmem:[#allocation2 + $0x68] sm:$0xff] }
 0x2fb   :  { %4133 = vst.msk [vmem:[#allocation2 + $0x98] sm:$0xff] %vm3972_vm1, %v3860_v1  ;;  %v13404_v7 = vpop.f32.mrb[18].mxu0  ;;  %13593 = vmatprep.mubr.msk.f32.mxu1 %vm3972_vm1, %v4389_v4 }
 0x2fc   :  { %v3863_v9 = vadd.f32 %v13404_v7, %v17537_v58  ;;  %v3160_v10 = vpop.f32.mrb[19].mxu0  ;;  %13562 = vmatmul.mubr.msk.f32.gmra.mrb[124].mxu0 %vm311_vm0, %v2615_v3  ;;  %13594 = vmatmul.mubr.msk.f32.gmra.mrb[12].mxu1 %vm3972_vm1, %v4390_v8 }
 0x2fd   :  { %v3862_v6 = vadd.f32 %v17537_v58, %v3160_v10  ;;  %13564 = vmatprep.mubr.msk.f32.mxu0 %vm311_vm0, %v2616_v5  ;;  %v4392_v14 = vld [vmem:[#allocation2 + $0x80] sm:$0xff] }
 0x2fe   :  { %4136 = vst.msk [vmem:[#allocation2 + $0xb0] sm:$0xff] %vm3972_vm1, %v3863_v9  ;;  %v4391_v12 = vld [vmem:[#allocation2 + $0x78] sm:$0xff] }
 0x2ff   :  { %4135 = vst.msk [vmem:[#allocation2 + $0xa8] sm:$0xff] %vm3972_vm1, %v3862_v6  ;;  %v13407_v13 = vpop.f32.mrb[20].mxu0  ;;  %13596 = vmatprep.mubr.msk.f32.mxu1 %vm3972_vm1, %v4391_v12 }
 0x300   :  { %v3865_v15 = vadd.f32 %v13407_v13, %v17537_v58  ;;  %v3170_v16 = vpop.f32.mrb[21].mxu0  ;;  %13565 = vmatmul.mubr.msk.f32.gmra.mrb[126].mxu0 %vm311_vm0, %v2617_v11  ;;  %13597 = vmatmul.mubr.msk.f32.gmra.mrb[14].mxu1 %vm3972_vm1, %v4392_v14 }
 0x301   :  { %v3864_v17 = vadd.f32 %v17537_v58, %v3170_v16  ;;  %v4394_v20 = vld [vmem:[#allocation2 + $0xa0] sm:$0xff]  ;;  %14199 = vmatprep.mubr.msk.f32.mxu0 %vm15662_vm2, %v15660_v50 }
 0x302   :  { %4138 = vst.msk [vmem:[#allocation2 + $0xc0] sm:$0xff] %vm3972_vm1, %v3865_v15  ;;  %v4393_v18 = vld [vmem:[#allocation2 + $0x98] sm:$0xff] }
 0x303   :  { %4137 = vst.msk [vmem:[#allocation2 + $0xb8] sm:$0xff] %vm3972_vm1, %v3864_v17  ;;  %v13410_v19 = vpop.f32.mrb[22].mxu0  ;;  %13599 = vmatprep.mubr.msk.f32.mxu1 %vm3972_vm1, %v4393_v18 }
 0x304   :  { %v3867_v21 = vadd.f32 %v13410_v19, %v17537_v58  ;;  %v3180_v22 = vpop.f32.mrb[23].mxu0  ;;  %13600 = vmatmul.mubr.msk.f32.gmra.mrb[16].mxu1 %vm3972_vm1, %v4394_v20 }
 0x305   :  { %v3866_v23 = vadd.f32 %v17537_v58, %v3180_v22  ;;  %v4396_v26 = vld [vmem:[#allocation2 + $0xb0] sm:$0xff] }
 0x306   :  { %4140 = vst.msk [vmem:[#allocation2 + $0xd0] sm:$0xff] %vm3972_vm1, %v3867_v21  ;;  %v4395_v24 = vld [vmem:[#allocation2 + $0xa8] sm:$0xff] }
 0x307   :  { %4139 = vst.msk [vmem:[#allocation2 + $0xc8] sm:$0xff] %vm3972_vm1, %v3866_v23  ;;  %v13413_v25 = vpop.f32.mrb[24].mxu0  ;;  %13602 = vmatprep.mubr.msk.f32.mxu1 %vm3972_vm1, %v4395_v24 }
 0x308   :  { %v3869_v2 = vadd.f32 %v13413_v25, %v17537_v58  ;;  %v3190_v27 = vpop.f32.mrb[25].mxu0  ;;  %13603 = vmatmul.mubr.msk.f32.gmra.mrb[18].mxu1 %vm3972_vm1, %v4396_v26 }
 0x309   :  { %v3868_v28 = vadd.f32 %v17537_v58, %v3190_v27  ;;  %v4398_v31 = vld [vmem:[#allocation2 + $0xc0] sm:$0xff] }
 0x30a   :  { %4142 = vst.msk [vmem:[#allocation2 + $0xe0] sm:$0xff] %vm3972_vm1, %v3869_v2  ;;  %v4397_v29 = vld [vmem:[#allocation2 + $0xb8] sm:$0xff] }
 0x30b   :  { %4141 = vst.msk [vmem:[#allocation2 + $0xd8] sm:$0xff] %vm3972_vm1, %v3868_v28  ;;  %v13416_v30 = vpop.f32.mrb[26].mxu0  ;;  %13605 = vmatprep.mubr.msk.f32.mxu1 %vm3972_vm1, %v4397_v29 }
 0x30c   :  { %v3871_v32 = vadd.f32 %v13416_v30, %v17537_v58  ;;  %v3200_v33 = vpop.f32.mrb[27].mxu0  ;;  %13606 = vmatmul.mubr.msk.f32.gmra.mrb[20].mxu1 %vm3972_vm1, %v4398_v31 }
 0x30d   :  { %v3870_v34 = vadd.f32 %v17537_v58, %v3200_v33  ;;  %v4400_v37 = vld [vmem:[#allocation2 + $0xd0] sm:$0xff] }
 0x30e   :  { %4144 = vst.msk [vmem:[#allocation2 + $0xf0] sm:$0xff] %vm3972_vm1, %v3871_v32  ;;  %v4399_v35 = vld [vmem:[#allocation2 + $0xc8] sm:$0xff] }
 0x30f   :  { %4143 = vst.msk [vmem:[#allocation2 + $0xe8] sm:$0xff] %vm3972_vm1, %v3870_v34  ;;  %v13419_v36 = vpop.f32.mrb[28].mxu0  ;;  %13608 = vmatprep.mubr.msk.f32.mxu1 %vm3972_vm1, %v4399_v35 }
 0x310   :  { %v3873_v38 = vadd.f32 %v13419_v36, %v17537_v58  ;;  %v3210_v39 = vpop.f32.mrb[29].mxu0  ;;  %13609 = vmatmul.mubr.msk.f32.gmra.mrb[22].mxu1 %vm3972_vm1, %v4400_v37 }
 0x311   :  { %v3872_v40 = vadd.f32 %v17537_v58, %v3210_v39  ;;  %v4402_v43 = vld [vmem:[#allocation2 + $0xe0] sm:$0xff] }
 0x312   :  { %4146 = vst.msk [vmem:[#allocation2 + $0x100] sm:$0xff] %vm3972_vm1, %v3873_v38  ;;  %v4401_v41 = vld [vmem:[#allocation2 + $0xd8] sm:$0xff] }
 0x313   :  { %4145 = vst.msk [vmem:[#allocation2 + $0xf8] sm:$0xff] %vm3972_vm1, %v3872_v40  ;;  %v13422_v42 = vpop.f32.mrb[30].mxu0  ;;  %13611 = vmatprep.mubr.msk.f32.mxu1 %vm3972_vm1, %v4401_v41 }
 0x314   :  { %v3875_v44 = vadd.f32 %v13422_v42, %v17537_v58  ;;  %v3220_v45 = vpop.f32.mrb[31].mxu0  ;;  %13612 = vmatmul.mubr.msk.f32.gmra.mrb[24].mxu1 %vm3972_vm1, %v4402_v43 }
 0x315   :  { %v3874_v46 = vadd.f32 %v17537_v58, %v3220_v45  ;;  %v4404_v49 = vld [vmem:[#allocation2 + $0xf0] sm:$0xff] }
 0x316   :  { %4148 = vst.msk [vmem:[#allocation2 + $0x110] sm:$0xff] %vm3972_vm1, %v3875_v44  ;;  %v4403_v47 = vld [vmem:[#allocation2 + $0xe8] sm:$0xff] }
 0x317   :  { %4147 = vst.msk [vmem:[#allocation2 + $0x108] sm:$0xff] %vm3972_vm1, %v3874_v46  ;;  %v13425_v48 = vpop.f32.mrb[32].mxu0  ;;  %13614 = vmatprep.mubr.msk.f32.mxu1 %vm3972_vm1, %v4403_v47 }
 0x318   :  { %v3877_v51 = vadd.f32 %v13425_v48, %v17537_v58  ;;  %v3230_v52 = vpop.f32.mrb[33].mxu0  ;;  %13615 = vmatmul.mubr.msk.f32.gmra.mrb[26].mxu1 %vm3972_vm1, %v4404_v49 }
 0x319   :  { %v3876_v53 = vadd.f32 %v17537_v58, %v3230_v52  ;;  %v4406_v56 = vld [vmem:[#allocation2 + $0x100] sm:$0xff] }
 0x31a   :  { %4150 = vst.msk [vmem:[#allocation2 + $0x130] sm:$0xff] %vm3972_vm1, %v3877_v51  ;;  %v4405_v54 = vld [vmem:[#allocation2 + $0xf8] sm:$0xff] }
 0x31b   :  { %4149 = vst.msk [vmem:[#allocation2 + $0x128] sm:$0xff] %vm3972_vm1, %v3876_v53  ;;  %v13428_v55 = vpop.f32.mrb[34].mxu0  ;;  %13617 = vmatprep.mubr.msk.f32.mxu1 %vm3972_vm1, %v4405_v54 }
 0x31c   :  { %v3879_v57 = vadd.f32 %v13428_v55, %v17537_v58  ;;  %v3240_v59 = vpop.f32.mrb[35].mxu0  ;;  %13618 = vmatmul.mubr.msk.f32.gmra.mrb[28].mxu1 %vm3972_vm1, %v4406_v56 }
 0x31d   :  { %v3878_v60 = vadd.f32 %v17537_v58, %v3240_v59  ;;  %v4408_v63 = vld [vmem:[#allocation2 + $0x110] sm:$0xff] }
 0x31e   :  { %4152 = vst.msk [vmem:[#allocation2 + $0x140] sm:$0xff] %vm3972_vm1, %v3879_v57  ;;  %v4407_v61 = vld [vmem:[#allocation2 + $0x108] sm:$0xff] }
 0x31f   :  { %4151 = vst.msk [vmem:[#allocation2 + $0x138] sm:$0xff] %vm3972_vm1, %v3878_v60  ;;  %v13431_v62 = vpop.f32.mrb[36].mxu0  ;;  %13620 = vmatprep.mubr.msk.f32.mxu1 %vm3972_vm1, %v4407_v61 }
 0x320   :  { %v3881_v0 = vadd.f32 %v13431_v62, %v17537_v58  ;;  %v3250_v1 = vpop.f32.mrb[37].mxu0  ;;  %13621 = vmatmul.mubr.msk.f32.gmra.mrb[30].mxu1 %vm3972_vm1, %v4408_v63 }
 0x321   :  { %v3880_v3 = vadd.f32 %v17537_v58, %v3250_v1  ;;  %v4410_v7 = vld [vmem:[#allocation2 + $0x130] sm:$0xff] }
 0x322   :  { %4154 = vst.msk [vmem:[#allocation2 + $0x150] sm:$0xff] %vm3972_vm1, %v3881_v0  ;;  %v4409_v4 = vld [vmem:[#allocation2 + $0x128] sm:$0xff] }
 0x323   :  { %4153 = vst.msk [vmem:[#allocation2 + $0x148] sm:$0xff] %vm3972_vm1, %v3880_v3  ;;  %v13434_v5 = vpop.f32.mrb[38].mxu0  ;;  %13623 = vmatprep.mubr.msk.f32.mxu1 %vm3972_vm1, %v4409_v4 }
 0x324   :  { %v3883_v8 = vadd.f32 %v13434_v5, %v17537_v58  ;;  %v3260_v9 = vpop.f32.mrb[39].mxu0  ;;  %13624 = vmatmul.mubr.msk.f32.gmra.mrb[32].mxu1 %vm3972_vm1, %v4410_v7 }
 0x325   :  { %v3882_v10 = vadd.f32 %v17537_v58, %v3260_v9  ;;  %v4412_v12 = vld [vmem:[#allocation2 + $0x140] sm:$0xff] }
 0x326   :  { %4156 = vst.msk [vmem:[#allocation2 + $0x160] sm:$0xff] %vm3972_vm1, %v3883_v8  ;;  %v4411_v6 = vld [vmem:[#allocation2 + $0x138] sm:$0xff] }
 0x327   :  { %4155 = vst.msk [vmem:[#allocation2 + $0x158] sm:$0xff] %vm3972_vm1, %v3882_v10  ;;  %v13437_v11 = vpop.f32.mrb[40].mxu0  ;;  %13626 = vmatprep.mubr.msk.f32.mxu1 %vm3972_vm1, %v4411_v6 }
 0x328   :  { %v3885_v13 = vadd.f32 %v13437_v11, %v17537_v58  ;;  %v3270_v14 = vpop.f32.mrb[41].mxu0  ;;  %13627 = vmatmul.mubr.msk.f32.gmra.mrb[34].mxu1 %vm3972_vm1, %v4412_v12 }
 0x329   :  { %v3884_v15 = vadd.f32 %v17537_v58, %v3270_v14  ;;  %v4414_v18 = vld [vmem:[#allocation2 + $0x150] sm:$0xff] }
 0x32a   :  { %4158 = vst.msk [vmem:[#allocation2 + $0x170] sm:$0xff] %vm3972_vm1, %v3885_v13  ;;  %v4413_v16 = vld [vmem:[#allocation2 + $0x148] sm:$0xff] }
 0x32b   :  { %4157 = vst.msk [vmem:[#allocation2 + $0x168] sm:$0xff] %vm3972_vm1, %v3884_v15  ;;  %v13440_v17 = vpop.f32.mrb[42].mxu0  ;;  %13629 = vmatprep.mubr.msk.f32.mxu1 %vm3972_vm1, %v4413_v16 }
 0x32c   :  { %v3887_v19 = vadd.f32 %v13440_v17, %v17537_v58  ;;  %v3280_v20 = vpop.f32.mrb[43].mxu0  ;;  %13630 = vmatmul.mubr.msk.f32.gmra.mrb[36].mxu1 %vm3972_vm1, %v4414_v18 }
 0x32d   :  { %v3886_v21 = vadd.f32 %v17537_v58, %v3280_v20  ;;  %v4416_v24 = vld [vmem:[#allocation2 + $0x160] sm:$0xff] }
 0x32e   :  { %4160 = vst.msk [vmem:[#allocation2 + $0x180] sm:$0xff] %vm3972_vm1, %v3887_v19  ;;  %v4415_v22 = vld [vmem:[#allocation2 + $0x158] sm:$0xff] }
 0x32f   :  { %4159 = vst.msk [vmem:[#allocation2 + $0x178] sm:$0xff] %vm3972_vm1, %v3886_v21  ;;  %v13443_v23 = vpop.f32.mrb[44].mxu0  ;;  %13632 = vmatprep.mubr.msk.f32.mxu1 %vm3972_vm1, %v4415_v22 }
 0x330   :  { %v3889_v25 = vadd.f32 %v13443_v23, %v17537_v58  ;;  %v3290_v26 = vpop.f32.mrb[45].mxu0  ;;  %13633 = vmatmul.mubr.msk.f32.gmra.mrb[38].mxu1 %vm3972_vm1, %v4416_v24 }
 0x331   :  { %v3888_v2 = vadd.f32 %v17537_v58, %v3290_v26  ;;  %v4418_v29 = vld [vmem:[#allocation2 + $0x170] sm:$0xff] }
 0x332   :  { %4162 = vst.msk [vmem:[#allocation2 + $0x190] sm:$0xff] %vm3972_vm1, %v3889_v25  ;;  %v4417_v27 = vld [vmem:[#allocation2 + $0x168] sm:$0xff] }
 0x333   :  { %4161 = vst.msk [vmem:[#allocation2 + $0x188] sm:$0xff] %vm3972_vm1, %v3888_v2  ;;  %v13446_v28 = vpop.f32.mrb[46].mxu0  ;;  %13635 = vmatprep.mubr.msk.f32.mxu1 %vm3972_vm1, %v4417_v27 }
 0x334   :  { %v3891_v30 = vadd.f32 %v13446_v28, %v17537_v58  ;;  %v3300_v31 = vpop.f32.mrb[47].mxu0  ;;  %13636 = vmatmul.mubr.msk.f32.gmra.mrb[40].mxu1 %vm3972_vm1, %v4418_v29 }
 0x335   :  { %v3890_v32 = vadd.f32 %v17537_v58, %v3300_v31  ;;  %v4420_v35 = vld [vmem:[#allocation2 + $0x180] sm:$0xff] }
 0x336   :  { %4164 = vst.msk [vmem:[#allocation2 + $0x1a0] sm:$0xff] %vm3972_vm1, %v3891_v30  ;;  %v4419_v33 = vld [vmem:[#allocation2 + $0x178] sm:$0xff] }
 0x337   :  { %4163 = vst.msk [vmem:[#allocation2 + $0x198] sm:$0xff] %vm3972_vm1, %v3890_v32  ;;  %v13449_v34 = vpop.f32.mrb[48].mxu0  ;;  %13638 = vmatprep.mubr.msk.f32.mxu1 %vm3972_vm1, %v4419_v33 }
 0x338   :  { %v3893_v36 = vadd.f32 %v13449_v34, %v17537_v58  ;;  %v3310_v37 = vpop.f32.mrb[49].mxu0  ;;  %13639 = vmatmul.mubr.msk.f32.gmra.mrb[42].mxu1 %vm3972_vm1, %v4420_v35 }
 0x339   :  { %v3892_v38 = vadd.f32 %v17537_v58, %v3310_v37  ;;  %v4422_v41 = vld [vmem:[#allocation2 + $0x190] sm:$0xff] }
 0x33a   :  { %4166 = vst.msk [vmem:[#allocation2 + $0x1c0] sm:$0xff] %vm3972_vm1, %v3893_v36  ;;  %v4421_v39 = vld [vmem:[#allocation2 + $0x188] sm:$0xff] }
 0x33b   :  { %4165 = vst.msk [vmem:[#allocation2 + $0x1b8] sm:$0xff] %vm3972_vm1, %v3892_v38  ;;  %v13452_v40 = vpop.f32.mrb[50].mxu0  ;;  %13641 = vmatprep.mubr.msk.f32.mxu1 %vm3972_vm1, %v4421_v39 }
 0x33c   :  { %v3895_v42 = vadd.f32 %v13452_v40, %v17537_v58  ;;  %v3320_v43 = vpop.f32.mrb[51].mxu0  ;;  %13642 = vmatmul.mubr.msk.f32.gmra.mrb[44].mxu1 %vm3972_vm1, %v4422_v41 }
 0x33d   :  { %v3894_v44 = vadd.f32 %v17537_v58, %v3320_v43  ;;  %v4424_v47 = vld [vmem:[#allocation2 + $0x1a0] sm:$0xff]  ;;  %v11743_v43 = vld [vmem:[%s19222_s3 + $0x48] sm:$0xff] }
 0x33e   :  { %4168 = vst.msk [vmem:[#allocation2 + $0x1d0] sm:$0xff] %vm3972_vm1, %v3895_v42  ;;  %v4423_v45 = vld [vmem:[#allocation2 + $0x198] sm:$0xff]  ;;  %v11742_v42 = vld [vmem:[%s19222_s3 + $0x40] sm:$0xff] }
 0x33f   :  { %4167 = vst.msk [vmem:[#allocation2 + $0x1c8] sm:$0xff] %vm3972_vm1, %v3894_v44  ;;  %v13455_v46 = vpop.f32.mrb[52].mxu0  ;;  %13644 = vmatprep.mubr.msk.f32.mxu1 %vm3972_vm1, %v4423_v45  ;;  %v17845_v45 = vpack.c.bf16 %v11743_v43, %v11742_v42 }
 0x340   :  { %v3897_v48 = vadd.f32 %v13455_v46, %v17537_v58  ;;  %v3330_v49 = vpop.f32.mrb[53].mxu0  ;;  %13645 = vmatmul.mubr.msk.f32.gmra.mrb[46].mxu1 %vm3972_vm1, %v4424_v47 }
 0x341   :  { %v3896_v51 = vadd.f32 %v17537_v58, %v3330_v49  ;;  %v4426_v54 = vld [vmem:[#allocation2 + $0x1c0] sm:$0xff]  ;;  %14569 = vmatprep.subr.bf16.mxu1 %v17845_v45 }
 0x342   :  { %4170 = vst.msk [vmem:[#allocation2 + $0x1e0] sm:$0xff] %vm3972_vm1, %v3897_v48  ;;  %v4425_v52 = vld [vmem:[#allocation2 + $0x1b8] sm:$0xff] }
 0x343   :  { %4169 = vst.msk [vmem:[#allocation2 + $0x1d8] sm:$0xff] %vm3972_vm1, %v3896_v51  ;;  %v13458_v53 = vpop.f32.mrb[54].mxu0  ;;  %13647 = vmatprep.mubr.msk.f32.mxu1 %vm3972_vm1, %v4425_v52 }
 0x344   :  { %v3899_v55 = vadd.f32 %v13458_v53, %v17537_v58  ;;  %v3340_v56 = vpop.f32.mrb[55].mxu0  ;;  %13648 = vmatmul.mubr.msk.f32.gmra.mrb[48].mxu1 %vm3972_vm1, %v4426_v54 }
 0x345   :  { %v3898_v57 = vadd.f32 %v17537_v58, %v3340_v56  ;;  %v4428_v61 = vld [vmem:[#allocation2 + $0x1d0] sm:$0xff] }
 0x346   :  { %4172 = vst.msk [vmem:[#allocation2 + $0x1f0] sm:$0xff] %vm3972_vm1, %v3899_v55  ;;  %v4427_v59 = vld [vmem:[#allocation2 + $0x1c8] sm:$0xff] }
 0x347   :  { %4171 = vst.msk [vmem:[#allocation2 + $0x1e8] sm:$0xff] %vm3972_vm1, %v3898_v57  ;;  %v13461_v60 = vpop.f32.mrb[56].mxu0  ;;  %13650 = vmatprep.mubr.msk.f32.mxu1 %vm3972_vm1, %v4427_v59 }
 0x348   :  { %v3901_v62 = vadd.f32 %v13461_v60, %v17537_v58  ;;  %v3350_v63 = vpop.f32.mrb[57].mxu0  ;;  %13651 = vmatmul.mubr.msk.f32.gmra.mrb[50].mxu1 %vm3972_vm1, %v4428_v61 }
 0x349   :  { %v3900_v0 = vadd.f32 %v17537_v58, %v3350_v63  ;;  %v4430_v4 = vld [vmem:[#allocation2 + $0x1e0] sm:$0xff] }
 0x34a   :  { %4174 = vst.msk [vmem:[#allocation2 + $0x200] sm:$0xff] %vm3972_vm1, %v3901_v62  ;;  %v4429_v1 = vld [vmem:[#allocation2 + $0x1d8] sm:$0xff] }
 0x34b   :  { %4173 = vst.msk [vmem:[#allocation2 + $0x1f8] sm:$0xff] %vm3972_vm1, %v3900_v0  ;;  %v13464_v3 = vpop.f32.mrb[58].mxu0  ;;  %13653 = vmatprep.mubr.msk.f32.mxu1 %vm3972_vm1, %v4429_v1 }
 0x34c   :  { %v3903_v5 = vadd.f32 %v13464_v3, %v17537_v58  ;;  %v3360_v7 = vpop.f32.mrb[59].mxu0  ;;  %13654 = vmatmul.mubr.msk.f32.gmra.mrb[52].mxu1 %vm3972_vm1, %v4430_v4 }
 0x34d   :  { %v3902_v8 = vadd.f32 %v17537_v58, %v3360_v7  ;;  %v4432_v6 = vld [vmem:[#allocation2 + $0x1f0] sm:$0xff] }
 0x34e   :  { %4176 = vst.msk [vmem:[#allocation2 + $0x210] sm:$0xff] %vm3972_vm1, %v3903_v5  ;;  %v4431_v9 = vld [vmem:[#allocation2 + $0x1e8] sm:$0xff] }
 0x34f   :  { %4175 = vst.msk [vmem:[#allocation2 + $0x208] sm:$0xff] %vm3972_vm1, %v3902_v8  ;;  %v13467_v10 = vpop.f32.mrb[60].mxu0  ;;  %13656 = vmatprep.mubr.msk.f32.mxu1 %vm3972_vm1, %v4431_v9 }
 0x350   :  { %v3905_v11 = vadd.f32 %v13467_v10, %v17537_v58  ;;  %v3370_v12 = vpop.f32.mrb[61].mxu0  ;;  %13657 = vmatmul.mubr.msk.f32.gmra.mrb[54].mxu1 %vm3972_vm1, %v4432_v6 }
 0x351   :  { %v3904_v13 = vadd.f32 %v17537_v58, %v3370_v12  ;;  %v4434_v16 = vld [vmem:[#allocation2 + $0x200] sm:$0xff] }
 0x352   :  { %4178 = vst.msk [vmem:[#allocation2 + $0x220] sm:$0xff] %vm3972_vm1, %v3905_v11  ;;  %v4433_v14 = vld [vmem:[#allocation2 + $0x1f8] sm:$0xff] }
 0x353   :  { %4177 = vst.msk [vmem:[#allocation2 + $0x218] sm:$0xff] %vm3972_vm1, %v3904_v13  ;;  %v13470_v15 = vpop.f32.mrb[62].mxu0  ;;  %13659 = vmatprep.mubr.msk.f32.mxu1 %vm3972_vm1, %v4433_v14 }
 0x354   :  { %v3907_v17 = vadd.f32 %v13470_v15, %v17537_v58  ;;  %v3380_v18 = vpop.f32.mrb[63].mxu0  ;;  %13660 = vmatmul.mubr.msk.f32.gmra.mrb[56].mxu1 %vm3972_vm1, %v4434_v16 }
 0x355   :  { %v3906_v19 = vadd.f32 %v17537_v58, %v3380_v18  ;;  %v4436_v22 = vld [vmem:[#allocation2 + $0x210] sm:$0xff] }
 0x356   :  { %4180 = vst.msk [vmem:[#allocation2 + $0x230] sm:$0xff] %vm3972_vm1, %v3907_v17  ;;  %v4435_v20 = vld [vmem:[#allocation2 + $0x208] sm:$0xff] }
 0x357   :  { %4179 = vst.msk [vmem:[#allocation2 + $0x228] sm:$0xff] %vm3972_vm1, %v3906_v19  ;;  %v13473_v21 = vpop.f32.mrb[64].mxu0  ;;  %13662 = vmatprep.mubr.msk.f32.mxu1 %vm3972_vm1, %v4435_v20 }
 0x358   :  { %v3909_v23 = vadd.f32 %v13473_v21, %v17537_v58  ;;  %v3390_v24 = vpop.f32.mrb[65].mxu0  ;;  %13663 = vmatmul.mubr.msk.f32.gmra.mrb[58].mxu1 %vm3972_vm1, %v4436_v22 }
 0x359   :  { %v3908_v25 = vadd.f32 %v17537_v58, %v3390_v24  ;;  %v4438_v27 = vld [vmem:[#allocation2 + $0x220] sm:$0xff] }
 0x35a   :  { %4182 = vst.msk [vmem:[#allocation2 + $0x250] sm:$0xff] %vm3972_vm1, %v3909_v23  ;;  %v4437_v26 = vld [vmem:[#allocation2 + $0x218] sm:$0xff] }
 0x35b   :  { %4181 = vst.msk [vmem:[#allocation2 + $0x248] sm:$0xff] %vm3972_vm1, %v3908_v25  ;;  %v13476_v2 = vpop.f32.mrb[66].mxu0  ;;  %13665 = vmatprep.mubr.msk.f32.mxu1 %vm3972_vm1, %v4437_v26 }
 0x35c   :  { %v3911_v28 = vadd.f32 %v13476_v2, %v17537_v58  ;;  %v3400_v29 = vpop.f32.mrb[67].mxu0  ;;  %13666 = vmatmul.mubr.msk.f32.gmra.mrb[60].mxu1 %vm3972_vm1, %v4438_v27 }
 0x35d   :  { %v3910_v30 = vadd.f32 %v17537_v58, %v3400_v29  ;;  %v4440_v33 = vld [vmem:[#allocation2 + $0x230] sm:$0xff] }
 0x35e   :  { %4184 = vst.msk [vmem:[#allocation2 + $0x260] sm:$0xff] %vm3972_vm1, %v3911_v28  ;;  %v4439_v31 = vld [vmem:[#allocation2 + $0x228] sm:$0xff] }
 0x35f   :  { %4183 = vst.msk [vmem:[#allocation2 + $0x258] sm:$0xff] %vm3972_vm1, %v3910_v30  ;;  %v13479_v32 = vpop.f32.mrb[68].mxu0  ;;  %13668 = vmatprep.mubr.msk.f32.mxu1 %vm3972_vm1, %v4439_v31 }
 0x360   :  { %v3913_v34 = vadd.f32 %v13479_v32, %v17537_v58  ;;  %v3410_v35 = vpop.f32.mrb[69].mxu0  ;;  %13669 = vmatmul.mubr.msk.f32.gmra.mrb[62].mxu1 %vm3972_vm1, %v4440_v33 }
 0x361   :  { %v3912_v36 = vadd.f32 %v17537_v58, %v3410_v35  ;;  %v4442_v39 = vld [vmem:[#allocation2 + $0x250] sm:$0xff] }
 0x362   :  { %4186 = vst.msk [vmem:[#allocation2 + $0x270] sm:$0xff] %vm3972_vm1, %v3913_v34  ;;  %v4441_v37 = vld [vmem:[#allocation2 + $0x248] sm:$0xff] }
 0x363   :  { %4185 = vst.msk [vmem:[#allocation2 + $0x268] sm:$0xff] %vm3972_vm1, %v3912_v36  ;;  %v13482_v38 = vpop.f32.mrb[70].mxu0  ;;  %13671 = vmatprep.mubr.msk.f32.mxu1 %vm3972_vm1, %v4441_v37 }
 0x364   :  { %v3915_v40 = vadd.f32 %v13482_v38, %v17537_v58  ;;  %v3420_v41 = vpop.f32.mrb[71].mxu0  ;;  %13672 = vmatmul.mubr.msk.f32.gmra.mrb[64].mxu1 %vm3972_vm1, %v4442_v39 }
 0x365   :  { %v3914_v44 = vadd.f32 %v17537_v58, %v3420_v41  ;;  %v4444_v48 = vld [vmem:[#allocation2 + $0x260] sm:$0xff] }
 0x366   :  { %4188 = vst.msk [vmem:[#allocation2 + $0x280] sm:$0xff] %vm3972_vm1, %v3915_v40  ;;  %v4443_v46 = vld [vmem:[#allocation2 + $0x258] sm:$0xff] }
 0x367   :  { %4187 = vst.msk [vmem:[#allocation2 + $0x278] sm:$0xff] %vm3972_vm1, %v3914_v44  ;;  %v13485_v47 = vpop.f32.mrb[72].mxu0  ;;  %13674 = vmatprep.mubr.msk.f32.mxu1 %vm3972_vm1, %v4443_v46 }
 0x368   :  { %v3917_v49 = vadd.f32 %v13485_v47, %v17537_v58  ;;  %v3430_v51 = vpop.f32.mrb[73].mxu0  ;;  %13675 = vmatmul.mubr.msk.f32.gmra.mrb[66].mxu1 %vm3972_vm1, %v4444_v48 }
 0x369   :  { %v3916_v52 = vadd.f32 %v17537_v58, %v3430_v51  ;;  %v4446_v55 = vld [vmem:[#allocation2 + $0x270] sm:$0xff] }
 0x36a   :  { %4190 = vst.msk [vmem:[#allocation2 + $0x290] sm:$0xff] %vm3972_vm1, %v3917_v49  ;;  %v4445_v53 = vld [vmem:[#allocation2 + $0x268] sm:$0xff] }
 0x36b   :  { %4189 = vst.msk [vmem:[#allocation2 + $0x288] sm:$0xff] %vm3972_vm1, %v3916_v52  ;;  %v13488_v54 = vpop.f32.mrb[74].mxu0  ;;  %13677 = vmatprep.mubr.msk.f32.mxu1 %vm3972_vm1, %v4445_v53 }
 0x36c   :  { %v3919_v56 = vadd.f32 %v13488_v54, %v17537_v58  ;;  %v3440_v57 = vpop.f32.mrb[75].mxu0  ;;  %13678 = vmatmul.mubr.msk.f32.gmra.mrb[68].mxu1 %vm3972_vm1, %v4446_v55  ;;  %v17920_v55 = vld [vmem:[%s19223_s2] ss:$0 sm:$0xff] }
 0x36d   :  { %v3918_v59 = vadd.f32 %v17537_v58, %v3440_v57  ;;  %v4448_v62 = vld [vmem:[#allocation2 + $0x280] sm:$0xff] }
 0x36e   :  { %4192 = vst.msk [vmem:[#allocation2 + $0x2a0] sm:$0xff] %vm3972_vm1, %v3919_v56  ;;  %v4447_v60 = vld [vmem:[#allocation2 + $0x278] sm:$0xff] }
 0x36f   :  { %4191 = vst.msk [vmem:[#allocation2 + $0x298] sm:$0xff] %vm3972_vm1, %v3918_v59  ;;  %v13491_v61 = vpop.f32.mrb[76].mxu0  ;;  %13680 = vmatprep.mubr.msk.f32.mxu1 %vm3972_vm1, %v4447_v60 }
 0x370   :  { %v3921_v63 = vadd.f32 %v13491_v61, %v17537_v58  ;;  %v3450_v0 = vpop.f32.mrb[77].mxu0  ;;  %13681 = vmatmul.mubr.msk.f32.gmra.mrb[70].mxu1 %vm3972_vm1, %v4448_v62 }
 0x371   :  { %v3920_v1 = vadd.f32 %v17537_v58, %v3450_v0  ;;  %v4450_v5 = vld [vmem:[#allocation2 + $0x290] sm:$0xff] }
 0x372   :  { %4194 = vst.msk [vmem:[#allocation2 + $0x2b0] sm:$0xff] %vm3972_vm1, %v3921_v63  ;;  %v4449_v3 = vld [vmem:[#allocation2 + $0x288] sm:$0xff] }
 0x373   :  { %4193 = vst.msk [vmem:[#allocation2 + $0x2a8] sm:$0xff] %vm3972_vm1, %v3920_v1  ;;  %v13494_v4 = vpop.f32.mrb[78].mxu0  ;;  %13683 = vmatprep.mubr.msk.f32.mxu1 %vm3972_vm1, %v4449_v3 }
 0x374   :  { %v3923_v7 = vadd.f32 %v13494_v4, %v17537_v58  ;;  %v3460_v8 = vpop.f32.mrb[79].mxu0  ;;  %13684 = vmatmul.mubr.msk.f32.gmra.mrb[72].mxu1 %vm3972_vm1, %v4450_v5 }
 0x375   :  { %v3922_v9 = vadd.f32 %v17537_v58, %v3460_v8  ;;  %v4452_v11 = vld [vmem:[#allocation2 + $0x2a0] sm:$0xff] }
 0x376   :  { %4196 = vst.msk [vmem:[#allocation2 + $0x2c0] sm:$0xff] %vm3972_vm1, %v3923_v7  ;;  %v4451_v10 = vld [vmem:[#allocation2 + $0x298] sm:$0xff] }
 0x377   :  { %4195 = vst.msk [vmem:[#allocation2 + $0x2b8] sm:$0xff] %vm3972_vm1, %v3922_v9  ;;  %v13497_v6 = vpop.f32.mrb[80].mxu0  ;;  %13686 = vmatprep.mubr.msk.f32.mxu1 %vm3972_vm1, %v4451_v10 }
 0x378   :  { %v3925_v12 = vadd.f32 %v13497_v6, %v17537_v58  ;;  %v3470_v13 = vpop.f32.mrb[81].mxu0  ;;  %13687 = vmatmul.mubr.msk.f32.gmra.mrb[74].mxu1 %vm3972_vm1, %v4452_v11 }
 0x379   :  { %v3924_v14 = vadd.f32 %v17537_v58, %v3470_v13  ;;  %v4454_v17 = vld [vmem:[#allocation2 + $0x2b0] sm:$0xff] }
 0x37a   :  { %4198 = vst.msk [vmem:[#allocation2 + $0x2e0] sm:$0xff] %vm3972_vm1, %v3925_v12  ;;  %v4453_v15 = vld [vmem:[#allocation2 + $0x2a8] sm:$0xff] }
 0x37b   :  { %4197 = vst.msk [vmem:[#allocation2 + $0x2d8] sm:$0xff] %vm3972_vm1, %v3924_v14  ;;  %v13500_v16 = vpop.f32.mrb[82].mxu0  ;;  %13689 = vmatprep.mubr.msk.f32.mxu1 %vm3972_vm1, %v4453_v15 }
 0x37c   :  { %v3927_v18 = vadd.f32 %v13500_v16, %v17537_v58  ;;  %v3480_v19 = vpop.f32.mrb[83].mxu0  ;;  %13690 = vmatmul.mubr.msk.f32.gmra.mrb[76].mxu1 %vm3972_vm1, %v4454_v17 }
 0x37d   :  { %v3926_v20 = vadd.f32 %v17537_v58, %v3480_v19  ;;  %v4456_v23 = vld [vmem:[#allocation2 + $0x2c0] sm:$0xff] }
 0x37e   :  { %4200 = vst.msk [vmem:[#allocation2 + $0x2f0] sm:$0xff] %vm3972_vm1, %v3927_v18  ;;  %v4455_v21 = vld [vmem:[#allocation2 + $0x2b8] sm:$0xff] }
 0x37f   :  { %4199 = vst.msk [vmem:[#allocation2 + $0x2e8] sm:$0xff] %vm3972_vm1, %v3926_v20  ;;  %v13503_v22 = vpop.f32.mrb[84].mxu0  ;;  %13692 = vmatprep.mubr.msk.f32.mxu1 %vm3972_vm1, %v4455_v21 }
 0x380   :  { %v3929_v24 = vadd.f32 %v13503_v22, %v17537_v58  ;;  %v3490_v25 = vpop.f32.mrb[85].mxu0  ;;  %13693 = vmatmul.mubr.msk.f32.gmra.mrb[78].mxu1 %vm3972_vm1, %v4456_v23 }
 0x381   :  { %v3928_v26 = vadd.f32 %v17537_v58, %v3490_v25  ;;  %v4458_v28 = vld [vmem:[#allocation2 + $0x2e0] sm:$0xff] }
 0x382   :  { %4202 = vst.msk [vmem:[#allocation2 + $0x300] sm:$0xff] %vm3972_vm1, %v3929_v24  ;;  %v4457_v2 = vld [vmem:[#allocation2 + $0x2d8] sm:$0xff] }
 0x383   :  { %4201 = vst.msk [vmem:[#allocation2 + $0x2f8] sm:$0xff] %vm3972_vm1, %v3928_v26  ;;  %v13506_v27 = vpop.f32.mrb[86].mxu0  ;;  %13695 = vmatprep.mubr.msk.f32.mxu1 %vm3972_vm1, %v4457_v2 }
 0x384   :  { %v3931_v29 = vadd.f32 %v13506_v27, %v17537_v58  ;;  %v3500_v30 = vpop.f32.mrb[87].mxu0  ;;  %13696 = vmatmul.mubr.msk.f32.gmra.mrb[80].mxu1 %vm3972_vm1, %v4458_v28 }
 0x385   :  { %v3930_v31 = vadd.f32 %v17537_v58, %v3500_v30  ;;  %v4460_v34 = vld [vmem:[#allocation2 + $0x2f0] sm:$0xff] }
 0x386   :  { %4204 = vst.msk [vmem:[#allocation2 + $0x310] sm:$0xff] %vm3972_vm1, %v3931_v29  ;;  %v4459_v32 = vld [vmem:[#allocation2 + $0x2e8] sm:$0xff] }
 0x387   :  { %4203 = vst.msk [vmem:[#allocation2 + $0x308] sm:$0xff] %vm3972_vm1, %v3930_v31  ;;  %v13509_v33 = vpop.f32.mrb[88].mxu0  ;;  %13698 = vmatprep.mubr.msk.f32.mxu1 %vm3972_vm1, %v4459_v32 }
 0x388   :  { %v3933_v35 = vadd.f32 %v13509_v33, %v17537_v58  ;;  %v3510_v36 = vpop.f32.mrb[89].mxu0  ;;  %13699 = vmatmul.mubr.msk.f32.gmra.mrb[82].mxu1 %vm3972_vm1, %v4460_v34 }
 0x389   :  { %v3932_v37 = vadd.f32 %v17537_v58, %v3510_v36  ;;  %v4462_v40 = vld [vmem:[#allocation2 + $0x300] sm:$0xff] }
 0x38a   :  { %4206 = vst.msk [vmem:[#allocation2 + $0x320] sm:$0xff] %vm3972_vm1, %v3933_v35  ;;  %v4461_v38 = vld [vmem:[#allocation2 + $0x2f8] sm:$0xff] }
 0x38b   :  { %4205 = vst.msk [vmem:[#allocation2 + $0x318] sm:$0xff] %vm3972_vm1, %v3932_v37  ;;  %v13512_v39 = vpop.f32.mrb[90].mxu0  ;;  %13701 = vmatprep.mubr.msk.f32.mxu1 %vm3972_vm1, %v4461_v38 }
 0x38c   :  { %v3935_v41 = vadd.f32 %v13512_v39, %v17537_v58  ;;  %v3520_v42 = vpop.f32.mrb[91].mxu0  ;;  %13702 = vmatmul.mubr.msk.f32.gmra.mrb[84].mxu1 %vm3972_vm1, %v4462_v40 }
 0x38d   :  { %v3934_v43 = vadd.f32 %v17537_v58, %v3520_v42  ;;  %v4464_v47 = vld [vmem:[#allocation2 + $0x310] sm:$0xff] }
 0x38e   :  { %4208 = vst.msk [vmem:[#allocation2 + $0x330] sm:$0xff] %vm3972_vm1, %v3935_v41  ;;  %v4463_v44 = vld [vmem:[#allocation2 + $0x308] sm:$0xff] }
 0x38f   :  { %4207 = vst.msk [vmem:[#allocation2 + $0x328] sm:$0xff] %vm3972_vm1, %v3934_v43  ;;  %v13515_v46 = vpop.f32.mrb[92].mxu0  ;;  %13704 = vmatprep.mubr.msk.f32.mxu1 %vm3972_vm1, %v4463_v44 }
 0x390   :  { %v3937_v48 = vadd.f32 %v13515_v46, %v17537_v58  ;;  %v3530_v49 = vpop.f32.mrb[93].mxu0  ;;  %13705 = vmatmul.mubr.msk.f32.gmra.mrb[86].mxu1 %vm3972_vm1, %v4464_v47 }
 0x391   :  { %v3936_v51 = vadd.f32 %v17537_v58, %v3530_v49  ;;  %v4466_v54 = vld [vmem:[#allocation2 + $0x320] sm:$0xff] }
 0x392   :  { %4210 = vst.msk [vmem:[#allocation2 + $0x340] sm:$0xff] %vm3972_vm1, %v3937_v48  ;;  %v4465_v52 = vld [vmem:[#allocation2 + $0x318] sm:$0xff] }
 0x393   :  { %4209 = vst.msk [vmem:[#allocation2 + $0x338] sm:$0xff] %vm3972_vm1, %v3936_v51  ;;  %v13518_v53 = vpop.f32.mrb[94].mxu0  ;;  %13707 = vmatprep.mubr.msk.f32.mxu1 %vm3972_vm1, %v4465_v52 }
 0x394   :  { %v3939_v56 = vadd.f32 %v17920_v55, %v13518_v53  ;;  %v3540_v57 = vpop.f32.mrb[95].mxu0  ;;  %13708 = vmatmul.mubr.msk.f32.gmra.mrb[88].mxu1 %vm3972_vm1, %v4466_v54 }
 0x395   :  { %v3938_v58 = vadd.f32 %v17920_v55, %v3540_v57  ;;  %v4468_v61 = vld [vmem:[#allocation2 + $0x330] sm:$0xff] }
 0x396   :  { %4212 = vst.msk [vmem:[#allocation2 + $0x350] sm:$0xff] %vm3972_vm1, %v3939_v56  ;;  %v4467_v59 = vld [vmem:[#allocation2 + $0x328] sm:$0xff] }
 0x397   :  { %4211 = vst.msk [vmem:[#allocation2 + $0x348] sm:$0xff] %vm3972_vm1, %v3938_v58  ;;  %v13521_v60 = vpop.f32.mrb[96].mxu0  ;;  %13710 = vmatprep.mubr.msk.f32.mxu1 %vm3972_vm1, %v4467_v59 }
 0x398   :  { %v3941_v62 = vadd.f32 %v17920_v55, %v13521_v60  ;;  %v3550_v63 = vpop.f32.mrb[97].mxu0  ;;  %13711 = vmatmul.mubr.msk.f32.gmra.mrb[90].mxu1 %vm3972_vm1, %v4468_v61 }
 0x399   :  { %v3940_v0 = vadd.f32 %v17920_v55, %v3550_v63  ;;  %v4470_v4 = vld [vmem:[#allocation2 + $0x340] sm:$0xff] }
 0x39a   :  { %4214 = vst.msk [vmem:[#allocation2 + $0x370] sm:$0xff] %vm3972_vm1, %v3941_v62  ;;  %v4469_v1 = vld [vmem:[#allocation2 + $0x338] sm:$0xff] }
 0x39b   :  { %4213 = vst.msk [vmem:[#allocation2 + $0x368] sm:$0xff] %vm3972_vm1, %v3940_v0  ;;  %v13524_v3 = vpop.f32.mrb[98].mxu0  ;;  %13713 = vmatprep.mubr.msk.f32.mxu1 %vm3972_vm1, %v4469_v1 }
 0x39c   :  { %v3943_v5 = vadd.f32 %v17920_v55, %v13524_v3  ;;  %v3560_v7 = vpop.f32.mrb[99].mxu0  ;;  %13714 = vmatmul.mubr.msk.f32.gmra.mrb[92].mxu1 %vm3972_vm1, %v4470_v4 }
 0x39d   :  { %v3942_v8 = vadd.f32 %v17920_v55, %v3560_v7  ;;  %v4472_v6 = vld [vmem:[#allocation2 + $0x350] sm:$0xff] }
 0x39e   :  { %4216 = vst.msk [vmem:[#allocation2 + $0x380] sm:$0xff] %vm3972_vm1, %v3943_v5  ;;  %v4471_v9 = vld [vmem:[#allocation2 + $0x348] sm:$0xff] }
 0x39f   :  { %4215 = vst.msk [vmem:[#allocation2 + $0x378] sm:$0xff] %vm3972_vm1, %v3942_v8  ;;  %v13527_v10 = vpop.f32.mrb[100].mxu0  ;;  %13716 = vmatprep.mubr.msk.f32.mxu1 %vm3972_vm1, %v4471_v9 }
 0x3a0   :  { %v3945_v11 = vadd.f32 %v17920_v55, %v13527_v10  ;;  %v3570_v12 = vpop.f32.mrb[101].mxu0  ;;  %13717 = vmatmul.mubr.msk.f32.gmra.mrb[94].mxu1 %vm3972_vm1, %v4472_v6 }
 0x3a1   :  { %v3944_v13 = vadd.f32 %v17920_v55, %v3570_v12  ;;  %v4474_v16 = vld [vmem:[#allocation2 + $0x370] sm:$0xff] }
 0x3a2   :  { %4218 = vst.msk [vmem:[#allocation2 + $0x390] sm:$0xff] %vm3972_vm1, %v3945_v11  ;;  %v4473_v14 = vld [vmem:[#allocation2 + $0x368] sm:$0xff] }
 0x3a3   :  { %4217 = vst.msk [vmem:[#allocation2 + $0x388] sm:$0xff] %vm3972_vm1, %v3944_v13  ;;  %v13530_v15 = vpop.f32.mrb[102].mxu0  ;;  %13719 = vmatprep.mubr.msk.f32.mxu1 %vm3972_vm1, %v4473_v14 }
 0x3a4   :  { %v3947_v17 = vadd.f32 %v17920_v55, %v13530_v15  ;;  %v3580_v18 = vpop.f32.mrb[103].mxu0  ;;  %13720 = vmatmul.mubr.msk.f32.gmra.mrb[96].mxu1 %vm3972_vm1, %v4474_v16 }
 0x3a5   :  { %v3946_v19 = vadd.f32 %v17920_v55, %v3580_v18  ;;  %v4476_v22 = vld [vmem:[#allocation2 + $0x380] sm:$0xff] }
 0x3a6   :  { %4220 = vst.msk [vmem:[#allocation2 + $0x3a0] sm:$0xff] %vm3972_vm1, %v3947_v17  ;;  %v4475_v20 = vld [vmem:[#allocation2 + $0x378] sm:$0xff] }
 0x3a7   :  { %4219 = vst.msk [vmem:[#allocation2 + $0x398] sm:$0xff] %vm3972_vm1, %v3946_v19  ;;  %v13533_v21 = vpop.f32.mrb[104].mxu0  ;;  %13722 = vmatprep.mubr.msk.f32.mxu1 %vm3972_vm1, %v4475_v20 }
 0x3a8   :  { %v3949_v23 = vadd.f32 %v17920_v55, %v13533_v21  ;;  %v3590_v24 = vpop.f32.mrb[105].mxu0  ;;  %13723 = vmatmul.mubr.msk.f32.gmra.mrb[98].mxu1 %vm3972_vm1, %v4476_v22 }
 0x3a9   :  { %v3948_v25 = vadd.f32 %v17920_v55, %v3590_v24  ;;  %v4478_v27 = vld [vmem:[#allocation2 + $0x390] sm:$0xff] }
 0x3aa   :  { %4222 = vst.msk [vmem:[#allocation2 + $0x3b0] sm:$0xff] %vm3972_vm1, %v3949_v23  ;;  %v4477_v26 = vld [vmem:[#allocation2 + $0x388] sm:$0xff] }
 0x3ab   :  { %4221 = vst.msk [vmem:[#allocation2 + $0x3a8] sm:$0xff] %vm3972_vm1, %v3948_v25  ;;  %v13536_v2 = vpop.f32.mrb[106].mxu0  ;;  %13725 = vmatprep.mubr.msk.f32.mxu1 %vm3972_vm1, %v4477_v26 }
 0x3ac   :  { %v3951_v28 = vadd.f32 %v17920_v55, %v13536_v2  ;;  %v3600_v29 = vpop.f32.mrb[107].mxu0  ;;  %13726 = vmatmul.mubr.msk.f32.gmra.mrb[100].mxu1 %vm3972_vm1, %v4478_v27 }
 0x3ad   :  { %v3950_v30 = vadd.f32 %v17920_v55, %v3600_v29  ;;  %v4480_v33 = vld [vmem:[#allocation2 + $0x3a0] sm:$0xff] }
 0x3ae   :  { %4224 = vst.msk [vmem:[#allocation2 + $0x3c0] sm:$0xff] %vm3972_vm1, %v3951_v28  ;;  %v4479_v31 = vld [vmem:[#allocation2 + $0x398] sm:$0xff] }
 0x3af   :  { %4223 = vst.msk [vmem:[#allocation2 + $0x3b8] sm:$0xff] %vm3972_vm1, %v3950_v30  ;;  %v13539_v32 = vpop.f32.mrb[108].mxu0  ;;  %13728 = vmatprep.mubr.msk.f32.mxu1 %vm3972_vm1, %v4479_v31 }
 0x3b0   :  { %v3953_v34 = vadd.f32 %v17920_v55, %v13539_v32  ;;  %v3610_v35 = vpop.f32.mrb[109].mxu0  ;;  %13729 = vmatmul.mubr.msk.f32.gmra.mrb[102].mxu1 %vm3972_vm1, %v4480_v33 }
 0x3b1   :  { %v3952_v36 = vadd.f32 %v17920_v55, %v3610_v35  ;;  %v4482_v39 = vld [vmem:[#allocation2 + $0x3b0] sm:$0xff]  ;;  %v4245_v35 = vld [vmem:[#allocation2 + $0x7] sm:$0xff] }
 0x3b2   :  { %4226 = vst.msk [vmem:[#allocation2 + $0x3d0] sm:$0xff] %vm3972_vm1, %v3953_v34  ;;  %v4481_v37 = vld [vmem:[#allocation2 + $0x3a8] sm:$0xff] }
 0x3b3   :  { %4225 = vst.msk [vmem:[#allocation2 + $0x3c8] sm:$0xff] %vm3972_vm1, %v3952_v36  ;;  %v13542_v38 = vpop.f32.mrb[110].mxu0  ;;  %13731 = vmatprep.mubr.msk.f32.mxu1 %vm3972_vm1, %v4481_v37  ;;  %v4246_v36 = vld [vmem:[#allocation2 + $0xf] sm:$0xff]  ;;  %v4247_v37 = vld [vmem:[#allocation2 + $0x17] sm:$0xff] }
 0x3b4   :  { %v3955_v40 = vadd.f32 %v17920_v55, %v13542_v38  ;;  %v3620_v41 = vpop.f32.mrb[111].mxu0  ;;  %13732 = vmatmul.mubr.msk.f32.gmra.mrb[104].mxu1 %vm3972_vm1, %v4482_v39  ;;  %v11744_v38 = vld [vmem:[%s19222_s3 + $0x50] sm:$0xff]  ;;  %v11745_v39 = vld [vmem:[%s19222_s3 + $0x58] sm:$0xff] }
 0x3b5   :  { %v3954_v42 = vadd.f32 %v17920_v55, %v3620_v41  ;;  %v4484_v46 = vld [vmem:[#allocation2 + $0x3c0] sm:$0xff] }
 0x3b6   :  { %4228 = vst.msk [vmem:[#allocation2 + $0x3e0] sm:$0xff] %vm3972_vm1, %v3955_v40  ;;  %v4483_v43 = vld [vmem:[#allocation2 + $0x3b8] sm:$0xff]  ;;  %v14572_v40 = vpack.c.bf16 %v11745_v39, %v11744_v38  ;;  %v4308_v38 = vld [vmem:[#allocation2 + $0x22f] sm:$0xff]  ;;  %v4309_v39 = vld [vmem:[#allocation2 + $0x247] sm:$0xff] }
 0x3b7   :  { %4227 = vst.msk [vmem:[#allocation2 + $0x3d8] sm:$0xff] %vm3972_vm1, %v3954_v42  ;;  %v13545_v44 = vpop.f32.mrb[112].mxu0  ;;  %13734 = vmatprep.mubr.msk.f32.mxu1 %vm3972_vm1, %v4483_v43  ;;  %v4248_v41 = vld [vmem:[#allocation2 + $0x1f] sm:$0xff]  ;;  %v4249_v42 = vld [vmem:[#allocation2 + $0x27] sm:$0xff]  ;;  %v4250_v43 = vld [vmem:[#allocation2 + $0x2f] sm:$0xff] }
 0x3b8   :  { %v3957_v47 = vadd.f32 %v17920_v55, %v13545_v44  ;;  %v3630_v48 = vpop.f32.mrb[113].mxu0  ;;  %13735 = vmatmul.mubr.msk.f32.gmra.mrb[106].mxu1 %vm3972_vm1, %v4484_v46  ;;  %v4251_v44 = vld [vmem:[#allocation2 + $0x37] sm:$0xff]  ;;  %v4252_v46 = vld [vmem:[#allocation2 + $0x3f] sm:$0xff] }
 0x3b9   :  { %v3956_v49 = vadd.f32 %v17920_v55, %v3630_v48  ;;  %v4486_v53 = vld [vmem:[#allocation2 + $0x3d0] sm:$0xff] }
 0x3ba   :  { %4230 = vst.msk [vmem:[#allocation2 + $0x400] sm:$0xff] %vm3972_vm1, %v3957_v47  ;;  %v4485_v51 = vld [vmem:[#allocation2 + $0x3c8] sm:$0xff]  ;;  %v4255_v48 = vld [vmem:[#allocation2 + $0x57] sm:$0xff] }
 0x3bb   :  { %4229 = vst.msk [vmem:[#allocation2 + $0x3f8] sm:$0xff] %vm3972_vm1, %v3956_v49  ;;  %v13548_v52 = vpop.f32.mrb[114].mxu0  ;;  %13737 = vmatprep.mubr.msk.f32.mxu1 %vm3972_vm1, %v4485_v51  ;;  %v4253_v47 = vld [vmem:[#allocation2 + $0x47] sm:$0xff]  ;;  %v4256_v49 = vld [vmem:[#allocation2 + $0x5f] sm:$0xff] }
 0x3bc   :  { %v3959_v54 = vadd.f32 %v17920_v55, %v13548_v52  ;;  %v3640_v56 = vpop.f32.mrb[115].mxu0  ;;  %13738 = vmatmul.mubr.msk.f32.gmra.mrb[108].mxu1 %vm3972_vm1, %v4486_v53  ;;  %v4257_v51 = vld [vmem:[#allocation2 + $0x67] sm:$0xff]  ;;  %v4258_v52 = vld [vmem:[#allocation2 + $0x6f] sm:$0xff]  ;;  %v4259_v53 = vld [vmem:[#allocation2 + $0x77] sm:$0xff] }
 0x3bd   :  { %v3958_v57 = vadd.f32 %v17920_v55, %v3640_v56  ;;  %v4488_v60 = vld [vmem:[#allocation2 + $0x3e0] sm:$0xff]  ;;  %v4261_v56 = vld [vmem:[#allocation2 + $0x97] sm:$0xff] }
 0x3be   :  { %4232 = vst.msk [vmem:[#allocation2 + $0x410] sm:$0xff] %vm3972_vm1, %v3959_v54  ;;  %v4487_v58 = vld [vmem:[#allocation2 + $0x3d8] sm:$0xff] }
 0x3bf   :  { %4231 = vst.msk [vmem:[#allocation2 + $0x408] sm:$0xff] %vm3972_vm1, %v3958_v57  ;;  %v13551_v59 = vpop.f32.mrb[116].mxu0  ;;  %13740 = vmatprep.mubr.msk.f32.mxu1 %vm3972_vm1, %v4487_v58  ;;  %v4260_v54 = vld [vmem:[#allocation2 + $0x7f] sm:$0xff]  ;;  %v4263_v58 = vld [vmem:[#allocation2 + $0xa7] sm:$0xff] }
 0x3c0   :  { %v3961_v61 = vadd.f32 %v17920_v55, %v13551_v59  ;;  %v3650_v62 = vpop.f32.mrb[117].mxu0  ;;  %13741 = vmatmul.mubr.msk.f32.gmra.mrb[110].mxu1 %vm3972_vm1, %v4488_v60  ;;  %v4262_v57 = vld [vmem:[#allocation2 + $0x9f] sm:$0xff]  ;;  %v4264_v59 = vld [vmem:[#allocation2 + $0xaf] sm:$0xff]  ;;  %v4265_v60 = vld [vmem:[#allocation2 + $0xb7] sm:$0xff] }
 0x3c1   :  { %v3960_v63 = vadd.f32 %v17920_v55, %v3650_v62  ;;  %v4490_v3 = vld [vmem:[#allocation2 + $0x400] sm:$0xff] }
 0x3c2   :  { %4234 = vst.msk [vmem:[#allocation2 + $0x420] sm:$0xff] %vm3972_vm1, %v3961_v61  ;;  %v4489_v0 = vld [vmem:[#allocation2 + $0x3f8] sm:$0xff]  ;;  %v4267_v62 = vld [vmem:[#allocation2 + $0xc7] sm:$0xff] }
 0x3c3   :  { %4233 = vst.msk [vmem:[#allocation2 + $0x418] sm:$0xff] %vm3972_vm1, %v3960_v63  ;;  %v13554_v1 = vpop.f32.mrb[118].mxu0  ;;  %13743 = vmatprep.mubr.msk.f32.mxu1 %vm3972_vm1, %v4489_v0  ;;  %v4266_v61 = vld [vmem:[#allocation2 + $0xbf] sm:$0xff]  ;;  %v4268_v63 = vld [vmem:[#allocation2 + $0xcf] sm:$0xff]  ;;  %v4269_v0 = vld [vmem:[#allocation2 + $0xd7] sm:$0xff] }
 0x3c4   :  { %v3963_v4 = vadd.f32 %v17920_v55, %v13554_v1  ;;  %v3660_v5 = vpop.f32.mrb[119].mxu0  ;;  %13744 = vmatmul.mubr.msk.f32.gmra.mrb[112].mxu1 %vm3972_vm1, %v4490_v3  ;;  %v4270_v1 = vld [vmem:[#allocation2 + $0xdf] sm:$0xff]  ;;  %v4271_v3 = vld [vmem:[#allocation2 + $0xe7] sm:$0xff] }
 0x3c5   :  { %v3962_v7 = vadd.f32 %v17920_v55, %v3660_v5  ;;  %v4492_v10 = vld [vmem:[#allocation2 + $0x410] sm:$0xff] }
 0x3c6   :  { %4236 = vst.msk [vmem:[#allocation2 + $0x430] sm:$0xff] %vm3972_vm1, %v3963_v4  ;;  %v4491_v8 = vld [vmem:[#allocation2 + $0x408] sm:$0xff]  ;;  %v4273_v5 = vld [vmem:[#allocation2 + $0xf7] sm:$0xff] }
 0x3c7   :  { %4235 = vst.msk [vmem:[#allocation2 + $0x428] sm:$0xff] %vm3972_vm1, %v3962_v7  ;;  %v13557_v9 = vpop.f32.mrb[120].mxu0  ;;  %13746 = vmatprep.mubr.msk.f32.mxu1 %vm3972_vm1, %v4491_v8  ;;  %v4272_v4 = vld [vmem:[#allocation2 + $0xef] sm:$0xff]  ;;  %v4274_v7 = vld [vmem:[#allocation2 + $0xff] sm:$0xff]  ;;  %v4275_v8 = vld [vmem:[#allocation2 + $0x107] sm:$0xff] }
 0x3c8   :  { %v3965_v6 = vadd.f32 %v17920_v55, %v13557_v9  ;;  %v3670_v11 = vpop.f32.mrb[121].mxu0  ;;  %13747 = vmatmul.mubr.msk.f32.gmra.mrb[114].mxu1 %vm3972_vm1, %v4492_v10  ;;  %v4276_v9 = vld [vmem:[#allocation2 + $0x10f] sm:$0xff]  ;;  %v4277_v10 = vld [vmem:[#allocation2 + $0x127] sm:$0xff] }
 0x3c9   :  { %v3964_v12 = vadd.f32 %v17920_v55, %v3670_v11  ;;  %v4494_v15 = vld [vmem:[#allocation2 + $0x420] sm:$0xff]  ;;  %v4279_v11 = vld [vmem:[#allocation2 + $0x137] sm:$0xff] }
 0x3ca   :  { %4238 = vst.msk [vmem:[#allocation2 + $0x440] sm:$0xff] %vm3972_vm1, %v3965_v6  ;;  %v4493_v13 = vld [vmem:[#allocation2 + $0x418] sm:$0xff]  ;;  %v4278_v6 = vld [vmem:[#allocation2 + $0x12f] sm:$0xff] }
 0x3cb   :  { %4237 = vst.msk [vmem:[#allocation2 + $0x438] sm:$0xff] %vm3972_vm1, %v3964_v12  ;;  %v13560_v14 = vpop.f32.mrb[122].mxu0  ;;  %13749 = vmatprep.mubr.msk.f32.mxu1 %vm3972_vm1, %v4493_v13  ;;  %v4280_v12 = vld [vmem:[#allocation2 + $0x13f] sm:$0xff]  ;;  %v4281_v13 = vld [vmem:[#allocation2 + $0x147] sm:$0xff] }
 0x3cc   :  { %v3967_v16 = vadd.f32 %v17920_v55, %v13560_v14  ;;  %v3680_v17 = vpop.f32.mrb[123].mxu0  ;;  %13750 = vmatmul.mubr.msk.f32.gmra.mrb[116].mxu1 %vm3972_vm1, %v4494_v15  ;;  %v4282_v14 = vld [vmem:[#allocation2 + $0x14f] sm:$0xff]  ;;  %v4283_v15 = vld [vmem:[#allocation2 + $0x157] sm:$0xff] }
 0x3cd   :  { %v3966_v18 = vadd.f32 %v17920_v55, %v3680_v17  ;;  %v4496_v21 = vld [vmem:[#allocation2 + $0x430] sm:$0xff]  ;;  %v4285_v17 = vld [vmem:[#allocation2 + $0x167] sm:$0xff] }
 0x3ce   :  { %4240 = vst.msk [vmem:[#allocation2 + $0x450] sm:$0xff] %vm3972_vm1, %v3967_v16  ;;  %v4495_v19 = vld [vmem:[#allocation2 + $0x428] sm:$0xff]  ;;  %v4284_v16 = vld [vmem:[#allocation2 + $0x15f] sm:$0xff] }
 0x3cf   :  { %4239 = vst.msk [vmem:[#allocation2 + $0x448] sm:$0xff] %vm3972_vm1, %v3966_v18  ;;  %v13563_v20 = vpop.f32.mrb[124].mxu0  ;;  %13752 = vmatprep.mubr.msk.f32.mxu1 %vm3972_vm1, %v4495_v19  ;;  %v4286_v18 = vld [vmem:[#allocation2 + $0x16f] sm:$0xff]  ;;  %v4287_v19 = vld [vmem:[#allocation2 + $0x177] sm:$0xff] }
 0x3d0   :  { %v3969_v22 = vadd.f32 %v17920_v55, %v13563_v20  ;;  %v3690_v23 = vpop.f32.mrb[125].mxu0  ;;  %13753 = vmatmul.mubr.msk.f32.gmra.mrb[118].mxu1 %vm3972_vm1, %v4496_v21  ;;  %v4288_v20 = vld [vmem:[#allocation2 + $0x17f] sm:$0xff]  ;;  %v4289_v21 = vld [vmem:[#allocation2 + $0x187] sm:$0xff] }
 0x3d1   :  { %v3968_v24 = vadd.f32 %v17920_v55, %v3690_v23  ;;  %v4498_v2 = vld [vmem:[#allocation2 + $0x440] sm:$0xff]  ;;  %v4291_v23 = vld [vmem:[#allocation2 + $0x197] sm:$0xff] }
 0x3d2   :  { %4242 = vst.msk [vmem:[#allocation2 + $0x460] sm:$0xff] %vm3972_vm1, %v3969_v22  ;;  %v4497_v25 = vld [vmem:[#allocation2 + $0x438] sm:$0xff]  ;;  %v4290_v22 = vld [vmem:[#allocation2 + $0x18f] sm:$0xff] }
 0x3d3   :  { %4241 = vst.msk [vmem:[#allocation2 + $0x458] sm:$0xff] %vm3972_vm1, %v3968_v24  ;;  %v13566_v26 = vpop.f32.mrb[126].mxu0  ;;  %13755 = vmatprep.mubr.msk.f32.mxu1 %vm3972_vm1, %v4497_v25  ;;  %v4292_v24 = vld [vmem:[#allocation2 + $0x19f] sm:$0xff]  ;;  %v4293_v25 = vld [vmem:[#allocation2 + $0x1b7] sm:$0xff] }
 0x3d4   :  { %v3971_v27 = vadd.f32 %v17920_v55, %v13566_v26  ;;  %v3700_v28 = vpop.f32.mrb[127].mxu0  ;;  %13756 = vmatmul.mubr.msk.f32.gmra.mrb[120].mxu1 %vm3972_vm1, %v4498_v2  ;;  %v4294_v26 = vld [vmem:[#allocation2 + $0x1bf] sm:$0xff]  ;;  %v4295_v2 = vld [vmem:[#allocation2 + $0x1c7] sm:$0xff] }
 0x3d5   :  { %v3970_v29 = vadd.f32 %v17920_v55, %v3700_v28  ;;  %v4500_v31 = vld [vmem:[#allocation2 + $0x450] sm:$0xff] }
 0x3d6   :  { %4244 = vst.msk [vmem:[#allocation2 + $0x470] sm:$0xff] %vm3972_vm1, %v3971_v27  ;;  %v4499_v30 = vld [vmem:[#allocation2 + $0x448] sm:$0xff]  ;;  %v4297_v28 = vld [vmem:[#allocation2 + $0x1d7] sm:$0xff] }
 0x3d7   :  { %4243 = vst.msk [vmem:[#allocation2 + $0x468] sm:$0xff] %vm3972_vm1, %v3970_v29  ;;  %13758 = vmatprep.mubr.msk.f32.mxu1 %vm3972_vm1, %v4499_v30  ;;  %v4296_v27 = vld [vmem:[#allocation2 + $0x1cf] sm:$0xff]  ;;  %v4298_v29 = vld [vmem:[#allocation2 + $0x1df] sm:$0xff]  ;;  %v4299_v30 = vld [vmem:[#allocation2 + $0x1e7] sm:$0xff] }
 0x3d8   :  { %13759 = vmatmul.mubr.msk.f32.gmra.mrb[122].mxu1 %vm3972_vm1, %v4500_v31  ;;  %v4300_v31 = vld [vmem:[#allocation2 + $0x1ef] sm:$0xff] }
 0x3d9   :  { %v4502_v33 = vld [vmem:[#allocation2 + $0x460] sm:$0xff] }
 0x3da   :  { %v4501_v32 = vld [vmem:[#allocation2 + $0x458] sm:$0xff] }
 0x3db   :  { %13761 = vmatprep.mubr.msk.f32.mxu1 %vm3972_vm1, %v4501_v32  ;;  %v4301_v32 = vld [vmem:[#allocation2 + $0x1f7] sm:$0xff] }
 0x3dc   :  { %13762 = vmatmul.mubr.msk.f32.gmra.mrb[124].mxu1 %vm3972_vm1, %v4502_v33  ;;  %v4302_v33 = vld [vmem:[#allocation2 + $0x1ff] sm:$0xff] }
 0x3dd   :  { %v4504_v55 = vld [vmem:[#allocation2 + $0x470] sm:$0xff] }
 0x3de   :  { %v4503_v34 = vld [vmem:[#allocation2 + $0x468] sm:$0xff] }
 0x3df   :  { %13764 = vmatprep.mubr.msk.f32.mxu1 %vm3972_vm1, %v4503_v34  ;;  %v4303_v34 = vld [vmem:[#allocation2 + $0x207] sm:$0xff] }
 0x3e0   :  { %13765 = vmatmul.mubr.msk.f32.gmra.mrb[126].mxu1 %vm3972_vm1, %v4504_v55  ;;  %v4304_v55 = vld [vmem:[#allocation2 + $0x20f] sm:$0xff] }
 0x3e1   :  { %13775 = vmatprep.mubr.msk.f32.mxu1 %vm3972_vm1, %v4245_v35  ;;  %v4305_v35 = vld [vmem:[#allocation2 + $0x217] sm:$0xff] }
 0x3e4   :  { %13776 = vmatmul.mubr.msk.f32.vlgmr.msra.gmra.mrb[0].mxu1 %vm3972_vm1, %v4246_v36  ;;  %v4306_v36 = vld [vmem:[#allocation2 + $0x21f] sm:$0xff] }
 0x3e5   :  { %13778 = vmatprep.mubr.msk.f32.mxu1 %vm3972_vm1, %v4247_v37  ;;  %14571 = vmatpush3.bf16.msra.mxu1 %v17845_v45  ;;  %v4254_v45 = vld [vmem:[#allocation2 + $0x4f] sm:$0xff]  ;;  %v4307_v37 = vld [vmem:[#allocation2 + $0x227] sm:$0xff] }
 0x3e6   :  { %14573 = vmatprep.subr.bf16.mxu1 %v14572_v40 }
 0x3e8   :  { %13779 = vmatmul.mubr.msk.f32.gmra.mrb[2].mxu1 %vm3972_vm1, %v4248_v41  ;;  %v4311_v41 = vld [vmem:[#allocation2 + $0x257] sm:$0xff] }
 0x3e9   :  { %13781 = vmatprep.mubr.msk.f32.mxu1 %vm3972_vm1, %v4249_v42  ;;  %14575 = vmatpush3.bf16.msra.mxu1 %v14572_v40  ;;  %v4310_v40 = vld [vmem:[#allocation2 + $0x24f] sm:$0xff]  ;;  %v4312_v42 = vld [vmem:[#allocation2 + $0x25f] sm:$0xff] }
 0x3ec   :  { %13782 = vmatmul.mubr.msk.f32.gmra.mrb[4].mxu1 %vm3972_vm1, %v4250_v43  ;;  %v4313_v43 = vld [vmem:[#allocation2 + $0x267] sm:$0xff] }
 0x3ed   :  { %13784 = vmatprep.mubr.msk.f32.mxu1 %vm3972_vm1, %v4251_v44  ;;  %v4314_v44 = vld [vmem:[#allocation2 + $0x26f] sm:$0xff] }
 0x3f0   :  { %13785 = vmatmul.mubr.msk.f32.gmra.mrb[6].mxu1 %vm3972_vm1, %v4252_v46  ;;  %v4315_v46 = vld [vmem:[#allocation2 + $0x277] sm:$0xff] }
 0x3f1   :  { %13787 = vmatprep.mubr.msk.f32.mxu1 %vm3972_vm1, %v4253_v47  ;;  %v4316_v47 = vld [vmem:[#allocation2 + $0x27f] sm:$0xff] }
 0x3f4   :  { %13788 = vmatmul.mubr.msk.f32.gmra.mrb[8].mxu1 %vm3972_vm1, %v4254_v45  ;;  %v4317_v45 = vld [vmem:[#allocation2 + $0x287] sm:$0xff] }
 0x3f5   :  { %13790 = vmatprep.mubr.msk.f32.mxu1 %vm3972_vm1, %v4255_v48  ;;  %v4318_v48 = vld [vmem:[#allocation2 + $0x28f] sm:$0xff] }
 0x3f8   :  { %13791 = vmatmul.mubr.msk.f32.gmra.mrb[10].mxu1 %vm3972_vm1, %v4256_v49  ;;  %v4319_v49 = vld [vmem:[#allocation2 + $0x297] sm:$0xff] }
 0x3f9   :  { %13793 = vmatprep.mubr.msk.f32.mxu1 %vm3972_vm1, %v4257_v51  ;;  %v4320_v51 = vld [vmem:[#allocation2 + $0x29f] sm:$0xff] }
 0x3fc   :  { %13794 = vmatmul.mubr.msk.f32.gmra.mrb[12].mxu1 %vm3972_vm1, %v4258_v52  ;;  %v4321_v52 = vld [vmem:[#allocation2 + $0x2a7] sm:$0xff] }
 0x3fd   :  { %13796 = vmatprep.mubr.msk.f32.mxu1 %vm3972_vm1, %v4259_v53  ;;  %v4322_v53 = vld [vmem:[#allocation2 + $0x2af] sm:$0xff] }
 0x400   :  { %13797 = vmatmul.mubr.msk.f32.gmra.mrb[14].mxu1 %vm3972_vm1, %v4260_v54  ;;  %v4323_v54 = vld [vmem:[#allocation2 + $0x2b7] sm:$0xff] }
 0x401   :  { %13799 = vmatprep.mubr.msk.f32.mxu1 %vm3972_vm1, %v4261_v56  ;;  %v4324_v56 = vld [vmem:[#allocation2 + $0x2bf] sm:$0xff] }
 0x404   :  { %13800 = vmatmul.mubr.msk.f32.gmra.mrb[16].mxu1 %vm3972_vm1, %v4262_v57  ;;  %v4325_v57 = vld [vmem:[#allocation2 + $0x2d7] sm:$0xff] }
 0x405   :  { %13802 = vmatprep.mubr.msk.f32.mxu1 %vm3972_vm1, %v4263_v58  ;;  %v4326_v58 = vld [vmem:[#allocation2 + $0x2df] sm:$0xff] }
 0x408   :  { %13803 = vmatmul.mubr.msk.f32.gmra.mrb[18].mxu1 %vm3972_vm1, %v4264_v59  ;;  %v4327_v59 = vld [vmem:[#allocation2 + $0x2e7] sm:$0xff] }
 0x409   :  { %13805 = vmatprep.mubr.msk.f32.mxu1 %vm3972_vm1, %v4265_v60  ;;  %v4328_v60 = vld [vmem:[#allocation2 + $0x2ef] sm:$0xff] }
 0x40c   :  { %13806 = vmatmul.mubr.msk.f32.gmra.mrb[20].mxu1 %vm3972_vm1, %v4266_v61  ;;  %v4329_v61 = vld [vmem:[#allocation2 + $0x2f7] sm:$0xff] }
 0x40d   :  { %13808 = vmatprep.mubr.msk.f32.mxu1 %vm3972_vm1, %v4267_v62  ;;  %v4330_v62 = vld [vmem:[#allocation2 + $0x2ff] sm:$0xff] }
 0x410   :  { %13809 = vmatmul.mubr.msk.f32.gmra.mrb[22].mxu1 %vm3972_vm1, %v4268_v63  ;;  %v4331_v63 = vld [vmem:[#allocation2 + $0x307] sm:$0xff] }
 0x411   :  { %13811 = vmatprep.mubr.msk.f32.mxu1 %vm3972_vm1, %v4269_v0  ;;  %v4332_v0 = vld [vmem:[#allocation2 + $0x30f] sm:$0xff] }
 0x414   :  { %13812 = vmatmul.mubr.msk.f32.gmra.mrb[24].mxu1 %vm3972_vm1, %v4270_v1  ;;  %v4333_v1 = vld [vmem:[#allocation2 + $0x317] sm:$0xff] }
 0x415   :  { %13814 = vmatprep.mubr.msk.f32.mxu1 %vm3972_vm1, %v4271_v3  ;;  %v4334_v3 = vld [vmem:[#allocation2 + $0x31f] sm:$0xff] }
 0x418   :  { %13815 = vmatmul.mubr.msk.f32.gmra.mrb[26].mxu1 %vm3972_vm1, %v4272_v4  ;;  %v4335_v4 = vld [vmem:[#allocation2 + $0x327] sm:$0xff] }
 0x419   :  { %13817 = vmatprep.mubr.msk.f32.mxu1 %vm3972_vm1, %v4273_v5  ;;  %v4336_v5 = vld [vmem:[#allocation2 + $0x32f] sm:$0xff] }
 0x41c   :  { %13818 = vmatmul.mubr.msk.f32.gmra.mrb[28].mxu1 %vm3972_vm1, %v4274_v7  ;;  %v4337_v7 = vld [vmem:[#allocation2 + $0x337] sm:$0xff] }
 0x41d   :  { %13820 = vmatprep.mubr.msk.f32.mxu1 %vm3972_vm1, %v4275_v8  ;;  %v4338_v8 = vld [vmem:[#allocation2 + $0x33f] sm:$0xff] }
 0x420   :  { %13821 = vmatmul.mubr.msk.f32.gmra.mrb[30].mxu1 %vm3972_vm1, %v4276_v9  ;;  %v4339_v9 = vld [vmem:[#allocation2 + $0x347] sm:$0xff] }
 0x421   :  { %13823 = vmatprep.mubr.msk.f32.mxu1 %vm3972_vm1, %v4277_v10  ;;  %v4340_v10 = vld [vmem:[#allocation2 + $0x34f] sm:$0xff] }
 0x424   :  { %13824 = vmatmul.mubr.msk.f32.gmra.mrb[32].mxu1 %vm3972_vm1, %v4278_v6  ;;  %v4341_v6 = vld [vmem:[#allocation2 + $0x367] sm:$0xff] }
 0x425   :  { %13826 = vmatprep.mubr.msk.f32.mxu1 %vm3972_vm1, %v4279_v11  ;;  %v4342_v11 = vld [vmem:[#allocation2 + $0x36f] sm:$0xff] }
 0x428   :  { %13827 = vmatmul.mubr.msk.f32.gmra.mrb[34].mxu1 %vm3972_vm1, %v4280_v12  ;;  %v4343_v12 = vld [vmem:[#allocation2 + $0x377] sm:$0xff] }
 0x429   :  { %13829 = vmatprep.mubr.msk.f32.mxu1 %vm3972_vm1, %v4281_v13  ;;  %v4344_v13 = vld [vmem:[#allocation2 + $0x37f] sm:$0xff] }
 0x42c   :  { %13830 = vmatmul.mubr.msk.f32.gmra.mrb[36].mxu1 %vm3972_vm1, %v4282_v14  ;;  %v4345_v14 = vld [vmem:[#allocation2 + $0x387] sm:$0xff] }
 0x42d   :  { %13832 = vmatprep.mubr.msk.f32.mxu1 %vm3972_vm1, %v4283_v15  ;;  %v4346_v15 = vld [vmem:[#allocation2 + $0x38f] sm:$0xff] }
 0x430   :  { %13833 = vmatmul.mubr.msk.f32.gmra.mrb[38].mxu1 %vm3972_vm1, %v4284_v16  ;;  %v4347_v16 = vld [vmem:[#allocation2 + $0x397] sm:$0xff] }
 0x431   :  { %13835 = vmatprep.mubr.msk.f32.mxu1 %vm3972_vm1, %v4285_v17  ;;  %v4348_v17 = vld [vmem:[#allocation2 + $0x39f] sm:$0xff] }
 0x434   :  { %13836 = vmatmul.mubr.msk.f32.gmra.mrb[40].mxu1 %vm3972_vm1, %v4286_v18  ;;  %v4349_v18 = vld [vmem:[#allocation2 + $0x3a7] sm:$0xff] }
 0x435   :  { %13838 = vmatprep.mubr.msk.f32.mxu1 %vm3972_vm1, %v4287_v19  ;;  %v4350_v19 = vld [vmem:[#allocation2 + $0x3af] sm:$0xff] }
 0x438   :  { %13839 = vmatmul.mubr.msk.f32.gmra.mrb[42].mxu1 %vm3972_vm1, %v4288_v20  ;;  %v4351_v20 = vld [vmem:[#allocation2 + $0x3b7] sm:$0xff] }
 0x439   :  { %13841 = vmatprep.mubr.msk.f32.mxu1 %vm3972_vm1, %v4289_v21  ;;  %v4352_v21 = vld [vmem:[#allocation2 + $0x3bf] sm:$0xff] }
 0x43c   :  { %13842 = vmatmul.mubr.msk.f32.gmra.mrb[44].mxu1 %vm3972_vm1, %v4290_v22  ;;  %v4353_v22 = vld [vmem:[#allocation2 + $0x3c7] sm:$0xff] }
 0x43d   :  { %13844 = vmatprep.mubr.msk.f32.mxu1 %vm3972_vm1, %v4291_v23  ;;  %v4354_v23 = vld [vmem:[#allocation2 + $0x3cf] sm:$0xff] }
 0x440   :  { %13845 = vmatmul.mubr.msk.f32.gmra.mrb[46].mxu1 %vm3972_vm1, %v4292_v24  ;;  %v4355_v24 = vld [vmem:[#allocation2 + $0x3d7] sm:$0xff] }
 0x441   :  { %13847 = vmatprep.mubr.msk.f32.mxu1 %vm3972_vm1, %v4293_v25  ;;  %v4356_v25 = vld [vmem:[#allocation2 + $0x3df] sm:$0xff] }
 0x444   :  { %13848 = vmatmul.mubr.msk.f32.gmra.mrb[48].mxu1 %vm3972_vm1, %v4294_v26  ;;  %v4357_v26 = vld [vmem:[#allocation2 + $0x3f7] sm:$0xff] }
 0x445   :  { %13850 = vmatprep.mubr.msk.f32.mxu1 %vm3972_vm1, %v4295_v2  ;;  %v4358_v2 = vld [vmem:[#allocation2 + $0x3ff] sm:$0xff] }
 0x448   :  { %13851 = vmatmul.mubr.msk.f32.gmra.mrb[50].mxu1 %vm3972_vm1, %v4296_v27  ;;  %v4359_v27 = vld [vmem:[#allocation2 + $0x407] sm:$0xff] }
 0x449   :  { %13853 = vmatprep.mubr.msk.f32.mxu1 %vm3972_vm1, %v4297_v28  ;;  %v4360_v28 = vld [vmem:[#allocation2 + $0x40f] sm:$0xff] }
 0x44c   :  { %13854 = vmatmul.mubr.msk.f32.gmra.mrb[52].mxu1 %vm3972_vm1, %v4298_v29  ;;  %v4361_v29 = vld [vmem:[#allocation2 + $0x417] sm:$0xff] }
 0x44d   :  { %13856 = vmatprep.mubr.msk.f32.mxu1 %vm3972_vm1, %v4299_v30  ;;  %v4362_v30 = vld [vmem:[#allocation2 + $0x41f] sm:$0xff] }
 0x450   :  { %13857 = vmatmul.mubr.msk.f32.gmra.mrb[54].mxu1 %vm3972_vm1, %v4300_v31  ;;  %v4363_v31 = vld [vmem:[#allocation2 + $0x427] sm:$0xff] }
 0x451   :  { %13859 = vmatprep.mubr.msk.f32.mxu1 %vm3972_vm1, %v4301_v32  ;;  %v4364_v32 = vld [vmem:[#allocation2 + $0x42f] sm:$0xff] }
 0x454   :  { %13860 = vmatmul.mubr.msk.f32.gmra.mrb[56].mxu1 %vm3972_vm1, %v4302_v33  ;;  %v4365_v33 = vld [vmem:[#allocation2 + $0x437] sm:$0xff] }
 0x455   :  { %13862 = vmatprep.mubr.msk.f32.mxu1 %vm3972_vm1, %v4303_v34  ;;  %v4366_v34 = vld [vmem:[#allocation2 + $0x43f] sm:$0xff] }
 0x458   :  { %13863 = vmatmul.mubr.msk.f32.gmra.mrb[58].mxu1 %vm3972_vm1, %v4304_v55  ;;  %v4367_v55 = vld [vmem:[#allocation2 + $0x447] sm:$0xff] }
 0x459   :  { %13865 = vmatprep.mubr.msk.f32.mxu1 %vm3972_vm1, %v4305_v35  ;;  %v4368_v35 = vld [vmem:[#allocation2 + $0x44f] sm:$0xff] }
 0x45c   :  { %13866 = vmatmul.mubr.msk.f32.gmra.mrb[60].mxu1 %vm3972_vm1, %v4306_v36  ;;  %v4369_v36 = vld [vmem:[#allocation2 + $0x457] sm:$0xff] }
 0x45d   :  { %13868 = vmatprep.mubr.msk.f32.mxu1 %vm3972_vm1, %v4307_v37  ;;  %v4370_v37 = vld [vmem:[#allocation2 + $0x45f] sm:$0xff] }
 0x460   :  { %13869 = vmatmul.mubr.msk.f32.gmra.mrb[62].mxu1 %vm3972_vm1, %v4308_v38  ;;  %v4371_v38 = vld [vmem:[#allocation2 + $0x467] sm:$0xff] }
 0x461   :  { %13871 = vmatprep.mubr.msk.f32.mxu1 %vm3972_vm1, %v4309_v39  ;;  %v4372_v39 = vld [vmem:[#allocation2 + $0x46f] sm:$0xff] }
 0x464   :  { %13872 = vmatmul.mubr.msk.f32.gmra.mrb[64].mxu1 %vm3972_vm1, %v4310_v40  ;;  %v6688_v40 = vld [vmem:[#allocation2 + $0x9] sm:$0xff] }
 0x465   :  { %13874 = vmatprep.mubr.msk.f32.mxu1 %vm3972_vm1, %v4311_v41  ;;  %v6689_v41 = vld [vmem:[#allocation2 + $0x11] sm:$0xff] }
 0x468   :  { %13875 = vmatmul.mubr.msk.f32.gmra.mrb[66].mxu1 %vm3972_vm1, %v4312_v42  ;;  %v6690_v42 = vld [vmem:[#allocation2 + $0x19] sm:$0xff] }
 0x469   :  { %13877 = vmatprep.mubr.msk.f32.mxu1 %vm3972_vm1, %v4313_v43  ;;  %v6691_v43 = vld [vmem:[#allocation2 + $0x21] sm:$0xff] }
 0x46c   :  { %13878 = vmatmul.mubr.msk.f32.gmra.mrb[68].mxu1 %vm3972_vm1, %v4314_v44  ;;  %v6692_v44 = vld [vmem:[#allocation2 + $0x29] sm:$0xff] }
 0x46d   :  { %13880 = vmatprep.mubr.msk.f32.mxu1 %vm3972_vm1, %v4315_v46  ;;  %v6693_v46 = vld [vmem:[#allocation2 + $0x31] sm:$0xff] }
 0x470   :  { %13881 = vmatmul.mubr.msk.f32.gmra.mrb[70].mxu1 %vm3972_vm1, %v4316_v47  ;;  %v6694_v47 = vld [vmem:[#allocation2 + $0x39] sm:$0xff] }
 0x471   :  { %13883 = vmatprep.mubr.msk.f32.mxu1 %vm3972_vm1, %v4317_v45  ;;  %v6695_v45 = vld [vmem:[#allocation2 + $0x41] sm:$0xff] }
 0x474   :  { %13884 = vmatmul.mubr.msk.f32.gmra.mrb[72].mxu1 %vm3972_vm1, %v4318_v48  ;;  %v6696_v48 = vld [vmem:[#allocation2 + $0x49] sm:$0xff] }
 0x475   :  { %13886 = vmatprep.mubr.msk.f32.mxu1 %vm3972_vm1, %v4319_v49  ;;  %v6697_v49 = vld [vmem:[#allocation2 + $0x51] sm:$0xff] }
 0x478   :  { %13887 = vmatmul.mubr.msk.f32.gmra.mrb[74].mxu1 %vm3972_vm1, %v4320_v51  ;;  %v6698_v51 = vld [vmem:[#allocation2 + $0x59] sm:$0xff] }
 0x479   :  { %13889 = vmatprep.mubr.msk.f32.mxu1 %vm3972_vm1, %v4321_v52  ;;  %v6699_v52 = vld [vmem:[#allocation2 + $0x61] sm:$0xff] }
 0x47c   :  { %13890 = vmatmul.mubr.msk.f32.gmra.mrb[76].mxu1 %vm3972_vm1, %v4322_v53  ;;  %v6700_v53 = vld [vmem:[#allocation2 + $0x69] sm:$0xff] }
 0x47d   :  { %13892 = vmatprep.mubr.msk.f32.mxu1 %vm3972_vm1, %v4323_v54  ;;  %v6701_v54 = vld [vmem:[#allocation2 + $0x71] sm:$0xff] }
 0x480   :  { %13893 = vmatmul.mubr.msk.f32.gmra.mrb[78].mxu1 %vm3972_vm1, %v4324_v56  ;;  %v6702_v56 = vld [vmem:[#allocation2 + $0x79] sm:$0xff] }
 0x481   :  { %13895 = vmatprep.mubr.msk.f32.mxu1 %vm3972_vm1, %v4325_v57  ;;  %v6703_v57 = vld [vmem:[#allocation2 + $0x81] sm:$0xff] }
 0x484   :  { %13896 = vmatmul.mubr.msk.f32.gmra.mrb[80].mxu1 %vm3972_vm1, %v4326_v58  ;;  %v6704_v58 = vld [vmem:[#allocation2 + $0x99] sm:$0xff] }
 0x485   :  { %13898 = vmatprep.mubr.msk.f32.mxu1 %vm3972_vm1, %v4327_v59  ;;  %v6705_v59 = vld [vmem:[#allocation2 + $0xa1] sm:$0xff] }
 0x488   :  { %13899 = vmatmul.mubr.msk.f32.gmra.mrb[82].mxu1 %vm3972_vm1, %v4328_v60  ;;  %v6706_v60 = vld [vmem:[#allocation2 + $0xa9] sm:$0xff] }
 0x489   :  { %13901 = vmatprep.mubr.msk.f32.mxu1 %vm3972_vm1, %v4329_v61  ;;  %v6707_v61 = vld [vmem:[#allocation2 + $0xb1] sm:$0xff] }
 0x48c   :  { %13902 = vmatmul.mubr.msk.f32.gmra.mrb[84].mxu1 %vm3972_vm1, %v4330_v62  ;;  %v6708_v62 = vld [vmem:[#allocation2 + $0xb9] sm:$0xff] }
 0x48d   :  { %13904 = vmatprep.mubr.msk.f32.mxu1 %vm3972_vm1, %v4331_v63  ;;  %v6709_v63 = vld [vmem:[#allocation2 + $0xc1] sm:$0xff] }
 0x490   :  { %13905 = vmatmul.mubr.msk.f32.gmra.mrb[86].mxu1 %vm3972_vm1, %v4332_v0  ;;  %v6710_v0 = vld [vmem:[#allocation2 + $0xc9] sm:$0xff] }
 0x491   :  { %13907 = vmatprep.mubr.msk.f32.mxu1 %vm3972_vm1, %v4333_v1  ;;  %v6711_v1 = vld [vmem:[#allocation2 + $0xd1] sm:$0xff] }
 0x494   :  { %13908 = vmatmul.mubr.msk.f32.gmra.mrb[88].mxu1 %vm3972_vm1, %v4334_v3  ;;  %v6712_v3 = vld [vmem:[#allocation2 + $0xd9] sm:$0xff] }
 0x495   :  { %13910 = vmatprep.mubr.msk.f32.mxu1 %vm3972_vm1, %v4335_v4  ;;  %v6713_v4 = vld [vmem:[#allocation2 + $0xe1] sm:$0xff] }
 0x498   :  { %13911 = vmatmul.mubr.msk.f32.gmra.mrb[90].mxu1 %vm3972_vm1, %v4336_v5  ;;  %v6714_v5 = vld [vmem:[#allocation2 + $0xe9] sm:$0xff] }
 0x499   :  { %13913 = vmatprep.mubr.msk.f32.mxu1 %vm3972_vm1, %v4337_v7  ;;  %v6715_v7 = vld [vmem:[#allocation2 + $0xf1] sm:$0xff] }
 0x49c   :  { %13914 = vmatmul.mubr.msk.f32.gmra.mrb[92].mxu1 %vm3972_vm1, %v4338_v8  ;;  %v6716_v8 = vld [vmem:[#allocation2 + $0xf9] sm:$0xff] }
 0x49d   :  { %13916 = vmatprep.mubr.msk.f32.mxu1 %vm3972_vm1, %v4339_v9  ;;  %v6717_v9 = vld [vmem:[#allocation2 + $0x101] sm:$0xff] }
 0x4a0   :  { %13917 = vmatmul.mubr.msk.f32.gmra.mrb[94].mxu1 %vm3972_vm1, %v4340_v10  ;;  %v6718_v10 = vld [vmem:[#allocation2 + $0x109] sm:$0xff] }
 0x4a1   :  { %13919 = vmatprep.mubr.msk.f32.mxu1 %vm3972_vm1, %v4341_v6  ;;  %v6719_v6 = vld [vmem:[#allocation2 + $0x111] sm:$0xff] }
 0x4a4   :  { %13920 = vmatmul.mubr.msk.f32.gmra.mrb[96].mxu1 %vm3972_vm1, %v4342_v11  ;;  %v6720_v11 = vld [vmem:[#allocation2 + $0x129] sm:$0xff] }
 0x4a5   :  { %13922 = vmatprep.mubr.msk.f32.mxu1 %vm3972_vm1, %v4343_v12  ;;  %v6721_v12 = vld [vmem:[#allocation2 + $0x131] sm:$0xff] }
 0x4a8   :  { %13923 = vmatmul.mubr.msk.f32.gmra.mrb[98].mxu1 %vm3972_vm1, %v4344_v13  ;;  %v6722_v13 = vld [vmem:[#allocation2 + $0x139] sm:$0xff] }
 0x4a9   :  { %13925 = vmatprep.mubr.msk.f32.mxu1 %vm3972_vm1, %v4345_v14  ;;  %v6723_v14 = vld [vmem:[#allocation2 + $0x141] sm:$0xff] }
 0x4ac   :  { %13926 = vmatmul.mubr.msk.f32.gmra.mrb[100].mxu1 %vm3972_vm1, %v4346_v15  ;;  %v6724_v15 = vld [vmem:[#allocation2 + $0x149] sm:$0xff] }
 0x4ad   :  { %13928 = vmatprep.mubr.msk.f32.mxu1 %vm3972_vm1, %v4347_v16  ;;  %v6725_v16 = vld [vmem:[#allocation2 + $0x151] sm:$0xff] }
 0x4b0   :  { %13929 = vmatmul.mubr.msk.f32.gmra.mrb[102].mxu1 %vm3972_vm1, %v4348_v17  ;;  %v6726_v17 = vld [vmem:[#allocation2 + $0x159] sm:$0xff] }
 0x4b1   :  { %13931 = vmatprep.mubr.msk.f32.mxu1 %vm3972_vm1, %v4349_v18  ;;  %v6727_v18 = vld [vmem:[#allocation2 + $0x161] sm:$0xff] }
 0x4b4   :  { %13932 = vmatmul.mubr.msk.f32.gmra.mrb[104].mxu1 %vm3972_vm1, %v4350_v19  ;;  %v6728_v19 = vld [vmem:[#allocation2 + $0x169] sm:$0xff] }
 0x4b5   :  { %13934 = vmatprep.mubr.msk.f32.mxu1 %vm3972_vm1, %v4351_v20  ;;  %v6729_v20 = vld [vmem:[#allocation2 + $0x171] sm:$0xff] }
 0x4b8   :  { %13935 = vmatmul.mubr.msk.f32.gmra.mrb[106].mxu1 %vm3972_vm1, %v4352_v21  ;;  %v6730_v21 = vld [vmem:[#allocation2 + $0x179] sm:$0xff] }
 0x4b9   :  { %13937 = vmatprep.mubr.msk.f32.mxu1 %vm3972_vm1, %v4353_v22  ;;  %v6731_v22 = vld [vmem:[#allocation2 + $0x181] sm:$0xff] }
 0x4bc   :  { %13938 = vmatmul.mubr.msk.f32.gmra.mrb[108].mxu1 %vm3972_vm1, %v4354_v23  ;;  %v6732_v23 = vld [vmem:[#allocation2 + $0x189] sm:$0xff] }
 0x4bd   :  { %13940 = vmatprep.mubr.msk.f32.mxu1 %vm3972_vm1, %v4355_v24  ;;  %v6733_v24 = vld [vmem:[#allocation2 + $0x191] sm:$0xff] }
 0x4c0   :  { %13941 = vmatmul.mubr.msk.f32.gmra.mrb[110].mxu1 %vm3972_vm1, %v4356_v25  ;;  %v6734_v25 = vld [vmem:[#allocation2 + $0x199] sm:$0xff] }
 0x4c1   :  { %13943 = vmatprep.mubr.msk.f32.mxu1 %vm3972_vm1, %v4357_v26  ;;  %v6735_v26 = vld [vmem:[#allocation2 + $0x1a1] sm:$0xff] }
 0x4c4   :  { %13944 = vmatmul.mubr.msk.f32.gmra.mrb[112].mxu1 %vm3972_vm1, %v4358_v2  ;;  %v6736_v2 = vld [vmem:[#allocation2 + $0x1b9] sm:$0xff] }
 0x4c5   :  { %13946 = vmatprep.mubr.msk.f32.mxu1 %vm3972_vm1, %v4359_v27  ;;  %v15661_v27 = vmov 0.0|0.0  }
 0x4c6   :  { %14576 = vmatprep.subr.bf16.mxu0 %v15661_v27  ;;  %14600 = vmatprep.subr.bf16.mxu1 %v15661_v27 }
 0x4c8   :  { %13947 = vmatmul.mubr.msk.f32.gmra.mrb[114].mxu1 %vm3972_vm1, %v4360_v28  ;;  %v8173_v28 = vld [vmem:[%s19224_s5] sm:$0xff] }
 0x4c9   :  { %13949 = vmatprep.mubr.msk.f32.mxu1 %vm3972_vm1, %v4361_v29  ;;  %v8174_v29 = vld [vmem:[%s19224_s5 + $0x8] sm:$0xff] }
 0x4cc   :  { %13950 = vmatmul.mubr.msk.f32.gmra.mrb[116].mxu1 %vm3972_vm1, %v4362_v30  ;;  %v6737_v30 = vld [vmem:[#allocation2 + $0x1c1] sm:$0xff] }
 0x4cd   :  { %13952 = vmatprep.mubr.msk.f32.mxu1 %vm3972_vm1, %v4363_v31  ;;  %v18221_v31 = vpack.c.bf16 %v8174_v29, %v8173_v28  ;;  %v6787_v28 = vld [vmem:[#allocation2 + $0x381] sm:$0xff]  ;;  %v6788_v29 = vld [vmem:[#allocation2 + $0x389] sm:$0xff] }
 0x4cf   :  { %14578 = vmatpush3.bf16.msra.mxu0 %v18221_v31 }
 0x4d0   :  { %13953 = vmatmul.mubr.msk.f32.gmra.mrb[118].mxu1 %vm3972_vm1, %v4364_v32  ;;  %v6738_v32 = vld [vmem:[#allocation2 + $0x1c9] sm:$0xff]  ;;  %14579 = vmatprep.subr.bf16.mxu0 %v15661_v27 }
 0x4d1   :  { %13955 = vmatprep.mubr.msk.f32.mxu1 %vm3972_vm1, %v4365_v33  ;;  %v6739_v33 = vld [vmem:[#allocation2 + $0x1d1] sm:$0xff] }
 0x4d4   :  { %13956 = vmatmul.mubr.msk.f32.gmra.mrb[120].mxu1 %vm3972_vm1, %v4366_v34  ;;  %v6740_v34 = vld [vmem:[#allocation2 + $0x1d9] sm:$0xff] }
 0x4d5   :  { %13958 = vmatprep.mubr.msk.f32.mxu1 %vm3972_vm1, %v4367_v55  ;;  %v6741_v55 = vld [vmem:[#allocation2 + $0x1e1] sm:$0xff] }
 0x4d8   :  { %13959 = vmatmul.mubr.msk.f32.gmra.mrb[122].mxu1 %vm3972_vm1, %v4368_v35  ;;  %v6742_v35 = vld [vmem:[#allocation2 + $0x1e9] sm:$0xff] }
 0x4d9   :  { %13961 = vmatprep.mubr.msk.f32.mxu1 %vm3972_vm1, %v4369_v36  ;;  %v6743_v36 = vld [vmem:[#allocation2 + $0x1f1] sm:$0xff] }
 0x4dc   :  { %13962 = vmatmul.mubr.msk.f32.gmra.mrb[124].mxu1 %vm3972_vm1, %v4370_v37  ;;  %v6744_v37 = vld [vmem:[#allocation2 + $0x1f9] sm:$0xff] }
 0x4dd   :  { %13964 = vmatprep.mubr.msk.f32.mxu1 %vm3972_vm1, %v4371_v38  ;;  %v6745_v38 = vld [vmem:[#allocation2 + $0x201] sm:$0xff] }
 0x4e0   :  { %13965 = vmatmul.mubr.msk.f32.gmra.mrb[126].mxu1 %vm3972_vm1, %v4372_v39  ;;  %v6746_v39 = vld [vmem:[#allocation2 + $0x209] sm:$0xff] }
 0x4e1   :  { %13975 = vmatprep.mubr.msk.f32.mxu1 %vm3972_vm1, %v6688_v40  ;;  %v6747_v40 = vld [vmem:[#allocation2 + $0x211] sm:$0xff] }
 0x4e4   :  { %13976 = vmatmul.mubr.msk.f32.vlgmr.msra.gmra.mrb[0].mxu1 %vm3972_vm1, %v6689_v41  ;;  %v6748_v41 = vld [vmem:[#allocation2 + $0x219] sm:$0xff] }
 0x4e5   :  { %13978 = vmatprep.mubr.msk.f32.mxu1 %vm3972_vm1, %v6690_v42  ;;  %14602 = vmatpush3.bf16.msra.mxu1 %v18221_v31  ;;  %v6749_v42 = vld [vmem:[#allocation2 + $0x221] sm:$0xff] }
 0x4e6   :  { %14603 = vmatprep.subr.bf16.mxu1 %v15661_v27 }
 0x4e8   :  { %13979 = vmatmul.mubr.msk.f32.gmra.mrb[2].mxu1 %vm3972_vm1, %v6691_v43  ;;  %v6750_v43 = vld [vmem:[#allocation2 + $0x229] sm:$0xff] }
 0x4e9   :  { %13981 = vmatprep.mubr.msk.f32.mxu1 %vm3972_vm1, %v6692_v44  ;;  %v6751_v44 = vld [vmem:[#allocation2 + $0x231] sm:$0xff] }
 0x4ec   :  { %13982 = vmatmul.mubr.msk.f32.gmra.mrb[4].mxu1 %vm3972_vm1, %v6693_v46  ;;  %v6752_v46 = vld [vmem:[#allocation2 + $0x249] sm:$0xff] }
 0x4ed   :  { %13984 = vmatprep.mubr.msk.f32.mxu1 %vm3972_vm1, %v6694_v47  ;;  %v8175_v47 = vld [vmem:[%s19224_s5 + $0x10] sm:$0xff] }
 0x4f0   :  { %13985 = vmatmul.mubr.msk.f32.gmra.mrb[6].mxu1 %vm3972_vm1, %v6695_v45  ;;  %v8176_v45 = vld [vmem:[%s19224_s5 + $0x18] sm:$0xff] }
 0x4f1   :  { %13987 = vmatprep.mubr.msk.f32.mxu1 %vm3972_vm1, %v6696_v48  ;;  %v18249_v48 = vpack.c.bf16 %v8176_v45, %v8175_v47  ;;  %v6800_v45 = vld [vmem:[#allocation2 + $0x3f9] sm:$0xff] }
 0x4f3   :  { %14581 = vmatpush3.bf16.msra.mxu0 %v18249_v48  ;;  %14605 = vmatpush3.bf16.msra.mxu1 %v18249_v48 }
 0x4f4   :  { %13988 = vmatmul.mubr.msk.f32.gmra.mrb[8].mxu1 %vm3972_vm1, %v6697_v49  ;;  %v6753_v49 = vld [vmem:[#allocation2 + $0x251] sm:$0xff]  ;;  %14582 = vmatprep.subr.bf16.mxu0 %v15661_v27 }
 0x4f5   :  { %13990 = vmatprep.mubr.msk.f32.mxu1 %vm3972_vm1, %v6698_v51  ;;  %v6754_v51 = vld [vmem:[#allocation2 + $0x259] sm:$0xff]  ;;  %14606 = vmatprep.subr.bf16.mxu1 %v15661_v27 }
 0x4f8   :  { %13991 = vmatmul.mubr.msk.f32.gmra.mrb[10].mxu1 %vm3972_vm1, %v6699_v52  ;;  %v6755_v52 = vld [vmem:[#allocation2 + $0x261] sm:$0xff] }
 0x4f9   :  { %13993 = vmatprep.mubr.msk.f32.mxu1 %vm3972_vm1, %v6700_v53  ;;  %v6756_v53 = vld [vmem:[#allocation2 + $0x269] sm:$0xff] }
 0x4fc   :  { %13994 = vmatmul.mubr.msk.f32.gmra.mrb[12].mxu1 %vm3972_vm1, %v6701_v54  ;;  %v6757_v54 = vld [vmem:[#allocation2 + $0x271] sm:$0xff] }
 0x4fd   :  { %13996 = vmatprep.mubr.msk.f32.mxu1 %vm3972_vm1, %v6702_v56  ;;  %v6758_v56 = vld [vmem:[#allocation2 + $0x279] sm:$0xff] }
 0x500   :  { %13997 = vmatmul.mubr.msk.f32.gmra.mrb[14].mxu1 %vm3972_vm1, %v6703_v57  ;;  %v6759_v57 = vld [vmem:[#allocation2 + $0x281] sm:$0xff] }
 0x501   :  { %13999 = vmatprep.mubr.msk.f32.mxu1 %vm3972_vm1, %v6704_v58  ;;  %v6760_v58 = vld [vmem:[#allocation2 + $0x289] sm:$0xff] }
 0x504   :  { %14000 = vmatmul.mubr.msk.f32.gmra.mrb[16].mxu1 %vm3972_vm1, %v6705_v59  ;;  %v6761_v59 = vld [vmem:[#allocation2 + $0x291] sm:$0xff] }
 0x505   :  { %14002 = vmatprep.mubr.msk.f32.mxu1 %vm3972_vm1, %v6706_v60  ;;  %v6762_v60 = vld [vmem:[#allocation2 + $0x299] sm:$0xff] }
 0x508   :  { %14003 = vmatmul.mubr.msk.f32.gmra.mrb[18].mxu1 %vm3972_vm1, %v6707_v61  ;;  %v6763_v61 = vld [vmem:[#allocation2 + $0x2a1] sm:$0xff] }
 0x509   :  { %14005 = vmatprep.mubr.msk.f32.mxu1 %vm3972_vm1, %v6708_v62  ;;  %v6764_v62 = vld [vmem:[#allocation2 + $0x2a9] sm:$0xff] }
 0x50c   :  { %14006 = vmatmul.mubr.msk.f32.gmra.mrb[20].mxu1 %vm3972_vm1, %v6709_v63  ;;  %v6765_v63 = vld [vmem:[#allocation2 + $0x2b1] sm:$0xff] }
 0x50d   :  { %14008 = vmatprep.mubr.msk.f32.mxu1 %vm3972_vm1, %v6710_v0  ;;  %v6766_v0 = vld [vmem:[#allocation2 + $0x2b9] sm:$0xff] }
 0x510   :  { %14009 = vmatmul.mubr.msk.f32.gmra.mrb[22].mxu1 %vm3972_vm1, %v6711_v1  ;;  %v6767_v1 = vld [vmem:[#allocation2 + $0x2c1] sm:$0xff] }
 0x511   :  { %14011 = vmatprep.mubr.msk.f32.mxu1 %vm3972_vm1, %v6712_v3  ;;  %v6768_v3 = vld [vmem:[#allocation2 + $0x2d9] sm:$0xff] }
 0x514   :  { %14012 = vmatmul.mubr.msk.f32.gmra.mrb[24].mxu1 %vm3972_vm1, %v6713_v4  ;;  %v8177_v4 = vld [vmem:[%s19224_s5 + $0x20] sm:$0xff] }
 0x515   :  { %14014 = vmatprep.mubr.msk.f32.mxu1 %vm3972_vm1, %v6714_v5  ;;  %v8178_v5 = vld [vmem:[%s19224_s5 + $0x28] sm:$0xff] }
 0x518   :  { %14015 = vmatmul.mubr.msk.f32.gmra.mrb[26].mxu1 %vm3972_vm1, %v6715_v7  ;;  %v18277_v7 = vpack.c.bf16 %v8178_v5, %v8177_v4  ;;  %v6807_v4 = vld [vmem:[#allocation2 + $0x431] sm:$0xff] }
 0x519   :  { %14017 = vmatprep.mubr.msk.f32.mxu1 %vm3972_vm1, %v6716_v8  ;;  %v6769_v8 = vld [vmem:[#allocation2 + $0x2e1] sm:$0xff] }
 0x51a   :  { %14584 = vmatpush3.bf16.msra.mxu0 %v18277_v7  ;;  %14608 = vmatpush3.bf16.msra.mxu1 %v18277_v7 }
 0x51b   :  { %14585 = vmatprep.subr.bf16.mxu0 %v15661_v27  ;;  %14609 = vmatprep.subr.bf16.mxu1 %v15661_v27 }
 0x51c   :  { %14018 = vmatmul.mubr.msk.f32.gmra.mrb[28].mxu1 %vm3972_vm1, %v6717_v9  ;;  %v6770_v9 = vld [vmem:[#allocation2 + $0x2e9] sm:$0xff] }
 0x51d   :  { %14020 = vmatprep.mubr.msk.f32.mxu1 %vm3972_vm1, %v6718_v10  ;;  %v6771_v10 = vld [vmem:[#allocation2 + $0x2f1] sm:$0xff] }
 0x520   :  { %14021 = vmatmul.mubr.msk.f32.gmra.mrb[30].mxu1 %vm3972_vm1, %v6719_v6  ;;  %v6772_v6 = vld [vmem:[#allocation2 + $0x2f9] sm:$0xff] }
 0x521   :  { %14023 = vmatprep.mubr.msk.f32.mxu1 %vm3972_vm1, %v6720_v11  ;;  %v6773_v11 = vld [vmem:[#allocation2 + $0x301] sm:$0xff] }
 0x524   :  { %14024 = vmatmul.mubr.msk.f32.gmra.mrb[32].mxu1 %vm3972_vm1, %v6721_v12  ;;  %v6774_v12 = vld [vmem:[#allocation2 + $0x309] sm:$0xff] }
 0x525   :  { %14026 = vmatprep.mubr.msk.f32.mxu1 %vm3972_vm1, %v6722_v13  ;;  %v6775_v13 = vld [vmem:[#allocation2 + $0x311] sm:$0xff] }
 0x528   :  { %14027 = vmatmul.mubr.msk.f32.gmra.mrb[34].mxu1 %vm3972_vm1, %v6723_v14  ;;  %v6776_v14 = vld [vmem:[#allocation2 + $0x319] sm:$0xff] }
 0x529   :  { %14029 = vmatprep.mubr.msk.f32.mxu1 %vm3972_vm1, %v6724_v15  ;;  %v6777_v15 = vld [vmem:[#allocation2 + $0x321] sm:$0xff] }
 0x52c   :  { %14030 = vmatmul.mubr.msk.f32.gmra.mrb[36].mxu1 %vm3972_vm1, %v6725_v16  ;;  %v6778_v16 = vld [vmem:[#allocation2 + $0x329] sm:$0xff] }
 0x52d   :  { %14032 = vmatprep.mubr.msk.f32.mxu1 %vm3972_vm1, %v6726_v17  ;;  %v6779_v17 = vld [vmem:[#allocation2 + $0x331] sm:$0xff] }
 0x530   :  { %14033 = vmatmul.mubr.msk.f32.gmra.mrb[38].mxu1 %vm3972_vm1, %v6727_v18  ;;  %v6780_v18 = vld [vmem:[#allocation2 + $0x339] sm:$0xff] }
 0x531   :  { %14035 = vmatprep.mubr.msk.f32.mxu1 %vm3972_vm1, %v6728_v19  ;;  %v6781_v19 = vld [vmem:[#allocation2 + $0x341] sm:$0xff] }
 0x534   :  { %14036 = vmatmul.mubr.msk.f32.gmra.mrb[40].mxu1 %vm3972_vm1, %v6729_v20  ;;  %v6782_v20 = vld [vmem:[#allocation2 + $0x349] sm:$0xff] }
 0x535   :  { %14038 = vmatprep.mubr.msk.f32.mxu1 %vm3972_vm1, %v6730_v21  ;;  %v6783_v21 = vld [vmem:[#allocation2 + $0x351] sm:$0xff] }
 0x538   :  { %14039 = vmatmul.mubr.msk.f32.gmra.mrb[42].mxu1 %vm3972_vm1, %v6731_v22  ;;  %v6784_v22 = vld [vmem:[#allocation2 + $0x369] sm:$0xff] }
 0x539   :  { %14041 = vmatprep.mubr.msk.f32.mxu1 %vm3972_vm1, %v6732_v23  ;;  %v8179_v23 = vld [vmem:[%s19224_s5 + $0x30] sm:$0xff] }
 0x53c   :  { %14042 = vmatmul.mubr.msk.f32.gmra.mrb[44].mxu1 %vm3972_vm1, %v6733_v24  ;;  %v8180_v24 = vld [vmem:[%s19224_s5 + $0x38] sm:$0xff] }
 0x53d   :  { %14044 = vmatprep.mubr.msk.f32.mxu1 %vm3972_vm1, %v6734_v25  ;;  %v18305_v25 = vpack.c.bf16 %v8180_v24, %v8179_v23  ;;  %v6813_v23 = vld [vmem:[#allocation2 + $0x461] sm:$0xff] }
 0x53f   :  { %14587 = vmatpush3.bf16.msra.mxu0 %v18305_v25  ;;  %14611 = vmatpush3.bf16.msra.mxu1 %v18305_v25 }
 0x540   :  { %14045 = vmatmul.mubr.msk.f32.gmra.mrb[46].mxu1 %vm3972_vm1, %v6735_v26  ;;  %v6785_v26 = vld [vmem:[#allocation2 + $0x371] sm:$0xff]  ;;  %14588 = vmatprep.subr.bf16.mxu0 %v15661_v27 }
 0x541   :  { %14047 = vmatprep.mubr.msk.f32.mxu1 %vm3972_vm1, %v6736_v2  ;;  %v6786_v2 = vld [vmem:[#allocation2 + $0x379] sm:$0xff]  ;;  %14612 = vmatprep.subr.bf16.mxu1 %v15661_v27 }
 0x544   :  { %14048 = vmatmul.mubr.msk.f32.gmra.mrb[48].mxu1 %vm3972_vm1, %v6737_v30  ;;  %v6789_v30 = vld [vmem:[#allocation2 + $0x391] sm:$0xff] }
 0x545   :  { %14050 = vmatprep.mubr.msk.f32.mxu1 %vm3972_vm1, %v6738_v32  ;;  %v6790_v32 = vld [vmem:[#allocation2 + $0x399] sm:$0xff] }
 0x548   :  { %14051 = vmatmul.mubr.msk.f32.gmra.mrb[50].mxu1 %vm3972_vm1, %v6739_v33  ;;  %v6791_v33 = vld [vmem:[#allocation2 + $0x3a1] sm:$0xff] }
 0x549   :  { %14053 = vmatprep.mubr.msk.f32.mxu1 %vm3972_vm1, %v6740_v34  ;;  %v6792_v34 = vld [vmem:[#allocation2 + $0x3a9] sm:$0xff] }
 0x54c   :  { %14054 = vmatmul.mubr.msk.f32.gmra.mrb[52].mxu1 %vm3972_vm1, %v6741_v55  ;;  %v6793_v55 = vld [vmem:[#allocation2 + $0x3b1] sm:$0xff] }
 0x54d   :  { %14056 = vmatprep.mubr.msk.f32.mxu1 %vm3972_vm1, %v6742_v35  ;;  %v6794_v35 = vld [vmem:[#allocation2 + $0x3b9] sm:$0xff] }
 0x550   :  { %14057 = vmatmul.mubr.msk.f32.gmra.mrb[54].mxu1 %vm3972_vm1, %v6743_v36 }
 0x551   :  { %14059 = vmatprep.mubr.msk.f32.mxu1 %vm3972_vm1, %v6744_v37  ;;  %v6795_v37 = vld [vmem:[#allocation2 + $0x3c1] sm:$0xff] }
 0x554   :  { %14060 = vmatmul.mubr.msk.f32.gmra.mrb[56].mxu1 %vm3972_vm1, %v6745_v38 }
 0x555   :  { %14062 = vmatprep.mubr.msk.f32.mxu1 %vm3972_vm1, %v6746_v39  ;;  %v6796_v39 = vld [vmem:[#allocation2 + $0x3c9] sm:$0xff] }
 0x558   :  { %14063 = vmatmul.mubr.msk.f32.gmra.mrb[58].mxu1 %vm3972_vm1, %v6747_v40 }
 0x559   :  { %14065 = vmatprep.mubr.msk.f32.mxu1 %vm3972_vm1, %v6748_v41  ;;  %v6797_v41 = vld [vmem:[#allocation2 + $0x3d1] sm:$0xff] }
 0x55c   :  { %14066 = vmatmul.mubr.msk.f32.gmra.mrb[60].mxu1 %vm3972_vm1, %v6749_v42 }
 0x55d   :  { %14068 = vmatprep.mubr.msk.f32.mxu1 %vm3972_vm1, %v6750_v43  ;;  %v6798_v43 = vld [vmem:[#allocation2 + $0x3d9] sm:$0xff] }
 0x560   :  { %14069 = vmatmul.mubr.msk.f32.gmra.mrb[62].mxu1 %vm3972_vm1, %v6751_v44 }
 0x561   :  { %14071 = vmatprep.mubr.msk.f32.mxu1 %vm3972_vm1, %v6752_v46  ;;  %v6799_v46 = vld [vmem:[#allocation2 + $0x3e1] sm:$0xff] }
 0x564   :  { %14072 = vmatmul.mubr.msk.f32.gmra.mrb[64].mxu1 %vm3972_vm1, %v6753_v49  ;;  %v8181_v49 = vld [vmem:[%s19224_s5 + $0x40] sm:$0xff] }
 0x565   :  { %14074 = vmatprep.mubr.msk.f32.mxu1 %vm3972_vm1, %v6754_v51  ;;  %v8182_v51 = vld [vmem:[%s19224_s5 + $0x48] sm:$0xff] }
 0x568   :  { %14075 = vmatmul.mubr.msk.f32.gmra.mrb[66].mxu1 %vm3972_vm1, %v6755_v52  ;;  %v18341_v52 = vpack.c.bf16 %v8182_v51, %v8181_v49 }
 0x569   :  { %14077 = vmatprep.mubr.msk.f32.mxu1 %vm3972_vm1, %v6756_v53 }
 0x56a   :  { %14590 = vmatpush3.bf16.msra.mxu0 %v18341_v52  ;;  %14614 = vmatpush3.bf16.msra.mxu1 %v18341_v52 }
 0x56b   :  { %14591 = vmatprep.subr.bf16.mxu0 %v15661_v27  ;;  %14615 = vmatprep.subr.bf16.mxu1 %v15661_v27 }
 0x56c   :  { %14078 = vmatmul.mubr.msk.f32.gmra.mrb[68].mxu1 %vm3972_vm1, %v6757_v54  ;;  %v6801_v54 = vld [vmem:[#allocation2 + $0x401] sm:$0xff] }
 0x56d   :  { %14080 = vmatprep.mubr.msk.f32.mxu1 %vm3972_vm1, %v6758_v56 }
 0x570   :  { %14081 = vmatmul.mubr.msk.f32.gmra.mrb[70].mxu1 %vm3972_vm1, %v6759_v57  ;;  %v6802_v57 = vld [vmem:[#allocation2 + $0x409] sm:$0xff] }
 0x571   :  { %14083 = vmatprep.mubr.msk.f32.mxu1 %vm3972_vm1, %v6760_v58 }
 0x574   :  { %14084 = vmatmul.mubr.msk.f32.gmra.mrb[72].mxu1 %vm3972_vm1, %v6761_v59  ;;  %v6803_v59 = vld [vmem:[#allocation2 + $0x411] sm:$0xff] }
 0x575   :  { %14086 = vmatprep.mubr.msk.f32.mxu1 %vm3972_vm1, %v6762_v60 }
 0x578   :  { %14087 = vmatmul.mubr.msk.f32.gmra.mrb[74].mxu1 %vm3972_vm1, %v6763_v61  ;;  %v6804_v61 = vld [vmem:[#allocation2 + $0x419] sm:$0xff] }
 0x579   :  { %14089 = vmatprep.mubr.msk.f32.mxu1 %vm3972_vm1, %v6764_v62 }
 0x57c   :  { %14090 = vmatmul.mubr.msk.f32.gmra.mrb[76].mxu1 %vm3972_vm1, %v6765_v63  ;;  %v6805_v63 = vld [vmem:[#allocation2 + $0x421] sm:$0xff] }
 0x57d   :  { %14092 = vmatprep.mubr.msk.f32.mxu1 %vm3972_vm1, %v6766_v0 }
 0x580   :  { %14093 = vmatmul.mubr.msk.f32.gmra.mrb[78].mxu1 %vm3972_vm1, %v6767_v1  ;;  %v6806_v1 = vld [vmem:[#allocation2 + $0x429] sm:$0xff] }
 0x581   :  { %14095 = vmatprep.mubr.msk.f32.mxu1 %vm3972_vm1, %v6768_v3 }
 0x584   :  { %14096 = vmatmul.mubr.msk.f32.gmra.mrb[80].mxu1 %vm3972_vm1, %v6769_v8  ;;  %v6808_v8 = vld [vmem:[#allocation2 + $0x439] sm:$0xff] }
 0x585   :  { %14098 = vmatprep.mubr.msk.f32.mxu1 %vm3972_vm1, %v6770_v9 }
 0x588   :  { %14099 = vmatmul.mubr.msk.f32.gmra.mrb[82].mxu1 %vm3972_vm1, %v6771_v10  ;;  %v6809_v10 = vld [vmem:[#allocation2 + $0x441] sm:$0xff] }
 0x589   :  { %14101 = vmatprep.mubr.msk.f32.mxu1 %vm3972_vm1, %v6772_v6 }
 0x58c   :  { %14102 = vmatmul.mubr.msk.f32.gmra.mrb[84].mxu1 %vm3972_vm1, %v6773_v11  ;;  %v6810_v11 = vld [vmem:[#allocation2 + $0x449] sm:$0xff] }
 0x58d   :  { %14104 = vmatprep.mubr.msk.f32.mxu1 %vm3972_vm1, %v6774_v12  ;;  %v18379_v12 = vld [vmem:[%s19225_s4] ss:$0 sm:$0xff] }
 0x590   :  { %14105 = vmatmul.mubr.msk.f32.gmra.mrb[86].mxu1 %vm3972_vm1, %v6775_v13 }
 0x591   :  { %14107 = vmatprep.mubr.msk.f32.mxu1 %vm3972_vm1, %v6776_v14  ;;  %v6811_v14 = vld [vmem:[#allocation2 + $0x451] sm:$0xff] }
 0x594   :  { %14108 = vmatmul.mubr.msk.f32.gmra.mrb[88].mxu1 %vm3972_vm1, %v6777_v15 }
 0x595   :  { %14110 = vmatprep.mubr.msk.f32.mxu1 %vm3972_vm1, %v6778_v16 }
 0x598   :  { %14111 = vmatmul.mubr.msk.f32.gmra.mrb[90].mxu1 %vm3972_vm1, %v6779_v17 }
 0x599   :  { %14113 = vmatprep.mubr.msk.f32.mxu1 %vm3972_vm1, %v6780_v18  ;;  %v6812_v18 = vld [vmem:[#allocation2 + $0x459] sm:$0xff] }
 0x59c   :  { %14114 = vmatmul.mubr.msk.f32.gmra.mrb[92].mxu1 %vm3972_vm1, %v6781_v19 }
 0x59d   :  { %14116 = vmatprep.mubr.msk.f32.mxu1 %vm3972_vm1, %v6782_v20 }
 0x5a0   :  { %14117 = vmatmul.mubr.msk.f32.gmra.mrb[94].mxu1 %vm3972_vm1, %v6783_v21 }
 0x5a1   :  { %14119 = vmatprep.mubr.msk.f32.mxu1 %vm3972_vm1, %v6784_v22 }
 0x5a4   :  { %14120 = vmatmul.mubr.msk.f32.gmra.mrb[96].mxu1 %vm3972_vm1, %v6785_v26 }
 0x5a5   :  { %14122 = vmatprep.mubr.msk.f32.mxu1 %vm3972_vm1, %v6786_v2 }
 0x5a8   :  { %14123 = vmatmul.mubr.msk.f32.gmra.mrb[98].mxu1 %vm3972_vm1, %v6787_v28 }
 0x5a9   :  { %14125 = vmatprep.mubr.msk.f32.mxu1 %vm3972_vm1, %v6788_v29  ;;  %v6814_v29 = vld [vmem:[#allocation2 + $0x469] sm:$0xff] }
 0x5ac   :  { %14126 = vmatmul.mubr.msk.f32.gmra.mrb[100].mxu1 %vm3972_vm1, %v6789_v30 }
 0x5ad   :  { %14128 = vmatprep.mubr.msk.f32.mxu1 %vm3972_vm1, %v6790_v32 }
 0x5b0   :  { %14129 = vmatmul.mubr.msk.f32.gmra.mrb[102].mxu1 %vm3972_vm1, %v6791_v33 }
 0x5b1   :  { %14131 = vmatprep.mubr.msk.f32.mxu1 %vm3972_vm1, %v6792_v34 }
 0x5b4   :  { %14132 = vmatmul.mubr.msk.f32.gmra.mrb[104].mxu1 %vm3972_vm1, %v6793_v55  ;;  %v6815_v55 = vld [vmem:[#allocation2 + $0x471] sm:$0xff] }
 0x5b5   :  { %14134 = vmatprep.mubr.msk.f32.mxu1 %vm3972_vm1, %v6794_v35 }
 0x5b7   :  { %v13977_v36 = vpop.f32.mrb[0].mxu1 }
 0x5b8   :  { %v7271_v38 = vpop.f32.mrb[1].mxu1  ;;  %14135 = vmatmul.mubr.msk.f32.gmra.mrb[106].mxu1 %vm3972_vm1, %v6795_v37  ;;  %v8046_v15 = vadd.f32 %v13977_v36, %v18379_v12 }
 0x5b9   :  { %14137 = vmatprep.mubr.msk.f32.mxu1 %vm3972_vm1, %v6796_v39  ;;  %v8045_v19 = vadd.f32 %v18379_v12, %v7271_v38 }
 0x5bb   :  { %v18323_v40 = vpop.f32.mrb[2].mxu1 }
 0x5bc   :  { %v18325_v42 = vpop.f32.mrb[3].mxu1  ;;  %14138 = vmatmul.mubr.msk.f32.gmra.mrb[108].mxu1 %vm3972_vm1, %v6797_v41  ;;  %v8048_v26 = vadd.f32 %v18323_v40, %v18379_v12 }
 0x5bd   :  { %14140 = vmatprep.mubr.msk.f32.mxu1 %vm3972_vm1, %v6798_v43  ;;  %v8047_v30 = vadd.f32 %v18379_v12, %v18325_v42 }
 0x5bf   :  { %v18329_v44 = vpop.f32.mrb[4].mxu1 }
 0x5c0   :  { %v18331_v47 = vpop.f32.mrb[5].mxu1  ;;  %14141 = vmatmul.mubr.msk.f32.gmra.mrb[110].mxu1 %vm3972_vm1, %v6799_v46  ;;  %v8050_v36 = vadd.f32 %v18329_v44, %v18379_v12  ;;  %v8183_v46 = vld [vmem:[%s19224_s5 + $0x50] sm:$0xff]  ;;  %v8184_v44 = vld [vmem:[%s19224_s5 + $0x58] sm:$0xff] }
 0x5c1   :  { %14143 = vmatprep.mubr.msk.f32.mxu1 %vm3972_vm1, %v6800_v45  ;;  %v8049_v39 = vadd.f32 %v18379_v12, %v18331_v47  ;;  %v18412_v51 = vpack.c.bf16 %v8184_v44, %v8183_v46 }
 0x5c3   :  { %v18343_v53 = vpop.f32.mrb[6].mxu1  ;;  %14593 = vmatpush3.bf16.msra.mxu0 %v18412_v51  ;;  %14617 = vmatpush3.bf16.msra.mxu1 %v18412_v51 }
 0x5c4   :  { %v18345_v56 = vpop.f32.mrb[7].mxu1  ;;  %14144 = vmatmul.mubr.msk.f32.gmra.mrb[112].mxu1 %vm3972_vm1, %v6801_v54  ;;  %v8052_v45 = vadd.f32 %v18343_v53, %v18379_v12  ;;  %14594 = vmatprep.subr.bf16.mxu0 %v15661_v27 }
 0x5c5   :  { %14146 = vmatprep.mubr.msk.f32.mxu1 %vm3972_vm1, %v6802_v57  ;;  %v8051_v54 = vadd.f32 %v18379_v12, %v18345_v56  ;;  %14618 = vmatprep.subr.bf16.mxu1 %v15661_v27 }
 0x5c7   :  { %v18353_v58 = vpop.f32.mrb[8].mxu1 }
 0x5c8   :  { %v18355_v60 = vpop.f32.mrb[9].mxu1  ;;  %14147 = vmatmul.mubr.msk.f32.gmra.mrb[114].mxu1 %vm3972_vm1, %v6803_v59  ;;  %v8054_v53 = vadd.f32 %v18353_v58, %v18379_v12 }
 0x5c9   :  { %14149 = vmatprep.mubr.msk.f32.mxu1 %vm3972_vm1, %v6804_v61 }
 0x5cb   :  { %v18359_v62 = vpop.f32.mrb[10].mxu1 }
 0x5cc   :  { %v18361_v0 = vpop.f32.mrb[11].mxu1  ;;  %14150 = vmatmul.mubr.msk.f32.gmra.mrb[116].mxu1 %vm3972_vm1, %v6805_v63 }
 0x5cd   :  { %14152 = vmatprep.mubr.msk.f32.mxu1 %vm3972_vm1, %v6806_v1  ;;  %v8055_v58 = vadd.f32 %v18379_v12, %v18361_v0 }
 0x5cf   :  { %v18365_v3 = vpop.f32.mrb[12].mxu1 }
 0x5d0   :  { %v18367_v5 = vpop.f32.mrb[13].mxu1  ;;  %14153 = vmatmul.mubr.msk.f32.gmra.mrb[118].mxu1 %vm3972_vm1, %v6807_v4  ;;  %v8053_v4 = vadd.f32 %v18379_v12, %v18355_v60 }
 0x5d1   :  { %14155 = vmatprep.mubr.msk.f32.mxu1 %vm3972_vm1, %v6808_v8 }
 0x5d3   :  { %v18371_v9 = vpop.f32.mrb[14].mxu1 }
 0x5d4   :  { %v18373_v6 = vpop.f32.mrb[15].mxu1  ;;  %14156 = vmatmul.mubr.msk.f32.gmra.mrb[120].mxu1 %vm3972_vm1, %v6809_v10 }
 0x5d5   :  { %14158 = vmatprep.mubr.msk.f32.mxu1 %vm3972_vm1, %v6810_v11 }
 0x5d7   :  { %v14001_v13 = vpop.f32.mrb[16].mxu1 }
 0x5d8   :  { %v8062_v16 = vadd.f32 %v14001_v13, %v18379_v12  ;;  %v7351_v17 = vpop.f32.mrb[17].mxu1  ;;  %14159 = vmatmul.mubr.msk.f32.gmra.mrb[122].mxu1 %vm3972_vm1, %v6811_v14  ;;  %v8056_v14 = vadd.f32 %v18359_v62, %v18379_v12  ;;  %v8057_v62 = vadd.f32 %v18379_v12, %v18367_v5 }
 0x5d9   :  { %v8061_v20 = vadd.f32 %v18379_v12, %v7351_v17  ;;  %14161 = vmatprep.mubr.msk.f32.mxu1 %vm3972_vm1, %v6812_v18 }
 0x5da   :  { %v15409_v21 = vpack.i.bf16 %v8062_v16, %v8046_v15 }
 0x5db   :  { %v14004_v22 = vpop.f32.mrb[18].mxu1  ;;  %v15407_v24 = vpack.i.bf16 %v8061_v20, %v8045_v19  ;;  %v8058_v20 = vadd.f32 %v18365_v3, %v18379_v12  ;;  %v8059_v3 = vadd.f32 %v18379_v12, %v18373_v6  ;;  %v8186_v6 = vld [vmem:[%s19224_s5 + $0x68] sm:$0xff] }
 0x5dc   :  { %v8064_v2 = vadd.f32 %v14004_v22, %v18379_v12  ;;  %v7361_v28 = vpop.f32.mrb[19].mxu1  ;;  %14162 = vmatmul.mubr.msk.f32.gmra.mrb[124].mxu1 %vm3972_vm1, %v6813_v23 }
 0x5dd   :  { %v8063_v32 = vadd.f32 %v18379_v12, %v7361_v28  ;;  %14164 = vmatprep.mubr.msk.f32.mxu1 %vm3972_vm1, %v6814_v29  ;;  %15408 = vxpose.xlu0.b32.start [1/16] (narrow) %v15407_v24, 24 }
 0x5de   :  { %v15413_v33 = vpack.i.bf16 %v8064_v2, %v8048_v26  ;;  %v8060_v2 = vadd.f32 %v18371_v9, %v18379_v12  ;;  %v8185_v9 = vld [vmem:[%s19224_s5 + $0x60] sm:$0xff] }
 0x5df   :  { %v14007_v34 = vpop.f32.mrb[20].mxu1  ;;  %v15411_v35 = vpack.i.bf16 %v8063_v32, %v8047_v30 }
 0x5e0   :  { %v8066_v37 = vadd.f32 %v14007_v34, %v18379_v12  ;;  %v7371_v38 = vpop.f32.mrb[21].mxu1  ;;  %14165 = vmatmul.mubr.msk.f32.gmra.mrb[126].mxu1 %vm3972_vm1, %v6815_v55 }
 0x5e1   :  { %v8065_v40 = vadd.f32 %v18379_v12, %v7371_v38  ;;  %15410 = vxpose.xlu0.b32.cont [2/16] (narrow) %v15409_v21, 24  ;;  %v18451_v38 = vpack.c.bf16 %v8186_v6, %v8185_v9  ;;  %14240 = vmatprep.mubr.msk.f32.mxu1 %vm15662_vm2, %v15660_v50 }
 0x5e2   :  { %v15417_v41 = vpack.i.bf16 %v8066_v37, %v8050_v36 }
 0x5e3   :  { %v14010_v42 = vpop.f32.mrb[22].mxu1  ;;  %v15415_v43 = vpack.i.bf16 %v8065_v40, %v8049_v39  ;;  %14596 = vmatpush3.bf16.msra.mxu0 %v18451_v38  ;;  %14620 = vmatpush3.bf16.msra.mxu1 %v18451_v38 }
 0x5e4   :  { %v8068_v49 = vadd.f32 %v14010_v42, %v18379_v12  ;;  %v7381_v47 = vpop.f32.mrb[23].mxu1  ;;  %14597 = vmatprep.subr.bf16.mxu0 %v15661_v27  ;;  %14621 = vmatprep.subr.bf16.mxu1 %v15661_v27 }
 0x5e5   :  { %v8067_v57 = vadd.f32 %v18379_v12, %v7381_v47  ;;  %15412 = vxpose.xlu0.b32.cont [3/16] (narrow) %v15411_v35, 24 }
 0x5e6   :  { %v15421_v59 = vpack.i.bf16 %v8068_v49, %v8052_v45 }
 0x5e7   :  { %v14013_v61 = vpop.f32.mrb[24].mxu1  ;;  %v15419_v63 = vpack.i.bf16 %v8067_v57, %v8051_v54 }
 0x5e8   :  { %v8070_v1 = vadd.f32 %v14013_v61, %v18379_v12  ;;  %v7391_v56 = vpop.f32.mrb[25].mxu1 }
 0x5e9   :  { %v8069_v8 = vadd.f32 %v18379_v12, %v7391_v56  ;;  %15414 = vxpose.xlu0.b32.cont [4/16] (narrow) %v15413_v33, 24 }
 0x5ea   :  { %v15425_v10 = vpack.i.bf16 %v8070_v1, %v8054_v53 }
 0x5eb   :  { %v14016_v11 = vpop.f32.mrb[26].mxu1  ;;  %v15423_v13 = vpack.i.bf16 %v8069_v8, %v8053_v4 }
 0x5ec   :  { %v8072_v15 = vadd.f32 %v14016_v11, %v18379_v12  ;;  %v7401_v16 = vpop.f32.mrb[27].mxu1 }
 0x5ed   :  { %v8071_v17 = vadd.f32 %v18379_v12, %v7401_v16  ;;  %15416 = vxpose.xlu0.b32.cont [5/16] (narrow) %v15415_v43, 24 }
 0x5ee   :  { %v15429_v18 = vpack.i.bf16 %v8072_v15, %v8056_v14 }
 0x5ef   :  { %v14019_v60 = vpop.f32.mrb[28].mxu1  ;;  %v15427_v19 = vpack.i.bf16 %v8071_v17, %v8055_v58 }
 0x5f0   :  { %v8074_v21 = vadd.f32 %v14019_v60, %v18379_v12  ;;  %v7411_v22 = vpop.f32.mrb[29].mxu1 }
 0x5f1   :  { %v8073_v23 = vadd.f32 %v18379_v12, %v7411_v22  ;;  %15418 = vxpose.xlu0.b32.cont [6/16] (narrow) %v15417_v41, 24 }
 0x5f2   :  { %v15433_v24 = vpack.i.bf16 %v8074_v21, %v8058_v20 }
 0x5f3   :  { %v14022_v0 = vpop.f32.mrb[30].mxu1  ;;  %v15431_v26 = vpack.i.bf16 %v8073_v23, %v8057_v62  ;;  %v8187_v23 = vld [vmem:[%s19224_s5 + $0x70] sm:$0xff] }
 0x5f4   :  { %v8076_v28 = vadd.f32 %v14022_v0, %v18379_v12  ;;  %v7421_v29 = vpop.f32.mrb[31].mxu1 }
 0x5f5   :  { %v8075_v30 = vadd.f32 %v18379_v12, %v7421_v29  ;;  %15420 = vxpose.xlu0.b32.cont [7/16] (narrow) %v15419_v63, 24 }
 0x5f6   :  { %v15437_v32 = vpack.i.bf16 %v8076_v28, %v8060_v2 }
 0x5f7   :  { %v14025_v5 = vpop.f32.mrb[32].mxu1  ;;  %v15435_v33 = vpack.i.bf16 %v8075_v30, %v8059_v3 }
 0x5f8   :  { %v7431_v34 = vpop.f32.mrb[33].mxu1  ;;  %v8078_v57 = vadd.f32 %v14025_v5, %v18379_v12 }
 0x5f9   :  { %15422 = vxpose.xlu0.b32.cont [8/16] (narrow) %v15421_v59, 24  ;;  %v8077_v63 = vadd.f32 %v18379_v12, %v7431_v34 }
 0x5fb   :  { %v14028_v55 = vpop.f32.mrb[34].mxu1 }
 0x5fc   :  { %v7441_v35 = vpop.f32.mrb[35].mxu1  ;;  %v8080_v8 = vadd.f32 %v14028_v55, %v18379_v12 }
 0x5fd   :  { %15424 = vxpose.xlu0.b32.cont [9/16] (narrow) %v15423_v13, 24  ;;  %v8079_v13 = vadd.f32 %v18379_v12, %v7441_v35 }
 0x5ff   :  { %v14031_v36 = vpop.f32.mrb[36].mxu1 }
 0x600   :  { %v7451_v37 = vpop.f32.mrb[37].mxu1  ;;  %v8082_v17 = vadd.f32 %v14031_v36, %v18379_v12 }
 0x601   :  { %15426 = vxpose.xlu0.b32.cont [10/16] (narrow) %v15425_v10, 24 }
 0x603   :  { %v14034_v39 = vpop.f32.mrb[38].mxu1 }
 0x604   :  { %v7461_v40 = vpop.f32.mrb[39].mxu1  ;;  %v8084_v0 = vadd.f32 %v14034_v39, %v18379_v12 }
 0x605   :  { %15428 = vxpose.xlu0.b32.cont [11/16] (narrow) %v15427_v19, 24  ;;  %v8081_v19 = vadd.f32 %v18379_v12, %v7451_v37  ;;  %v8083_v29 = vadd.f32 %v18379_v12, %v7461_v40 }
 0x607   :  { %v14037_v41 = vpop.f32.mrb[40].mxu1 }
 0x608   :  { %v7471_v42 = vpop.f32.mrb[41].mxu1 }
 0x609   :  { %15430 = vxpose.xlu0.b32.cont [12/16] (narrow) %v15429_v18, 24  ;;  %v8085_v35 = vadd.f32 %v18379_v12, %v7471_v42 }
 0x60b   :  { %v14040_v43 = vpop.f32.mrb[42].mxu1 }
 0x60c   :  { %v18457_v46 = vpop.f32.mrb[43].mxu1  ;;  %v8088_v39 = vadd.f32 %v14040_v43, %v18379_v12 }
 0x60d   :  { %15432 = vxpose.xlu0.b32.cont [13/16] (narrow) %v15431_v26, 24 }
 0x60f   :  { %v18459_v44 = vpop.f32.mrb[44].mxu1 }
 0x610   :  { %v18461_v45 = vpop.f32.mrb[45].mxu1 }
 0x611   :  { %15434 = vxpose.xlu0.b32.cont [14/16] (narrow) %v15433_v24, 24  ;;  %v8188_v24 = vld [vmem:[%s19224_s5 + $0x78] sm:$0xff]  ;;  %v8089_v43 = vadd.f32 %v18379_v12, %v18461_v45 }
 0x612   :  { %v18487_v28 = vpack.c.bf16 %v8188_v24, %v8187_v23 }
 0x613   :  { %v18463_v49 = vpop.f32.mrb[46].mxu1 }
 0x614   :  { %v18465_v47 = vpop.f32.mrb[47].mxu1  ;;  %14599 = vmatpush3.bf16.msra.mxu0 %v18487_v28  ;;  %14623 = vmatpush3.bf16.msra.mxu1 %v18487_v28 }
 0x615   :  { %15436 = vxpose.xlu0.b32.cont [15/16] (narrow) %v15435_v33, 24  ;;  %14624 = vmatprep.subr.bf16.mxu0 %v15661_v27  ;;  %v8086_v33 = vadd.f32 %v14037_v41, %v18379_v12 }
 0x616   :  { %14648 = vmatprep.subr.bf16.mxu1 %v15661_v27 }
 0x617   :  { %v14049_v54 = vpop.f32.mrb[48].mxu1 }
 0x618   :  { %v8094_v59 = vadd.f32 %v14049_v54, %v18379_v12  ;;  %v7511_v61 = vpop.f32.mrb[49].mxu1 }
 0x619   :  { %v8093_v53 = vadd.f32 %v18379_v12, %v7511_v61  ;;  %15438 = vxpose.xlu0.b32.end [16/16] (narrow) %v15437_v32, 24 }
 0x61a   :  { %v15456_v1 = vpack.i.bf16 %v8094_v59, %v8078_v57  ;;  %v8087_v57 = vadd.f32 %v18379_v12, %v18457_v46 }
 0x61b   :  { %v14052_v56 = vpop.f32.mrb[50].mxu1  ;;  %v15454_v4 = vpack.i.bf16 %v8093_v53, %v8077_v63  ;;  %v8090_v63 = vadd.f32 %v18459_v44, %v18379_v12  ;;  %v8091_v44 = vadd.f32 %v18379_v12, %v18465_v47 }
 0x61c   :  { %v8096_v10 = vadd.f32 %v14052_v56, %v18379_v12  ;;  %v7521_v11 = vpop.f32.mrb[51].mxu1 }
 0x61d   :  { %v8095_v14 = vadd.f32 %v18379_v12, %v7521_v11  ;;  %15455 = vxpose.xlu1.b32.start [1/16] (narrow) %v15454_v4, 24 }
 0x61e   :  { %v15460_v15 = vpack.i.bf16 %v8096_v10, %v8080_v8  ;;  %v8092_v10 = vadd.f32 %v18463_v49, %v18379_v12 }
 0x61f   :  { %v14055_v16 = vpop.f32.mrb[52].mxu1  ;;  %v15458_v58 = vpack.i.bf16 %v8095_v14, %v8079_v13 }
 0x620   :  { %v8098_v18 = vadd.f32 %v14055_v16, %v18379_v12  ;;  %v7531_v60 = vpop.f32.mrb[53].mxu1 }
 0x621   :  { %v8097_v20 = vadd.f32 %v18379_v12, %v7531_v60  ;;  %15457 = vxpose.xlu1.b32.cont [2/16] (narrow) %v15456_v1, 24 }
 0x622   :  { %v15464_v21 = vpack.i.bf16 %v8098_v18, %v8082_v17 }
 0x623   :  { %v14058_v22 = vpop.f32.mrb[54].mxu1  ;;  %v15462_v62 = vpack.i.bf16 %v8097_v20, %v8081_v19 }
 0x624   :  { %v8100_v26 = vadd.f32 %v14058_v22, %v18379_v12  ;;  %v7541_v2 = vpop.f32.mrb[55].mxu1 }
 0x625   :  { %v8099_v3 = vadd.f32 %v18379_v12, %v7541_v2  ;;  %15459 = vxpose.xlu1.b32.cont [3/16] (narrow) %v15458_v58, 24 }
 0x626   :  { %v15468_v30 = vpack.i.bf16 %v8100_v26, %v8084_v0 }
 0x627   :  { %v14061_v32 = vpop.f32.mrb[56].mxu1  ;;  %v15466_v5 = vpack.i.bf16 %v8099_v3, %v8083_v29 }
 0x628   :  { %v8102_v34 = vadd.f32 %v14061_v32, %v18379_v12  ;;  %v7551_v55 = vpop.f32.mrb[57].mxu1 }
 0x629   :  { %v8101_v36 = vadd.f32 %v18379_v12, %v7551_v55  ;;  %15461 = vxpose.xlu1.b32.cont [4/16] (narrow) %v15460_v15, 24 }
 0x62a   :  { %v15472_v37 = vpack.i.bf16 %v8102_v34, %v8086_v33 }
 0x62b   :  { %v14064_v9 = vpop.f32.mrb[58].mxu1  ;;  %v15470_v6 = vpack.i.bf16 %v8101_v36, %v8085_v35 }
 0x62c   :  { %v8104_v40 = vadd.f32 %v14064_v9, %v18379_v12  ;;  %v7561_v54 = vpop.f32.mrb[59].mxu1 }
 0x62d   :  { %v8103_v41 = vadd.f32 %v18379_v12, %v7561_v54  ;;  %15463 = vxpose.xlu1.b32.cont [5/16] (narrow) %v15462_v62, 24 }
 0x62e   :  { %v15476_v59 = vpack.i.bf16 %v8104_v40, %v8088_v39 }
 0x62f   :  { %v14067_v61 = vpop.f32.mrb[60].mxu1  ;;  %v15474_v42 = vpack.i.bf16 %v8103_v41, %v8087_v57 }
 0x630   :  { %v8106_v53 = vadd.f32 %v14067_v61, %v18379_v12  ;;  %v7571_v1 = vpop.f32.mrb[61].mxu1 }
 0x631   :  { %v8105_v56 = vadd.f32 %v18379_v12, %v7571_v1  ;;  %15465 = vxpose.xlu1.b32.cont [6/16] (narrow) %v15464_v21, 24 }
 0x632   :  { %v15480_v4 = vpack.i.bf16 %v8106_v53, %v8090_v63 }
 0x633   :  { %v14070_v46 = vpop.f32.mrb[62].mxu1  ;;  %v15478_v8 = vpack.i.bf16 %v8105_v56, %v8089_v43 }
 0x634   :  { %v8108_v11 = vadd.f32 %v14070_v46, %v18379_v12  ;;  %v7581_v13 = vpop.f32.mrb[63].mxu1 }
 0x635   :  { %v8107_v14 = vadd.f32 %v18379_v12, %v7581_v13  ;;  %15467 = vxpose.xlu1.b32.cont [7/16] (narrow) %v15466_v5, 24 }
 0x636   :  { %v15484_v15 = vpack.i.bf16 %v8108_v11, %v8092_v10 }
 0x637   :  { %v14073_v45 = vpop.f32.mrb[64].mxu1  ;;  %v15482_v16 = vpack.i.bf16 %v8107_v14, %v8091_v44 }
 0x638   :  { %v7591_v58 = vpop.f32.mrb[65].mxu1  ;;  %v8110_v29 = vadd.f32 %v14073_v45, %v18379_v12 }
 0x639   :  { %15469 = vxpose.xlu1.b32.cont [8/16] (narrow) %v15468_v30, 24  ;;  %v8109_v32 = vadd.f32 %v18379_v12, %v7591_v58 }
 0x63b   :  { %v14076_v17 = vpop.f32.mrb[66].mxu1 }
 0x63c   :  { %v7601_v18 = vpop.f32.mrb[67].mxu1  ;;  %v8112_v35 = vadd.f32 %v14076_v17, %v18379_v12 }
 0x63d   :  { %15471 = vxpose.xlu1.b32.cont [9/16] (narrow) %v15470_v6, 24  ;;  %v8111_v9 = vadd.f32 %v18379_v12, %v7601_v18 }
 0x63f   :  { %v14079_v49 = vpop.f32.mrb[68].mxu1 }
 0x640   :  { %v7611_v47 = vpop.f32.mrb[69].mxu1  ;;  %v18545_v61 = vadd.f32 %v14079_v49, %v18379_v12 }
 0x641   :  { %15473 = vxpose.xlu1.b32.cont [10/16] (narrow) %v15472_v37, 24  ;;  %v8113_v53 = vadd.f32 %v18379_v12, %v7611_v47 }
 0x643   :  { %v14082_v60 = vpop.f32.mrb[70].mxu1 }
 0x644   :  { %v7621_v19 = vpop.f32.mrb[71].mxu1  ;;  %v18559_v10 = vadd.f32 %v14082_v60, %v18379_v12 }
 0x645   :  { %15475 = vxpose.xlu1.b32.cont [11/16] (narrow) %v15474_v42, 24  ;;  %v18569_v14 = vadd.f32 %v18379_v12, %v7621_v19 }
 0x647   :  { %v18520_v20 = vpop.f32.mrb[72].mxu1 }
 0x648   :  { %v18522_v21 = vpop.f32.mrb[73].mxu1  ;;  %v18584_v18 = vadd.f32 %v18520_v20, %v18379_v12 }
 0x649   :  { %15477 = vxpose.xlu1.b32.cont [12/16] (narrow) %v15476_v59, 24 }
 0x64b   :  { %v18524_v22 = vpop.f32.mrb[74].mxu1 }
 0x64c   :  { %v18526_v62 = vpop.f32.mrb[75].mxu1 }
 0x64d   :  { %15479 = vxpose.xlu1.b32.cont [13/16] (narrow) %v15478_v8, 24 }
 0x64f   :  { %v18528_v23 = vpop.f32.mrb[76].mxu1 }
 0x650   :  { %v18530_v24 = vpop.f32.mrb[77].mxu1 }
 0x651   :  { %15481 = vxpose.xlu1.b32.cont [14/16] (narrow) %v15480_v4, 24 }
 0x653   :  { %v18532_v0 = vpop.f32.mrb[78].mxu1 }
 0x654   :  { %v18534_v26 = vpop.f32.mrb[79].mxu1 }
 0x655   :  { %15483 = vxpose.xlu1.b32.cont [15/16] (narrow) %v15482_v16, 24 }
 0x657   :  { %v14097_v2 = vpop.f32.mrb[80].mxu1 }
 0x658   :  { %v8126_v3 = vadd.f32 %v14097_v2, %v18379_v12  ;;  %v7671_v30 = vpop.f32.mrb[81].mxu1  ;;  %v8117_v2 = vadd.f32 %v18379_v12, %v18522_v21  ;;  %v18604_v21 = vadd.f32 %v18524_v22, %v18379_v12 }
 0x659   :  { %v8125_v5 = vadd.f32 %v18379_v12, %v7671_v30  ;;  %15485 = vxpose.xlu1.b32.end [16/16] (narrow) %v15484_v15, 24 }
 0x65a   :  { %v15503_v33 = vpack.i.bf16 %v8126_v3, %v8110_v29 }
 0x65b   :  { %v14100_v34 = vpop.f32.mrb[82].mxu1  ;;  %v15501_v55 = vpack.i.bf16 %v8125_v5, %v8109_v32 }
 0x65c   :  { %v8128_v36 = vadd.f32 %v14100_v34, %v18379_v12  ;;  %v7681_v37 = vpop.f32.mrb[83].mxu1 }
 0x65d   :  { %v8127_v6 = vadd.f32 %v18379_v12, %v7681_v37  ;;  %15502 = vxpose.xlu0.b32.start [1/16] (narrow) %v15501_v55, 24  ;;  %v15439_v39 = vpop.trf.xlu0 }
 0x65e   :  { %v15507_v40 = vpack.i.bf16 %v8128_v36, %v8112_v35  ;;  %v15443_v54 = vunpack.i.h.bf16 %v15439_v39  ;;  %v15440_v59 = vunpack.i.l.bf16 %v15439_v39 }
 0x65f   :  { %v15505_v57 = vpack.i.bf16 %v8127_v6, %v8111_v9  ;;  %v14103_v41 = vpop.f32.mrb[84].mxu1  ;;  %v8121_v9 = vadd.f32 %v18379_v12, %v18530_v24  ;;  %v8124_v24 = vadd.f32 %v18532_v0, %v18379_v12 }
 0x660   :  { %v18548_v42 = vadd.f32 %v14103_v41, %v18379_v12  ;;  %v7691_v63 = vpop.f32.mrb[85].mxu1  ;;  %14241 = vmatmul.mubr.f32.vlgmr.msra.gmra.mrb[128].mxu1 %v15443_v54  ;;  %14200 = vmatmul.mubr.f32.vlgmr.msra.gmra.mrb[128].mxu0 %v15440_v59  ;;  %v8123_v41 = vadd.f32 %v18379_v12, %v18534_v26 }
 0x661   :  { %v8129_v1 = vadd.f32 %v18379_v12, %v7691_v63  ;;  %15504 = vxpose.xlu0.b32.cont [2/16] (narrow) %v15503_v33, 24  ;;  %v15444_v43 = vpop.trf.xlu0  ;;  %14626 = vmatpush3.bf16.msra.mxu0 %v18221_v31  ;;  %v8119_v33 = vadd.f32 %v18379_v12, %v18526_v62  ;;  %v8122_v62 = vadd.f32 %v18528_v23, %v18379_v12 }
 0x662   :  { %v15511_v56 = vpack.i.bf16 %v18548_v42, %v18545_v61  ;;  %14650 = vmatpush3.bf16.msra.mxu1 %v18221_v31  ;;  %v15445_v4 = vunpack.i.l.bf16 %v15444_v43  ;;  %14627 = vmatprep.subr.bf16.mxu0 %v15661_v27  ;;  %v15448_v44 = vunpack.i.h.bf16 %v15444_v43 }
 0x663   :  { %v15509_v46 = vpack.i.bf16 %v8129_v1, %v8113_v53  ;;  %v14106_v8 = vpop.f32.mrb[86].mxu1  ;;  %14651 = vmatprep.subr.bf16.mxu1 %v15661_v27  ;;  %14202 = vmatprep.mubr.msk.f32.mxu0 %vm15662_vm2, %v15660_v50 }
 0x664   :  { %v18562_v11 = vadd.f32 %v14106_v8, %v18379_v12  ;;  %v7701_v13 = vpop.f32.mrb[87].mxu1  ;;  %14243 = vmatprep.mubr.msk.f32.mxu1 %vm15662_vm2, %v15660_v50  ;;  %14203 = vmatmul.mubr.f32.gmra.mrb[130].mxu0 %v15445_v4 }
 0x665   :  { %v18572_v15 = vadd.f32 %v18379_v12, %v7701_v13  ;;  %15506 = vxpose.xlu0.b32.cont [3/16] (narrow) %v15505_v57, 24  ;;  %v15449_v45 = vpop.trf.xlu0  ;;  %14629 = vmatpush3.bf16.msra.mxu0 %v18249_v48 }
 0x666   :  { %v15515_v16 = vpack.i.bf16 %v18562_v11, %v18559_v10  ;;  %14653 = vmatpush3.bf16.msra.mxu1 %v18249_v48  ;;  %14630 = vmatprep.subr.bf16.mxu0 %v15661_v27  ;;  %v15450_v60 = vunpack.i.l.bf16 %v15449_v45  ;;  %v15453_v19 = vunpack.i.h.bf16 %v15449_v45 }
 0x667   :  { %v15513_v58 = vpack.i.bf16 %v18572_v15, %v18569_v14  ;;  %v14109_v17 = vpop.f32.mrb[88].mxu1  ;;  %14654 = vmatprep.subr.bf16.mxu1 %v15661_v27  ;;  %14244 = vmatmul.mubr.f32.gmra.mrb[130].mxu1 %v15448_v44 }
 0x668   :  { %v18587_v49 = vadd.f32 %v14109_v17, %v18379_v12  ;;  %v7711_v47 = vpop.f32.mrb[89].mxu1  ;;  %14205 = vmatprep.mubr.msk.f32.mxu0 %vm15662_vm2, %v15660_v50  ;;  %14246 = vmatprep.mubr.msk.f32.mxu1 %vm15662_vm2, %v15660_v50 }
 0x669   :  { %v8133_v29 = vadd.f32 %v18379_v12, %v7711_v47  ;;  %15508 = vxpose.xlu0.b32.cont [4/16] (narrow) %v15507_v40, 24  ;;  %14632 = vmatpush3.bf16.msra.mxu0 %v18277_v7 }
 0x66a   :  { %v15519_v20 = vpack.i.bf16 %v18587_v49, %v18584_v18  ;;  %14656 = vmatpush3.bf16.msra.mxu1 %v18277_v7  ;;  %14633 = vmatprep.subr.bf16.mxu0 %v15661_v27 }
 0x66b   :  { %v15517_v3 = vpack.i.bf16 %v8133_v29, %v8117_v2  ;;  %v14112_v30 = vpop.f32.mrb[90].mxu1  ;;  %14657 = vmatprep.subr.bf16.mxu1 %v15661_v27  ;;  %14206 = vmatmul.mubr.f32.gmra.mrb[132].mxu0 %v15450_v60 }
 0x66c   :  { %v18607_v32 = vadd.f32 %v14112_v30, %v18379_v12  ;;  %v7721_v5 = vpop.f32.mrb[91].mxu1  ;;  %14247 = vmatmul.mubr.f32.gmra.mrb[132].mxu1 %v15453_v19  ;;  %14281 = vmatprep.mubr.msk.f32.mxu0 %vm15662_vm2, %v15660_v50 }
 0x66d   :  { %v8135_v34 = vadd.f32 %v18379_v12, %v7721_v5  ;;  %15510 = vxpose.xlu0.b32.cont [5/16] (narrow) %v15509_v46, 24  ;;  %14635 = vmatpush3.bf16.msra.mxu0 %v18305_v25 }
 0x66e   :  { %v15523_v55 = vpack.i.bf16 %v18607_v32, %v18604_v21  ;;  %14659 = vmatpush3.bf16.msra.mxu1 %v18305_v25  ;;  %14636 = vmatprep.subr.bf16.mxu0 %v15661_v27 }
 0x66f   :  { %v15521_v22 = vpack.i.bf16 %v8135_v34, %v8119_v33  ;;  %v14115_v35 = vpop.f32.mrb[92].mxu1  ;;  %14660 = vmatprep.subr.bf16.mxu1 %v15661_v27  ;;  %14322 = vmatprep.mubr.msk.f32.mxu1 %vm15662_vm2, %v15660_v50 }
 0x670   :  { %v8138_v36 = vadd.f32 %v14115_v35, %v18379_v12  ;;  %v7731_v37 = vpop.f32.mrb[93].mxu1 }
 0x671   :  { %v8137_v6 = vadd.f32 %v18379_v12, %v7731_v37  ;;  %15512 = vxpose.xlu0.b32.cont [6/16] (narrow) %v15511_v56, 24  ;;  %14638 = vmatpush3.bf16.msra.mxu0 %v18341_v52 }
 0x672   :  { %v15527_v39 = vpack.i.bf16 %v8138_v36, %v8122_v62  ;;  %14662 = vmatpush3.bf16.msra.mxu1 %v18341_v52  ;;  %14639 = vmatprep.subr.bf16.mxu0 %v15661_v27 }
 0x673   :  { %v15525_v23 = vpack.i.bf16 %v8137_v6, %v8121_v9  ;;  %v14118_v40 = vpop.f32.mrb[94].mxu1  ;;  %14663 = vmatprep.subr.bf16.mxu1 %v15661_v27 }
 0x674   :  { %v8140_v54 = vadd.f32 %v14118_v40, %v18379_v12  ;;  %v7741_v57 = vpop.f32.mrb[95].mxu1 }
 0x675   :  { %v8139_v59 = vadd.f32 %v18379_v12, %v7741_v57  ;;  %15514 = vxpose.xlu0.b32.cont [7/16] (narrow) %v15513_v58, 24  ;;  %14641 = vmatpush3.bf16.msra.mxu0 %v18412_v51 }
 0x676   :  { %v15531_v61 = vpack.i.bf16 %v8140_v54, %v8124_v24  ;;  %14665 = vmatpush3.bf16.msra.mxu1 %v18412_v51  ;;  %14642 = vmatprep.subr.bf16.mxu0 %v15661_v27 }
 0x677   :  { %v15529_v42 = vpack.i.bf16 %v8139_v59, %v8123_v41  ;;  %v14121_v63 = vpop.f32.mrb[96].mxu1  ;;  %14666 = vmatprep.subr.bf16.mxu1 %v15661_v27 }
 0x678   :  { %v7751_v0 = vpop.f32.mrb[97].mxu1 }
 0x679   :  { %15516 = vxpose.xlu0.b32.cont [8/16] (narrow) %v15515_v16, 24  ;;  %14644 = vmatpush3.bf16.msra.mxu0 %v18451_v38  ;;  %v8142_v16 = vadd.f32 %v14121_v63, %v18379_v12  ;;  %v8141_v18 = vadd.f32 %v18379_v12, %v7751_v0 }
 0x67a   :  { %14668 = vmatpush3.bf16.msra.mxu1 %v18451_v38  ;;  %14645 = vmatprep.subr.bf16.mxu0 %v15661_v27 }
 0x67b   :  { %v14124_v26 = vpop.f32.mrb[98].mxu1  ;;  %14669 = vmatprep.subr.bf16.mxu1 %v15661_v27 }
 0x67c   :  { %v7761_v53 = vpop.f32.mrb[99].mxu1  ;;  %v8144_v2 = vadd.f32 %v14124_v26, %v18379_v12 }
 0x67d   :  { %15518 = vxpose.xlu0.b32.cont [9/16] (narrow) %v15517_v3, 24  ;;  %14647 = vmatpush3.bf16.msra.mxu0 %v18487_v28  ;;  %v8143_v3 = vadd.f32 %v18379_v12, %v7761_v53 }
 0x67e   :  { %14671 = vmatpush3.bf16.msra.mxu1 %v18487_v28  ;;  %14672 = vmatprep.subr.bf16.mxu0 %v15661_v27 }
 0x67f   :  { %v14127_v1 = vpop.f32.mrb[100].mxu1  ;;  %14696 = vmatprep.subr.bf16.mxu1 %v15661_v27 }
 0x680   :  { %v7771_v43 = vpop.f32.mrb[101].mxu1 }
 0x681   :  { %15520 = vxpose.xlu0.b32.cont [10/16] (narrow) %v15519_v20, 24  ;;  %v8145_v36 = vadd.f32 %v18379_v12, %v7771_v43 }
 0x683   :  { %v14130_v56 = vpop.f32.mrb[102].mxu1 }
 0x684   :  { %v7781_v4 = vpop.f32.mrb[103].mxu1  ;;  %v18698_v24 = vadd.f32 %v14130_v56, %v18379_v12 }
 0x685   :  { %15522 = vxpose.xlu0.b32.cont [11/16] (narrow) %v15521_v22, 24  ;;  %v18684_v22 = vadd.f32 %v14127_v1, %v18379_v12  ;;  %v18708_v59 = vadd.f32 %v18379_v12, %v7781_v4 }
 0x687   :  { %v18659_v46 = vpop.f32.mrb[104].mxu1 }
 0x688   :  { %v18661_v8 = vpop.f32.mrb[105].mxu1  ;;  %v18723_v53 = vadd.f32 %v18659_v46, %v18379_v12 }
 0x689   :  { %15524 = vxpose.xlu0.b32.cont [12/16] (narrow) %v15523_v55, 24 }
 0x68b   :  { %v18663_v10 = vpop.f32.mrb[106].mxu1 }
 0x68c   :  { %v18665_v11 = vpop.f32.mrb[107].mxu1 }
 0x68d   :  { %15526 = vxpose.xlu0.b32.cont [13/16] (narrow) %v15525_v23, 24 }
 0x68f   :  { %v18667_v13 = vpop.f32.mrb[108].mxu1 }
 0x690   :  { %v18669_v44 = vpop.f32.mrb[109].mxu1 }
 0x691   :  { %15528 = vxpose.xlu0.b32.cont [14/16] (narrow) %v15527_v39, 24 }
 0x693   :  { %v18671_v14 = vpop.f32.mrb[110].mxu1 }
 0x694   :  { %v18673_v15 = vpop.f32.mrb[111].mxu1 }
 0x695   :  { %15530 = vxpose.xlu0.b32.cont [15/16] (narrow) %v15529_v42, 24 }
 0x697   :  { %v14145_v45 = vpop.f32.mrb[112].mxu1 }
 0x698   :  { %v8158_v58 = vadd.f32 %v14145_v45, %v18379_v12  ;;  %v7831_v17 = vpop.f32.mrb[113].mxu1  ;;  %v8149_v45 = vadd.f32 %v18379_v12, %v18661_v8  ;;  %v8152_v8 = vadd.f32 %v18663_v10, %v18379_v12 }
 0x699   :  { %v8157_v49 = vadd.f32 %v18379_v12, %v7831_v17  ;;  %15532 = vxpose.xlu0.b32.end [16/16] (narrow) %v15531_v61, 24 }
 0x69a   :  { %v15550_v47 = vpack.i.bf16 %v8158_v58, %v8142_v16 }
 0x69b   :  { %v14148_v60 = vpop.f32.mrb[114].mxu1  ;;  %v15548_v19 = vpack.i.bf16 %v8157_v49, %v8141_v18 }
 0x69c   :  { %v8160_v29 = vadd.f32 %v14148_v60, %v18379_v12  ;;  %v7841_v20 = vpop.f32.mrb[115].mxu1 }
 0x69d   :  { %v8159_v30 = vadd.f32 %v18379_v12, %v7841_v20  ;;  %15549 = vxpose.xlu1.b32.start [1/16] (narrow) %v15548_v19, 24  ;;  %v15486_v21 = vpop.trf.xlu1 }
 0x69e   :  { %v15554_v32 = vpack.i.bf16 %v8160_v29, %v8144_v2  ;;  %v15490_v5 = vunpack.i.h.bf16 %v15486_v21  ;;  %v15487_v55 = vunpack.i.l.bf16 %v15486_v21 }
 0x69f   :  { %v15552_v33 = vpack.i.bf16 %v8159_v30, %v8143_v3  ;;  %v14151_v34 = vpop.f32.mrb[116].mxu1  ;;  %v8153_v3 = vadd.f32 %v18379_v12, %v18669_v44  ;;  %v8156_v44 = vadd.f32 %v18671_v14, %v18379_v12 }
 0x6a0   :  { %v18687_v35 = vadd.f32 %v14151_v34, %v18379_v12  ;;  %v7851_v62 = vpop.f32.mrb[117].mxu1  ;;  %14323 = vmatmul.mubr.f32.vlgmr.msra.gmra.mrb[134].mxu1 %v15490_v5  ;;  %14282 = vmatmul.mubr.f32.vlgmr.msra.gmra.mrb[134].mxu0 %v15487_v55  ;;  %v8155_v34 = vadd.f32 %v18379_v12, %v18673_v15 }
 0x6a1   :  { %v8161_v37 = vadd.f32 %v18379_v12, %v7851_v62  ;;  %15551 = vxpose.xlu1.b32.cont [2/16] (narrow) %v15550_v47, 24  ;;  %v15491_v9 = vpop.trf.xlu1  ;;  %14674 = vmatpush3.bf16.msra.mxu0 %v18221_v31  ;;  %v8151_v47 = vadd.f32 %v18379_v12, %v18665_v11  ;;  %v8154_v11 = vadd.f32 %v18667_v13, %v18379_v12 }
 0x6a2   :  { %v15558_v6 = vpack.i.bf16 %v18687_v35, %v18684_v22  ;;  %14698 = vmatpush3.bf16.msra.mxu1 %v18221_v31  ;;  %v15492_v39 = vunpack.i.l.bf16 %v15491_v9  ;;  %14675 = vmatprep.subr.bf16.mxu0 %v15661_v27  ;;  %v15495_v41 = vunpack.i.h.bf16 %v15491_v9 }
 0x6a3   :  { %v15556_v23 = vpack.i.bf16 %v8161_v37, %v8145_v36  ;;  %v14154_v40 = vpop.f32.mrb[118].mxu1  ;;  %14699 = vmatprep.subr.bf16.mxu1 %v15661_v27  ;;  %14284 = vmatprep.mubr.msk.f32.mxu0 %vm15662_vm2, %v15660_v50 }
 0x6a4   :  { %v18701_v54 = vadd.f32 %v14154_v40, %v18379_v12  ;;  %v7861_v57 = vpop.f32.mrb[119].mxu1  ;;  %14325 = vmatprep.mubr.msk.f32.mxu1 %vm15662_vm2, %v15660_v50  ;;  %14285 = vmatmul.mubr.f32.gmra.mrb[136].mxu0 %v15492_v39 }
 0x6a5   :  { %v18711_v61 = vadd.f32 %v18379_v12, %v7861_v57  ;;  %15553 = vxpose.xlu1.b32.cont [3/16] (narrow) %v15552_v33, 24  ;;  %v15496_v42 = vpop.trf.xlu1  ;;  %14677 = vmatpush3.bf16.msra.mxu0 %v18249_v48 }
 0x6a6   :  { %v15562_v63 = vpack.i.bf16 %v18701_v54, %v18698_v24  ;;  %14701 = vmatpush3.bf16.msra.mxu1 %v18249_v48  ;;  %14678 = vmatprep.subr.bf16.mxu0 %v15661_v27  ;;  %v15497_v56 = vunpack.i.l.bf16 %v15496_v42  ;;  %v15500_v4 = vunpack.i.h.bf16 %v15496_v42  ;;  %v8315_v24 = vlaneseq }
 0x6a7   :  { %v15560_v0 = vpack.i.bf16 %v18711_v61, %v18708_v59  ;;  %v14157_v26 = vpop.f32.mrb[120].mxu1  ;;  %14702 = vmatprep.subr.bf16.mxu1 %v15661_v27  ;;  %14326 = vmatmul.mubr.f32.gmra.mrb[136].mxu1 %v15495_v41  ;;  %v18844_v41 = vld [vmem:[%s19226_s7] ss:$0 sm:$0xff] }
 0x6a8   :  { %v18726_v1 = vadd.f32 %v14157_v26, %v18379_v12  ;;  %v7871_v43 = vpop.f32.mrb[121].mxu1  ;;  %14287 = vmatprep.mubr.msk.f32.mxu0 %vm15662_vm2, %v15660_v50  ;;  %14328 = vmatprep.mubr.msk.f32.mxu1 %vm15662_vm2, %v15660_v50  ;;  %v18839_v57 = vshrl.u32 %v8315_v24, 7 }
 0x6a9   :  { %v8165_v16 = vadd.f32 %v18379_v12, %v7871_v43  ;;  %15555 = vxpose.xlu1.b32.cont [4/16] (narrow) %v15554_v32, 24  ;;  %14680 = vmatpush3.bf16.msra.mxu0 %v18277_v7 }
 0x6aa   :  { %v15566_v46 = vpack.i.bf16 %v18726_v1, %v18723_v53  ;;  %14704 = vmatpush3.bf16.msra.mxu1 %v18277_v7  ;;  %14681 = vmatprep.subr.bf16.mxu0 %v15661_v27 }
 0x6ab   :  { %v15564_v58 = vpack.i.bf16 %v8165_v16, %v8149_v45  ;;  %v14160_v17 = vpop.f32.mrb[122].mxu1  ;;  %14705 = vmatprep.subr.bf16.mxu1 %v15661_v27  ;;  %14288 = vmatmul.mubr.f32.gmra.mrb[138].mxu0 %v15497_v56 }
 0x6ac   :  { %v8168_v18 = vadd.f32 %v14160_v17, %v18379_v12  ;;  %v7881_v49 = vpop.f32.mrb[123].mxu1  ;;  %14329 = vmatmul.mubr.f32.gmra.mrb[138].mxu1 %v15500_v4  ;;  %14363 = vmatprep.mubr.msk.f32.mxu0 %vm15662_vm2, %v15660_v50 }
 0x6ad   :  { %v8167_v60 = vadd.f32 %v18379_v12, %v7881_v49  ;;  %15557 = vxpose.xlu1.b32.cont [5/16] (narrow) %v15556_v23, 24  ;;  %14683 = vmatpush3.bf16.msra.mxu0 %v18305_v25  ;;  %v15663_v23 = vmov 1966171168  }
 0x6ae   :  { %v15570_v19 = vpack.i.bf16 %v8168_v18, %v8152_v8  ;;  %14707 = vmatpush3.bf16.msra.mxu1 %v18305_v25  ;;  %14684 = vmatprep.subr.bf16.mxu0 %v15661_v27  ;;  %v8313_v40 = vunpack.c.l.s4 %v15663_v23 }
 0x6af   :  { %v15568_v10 = vpack.i.bf16 %v8167_v60, %v8151_v47  ;;  %v14163_v2 = vpop.f32.mrb[124].mxu1  ;;  %14708 = vmatprep.subr.bf16.mxu1 %v15661_v27  ;;  %14404 = vmatprep.mubr.msk.f32.mxu1 %vm15662_vm2, %v15660_v50 }
 0x6b0   :  { %v8170_v29 = vadd.f32 %v14163_v2, %v18379_v12  ;;  %v7891_v20 = vpop.f32.mrb[125].mxu1  ;;  %v8314_v54 = vunpack.c.0.s8 %v8313_v40 }
 0x6b1   :  { %v8169_v30 = vadd.f32 %v18379_v12, %v7891_v20  ;;  %15559 = vxpose.xlu1.b32.cont [6/16] (narrow) %v15558_v6, 24  ;;  %14686 = vmatpush3.bf16.msra.mxu0 %v18341_v52 }
 0x6b2   :  { %v15574_v21 = vpack.i.bf16 %v8170_v29, %v8154_v11  ;;  %14710 = vmatpush3.bf16.msra.mxu1 %v18341_v52  ;;  %14687 = vmatprep.subr.bf16.mxu0 %v15661_v27  ;;  %v18847_v59 = vsub.s32 %v8314_v54, %v18839_v57 }
 0x6b3   :  { %v15572_v13 = vpack.i.bf16 %v8169_v30, %v8153_v3  ;;  %v14166_v32 = vpop.f32.mrb[126].mxu1  ;;  %14711 = vmatprep.subr.bf16.mxu1 %v15661_v27 }
 0x6b4   :  { %v8172_v5 = vadd.f32 %v14166_v32, %v18379_v12  ;;  %v7901_v33 = vpop.f32.mrb[127].mxu1 }
 0x6b5   :  { %v8171_v55 = vadd.f32 %v18379_v12, %v7901_v33  ;;  %15561 = vxpose.xlu1.b32.cont [7/16] (narrow) %v15560_v0, 24  ;;  %14689 = vmatpush3.bf16.msra.mxu0 %v18412_v51 }
 0x6b6   :  { %v15578_v22 = vpack.i.bf16 %v8172_v5, %v8156_v44  ;;  %14713 = vmatpush3.bf16.msra.mxu1 %v18412_v51  ;;  %14690 = vmatprep.subr.bf16.mxu0 %v15661_v27 }
 0x6b7   :  { %v15576_v35 = vpack.i.bf16 %v8171_v55, %v8155_v34  ;;  %14714 = vmatprep.subr.bf16.mxu1 %v15661_v27 }
 0x6b9   :  { %15563 = vxpose.xlu1.b32.cont [8/16] (narrow) %v15562_v63, 24  ;;  %14692 = vmatpush3.bf16.msra.mxu0 %v18451_v38 }
 0x6ba   :  { %14716 = vmatpush3.bf16.msra.mxu1 %v18451_v38  ;;  %14693 = vmatprep.subr.bf16.mxu0 %v15661_v27 }
 0x6bb   :  { %14717 = vmatprep.subr.bf16.mxu1 %v15661_v27 }
 0x6bd   :  { %15565 = vxpose.xlu1.b32.cont [9/16] (narrow) %v15564_v58, 24  ;;  %14695 = vmatpush3.bf16.msra.mxu0 %v18487_v28 }
 0x6be   :  { %14719 = vmatpush3.bf16.msra.mxu1 %v18487_v28  ;;  %14720 = vmatprep.subr.bf16.mxu0 %v15661_v27 }
 0x6bf   :  { %14744 = vmatprep.subr.bf16.mxu1 %v15661_v27 }
 0x6c1   :  { %15567 = vxpose.xlu1.b32.cont [10/16] (narrow) %v15566_v46, 24 }
 0x6c5   :  { %15569 = vxpose.xlu1.b32.cont [11/16] (narrow) %v15568_v10, 24 }
 0x6c9   :  { %15571 = vxpose.xlu1.b32.cont [12/16] (narrow) %v15570_v19, 24 }
 0x6cd   :  { %15573 = vxpose.xlu1.b32.cont [13/16] (narrow) %v15572_v13, 24 }
 0x6d1   :  { %15575 = vxpose.xlu1.b32.cont [14/16] (narrow) %v15574_v21, 24 }
 0x6d5   :  { %15577 = vxpose.xlu1.b32.cont [15/16] (narrow) %v15576_v35, 24 }
 0x6d9   :  { %15579 = vxpose.xlu1.b32.end [16/16] (narrow) %v15578_v22, 24 }
 0x6dd   :  { %v15533_v12 = vpop.trf.xlu0 }
 0x6de   :  { %v15537_v14 = vunpack.i.h.bf16 %v15533_v12  ;;  %v15534_v15 = vunpack.i.l.bf16 %v15533_v12 }
 0x6e0   :  { %14364 = vmatmul.mubr.f32.vlgmr.msra.gmra.mrb[140].mxu0 %v15534_v15  ;;  %14405 = vmatmul.mubr.f32.vlgmr.msra.gmra.mrb[140].mxu1 %v15537_v14 }
 0x6e1   :  { %14722 = vmatpush3.bf16.msra.mxu0 %v18221_v31  ;;  %14746 = vmatpush3.bf16.msra.mxu1 %v18221_v31  ;;  %v15538_v62 = vpop.trf.xlu0 }
 0x6e2   :  { %14723 = vmatprep.subr.bf16.mxu0 %v15661_v27  ;;  %14747 = vmatprep.subr.bf16.mxu1 %v15661_v27  ;;  %v15539_v36 = vunpack.i.l.bf16 %v15538_v62  ;;  %v15542_v37 = vunpack.i.h.bf16 %v15538_v62 }
 0x6e3   :  { %14366 = vmatprep.mubr.msk.f32.mxu0 %vm15662_vm2, %v15660_v50  ;;  %14407 = vmatprep.mubr.msk.f32.mxu1 %vm15662_vm2, %v15660_v50 }
 0x6e4   :  { %14367 = vmatmul.mubr.f32.gmra.mrb[142].mxu0 %v15539_v36  ;;  %14408 = vmatmul.mubr.f32.gmra.mrb[142].mxu1 %v15542_v37 }
 0x6e5   :  { %14725 = vmatpush3.bf16.msra.mxu0 %v18249_v48  ;;  %14749 = vmatpush3.bf16.msra.mxu1 %v18249_v48  ;;  %v15543_v31 = vpop.trf.xlu0 }
 0x6e6   :  { %14726 = vmatprep.subr.bf16.mxu0 %v15661_v27  ;;  %14750 = vmatprep.subr.bf16.mxu1 %v15661_v27  ;;  %v15547_v9 = vunpack.i.h.bf16 %v15543_v31  ;;  %v15544_v6 = vunpack.i.l.bf16 %v15543_v31 }
 0x6e7   :  { %14369 = vmatprep.mubr.msk.f32.mxu0 %vm15662_vm2, %v15660_v50  ;;  %14410 = vmatprep.mubr.msk.f32.mxu1 %vm15662_vm2, %v15660_v50 }
 0x6e8   :  { %14370 = vmatmul.mubr.f32.gmra.mrb[144].mxu0 %v15544_v6  ;;  %14411 = vmatmul.mubr.f32.gmra.mrb[144].mxu1 %v15547_v9 }
 0x6e9   :  { %14728 = vmatpush3.bf16.msra.mxu0 %v18277_v7  ;;  %14752 = vmatpush3.bf16.msra.mxu1 %v18277_v7 }
 0x6ea   :  { %14729 = vmatprep.subr.bf16.mxu0 %v15661_v27  ;;  %14753 = vmatprep.subr.bf16.mxu1 %v15661_v27 }
 0x6eb   :  { %14445 = vmatprep.mubr.msk.f32.mxu0 %vm15662_vm2, %v15660_v50  ;;  %14486 = vmatprep.mubr.msk.f32.mxu1 %vm15662_vm2, %v15660_v50 }
 0x6ed   :  { %14731 = vmatpush3.bf16.msra.mxu0 %v18305_v25  ;;  %14755 = vmatpush3.bf16.msra.mxu1 %v18305_v25 }
 0x6ee   :  { %14732 = vmatprep.subr.bf16.mxu0 %v15661_v27  ;;  %14756 = vmatprep.subr.bf16.mxu1 %v15661_v27 }
 0x6f1   :  { %14734 = vmatpush3.bf16.msra.mxu0 %v18341_v52  ;;  %14758 = vmatpush3.bf16.msra.mxu1 %v18341_v52 }
 0x6f2   :  { %14735 = vmatprep.subr.bf16.mxu0 %v15661_v27  ;;  %14759 = vmatprep.subr.bf16.mxu1 %v15661_v27 }
 0x6f5   :  { %14737 = vmatpush3.bf16.msra.mxu0 %v18412_v51  ;;  %14761 = vmatpush3.bf16.msra.mxu1 %v18412_v51 }
 0x6f6   :  { %14738 = vmatprep.subr.bf16.mxu0 %v15661_v27  ;;  %14762 = vmatprep.subr.bf16.mxu1 %v15661_v27 }
 0x6f9   :  { %14740 = vmatpush3.bf16.msra.mxu0 %v18451_v38  ;;  %14764 = vmatpush3.bf16.msra.mxu1 %v18451_v38 }
 0x6fa   :  { %14741 = vmatprep.subr.bf16.mxu0 %v15661_v27  ;;  %14765 = vmatprep.subr.bf16.mxu1 %v15661_v27 }
 0x6fd   :  { %14743 = vmatpush3.bf16.msra.mxu0 %v18487_v28  ;;  %14767 = vmatpush3.bf16.msra.mxu1 %v18487_v28 }
 0x71d   :  { %v15580_v48 = vpop.trf.xlu1 }
 0x71e   :  { %v15584_v7 = vunpack.i.h.bf16 %v15580_v48  ;;  %v15581_v25 = vunpack.i.l.bf16 %v15580_v48 }
 0x720   :  { %14446 = vmatmul.mubr.f32.vlgmr.msra.gmra.mrb[146].mxu0 %v15581_v25  ;;  %14487 = vmatmul.mubr.f32.vlgmr.msra.gmra.mrb[146].mxu1 %v15584_v7 }
 0x721   :  { %v15585_v52 = vpop.trf.xlu1  ;;  %14448 = vmatprep.mubr.msk.f32.mxu0 %vm15662_vm2, %v15660_v50  ;;  %14489 = vmatprep.mubr.msk.f32.mxu1 %vm15662_vm2, %v15660_v50 }
 0x722   :  { %v15586_v51 = vunpack.i.l.bf16 %v15585_v52  ;;  %v15589_v38 = vunpack.i.h.bf16 %v15585_v52 }
 0x724   :  { %14449 = vmatmul.mubr.f32.gmra.mrb[148].mxu0 %v15586_v51  ;;  %14490 = vmatmul.mubr.f32.gmra.mrb[148].mxu1 %v15589_v38 }
 0x725   :  { %v15590_v27 = vpop.trf.xlu1  ;;  %14451 = vmatprep.mubr.msk.f32.mxu0 %vm15662_vm2, %v15660_v50  ;;  %14492 = vmatprep.mubr.msk.f32.mxu1 %vm15662_vm2, %v15660_v50 }
 0x726   :  { %v15594_v28 = vunpack.i.h.bf16 %v15590_v27  ;;  %v15591_v39 = vunpack.i.l.bf16 %v15590_v27 }
 0x728   :  { %14452 = vmatmul.mubr.f32.gmra.mrb[150].mxu0 %v15591_v39  ;;  %14493 = vmatmul.mubr.f32.gmra.mrb[150].mxu1 %v15594_v28 }
 0x733   :  { %v8565_v61 = vpop.f32.mrb[128].mxu1  ;;  %v8294_v42 = vpop.f32.mrb[128].mxu0 }
 0x734   :  { %v8566_v63 = vadd.f32 %v18844_v41, %v8565_v61  ;;  %v14242_v0 = vpop.f32.mrb[129].mxu1  ;;  %v8295_v26 = vadd.f32 %v18844_v41, %v8294_v42  ;;  %v14201_v53 = vpop.f32.mrb[129].mxu0 }
 0x736   :  { %v8582_v1 = vcombine.high %v8566_v63, %v8566_v63  ;;  %v8589_v43 = vrot.slane %v8566_v63, %v18847_v59  ;;  %v8311_v56 = vcombine.high %v8295_v26, %v8295_v26  ;;  %v8318_v4 = vrot.slane %v8295_v26, %v18847_v59 }
 0x737   :  { %v8299_v58 = vpop.f32.mrb[130].mxu0 }
 0x738   :  { %v8596_v45 = vrot.slane %v8582_v1, %v18847_v59  ;;  %v8597_v16 = vcombine.high %v8589_v43, %v8589_v43  ;;  %v8605_v46 = vrot.slane %v8589_v43, %v18847_v59  ;;  %11886 = vst.sshfl [vmem:[#allocation3 + $0x1] sm:$0x1 pattern:$0x73625140] %v8589_v43  ;;  %v8325_v17 = vrot.slane %v8311_v56, %v18847_v59  ;;  %v14204_v47 = vpop.f32.mrb[131].mxu0 }
 0x739   :  { %v8326_v8 = vcombine.high %v8318_v4, %v8318_v4  ;;  %v8334_v18 = vrot.slane %v8318_v4, %v18847_v59  ;;  %11876 = vst.sshfl [vmem:[#allocation3] sm:$0x1 pattern:$0x73625140] %v8318_v4  ;;  %v8300_v49 = vadd.f32 %v18844_v41, %v8299_v58 }
 0x73a   :  { %v8598_v60 = vcombine.high %v8596_v45, %v8596_v45  ;;  %v8612_v19 = vrot.slane %v8596_v45, %v18847_v59  ;;  %v8619_v10 = vrot.slane %v8597_v16, %v18847_v59  ;;  %v8627_v2 = vcombine.high %v8605_v46, %v8605_v46  ;;  %11887 = vst.sshfl [vmem:[#allocation3 + $0x9] sm:$0x1 pattern:$0x73625140] %v8597_v16  ;;  %v8570_v30 = vpop.f32.mrb[130].mxu1 }
 0x73b   :  { %11888 = vst.sshfl [vmem:[#allocation3 + $0x21] sm:$0x1 pattern:$0x73625140] %v8596_v45  ;;  %v8327_v11 = vcombine.high %v8325_v17, %v8325_v17  ;;  %v8341_v29 = vrot.slane %v8325_v17, %v18847_v59  ;;  %v8348_v20 = vrot.slane %v8326_v8, %v18847_v59  ;;  %v8356_v3 = vcombine.high %v8334_v18, %v8334_v18  ;;  %v14245_v5 = vpop.f32.mrb[131].mxu1 }
 0x73c   :  { %11877 = vst.sshfl [vmem:[#allocation3 + $0x8] sm:$0x1 pattern:$0x73625140] %v8326_v8  ;;  %v8626_v21 = vrot.slane %v8598_v60, %v18847_v59  ;;  %v8628_v13 = vcombine.high %v8612_v19, %v8612_v19  ;;  %v8629_v32 = vcombine.high %v8619_v10, %v8619_v10  ;;  %8722 = vst [vmem:[#allocation3 + $0x11] sm:$0x1] %v8627_v2 }
 0x73d   :  { %11878 = vst.sshfl [vmem:[#allocation3 + $0x20] sm:$0x1 pattern:$0x73625140] %v8325_v17  ;;  %v8360_v44 = vcombine.high %v8300_v49, %v8300_v49  ;;  %v8355_v33 = vrot.slane %v8327_v11, %v18847_v59  ;;  %v8357_v34 = vcombine.high %v8341_v29, %v8341_v29  ;;  %v8358_v55 = vcombine.high %v8348_v20, %v8348_v20 }
 0x73e   :  { %11889 = vst.sshfl [vmem:[#allocation3 + $0x29] sm:$0x1 pattern:$0x73625140] %v8598_v60  ;;  %8451 = vst [vmem:[#allocation3 + $0x10] sm:$0x1] %v8356_v3  ;;  %v8367_v22 = vrot.slane %v8300_v49, %v18847_v59  ;;  %v8630_v35 = vcombine.high %v8626_v21, %v8626_v21  ;;  %v8571_v14 = vadd.f32 %v18844_v41, %v8570_v30 }
 0x73f   :  { %11879 = vst.sshfl [vmem:[#allocation3 + $0x28] sm:$0x1 pattern:$0x73625140] %v8327_v11  ;;  %8723 = vst [vmem:[#allocation3 + $0x19] sm:$0x1] %v8629_v32  ;;  %v8374_v12 = vrot.slane %v8360_v44, %v18847_v59  ;;  %v8359_v15 = vcombine.high %v8355_v33, %v8355_v33 }
 0x740   :  { %8726 = vst [vmem:[#allocation3 + $0x31] sm:$0x1] %v8628_v13  ;;  %8452 = vst [vmem:[#allocation3 + $0x18] sm:$0x1] %v8358_v55  ;;  %v8375_v62 = vcombine.high %v8367_v22, %v8367_v22  ;;  %v8383_v36 = vrot.slane %v8367_v22, %v18847_v59  ;;  %v8304_v37 = vpop.f32.mrb[132].mxu0  ;;  %v8575_v31 = vpop.f32.mrb[132].mxu1  ;;  %v8631_v48 = vcombine.high %v8571_v14, %v8571_v14 }
 0x741   :  { %8455 = vst [vmem:[#allocation3 + $0x30] sm:$0x1] %v8357_v34  ;;  %11880 = vst.sshfl [vmem:[#allocation3 + $0x40] sm:$0x1 pattern:$0x73625140] %v8367_v22  ;;  %v8376_v9 = vcombine.high %v8374_v12, %v8374_v12  ;;  %v8390_v6 = vrot.slane %v8374_v12, %v18847_v59  ;;  %v8638_v7 = vrot.slane %v8571_v14, %v18847_v59 }
 0x742   :  { %8727 = vst [vmem:[#allocation3 + $0x39] sm:$0x1] %v8630_v35  ;;  %11882 = vst.sshfl [vmem:[#allocation3 + $0x60] sm:$0x1 pattern:$0x73625140] %v8374_v12  ;;  %v8397_v51 = vrot.slane %v8375_v62, %v18847_v59  ;;  %v8405_v38 = vcombine.high %v8383_v36, %v8383_v36  ;;  %v8305_v27 = vadd.f32 %v18844_v41, %v8304_v37 }
 0x743   :  { %v14207_v25 = vpop.f32.mrb[133].mxu0  ;;  %v14248_v52 = vpop.f32.mrb[133].mxu1  ;;  %8456 = vst [vmem:[#allocation3 + $0x38] sm:$0x1] %v8359_v15  ;;  %v8576_v28 = vadd.f32 %v18844_v41, %v8575_v31  ;;  %v8404_v39 = vrot.slane %v8376_v9, %v18847_v59  ;;  %v8406_v23 = vcombine.high %v8390_v6, %v8390_v6  ;;  %v8645_v40 = vrot.slane %v8631_v48, %v18847_v59 }
 0x744   :  { %11881 = vst.sshfl [vmem:[#allocation3 + $0x48] sm:$0x1 pattern:$0x73625140] %v8375_v62  ;;  %v8646_v24 = vcombine.high %v8638_v7, %v8638_v7  ;;  %v8407_v54 = vcombine.high %v8397_v51, %v8397_v51  ;;  %8459 = vst [vmem:[#allocation3 + $0x50] sm:$0x1] %v8405_v38  ;;  %v8654_v61 = vrot.slane %v8638_v7, %v18847_v59 }
 0x745   :  { %11883 = vst.sshfl [vmem:[#allocation3 + $0x68] sm:$0x1 pattern:$0x73625140] %v8376_v9  ;;  %v8415_v42 = vrot.slane %v8305_v27, %v18847_v59  ;;  %v8686_v63 = vrot.slane %v8576_v28, %v18847_v59  ;;  %v8408_v0 = vcombine.high %v8404_v39, %v8404_v39  ;;  %8463 = vst [vmem:[#allocation3 + $0x70] sm:$0x1] %v8406_v23 }
 0x746   :  { %11890 = vst.sshfl [vmem:[#allocation3 + $0x41] sm:$0x1 pattern:$0x73625140] %v8638_v7  ;;  %v8647_v26 = vcombine.high %v8645_v40, %v8645_v40  ;;  %v8661_v53 = vrot.slane %v8645_v40, %v18847_v59  ;;  %v8668_v1 = vrot.slane %v8646_v24, %v18847_v59  ;;  %8460 = vst [vmem:[#allocation3 + $0x58] sm:$0x1] %v8407_v54 }
 0x747   :  { %11891 = vst.sshfl [vmem:[#allocation3 + $0x49] sm:$0x1 pattern:$0x73625140] %v8646_v24  ;;  %v8676_v43 = vcombine.high %v8654_v61, %v8654_v61  ;;  %v8416_v56 = vcombine.high %v8415_v42, %v8415_v42  ;;  %v8687_v4 = vcombine.high %v8686_v63, %v8686_v63  ;;  %8464 = vst [vmem:[#allocation3 + $0x78] sm:$0x1] %v8408_v0 }
 0x748   :  { %11892 = vst.sshfl [vmem:[#allocation3 + $0x61] sm:$0x1 pattern:$0x73625140] %v8645_v40  ;;  %v8675_v45 = vrot.slane %v8647_v26, %v18847_v59  ;;  %v8677_v16 = vcombine.high %v8661_v53, %v8661_v53  ;;  %v8678_v46 = vcombine.high %v8668_v1, %v8668_v1 }
 0x749   :  { %11884 = vst.sshfl [vmem:[#allocation3 + $0x80] sm:$0x1 pattern:$0x73625140] %v8415_v42  ;;  %8730 = vst [vmem:[#allocation3 + $0x51] sm:$0x1] %v8676_v43 }
 0x74a   :  { %11894 = vst.sshfl [vmem:[#allocation3 + $0x81] sm:$0x1 pattern:$0x73625140] %v8686_v63  ;;  %v8679_v58 = vcombine.high %v8675_v45, %v8675_v45  ;;  %8731 = vst [vmem:[#allocation3 + $0x59] sm:$0x1] %v8678_v46 }
 0x74b   :  { %11893 = vst.sshfl [vmem:[#allocation3 + $0x69] sm:$0x1 pattern:$0x73625140] %v8647_v26  ;;  %8734 = vst [vmem:[#allocation3 + $0x71] sm:$0x1] %v8677_v16 }
 0x74c   :  { %11885 = vst.sshfl [vmem:[#allocation3 + $0x88] sm:$0x1 pattern:$0x73625140] %v8416_v56  ;;  %8735 = vst [vmem:[#allocation3 + $0x79] sm:$0x1] %v8679_v58 }
 0x74d   :  { %11895 = vst.sshfl [vmem:[#allocation3 + $0x89] sm:$0x1 pattern:$0x73625140] %v8687_v4 }
 0x773   :  { %v9107_v17 = vpop.f32.mrb[134].mxu1  ;;  %v8836_v8 = vpop.f32.mrb[134].mxu0 }
 0x774   :  { %v9108_v18 = vadd.f32 %v18844_v41, %v9107_v17  ;;  %v14324_v49 = vpop.f32.mrb[135].mxu1  ;;  %v8837_v47 = vadd.f32 %v18844_v41, %v8836_v8  ;;  %v14283_v60 = vpop.f32.mrb[135].mxu0 }
 0x776   :  { %v9124_v19 = vcombine.high %v9108_v18, %v9108_v18  ;;  %v9131_v10 = vrot.slane %v9108_v18, %v18847_v59  ;;  %v8853_v2 = vcombine.high %v8837_v47, %v8837_v47  ;;  %v8860_v11 = vrot.slane %v8837_v47, %v18847_v59 }
 0x777   :  { %v8841_v30 = vpop.f32.mrb[136].mxu0 }
 0x778   :  { %v9138_v29 = vrot.slane %v9124_v19, %v18847_v59  ;;  %v9139_v20 = vcombine.high %v9131_v10, %v9131_v10  ;;  %v9147_v3 = vrot.slane %v9131_v10, %v18847_v59  ;;  %11906 = vst.sshfl [vmem:[#allocation3 + $0x3] sm:$0x1 pattern:$0x73625140] %v9131_v10  ;;  %v8867_v21 = vrot.slane %v8853_v2, %v18847_v59  ;;  %v14286_v5 = vpop.f32.mrb[137].mxu0 }
 0x779   :  { %v8868_v13 = vcombine.high %v8860_v11, %v8860_v11  ;;  %v8876_v32 = vrot.slane %v8860_v11, %v18847_v59  ;;  %11896 = vst.sshfl [vmem:[#allocation3 + $0x2] sm:$0x1 pattern:$0x73625140] %v8860_v11  ;;  %v8842_v44 = vadd.f32 %v18844_v41, %v8841_v30 }
 0x77a   :  { %v9140_v33 = vcombine.high %v9138_v29, %v9138_v29  ;;  %v9154_v34 = vrot.slane %v9138_v29, %v18847_v59  ;;  %v9161_v55 = vrot.slane %v9139_v20, %v18847_v59  ;;  %v9169_v22 = vcombine.high %v9147_v3, %v9147_v3  ;;  %11907 = vst.sshfl [vmem:[#allocation3 + $0xb] sm:$0x1 pattern:$0x73625140] %v9139_v20  ;;  %v9112_v62 = vpop.f32.mrb[136].mxu1 }
 0x77b   :  { %11908 = vst.sshfl [vmem:[#allocation3 + $0x23] sm:$0x1 pattern:$0x73625140] %v9138_v29  ;;  %v8869_v35 = vcombine.high %v8867_v21, %v8867_v21  ;;  %v8883_v12 = vrot.slane %v8867_v21, %v18847_v59  ;;  %v8890_v14 = vrot.slane %v8868_v13, %v18847_v59  ;;  %v8898_v15 = vcombine.high %v8876_v32, %v8876_v32  ;;  %v14327_v6 = vpop.f32.mrb[137].mxu1  ;;  %v18926_v32 = vld [vmem:[%s19227_s6 + $0x10] sm:$0xff] }
 0x77c   :  { %11897 = vst.sshfl [vmem:[#allocation3 + $0xa] sm:$0x1 pattern:$0x73625140] %v8868_v13  ;;  %v9168_v36 = vrot.slane %v9140_v33, %v18847_v59  ;;  %v9170_v37 = vcombine.high %v9154_v34, %v9154_v34  ;;  %v9171_v31 = vcombine.high %v9161_v55, %v9161_v55  ;;  %9264 = vst [vmem:[#allocation3 + $0x13] sm:$0x1] %v9169_v22 }
 0x77d   :  { %11898 = vst.sshfl [vmem:[#allocation3 + $0x22] sm:$0x1 pattern:$0x73625140] %v8867_v21  ;;  %v8902_v9 = vcombine.high %v8842_v44, %v8842_v44  ;;  %v8897_v48 = vrot.slane %v8869_v35, %v18847_v59  ;;  %v8899_v7 = vcombine.high %v8883_v12, %v8883_v12  ;;  %v8900_v25 = vcombine.high %v8890_v14, %v8890_v14  ;;  %v18916_v21 = vld [vmem:[%s19227_s6] sm:$0xff]  ;;  %v18921_v13 = vld [vmem:[%s19227_s6 + $0x8] sm:$0xff] }
 0x77e   :  { %11909 = vst.sshfl [vmem:[#allocation3 + $0x2b] sm:$0x1 pattern:$0x73625140] %v9140_v33  ;;  %8993 = vst [vmem:[#allocation3 + $0x12] sm:$0x1] %v8898_v15  ;;  %v8909_v52 = vrot.slane %v8842_v44, %v18847_v59  ;;  %v9172_v51 = vcombine.high %v9168_v36, %v9168_v36  ;;  %v9113_v27 = vadd.f32 %v18844_v41, %v9112_v62 }
 0x77f   :  { %11899 = vst.sshfl [vmem:[#allocation3 + $0x2a] sm:$0x1 pattern:$0x73625140] %v8869_v35  ;;  %9265 = vst [vmem:[#allocation3 + $0x1b] sm:$0x1] %v9171_v31  ;;  %v8916_v38 = vrot.slane %v8902_v9, %v18847_v59  ;;  %v8901_v28 = vcombine.high %v8897_v48, %v8897_v48 }
 0x780   :  { %9268 = vst [vmem:[#allocation3 + $0x33] sm:$0x1] %v9170_v37  ;;  %8994 = vst [vmem:[#allocation3 + $0x1a] sm:$0x1] %v8900_v25  ;;  %v8917_v39 = vcombine.high %v8909_v52, %v8909_v52  ;;  %v8925_v23 = vrot.slane %v8909_v52, %v18847_v59  ;;  %v8846_v40 = vpop.f32.mrb[138].mxu0  ;;  %v9117_v24 = vpop.f32.mrb[138].mxu1  ;;  %v9173_v42 = vcombine.high %v9113_v27, %v9113_v27 }
 0x781   :  { %8997 = vst [vmem:[#allocation3 + $0x32] sm:$0x1] %v8899_v7  ;;  %11900 = vst.sshfl [vmem:[#allocation3 + $0x42] sm:$0x1 pattern:$0x73625140] %v8909_v52  ;;  %v8918_v54 = vcombine.high %v8916_v38, %v8916_v38  ;;  %v8932_v61 = vrot.slane %v8916_v38, %v18847_v59  ;;  %v9180_v63 = vrot.slane %v9113_v27, %v18847_v59 }
 0x782   :  { %9269 = vst [vmem:[#allocation3 + $0x3b] sm:$0x1] %v9172_v51  ;;  %11902 = vst.sshfl [vmem:[#allocation3 + $0x62] sm:$0x1 pattern:$0x73625140] %v8916_v38  ;;  %v8939_v53 = vrot.slane %v8917_v39, %v18847_v59  ;;  %v8947_v1 = vcombine.high %v8925_v23, %v8925_v23  ;;  %v8847_v43 = vadd.f32 %v18844_v41, %v8846_v40 }
 0x783   :  { %v14289_v0 = vpop.f32.mrb[139].mxu0  ;;  %v14330_v26 = vpop.f32.mrb[139].mxu1  ;;  %8998 = vst [vmem:[#allocation3 + $0x3a] sm:$0x1] %v8901_v28  ;;  %v9118_v56 = vadd.f32 %v18844_v41, %v9117_v24  ;;  %v8946_v4 = vrot.slane %v8918_v54, %v18847_v59  ;;  %v8948_v45 = vcombine.high %v8932_v61, %v8932_v61  ;;  %v9187_v16 = vrot.slane %v9173_v42, %v18847_v59  ;;  %v18931_v44 = vld [vmem:[%s19227_s6 + $0x18] sm:$0xff]  ;;  %s18997_s6 = smov 0  }
 0x784   :  { %11901 = vst.sshfl [vmem:[#allocation3 + $0x4a] sm:$0x1 pattern:$0x73625140] %v8917_v39  ;;  %v9188_v46 = vcombine.high %v9180_v63, %v9180_v63  ;;  %v8949_v58 = vcombine.high %v8939_v53, %v8939_v53  ;;  %9001 = vst [vmem:[#allocation3 + $0x52] sm:$0x1] %v8947_v1  ;;  %v9196_v17 = vrot.slane %v9180_v63, %v18847_v59 }
 0x785   :  { %11903 = vst.sshfl [vmem:[#allocation3 + $0x6a] sm:$0x1 pattern:$0x73625140] %v8918_v54  ;;  %v8957_v8 = vrot.slane %v8847_v43, %v18847_v59  ;;  %v9228_v18 = vrot.slane %v9118_v56, %v18847_v59  ;;  %v8950_v49 = vcombine.high %v8946_v4, %v8946_v4  ;;  %9005 = vst [vmem:[#allocation3 + $0x72] sm:$0x1] %v8948_v45 }
 0x786   :  { %11910 = vst.sshfl [vmem:[#allocation3 + $0x43] sm:$0x1 pattern:$0x73625140] %v9180_v63  ;;  %v9189_v47 = vcombine.high %v9187_v16, %v9187_v16  ;;  %v9203_v60 = vrot.slane %v9187_v16, %v18847_v59  ;;  %v9210_v19 = vrot.slane %v9188_v46, %v18847_v59  ;;  %9002 = vst [vmem:[#allocation3 + $0x5a] sm:$0x1] %v8949_v58 }
 0x787   :  { %11911 = vst.sshfl [vmem:[#allocation3 + $0x4b] sm:$0x1 pattern:$0x73625140] %v9188_v46  ;;  %v9218_v10 = vcombine.high %v9196_v17, %v9196_v17  ;;  %v8958_v2 = vcombine.high %v8957_v8, %v8957_v8  ;;  %v9229_v11 = vcombine.high %v9228_v18, %v9228_v18  ;;  %9006 = vst [vmem:[#allocation3 + $0x7a] sm:$0x1] %v8950_v49 }
 0x788   :  { %11912 = vst.sshfl [vmem:[#allocation3 + $0x63] sm:$0x1 pattern:$0x73625140] %v9187_v16  ;;  %v9217_v29 = vrot.slane %v9189_v47, %v18847_v59  ;;  %v9219_v20 = vcombine.high %v9203_v60, %v9203_v60  ;;  %v9220_v3 = vcombine.high %v9210_v19, %v9210_v19 }
 0x789   :  { %11904 = vst.sshfl [vmem:[#allocation3 + $0x82] sm:$0x1 pattern:$0x73625140] %v8957_v8  ;;  %9272 = vst [vmem:[#allocation3 + $0x53] sm:$0x1] %v9218_v10 }
 0x78a   :  { %11914 = vst.sshfl [vmem:[#allocation3 + $0x83] sm:$0x1 pattern:$0x73625140] %v9228_v18  ;;  %v9221_v30 = vcombine.high %v9217_v29, %v9217_v29  ;;  %9273 = vst [vmem:[#allocation3 + $0x5b] sm:$0x1] %v9220_v3 }
 0x78b   :  { %11913 = vst.sshfl [vmem:[#allocation3 + $0x6b] sm:$0x1 pattern:$0x73625140] %v9189_v47  ;;  %9276 = vst [vmem:[#allocation3 + $0x73] sm:$0x1] %v9219_v20 }
 0x78c   :  { %11905 = vst.sshfl [vmem:[#allocation3 + $0x8a] sm:$0x1 pattern:$0x73625140] %v8958_v2  ;;  %9277 = vst [vmem:[#allocation3 + $0x7b] sm:$0x1] %v9221_v30 }
 0x78d   :  { %11915 = vst.sshfl [vmem:[#allocation3 + $0x8b] sm:$0x1 pattern:$0x73625140] %v9229_v11 }
 0x7b3   :  { %v9378_v5 = vpop.f32.mrb[140].mxu0  ;;  %v9649_v33 = vpop.f32.mrb[140].mxu1 }
 0x7b4   :  { %v9379_v34 = vadd.f32 %v18844_v41, %v9378_v5  ;;  %v9650_v55 = vadd.f32 %v18844_v41, %v9649_v33  ;;  %v14365_v22 = vpop.f32.mrb[141].mxu0  ;;  %v14406_v35 = vpop.f32.mrb[141].mxu1 }
 0x7b6   :  { %v9395_v12 = vcombine.high %v9379_v34, %v9379_v34  ;;  %v9402_v14 = vrot.slane %v9379_v34, %v18847_v59  ;;  %v9666_v15 = vcombine.high %v9650_v55, %v9650_v55  ;;  %v9673_v62 = vrot.slane %v9650_v55, %v18847_v59 }
 0x7b7   :  { %v9383_v36 = vpop.f32.mrb[142].mxu0  ;;  %v9654_v37 = vpop.f32.mrb[142].mxu1 }
 0x7b8   :  { %v9409_v31 = vrot.slane %v9395_v12, %v18847_v59  ;;  %v9410_v9 = vcombine.high %v9402_v14, %v9402_v14  ;;  %v9418_v6 = vrot.slane %v9402_v14, %v18847_v59  ;;  %11916 = vst.sshfl [vmem:[#allocation3 + $0x4] sm:$0x1 pattern:$0x73625140] %v9402_v14  ;;  %v9680_v48 = vrot.slane %v9666_v15, %v18847_v59  ;;  %v14368_v7 = vpop.f32.mrb[143].mxu0  ;;  %v14409_v25 = vpop.f32.mrb[143].mxu1 }
 0x7b9   :  { %11926 = vst.sshfl [vmem:[#allocation3 + $0x5] sm:$0x1 pattern:$0x73625140] %v9673_v62  ;;  %v9681_v52 = vcombine.high %v9673_v62, %v9673_v62  ;;  %v9689_v51 = vrot.slane %v9673_v62, %v18847_v59  ;;  %v9384_v38 = vadd.f32 %v18844_v41, %v9383_v36  ;;  %v9655_v27 = vadd.f32 %v18844_v41, %v9654_v37 }
 0x7ba   :  { %v9411_v28 = vcombine.high %v9409_v31, %v9409_v31  ;;  %v9425_v39 = vrot.slane %v9409_v31, %v18847_v59  ;;  %v9432_v23 = vrot.slane %v9410_v9, %v18847_v59  ;;  %v9440_v40 = vcombine.high %v9418_v6, %v9418_v6  ;;  %11917 = vst.sshfl [vmem:[#allocation3 + $0xc] sm:$0x1 pattern:$0x73625140] %v9410_v9 }
 0x7bb   :  { %11918 = vst.sshfl [vmem:[#allocation3 + $0x24] sm:$0x1 pattern:$0x73625140] %v9409_v31  ;;  %v9682_v24 = vcombine.high %v9680_v48, %v9680_v48  ;;  %v9696_v54 = vrot.slane %v9680_v48, %v18847_v59  ;;  %v9703_v61 = vrot.slane %v9681_v52, %v18847_v59  ;;  %v9711_v42 = vcombine.high %v9689_v51, %v9689_v51  ;;  %v9388_v63 = vpop.f32.mrb[144].mxu0  ;;  %v9659_v0 = vpop.f32.mrb[144].mxu1 }
 0x7bc   :  { %11928 = vst.sshfl [vmem:[#allocation3 + $0x25] sm:$0x1 pattern:$0x73625140] %v9680_v48  ;;  %v9439_v26 = vrot.slane %v9411_v28, %v18847_v59  ;;  %v9441_v53 = vcombine.high %v9425_v39, %v9425_v39  ;;  %v9442_v1 = vcombine.high %v9432_v23, %v9432_v23  ;;  %9535 = vst [vmem:[#allocation3 + $0x14] sm:$0x1] %v9440_v40 }
 0x7bd   :  { %11927 = vst.sshfl [vmem:[#allocation3 + $0xd] sm:$0x1 pattern:$0x73625140] %v9681_v52  ;;  %v9444_v43 = vcombine.high %v9384_v38, %v9384_v38  ;;  %v14371_v56 = vpop.f32.mrb[145].mxu0  ;;  %v14412_v4 = vpop.f32.mrb[145].mxu1  ;;  %v9710_v45 = vrot.slane %v9682_v24, %v18847_v59  ;;  %v9712_v16 = vcombine.high %v9696_v54, %v9696_v54  ;;  %v9713_v46 = vcombine.high %v9703_v61, %v9703_v61 }
 0x7be   :  { %11919 = vst.sshfl [vmem:[#allocation3 + $0x2c] sm:$0x1 pattern:$0x73625140] %v9411_v28  ;;  %9806 = vst [vmem:[#allocation3 + $0x15] sm:$0x1] %v9711_v42  ;;  %v9451_v58 = vrot.slane %v9384_v38, %v18847_v59  ;;  %v9443_v17 = vcombine.high %v9439_v26, %v9439_v26  ;;  %v9715_v18 = vcombine.high %v9655_v27, %v9655_v27 }
 0x7bf   :  { %11929 = vst.sshfl [vmem:[#allocation3 + $0x2d] sm:$0x1 pattern:$0x73625140] %v9682_v24  ;;  %9536 = vst [vmem:[#allocation3 + $0x1c] sm:$0x1] %v9442_v1  ;;  %v9458_v8 = vrot.slane %v9444_v43, %v18847_v59  ;;  %v9722_v49 = vrot.slane %v9655_v27, %v18847_v59  ;;  %v9714_v47 = vcombine.high %v9710_v45, %v9710_v45 }
 0x7c0   :  { %9539 = vst [vmem:[#allocation3 + $0x34] sm:$0x1] %v9441_v53  ;;  %9807 = vst [vmem:[#allocation3 + $0x1d] sm:$0x1] %v9713_v46  ;;  %v9459_v60 = vcombine.high %v9451_v58, %v9451_v58  ;;  %v9467_v19 = vrot.slane %v9451_v58, %v18847_v59  ;;  %v9389_v10 = vadd.f32 %v18844_v41, %v9388_v63 }
 0x7c1   :  { %9810 = vst [vmem:[#allocation3 + $0x35] sm:$0x1] %v9712_v16  ;;  %11920 = vst.sshfl [vmem:[#allocation3 + $0x44] sm:$0x1 pattern:$0x73625140] %v9451_v58  ;;  %v9460_v2 = vcombine.high %v9458_v8, %v9458_v8  ;;  %v9474_v11 = vrot.slane %v9458_v8, %v18847_v59  ;;  %v9729_v29 = vrot.slane %v9715_v18, %v18847_v59 }
 0x7c2   :  { %9540 = vst [vmem:[#allocation3 + $0x3c] sm:$0x1] %v9443_v17  ;;  %11922 = vst.sshfl [vmem:[#allocation3 + $0x64] sm:$0x1 pattern:$0x73625140] %v9458_v8  ;;  %v9730_v20 = vcombine.high %v9722_v49, %v9722_v49  ;;  %v9481_v3 = vrot.slane %v9459_v60, %v18847_v59  ;;  %v9489_v30 = vcombine.high %v9467_v19, %v9467_v19 }
 0x7c3   :  { %11930 = vst.sshfl [vmem:[#allocation3 + $0x45] sm:$0x1 pattern:$0x73625140] %v9722_v49  ;;  %9811 = vst [vmem:[#allocation3 + $0x3d] sm:$0x1] %v9714_v47  ;;  %v9738_v5 = vrot.slane %v9722_v49, %v18847_v59  ;;  %v9499_v33 = vrot.slane %v9389_v10, %v18847_v59  ;;  %v9488_v34 = vrot.slane %v9460_v2, %v18847_v59 }
 0x7c4   :  { %11921 = vst.sshfl [vmem:[#allocation3 + $0x4c] sm:$0x1 pattern:$0x73625140] %v9459_v60  ;;  %v9490_v55 = vcombine.high %v9474_v11, %v9474_v11  ;;  %v9731_v22 = vcombine.high %v9729_v29, %v9729_v29  ;;  %v9745_v35 = vrot.slane %v9729_v29, %v18847_v59  ;;  %v9491_v12 = vcombine.high %v9481_v3, %v9481_v3 }
 0x7c5   :  { %11923 = vst.sshfl [vmem:[#allocation3 + $0x6c] sm:$0x1 pattern:$0x73625140] %v9460_v2  ;;  %9543 = vst [vmem:[#allocation3 + $0x54] sm:$0x1] %v9489_v30  ;;  %v9752_v14 = vrot.slane %v9730_v20, %v18847_v59  ;;  %v9760_v15 = vcombine.high %v9738_v5, %v9738_v5  ;;  %v9500_v62 = vcombine.high %v9499_v33, %v9499_v33 }
 0x7c6   :  { %11931 = vst.sshfl [vmem:[#allocation3 + $0x4d] sm:$0x1 pattern:$0x73625140] %v9730_v20  ;;  %v9492_v36 = vcombine.high %v9488_v34, %v9488_v34  ;;  %9547 = vst [vmem:[#allocation3 + $0x74] sm:$0x1] %v9490_v55  ;;  %v9759_v37 = vrot.slane %v9731_v22, %v18847_v59  ;;  %v9761_v31 = vcombine.high %v9745_v35, %v9745_v35 }
 0x7c7   :  { %11932 = vst.sshfl [vmem:[#allocation3 + $0x65] sm:$0x1 pattern:$0x73625140] %v9729_v29  ;;  %v9660_v9 = vadd.f32 %v18844_v41, %v9659_v0  ;;  %9544 = vst [vmem:[#allocation3 + $0x5c] sm:$0x1] %v9491_v12  ;;  %v9762_v6 = vcombine.high %v9752_v14, %v9752_v14 }
 0x7c8   :  { %11924 = vst.sshfl [vmem:[#allocation3 + $0x84] sm:$0x1 pattern:$0x73625140] %v9499_v33  ;;  %9814 = vst [vmem:[#allocation3 + $0x55] sm:$0x1] %v9760_v15  ;;  %v9763_v48 = vcombine.high %v9759_v37, %v9759_v37 }
 0x7c9   :  { %11933 = vst.sshfl [vmem:[#allocation3 + $0x6d] sm:$0x1 pattern:$0x73625140] %v9731_v22  ;;  %9548 = vst [vmem:[#allocation3 + $0x7c] sm:$0x1] %v9492_v36  ;;  %v9770_v7 = vrot.slane %v9660_v9, %v18847_v59 }
 0x7ca   :  { %11925 = vst.sshfl [vmem:[#allocation3 + $0x8c] sm:$0x1 pattern:$0x73625140] %v9500_v62  ;;  %9818 = vst [vmem:[#allocation3 + $0x75] sm:$0x1] %v9761_v31 }
 0x7cb   :  { %9815 = vst [vmem:[#allocation3 + $0x5d] sm:$0x1] %v9762_v6  ;;  %9819 = vst [vmem:[#allocation3 + $0x7d] sm:$0x1] %v9763_v48  ;;  %v9771_v25 = vcombine.high %v9770_v7, %v9770_v7 }
 0x7cc   :  { %11934 = vst.sshfl [vmem:[#allocation3 + $0x85] sm:$0x1 pattern:$0x73625140] %v9770_v7 }
 0x7cd   :  { %11935 = vst.sshfl [vmem:[#allocation3 + $0x8d] sm:$0x1 pattern:$0x73625140] %v9771_v25 }
 0x7f3   :  { %v9920_v52 = vpop.f32.mrb[146].mxu0  ;;  %v10191_v51 = vpop.f32.mrb[146].mxu1 }
 0x7f4   :  { %v9921_v38 = vadd.f32 %v18844_v41, %v9920_v52  ;;  %v10192_v27 = vadd.f32 %v18844_v41, %v10191_v51  ;;  %v14447_v28 = vpop.f32.mrb[147].mxu0  ;;  %v14488_v39 = vpop.f32.mrb[147].mxu1 }
 0x7f6   :  { %v9937_v23 = vcombine.high %v9921_v38, %v9921_v38  ;;  %v9944_v40 = vrot.slane %v9921_v38, %v18847_v59  ;;  %v10208_v24 = vcombine.high %v10192_v27, %v10192_v27  ;;  %v10215_v54 = vrot.slane %v10192_v27, %v18847_v59 }
 0x7f7   :  { %v9925_v61 = vpop.f32.mrb[148].mxu0  ;;  %v10196_v42 = vpop.f32.mrb[148].mxu1 }
 0x7f8   :  { %v9951_v63 = vrot.slane %v9937_v23, %v18847_v59  ;;  %v9952_v0 = vcombine.high %v9944_v40, %v9944_v40  ;;  %v9960_v26 = vrot.slane %v9944_v40, %v18847_v59  ;;  %11936 = vst.sshfl [vmem:[#allocation3 + $0x6] sm:$0x1 pattern:$0x73625140] %v9944_v40  ;;  %v10222_v53 = vrot.slane %v10208_v24, %v18847_v59  ;;  %v14450_v1 = vpop.f32.mrb[149].mxu0  ;;  %v14491_v43 = vpop.f32.mrb[149].mxu1 }
 0x7f9   :  { %11946 = vst.sshfl [vmem:[#allocation3 + $0x7] sm:$0x1 pattern:$0x73625140] %v10215_v54  ;;  %v10223_v56 = vcombine.high %v10215_v54, %v10215_v54  ;;  %v10231_v4 = vrot.slane %v10215_v54, %v18847_v59  ;;  %v9926_v45 = vadd.f32 %v18844_v41, %v9925_v61  ;;  %v10197_v16 = vadd.f32 %v18844_v41, %v10196_v42 }
 0x7fa   :  { %v9953_v46 = vcombine.high %v9951_v63, %v9951_v63  ;;  %v9967_v58 = vrot.slane %v9951_v63, %v18847_v59  ;;  %v9974_v17 = vrot.slane %v9952_v0, %v18847_v59  ;;  %v9982_v8 = vcombine.high %v9960_v26, %v9960_v26  ;;  %11937 = vst.sshfl [vmem:[#allocation3 + $0xe] sm:$0x1 pattern:$0x73625140] %v9952_v0 }
 0x7fb   :  { %11938 = vst.sshfl [vmem:[#allocation3 + $0x26] sm:$0x1 pattern:$0x73625140] %v9951_v63  ;;  %v10224_v18 = vcombine.high %v10222_v53, %v10222_v53  ;;  %v10238_v49 = vrot.slane %v10222_v53, %v18847_v59  ;;  %v10245_v47 = vrot.slane %v10223_v56, %v18847_v59  ;;  %v10253_v60 = vcombine.high %v10231_v4, %v10231_v4  ;;  %v9930_v19 = vpop.f32.mrb[150].mxu0  ;;  %v10201_v10 = vpop.f32.mrb[150].mxu1 }
 0x7fc   :  { %11948 = vst.sshfl [vmem:[#allocation3 + $0x27] sm:$0x1 pattern:$0x73625140] %v10222_v53  ;;  %v9981_v2 = vrot.slane %v9953_v46, %v18847_v59  ;;  %v9983_v11 = vcombine.high %v9967_v58, %v9967_v58  ;;  %v9984_v29 = vcombine.high %v9974_v17, %v9974_v17  ;;  %10077 = vst [vmem:[#allocation3 + $0x16] sm:$0x1] %v9982_v8 }
 0x7fd   :  { %11947 = vst.sshfl [vmem:[#allocation3 + $0xf] sm:$0x1 pattern:$0x73625140] %v10223_v56  ;;  %v9986_v20 = vcombine.high %v9926_v45, %v9926_v45  ;;  %v14453_v3 = vpop.f32.mrb[151].mxu0  ;;  %v14494_v30 = vpop.f32.mrb[151].mxu1  ;;  %v10252_v5 = vrot.slane %v10224_v18, %v18847_v59  ;;  %v10254_v33 = vcombine.high %v10238_v49, %v10238_v49  ;;  %v10255_v34 = vcombine.high %v10245_v47, %v10245_v47 }
 0x7fe   :  { %11939 = vst.sshfl [vmem:[#allocation3 + $0x2e] sm:$0x1 pattern:$0x73625140] %v9953_v46  ;;  %10348 = vst [vmem:[#allocation3 + $0x17] sm:$0x1] %v10253_v60  ;;  %v9993_v55 = vrot.slane %v9926_v45, %v18847_v59  ;;  %v9985_v22 = vcombine.high %v9981_v2, %v9981_v2  ;;  %v10257_v12 = vcombine.high %v10197_v16, %v10197_v16 }
 0x7ff   :  { %11949 = vst.sshfl [vmem:[#allocation3 + $0x2f] sm:$0x1 pattern:$0x73625140] %v10224_v18  ;;  %10078 = vst [vmem:[#allocation3 + $0x1e] sm:$0x1] %v9984_v29  ;;  %v10000_v35 = vrot.slane %v9986_v20, %v18847_v59  ;;  %v10264_v14 = vrot.slane %v10197_v16, %v18847_v59  ;;  %v10256_v15 = vcombine.high %v10252_v5, %v10252_v5 }
 0x800   :  { %10081 = vst [vmem:[#allocation3 + $0x36] sm:$0x1] %v9983_v11  ;;  %10349 = vst [vmem:[#allocation3 + $0x1f] sm:$0x1] %v10255_v34  ;;  %v10001_v62 = vcombine.high %v9993_v55, %v9993_v55  ;;  %v10009_v36 = vrot.slane %v9993_v55, %v18847_v59  ;;  %v9931_v37 = vadd.f32 %v18844_v41, %v9930_v19  ;;  %v15636_v56 = vmov 0.0  }
 0x801   :  { %10352 = vst [vmem:[#allocation3 + $0x37] sm:$0x1] %v10254_v33  ;;  %11940 = vst.sshfl [vmem:[#allocation3 + $0x46] sm:$0x1 pattern:$0x73625140] %v9993_v55  ;;  %v10002_v31 = vcombine.high %v10000_v35, %v10000_v35  ;;  %v10016_v9 = vrot.slane %v10000_v35, %v18847_v59  ;;  %v10271_v6 = vrot.slane %v10257_v12, %v18847_v59 }
 0x802   :  { %10082 = vst [vmem:[#allocation3 + $0x3e] sm:$0x1] %v9985_v22  ;;  %11942 = vst.sshfl [vmem:[#allocation3 + $0x66] sm:$0x1 pattern:$0x73625140] %v10000_v35  ;;  %v10272_v48 = vcombine.high %v10264_v14, %v10264_v14  ;;  %v10023_v7 = vrot.slane %v10001_v62, %v18847_v59  ;;  %v10031_v25 = vcombine.high %v10009_v36, %v10009_v36 }
 0x803   :  { %11950 = vst.sshfl [vmem:[#allocation3 + $0x47] sm:$0x1 pattern:$0x73625140] %v10264_v14  ;;  %10353 = vst [vmem:[#allocation3 + $0x3f] sm:$0x1] %v10256_v15  ;;  %v10280_v52 = vrot.slane %v10264_v14, %v18847_v59  ;;  %v10041_v51 = vrot.slane %v9931_v37, %v18847_v59  ;;  %v10030_v38 = vrot.slane %v10002_v31, %v18847_v59 }
 0x804   :  { %11941 = vst.sshfl [vmem:[#allocation3 + $0x4e] sm:$0x1 pattern:$0x73625140] %v10001_v62  ;;  %v10032_v27 = vcombine.high %v10016_v9, %v10016_v9  ;;  %v10273_v28 = vcombine.high %v10271_v6, %v10271_v6  ;;  %v10287_v39 = vrot.slane %v10271_v6, %v18847_v59  ;;  %v10033_v23 = vcombine.high %v10023_v7, %v10023_v7 }
 0x805   :  { %11943 = vst.sshfl [vmem:[#allocation3 + $0x6e] sm:$0x1 pattern:$0x73625140] %v10002_v31  ;;  %10085 = vst [vmem:[#allocation3 + $0x56] sm:$0x1] %v10031_v25  ;;  %v10294_v40 = vrot.slane %v10272_v48, %v18847_v59  ;;  %v10302_v24 = vcombine.high %v10280_v52, %v10280_v52  ;;  %v10042_v54 = vcombine.high %v10041_v51, %v10041_v51 }
 0x806   :  { %11951 = vst.sshfl [vmem:[#allocation3 + $0x4f] sm:$0x1 pattern:$0x73625140] %v10272_v48  ;;  %v10034_v61 = vcombine.high %v10030_v38, %v10030_v38  ;;  %10089 = vst [vmem:[#allocation3 + $0x76] sm:$0x1] %v10032_v27  ;;  %v10301_v42 = vrot.slane %v10273_v28, %v18847_v59  ;;  %v10303_v63 = vcombine.high %v10287_v39, %v10287_v39 }
 0x807   :  { %11952 = vst.sshfl [vmem:[#allocation3 + $0x67] sm:$0x1 pattern:$0x73625140] %v10271_v6  ;;  %v10202_v0 = vadd.f32 %v18844_v41, %v10201_v10  ;;  %10086 = vst [vmem:[#allocation3 + $0x5e] sm:$0x1] %v10033_v23  ;;  %v10304_v26 = vcombine.high %v10294_v40, %v10294_v40 }
 0x808   :  { %11944 = vst.sshfl [vmem:[#allocation3 + $0x86] sm:$0x1 pattern:$0x73625140] %v10041_v51  ;;  %10356 = vst [vmem:[#allocation3 + $0x57] sm:$0x1] %v10302_v24  ;;  %v10305_v53 = vcombine.high %v10301_v42, %v10301_v42 }
 0x809   :  { %11953 = vst.sshfl [vmem:[#allocation3 + $0x6f] sm:$0x1 pattern:$0x73625140] %v10273_v28  ;;  %10090 = vst [vmem:[#allocation3 + $0x7e] sm:$0x1] %v10034_v61  ;;  %v10312_v1 = vrot.slane %v10202_v0, %v18847_v59 }
 0x80a   :  { %11945 = vst.sshfl [vmem:[#allocation3 + $0x8e] sm:$0x1 pattern:$0x73625140] %v10042_v54  ;;  %10360 = vst [vmem:[#allocation3 + $0x77] sm:$0x1] %v10303_v63 }
 0x80b   :  { %10357 = vst [vmem:[#allocation3 + $0x5f] sm:$0x1] %v10304_v26  ;;  %10361 = vst [vmem:[#allocation3 + $0x7f] sm:$0x1] %v10305_v53  ;;  %v10313_v43 = vcombine.high %v10312_v1, %v10312_v1  ;;  %v15640_v4 = vmov 0.0  }
 0x80c   :  { %11954 = vst.sshfl [vmem:[#allocation3 + $0x87] sm:$0x1 pattern:$0x73625140] %v10312_v1 }
 0x80d   :  { %11955 = vst.sshfl [vmem:[#allocation3 + $0x8f] sm:$0x1 pattern:$0x73625140] %v10313_v43 }
 0x80e LB: > { %v14769_v41 = vpack.c.bf16 %v18921_v13, %v18916_v21  ;;  %v15664_v59 = vmov 0.0|0.0   ;;  %s15665_s28 = smov 32   ;;  %v14772_v45 = vpack.c.bf16 %v18931_v44, %v18926_v32  ;;  %vm15666_vm3 = vmmov 0   ;;  %s11956_s4 = sshll.u32 %s15646_s6, 3  ;;  %s15646_s6 = sphi %s18997_s6, %s10373_s6   ;;  %v15642_v4 = vphi %v15640_v4, %v10478_v4   ;;  %v15638_v56 = vphi %v15636_v56, %v10472_v56  }
 0x80f   : > { %14768 = vmatprep.subr.bf16.mxu0 %v15664_v59  ;;  %10380 = vrot.lane.b32.xlu0 %v15642_v4, %s15665_s28  ;;  %v15667_v16 = vmov 0.0   ;;  %s10377_s29 = scalar_lea.vmem [#allocation3], %s11956_s4  ;;  %s15668_s30 = smov 64  }
 0x810   : > { %14770 = vmatpush3.bf16.msra.mxu0 %v14769_v41  ;;  %14503 = vmatprep.mubr.msk.f32.mxu0 %vm15666_vm3, %v15667_v16  ;;  %s10483_s16 = scalar_lea.vmem [#allocation4], %s11956_s4  ;;  %s10373_s6 = sadd.s32 1, %s15646_s6  }
 0x811   : > { %14771 = vmatprep.subr.bf16.mxu0 %v15664_v59  ;;  %p10370_p0 = scmp.ge.s32.totalorder %s10373_s6, 18  }
 0x812   :  { %v10503_v33 = vld [vmem:[%s19213_s8] sm:$0xff] (%p10370_p0)  ;;  %v10504_v34 = vld [vmem:[%s19213_s8 + $0x8] sm:$0xff] (%p10370_p0)  ;;  %v10505_v55 = vld [vmem:[%s19213_s8 + $0x10] sm:$0xff] (%p10370_p0) }
 0x813   :  { %v14774_v22 = vpack.c.bf16 (%p10370_p0), %v10504_v34, %v10503_v33  ;;  %v10506_v35 = vld [vmem:[%s19213_s8 + $0x18] sm:$0xff] (%p10370_p0)  ;;  %v19048_v27 = vld [vmem:[%s19214_s9] sm:$0xff] (%p10370_p0)  ;;  %v19053_v28 = vld [vmem:[%s19214_s9 + $0x8] sm:$0xff] (%p10370_p0) }
 0x814   : > { %14773 = vmatpush3.bf16.msra.mxu0 %v14772_v45  ;;  %v10378_v58 = vld [vmem:[%s10377_s29] sm:$0xff]  ;;  %v14778_v14 = vpack.c.bf16 (%p10370_p0), %v10506_v35, %v10505_v55  ;;  %v19058_v39 = vld [vmem:[%s19214_s9 + $0x10] sm:$0xff] (%p10370_p0)  ;;  %v19063_v23 = vld [vmem:[%s19214_s9 + $0x18] sm:$0xff] (%p10370_p0)  ;;  %v15652_v35 = vmov (%p10370_p0), 0.0   ;;  %s19068_s9 = smov (%p10370_p0), 0  }
 0x815   :  { %14775 = vmatprep.subr.bf16.mxu0 (%p10370_p0), %v14774_v22  ;;  %15340 = vmatprep.subr.bf16.mxu1 (%p10370_p0), %v14774_v22  ;;  %v11959_v40 = vld [vmem:[%s19215_s10] ss:$0 sm:$0xff] (%p10370_p0) }
 0x816   :  { %15342 = vmatpush3.bf16.msra.mxu1 (%p10370_p0), %v14774_v22 }
 0x817   :  { %15341 = vmatprep.subr.bf16.mxu1 (%p10370_p0), %v14778_v14 }
 0x81a   :  { %15343 = vmatpush3.bf16.msra.mxu1 (%p10370_p0), %v14778_v14 }
 0x881   : > { %v10381_v46 = vpop.permute.xlu0 %10380 }
 0x882   : > { %14504 = vmatmul.mubr.msk.f32.vlgmr.msra.gmra.mrb[0].mxu0 %vm3972_vm1, %v10381_v46 }
 0x883   :  { %14777 = vmatpush3.bf16.msra.mxu0 (%p10370_p0), %v14774_v22  ;;  %v15648_v22 = vmov (%p10370_p0), 0.0  }
 0x884   :  { %14779 = vmatprep.subr.bf16.mxu0 (%p10370_p0), %v14778_v14 }
 0x887   :  { %14781 = vmatpush3.bf16.msra.mxu0 (%p10370_p0), %v14778_v14 }
 0x955   : > { %v10450_v17 = vpop.f32.mrb[0].mxu0 }
 0x956   : > { %v10454_v8 = vadd.f32 %v10450_v17, %v10378_v58  ;;  %v14505_v18 = vpop.f32.mrb[1].mxu0 }
 0x958   : > { %15596 = vtanh.f32 %v10454_v8  ;;  %v11958_v47 = vmul.f32 -1.442695, %v10454_v8 }
 0x95a   : > { %15598 = vpow2.f32 %v11958_v47 }
 0x962   : > { %v15597_v49 = vpop.eup %15596 }
 0x963   : > { %10464 = vrot.lane.b32.xlu0 %v15597_v49, %s15668_s30 }
 0x964   : > { %v15599_v60 = vpop.eup %15598 }
 0x965   : > { %v10458_v19 = vadd.f32 1.0, %v15599_v60 }
 0x967   : > { %15600 = vrcp.f32 %v10458_v19 }
 0x971   : > { %v15601_v10 = vpop.eup %15600 }
 0x972   : > { %v10462_v29 = vmul.f32 %v15638_v56, %v15601_v10 }
 0x9d5   : > { %v10465_v2 = vpop.permute.xlu0 %10464 }
 0x9d6   : > { %v10467_v11 = vmul.f32 %v15601_v10, %v10465_v2 }
 0x9d8   : > { %10469 = vrot.lane.b32.xlu1 %v10467_v11, %s15665_s28 }
 0xa4a   : > { %v10470_v20 = vpop.permute.xlu1 %10469 }
 0xa4b   : > { %v10472_v56 = vadd.f32 %v10470_v20, %v10462_v29  }
 0xa4d   : > { %15602 = vtanh.f32 %v10472_v56 }
 0xa57   : > { %v15603_v3 = vpop.eup %15602 }
 0xa58   : > { %10475 = vrot.lane.b32.xlu1 %v15603_v3, %s15668_s30 }
 0xaca   : > { %v10476_v30 = vpop.permute.xlu1 %10475 }
 0xacb   : > { %v10478_v4 = vmul.f32 %v15601_v10, %v10476_v30  }
 0xacd   : > { %10480 = vrot.lane.b32.xlu0 %v10478_v4, %s15665_s28 }
 0xb3a   :  { %10372 = sbr.rel (!%p10370_p0) target bundleno = 2062 (0x80e), region = 101 }
 0xb3f   : > { %v10481_v5 = vpop.permute.xlu0 %10480 }
 0xb40   : > { %10484 = vst.msk [vmem:[%s10483_s16] sm:$0xff] %vm3972_vm1, %v10481_v5 }
 0xb47   :  { %v10485_v12 = vld [vmem:[#allocation4] sm:$0xff]  ;;  %v10495_v21 = vld [vmem:[#allocation4 + $0x50] sm:$0xff]  ;;  %v10486_v13 = vld [vmem:[#allocation4 + $0x8] sm:$0xff] }
 0xb48   :  { %14514 = vmatprep.mubr.msk.f32.mxu0 %vm3972_vm1, %v10485_v12  ;;  %14529 = vmatprep.mubr.msk.f32.mxu1 %vm3972_vm1, %v10495_v21  ;;  %v10496_v32 = vld [vmem:[#allocation4 + $0x58] sm:$0xff]  ;;  %v10487_v44 = vld [vmem:[#allocation4 + $0x10] sm:$0xff]  ;;  %v10497_v15 = vld [vmem:[#allocation4 + $0x60] sm:$0xff] }
 0xb49   :  { %14515 = vmatmul.mubr.msk.f32.vlgmr.msra.gmra.mrb[0].mxu0 %vm3972_vm1, %v10486_v13  ;;  %14530 = vmatmul.mubr.msk.f32.vlgmr.msra.gmra.mrb[0].mxu1 %vm3972_vm1, %v10496_v32  ;;  %v10488_v62 = vld [vmem:[#allocation4 + $0x18] sm:$0xff]  ;;  %v10498_v36 = vld [vmem:[#allocation4 + $0x68] sm:$0xff]  ;;  %v10489_v37 = vld [vmem:[#allocation4 + $0x20] sm:$0xff] }
 0xb4a   :  { %14517 = vmatprep.mubr.msk.f32.mxu0 %vm3972_vm1, %v10487_v44  ;;  %14532 = vmatprep.mubr.msk.f32.mxu1 %vm3972_vm1, %v10497_v15  ;;  %v10499_v31 = vld [vmem:[#allocation4 + $0x70] sm:$0xff]  ;;  %v10490_v9 = vld [vmem:[#allocation4 + $0x28] sm:$0xff]  ;;  %v10500_v6 = vld [vmem:[#allocation4 + $0x78] sm:$0xff] }
 0xb4b   :  { %v10491_v48 = vld [vmem:[#allocation4 + $0x30] sm:$0xff]  ;;  %v10501_v7 = vld [vmem:[#allocation4 + $0x80] sm:$0xff]  ;;  %v10492_v25 = vld [vmem:[#allocation4 + $0x38] sm:$0xff] }
 0xb4c   :  { %v10502_v52 = vld [vmem:[#allocation4 + $0x88] sm:$0xff]  ;;  %v10493_v51 = vld [vmem:[#allocation4 + $0x40] sm:$0xff] }
 0xb4d   :  { %14518 = vmatmul.mubr.msk.f32.gmra.mrb[2].mxu0 %vm3972_vm1, %v10488_v62  ;;  %14533 = vmatmul.mubr.msk.f32.gmra.mrb[2].mxu1 %vm3972_vm1, %v10498_v36  ;;  %v10494_v38 = vld [vmem:[#allocation4 + $0x48] sm:$0xff] }
 0xb4e   :  { %14520 = vmatprep.mubr.msk.f32.mxu0 %vm3972_vm1, %v10489_v37  ;;  %14535 = vmatprep.mubr.msk.f32.mxu1 %vm3972_vm1, %v10499_v31 }
 0xb51   :  { %14521 = vmatmul.mubr.msk.f32.gmra.mrb[4].mxu0 %vm3972_vm1, %v10490_v9  ;;  %14536 = vmatmul.mubr.msk.f32.gmra.mrb[4].mxu1 %vm3972_vm1, %v10500_v6 }
 0xb52   :  { %14523 = vmatprep.mubr.msk.f32.mxu0 %vm3972_vm1, %v10491_v48  ;;  %14538 = vmatprep.mubr.msk.f32.mxu1 %vm3972_vm1, %v10501_v7 }
 0xb55   :  { %14524 = vmatmul.mubr.msk.f32.gmra.mrb[6].mxu0 %vm3972_vm1, %v10492_v25  ;;  %14539 = vmatmul.mubr.msk.f32.gmra.mrb[6].mxu1 %vm3972_vm1, %v10502_v52 }
 0xb56   :  { %14526 = vmatprep.mubr.msk.f32.mxu0 %vm3972_vm1, %v10493_v51 }
 0xb59   :  { %14527 = vmatmul.mubr.msk.f32.gmra.mrb[8].mxu0 %vm3972_vm1, %v10494_v38 }
 0xc1c   :  { %v14516_v24 = vpop.f32.mrb[0].mxu0  ;;  %v14531_v54 = vpop.f32.mrb[0].mxu1 }
 0xc1d   :  { %v10640_v61 = vadd.f32 %v14516_v24, %v11959_v40  ;;  %v10634_v42 = vpop.f32.mrb[1].mxu0  ;;  %v10690_v63 = vadd.f32 %v14531_v54, %v11959_v40  ;;  %v10684_v0 = vpop.f32.mrb[1].mxu1 }
 0xc1e   :  { %v10635_v26 = vadd.f32 %v11959_v40, %v10634_v42  ;;  %v10685_v53 = vadd.f32 %v11959_v40, %v10684_v0 }
 0xc1f   :  { %10724 = vst [vmem:[#allocation5 + $0x8] sm:$0xff] %v10640_v61  ;;  %10734 = vst [vmem:[#allocation5 + $0x58] sm:$0xff] %v10690_v63 }
 0xc20   :  { %10723 = vst [vmem:[#allocation5] sm:$0xff] %v10635_v26  ;;  %v14519_v1 = vpop.f32.mrb[2].mxu0  ;;  %10733 = vst [vmem:[#allocation5 + $0x50] sm:$0xff] %v10685_v53  ;;  %v14534_v43 = vpop.f32.mrb[2].mxu1 }
 0xc21   :  { %v10650_v56 = vadd.f32 %v14519_v1, %v11959_v40  ;;  %v10644_v4 = vpop.f32.mrb[3].mxu0  ;;  %v10700_v41 = vadd.f32 %v14534_v43, %v11959_v40  ;;  %v10694_v59 = vpop.f32.mrb[3].mxu1 }
 0xc22   :  { %v10645_v45 = vadd.f32 %v11959_v40, %v10644_v4  ;;  %v10695_v16 = vadd.f32 %v11959_v40, %v10694_v59 }
 0xc23   :  { %10726 = vst [vmem:[#allocation5 + $0x18] sm:$0xff] %v10650_v56  ;;  %10736 = vst [vmem:[#allocation5 + $0x68] sm:$0xff] %v10700_v41 }
 0xc24   :  { %10725 = vst [vmem:[#allocation5 + $0x10] sm:$0xff] %v10645_v45  ;;  %v14522_v46 = vpop.f32.mrb[4].mxu0  ;;  %10735 = vst [vmem:[#allocation5 + $0x60] sm:$0xff] %v10695_v16  ;;  %v14537_v58 = vpop.f32.mrb[4].mxu1 }
 0xc25   :  { %v10660_v17 = vadd.f32 %v14522_v46, %v11959_v40  ;;  %v10654_v8 = vpop.f32.mrb[5].mxu0  ;;  %v10710_v18 = vadd.f32 %v14537_v58, %v11959_v40  ;;  %v10704_v49 = vpop.f32.mrb[5].mxu1 }
 0xc26   :  { %v10655_v47 = vadd.f32 %v11959_v40, %v10654_v8  ;;  %v10705_v60 = vadd.f32 %v11959_v40, %v10704_v49 }
 0xc27   :  { %10728 = vst [vmem:[#allocation5 + $0x28] sm:$0xff] %v10660_v17  ;;  %10738 = vst [vmem:[#allocation5 + $0x78] sm:$0xff] %v10710_v18 }
 0xc28   :  { %10727 = vst [vmem:[#allocation5 + $0x20] sm:$0xff] %v10655_v47  ;;  %v14525_v19 = vpop.f32.mrb[6].mxu0  ;;  %10737 = vst [vmem:[#allocation5 + $0x70] sm:$0xff] %v10705_v60  ;;  %v14540_v10 = vpop.f32.mrb[6].mxu1 }
 0xc29   :  { %v10670_v2 = vadd.f32 %v14525_v19, %v11959_v40  ;;  %v10664_v11 = vpop.f32.mrb[7].mxu0  ;;  %v10720_v29 = vadd.f32 %v14540_v10, %v11959_v40  ;;  %v10714_v20 = vpop.f32.mrb[7].mxu1 }
 0xc2a   :  { %v10665_v3 = vadd.f32 %v11959_v40, %v10664_v11  ;;  %v10715_v30 = vadd.f32 %v11959_v40, %v10714_v20 }
 0xc2b   :  { %10730 = vst [vmem:[#allocation5 + $0x38] sm:$0xff] %v10670_v2  ;;  %10740 = vst [vmem:[#allocation5 + $0x88] sm:$0xff] %v10720_v29 }
 0xc2c   :  { %10729 = vst [vmem:[#allocation5 + $0x30] sm:$0xff] %v10665_v3  ;;  %v14528_v5 = vpop.f32.mrb[8].mxu0  ;;  %10739 = vst [vmem:[#allocation5 + $0x80] sm:$0xff] %v10715_v30 }
 0xc2d   :  { %v10680_v33 = vadd.f32 %v14528_v5, %v11959_v40  ;;  %v10674_v34 = vpop.f32.mrb[9].mxu0 }
 0xc2e   :  { %v10675_v55 = vadd.f32 %v11959_v40, %v10674_v34 }
 0xc2f   :  { %10732 = vst [vmem:[#allocation5 + $0x48] sm:$0xff] %v10680_v33 }
 0xc30   :  { %10731 = vst [vmem:[#allocation5 + $0x40] sm:$0xff] %v10675_v55 }
 0xc31 LB: > { %v14783_v12 = vpack.c.bf16 %v19053_v28, %v19048_v27  ;;  %v15669_v14 = vmov 0.0|0.0   ;;  %s15670_s10 = smov 32   ;;  %v14786_v21 = vpack.c.bf16 %v19063_v23, %v19058_v39  ;;  %vm15671_vm4 = vmmov 0   ;;  %s11978_s3 = sshll.u32 %s15658_s9, 3  ;;  %s15658_s9 = sphi %s19068_s9, %s10750_s9   ;;  %v15654_v35 = vphi %v15652_v35, %v15653_v35   ;;  %v15650_v22 = vphi %v15648_v22, %v10849_v22  }
 0xc32   : > { %14782 = vmatprep.subr.bf16.mxu0 %v15669_v14  ;;  %10757 = vrot.lane.b32.xlu0 %v15654_v35, %s15670_s10  ;;  %v15672_v13 = vmov 0.0   ;;  %s10754_s6 = scalar_lea.vmem [#allocation5], %s11978_s3  ;;  %s15673_s28 = smov 64  }
 0xc33   : > { %14784 = vmatpush3.bf16.msra.mxu0 %v14783_v12  ;;  %14549 = vmatprep.mubr.msk.f32.mxu0 %vm15671_vm4, %v15672_v13  ;;  %s10750_s9 = sadd.s32 1, %s15658_s9  }
 0xc34   : > { %14785 = vmatprep.subr.bf16.mxu0 %v15669_v14  ;;  %p10747_p1 = scmp.ge.s32.totalorder %s10750_s9, 18  }
 0xc35   :  { %v10857_v54 = vld [vmem:[%s19216_s11 + $0x8] sm:$0xff] (%p10747_p1)  ;;  %v10859_v61 = vld [vmem:[%s19216_s11 + $0x18] sm:$0xff] (%p10747_p1)  ;;  %v10856_v42 = vld [vmem:[%s19216_s11] sm:$0xff] (%p10747_p1)  ;;  %s15674_s19 = smov (%p10747_p1), 32   ;;  %vm11061_vm5 = vcmask (%p10747_p1), 7168  }
 0xc36   :  { %v14788_v63 = vpack.c.bf16 (%p10747_p1), %v10859_v61, %v10857_v54  ;;  %v10858_v27 = vld [vmem:[%s19216_s11 + $0x10] sm:$0xff] (%p10747_p1)  ;;  %v10861_v28 = vld [vmem:[%s19216_s11 + $0x28] sm:$0xff] (%p10747_p1)  ;;  %v10863_v39 = vld [vmem:[%s19216_s11 + $0x38] sm:$0xff] (%p10747_p1)  ;;  %v10868_v54 = vsub.s32 (%p10747_p1), 0, %v18839_v57 }
 0xc37   : > { %14787 = vmatpush3.bf16.msra.mxu0 %v14786_v21  ;;  %v10755_v44 = vld [vmem:[%s10754_s6] sm:$0xff]  ;;  %v14790_v23 = vpack.c.bf16 (%p10747_p1), %v10858_v27, %v10856_v42  ;;  %v14792_v0 = vpack.c.bf16 (%p10747_p1), %v10863_v39, %v10861_v28  ;;  %v10862_v26 = vld [vmem:[%s19216_s11 + $0x30] sm:$0xff] (%p10747_p1)  ;;  %v10969_v1 = vld [vmem:[%s19218_s13 + $0x88] sm:$0xff] (%p10747_p1) }
 0xc38   :  { %v10968_v53 = vld [vmem:[%s19218_s13 + $0x80] sm:$0xff] (%p10747_p1)  ;;  %14789 = vmatprep.subr.bf16.mxu0 (%p10747_p1), %v14788_v63  ;;  %v10953_v56 = vld [vmem:[%s19218_s13 + $0x8] sm:$0xff] (%p10747_p1)  ;;  %v10970_v45 = vld [vmem:[%s19218_s13 + $0x90] sm:$0xff] (%p10747_p1) }
 0xc39   :  { %v10952_v43 = vld [vmem:[%s19218_s13] sm:$0xff] (%p10747_p1)  ;;  %v14796_v41 = vpack.c.bf16 (%p10747_p1), %v10969_v1, %v10968_v53  ;;  %v10971_v16 = vld [vmem:[%s19218_s13 + $0x98] sm:$0xff] (%p10747_p1)  ;;  %v10954_v46 = vld [vmem:[%s19218_s13 + $0x10] sm:$0xff] (%p10747_p1) }
 0xc3a   :  { %v14798_v59 = vpack.c.bf16 (%p10747_p1), %v10953_v56, %v10952_v43  ;;  %v14800_v58 = vpack.c.bf16 (%p10747_p1), %v10971_v16, %v10970_v45  ;;  %v10955_v17 = vld [vmem:[%s19218_s13 + $0x18] sm:$0xff] (%p10747_p1)  ;;  %v10972_v8 = vld [vmem:[%s19218_s13 + $0xa0] sm:$0xff] (%p10747_p1)  ;;  %v10973_v18 = vld [vmem:[%s19218_s13 + $0xa8] sm:$0xff] (%p10747_p1) }
 0xc3b   :  { %14797 = vmatprep.subr.bf16.mxu1 (%p10747_p1), %v14796_v41  ;;  %v14802_v49 = vpack.c.bf16 (%p10747_p1), %v10955_v17, %v10954_v46  ;;  %v14804_v47 = vpack.c.bf16 (%p10747_p1), %v10973_v18, %v10972_v8  ;;  %v10956_v60 = vld [vmem:[%s19218_s13 + $0x20] sm:$0xff] (%p10747_p1)  ;;  %v10957_v19 = vld [vmem:[%s19218_s13 + $0x28] sm:$0xff] (%p10747_p1)  ;;  %v10974_v10 = vld [vmem:[%s19218_s13 + $0xb0] sm:$0xff] (%p10747_p1) }
 0xc3c   :  { %14799 = vmatpush3.bf16.msra.mxu1 (%p10747_p1), %v14798_v59  ;;  %v10975_v2 = vld [vmem:[%s19218_s13 + $0xb8] sm:$0xff] (%p10747_p1)  ;;  %v14806_v11 = vpack.c.bf16 (%p10747_p1), %v10957_v19, %v10956_v60  ;;  %v10958_v20 = vld [vmem:[%s19218_s13 + $0x30] sm:$0xff] (%p10747_p1)  ;;  %v10976_v30 = vld [vmem:[%s19218_s13 + $0xc0] sm:$0xff] (%p10747_p1) }
 0xc3d   :  { %14801 = vmatprep.subr.bf16.mxu1 (%p10747_p1), %v14800_v58  ;;  %v14808_v29 = vpack.c.bf16 (%p10747_p1), %v10975_v2, %v10974_v10  ;;  %v10959_v3 = vld [vmem:[%s19218_s13 + $0x38] sm:$0xff] (%p10747_p1)  ;;  %v10977_v5 = vld [vmem:[%s19218_s13 + $0xc8] sm:$0xff] (%p10747_p1)  ;;  %v10960_v55 = vld [vmem:[%s19218_s13 + $0x40] sm:$0xff] (%p10747_p1) }
 0xc3e   :  { %v14810_v33 = vpack.c.bf16 (%p10747_p1), %v10959_v3, %v10958_v20  ;;  %v14812_v34 = vpack.c.bf16 (%p10747_p1), %v10977_v5, %v10976_v30  ;;  %v10979_v12 = vld [vmem:[%s19218_s13 + $0xd8] sm:$0xff] (%p10747_p1)  ;;  %v10962_v13 = vld [vmem:[%s19218_s13 + $0x50] sm:$0xff] (%p10747_p1) }
 0xc40   :  { %14803 = vmatpush3.bf16.msra.mxu1 (%p10747_p1), %v14802_v49 }
 0xc41   :  { %14805 = vmatprep.subr.bf16.mxu1 (%p10747_p1), %v14804_v47 }
 0xc44   :  { %14807 = vmatpush3.bf16.msra.mxu1 (%p10747_p1), %v14806_v11 }
 0xc45   :  { %14809 = vmatprep.subr.bf16.mxu1 (%p10747_p1), %v14808_v29 }
 0xc48   :  { %14811 = vmatpush3.bf16.msra.mxu1 (%p10747_p1), %v14810_v33 }
 0xc49   :  { %14813 = vmatprep.subr.bf16.mxu1 (%p10747_p1), %v14812_v34 }
 0xca4   : > { %v10758_v32 = vpop.permute.xlu0 %10757 }
 0xca5   : > { %14550 = vmatmul.mubr.msk.f32.vlgmr.msra.gmra.mrb[0].mxu0 %vm3972_vm1, %v10758_v32  ;;  %v10963_v32 = vld [vmem:[%s19218_s13 + $0x58] sm:$0xff] (%p10747_p1) }
 0xca6   :  { %10945 = vmatprep.mubr.f32.mxu0 (%p10747_p1), %v15660_v50  ;;  %v10860_v50 = vld [vmem:[%s19216_s11 + $0x20] sm:$0xff] (%p10747_p1)  ;;  %14791 = vmatpush1.bf16.msra.mxu0 (%p10747_p1), %v14790_v23 }
 0xca7   :  { %v14794_v4 = vpack.c.bf16 (%p10747_p1), %v10862_v26, %v10860_v50  ;;  %14793 = vmatprep.subr.bf16.mxu0 (%p10747_p1), %v14792_v0  ;;  %v11982_v0 = vld [vmem:[#allocation6] ss:$0 sm:$0xff] (%p10747_p1) }
 0xcaa   :  { %14795 = vmatpush1.bf16.msra.mxu0 (%p10747_p1), %v14794_v4 }
 0xd78   : > { %v10827_v15 = vpop.f32.mrb[0].mxu0 }
 0xd79   : > { %v10831_v62 = vadd.f32 %v10827_v15, %v10755_v44  ;;  %v14551_v36 = vpop.f32.mrb[1].mxu0  ;;  %v10980_v44 = vld [vmem:[%s19218_s13 + $0xe0] sm:$0xff] (%p10747_p1)  ;;  %v10981_v15 = vld [vmem:[%s19218_s13 + $0xe8] sm:$0xff] (%p10747_p1) }
 0xd7a   :  { %v14820_v36 = vpack.c.bf16 (%p10747_p1), %v10981_v15, %v10980_v44 }
 0xd7b   : > { %15604 = vtanh.f32 %v10831_v62  ;;  %v11980_v31 = vmul.f32 -1.442695, %v10831_v62  ;;  %v14818_v62 = vpack.c.bf16 (%p10747_p1), %v10963_v32, %v10962_v13 }
 0xd7d   : > { %15606 = vpow2.f32 %v11980_v31  ;;  %v10965_v31 = vld [vmem:[%s19218_s13 + $0x68] sm:$0xff] (%p10747_p1) }
 0xd85   : > { %v15605_v37 = vpop.eup %15604 }
 0xd86   : > { %10841 = vrot.lane.b32.xlu0 %v15605_v37, %s15673_s28  ;;  %v10964_v37 = vld [vmem:[%s19218_s13 + $0x60] sm:$0xff] (%p10747_p1) }
 0xd87   : > { %v15607_v9 = vpop.eup %15606 }
 0xd88   : > { %v10835_v6 = vadd.f32 1.0, %v15607_v9  ;;  %v14822_v9 = vpack.c.bf16 (%p10747_p1), %v10965_v31, %v10964_v37 }
 0xd8a   : > { %15608 = vrcp.f32 %v10835_v6 }
 0xd94   : > { %v15609_v48 = vpop.eup %15608 }
 0xd95   : > { %v10839_v52 = vmul.f32 %v15650_v22, %v15609_v48 }
 0xdf8   : > { %v10842_v7 = vpop.permute.xlu0 %10841 }
 0xdf9   : > { %v10844_v25 = vmul.f32 %v15609_v48, %v10842_v7  ;;  %v10983_v7 = vld [vmem:[%s19218_s13 + $0xf8] sm:$0xff] (%p10747_p1) }
 0xdfb   : > { %10846 = vrot.lane.b32.xlu1 %v10844_v25, %s15670_s10 }
 0xe6d   : > { %v10847_v51 = vpop.permute.xlu1 %10846 }
 0xe6e   : > { %v10849_v22 = vadd.f32 %v10847_v51, %v10839_v52   ;;  %v10966_v52 = vld [vmem:[%s19218_s13 + $0x70] sm:$0xff] (%p10747_p1)  ;;  %v10967_v51 = vld [vmem:[%s19218_s13 + $0x78] sm:$0xff] (%p10747_p1) }
 0xe70   : > { %15610 = vtanh.f32 %v10849_v22  ;;  %v10961_v22 = vld [vmem:[%s19218_s13 + $0x48] sm:$0xff] (%p10747_p1) }
 0xe71   :  { %v14814_v14 = vpack.c.bf16 (%p10747_p1), %v10961_v22, %v10960_v55 }
 0xe73   :  { %14815 = vmatpush3.bf16.msra.mxu1 (%p10747_p1), %v14814_v14 }
 0xe7a   : > { %v15611_v38 = vpop.eup %15610 }
 0xe7b   : > { %10852 = vrot.lane.b32.xlu1 %v15611_v38, %s15673_s28  ;;  %v14826_v38 = vpack.c.bf16 (%p10747_p1), %v10967_v51, %v10966_v52 }
 0xeea   :  { %10749 = sbr.rel (!%p10747_p1) target bundleno = 3121 (0xc31), region = 112 }
 0xeed   : > { %v10853_v40 = vpop.permute.xlu1 %10852 }
 0xeee   : > { %v10855_v24 = vmul.f32 %v15609_v48, %v10853_v40   ;;  %v10982_v48 = vld [vmem:[%s19218_s13 + $0xf0] sm:$0xff] (%p10747_p1)  ;;  %v10872_v40 = vsub.s32 (%p10747_p1), 1, %v18839_v57 }
 0xeef   :  { %v14824_v25 = vpack.c.bf16 (%p10747_p1), %v10983_v7, %v10982_v48 }
 0xef0   : > { %v15653_v35 = vmov %v10855_v24   ;;  %10877 = vrot.lane.b32.xlu0 (%p10747_p1), %v10855_v24, %s15674_s19  ;;  %v10864_v24 = vld [vmem:[%s19217_s12] sm:$0x3] (%p10747_p1) }
 0xef1   :  { %v10978_v35 = vld [vmem:[%s19218_s13 + $0xd0] sm:$0xff]  ;;  %v10873_v61 = vrot.slane %v10864_v24, %v10872_v40  ;;  %v10869_v42 = vrot.slane %v10864_v24, %v10868_v54 }
 0xef2   :  { %v14816_v21 = vpack.c.bf16 %v10979_v12, %v10978_v35 }
 0xef4   :  { %14817 = vmatprep.subr.bf16.mxu1 %v14816_v21 }
 0xef5   :  { %14819 = vmatpush3.bf16.msra.mxu1 %v14818_v62 }
 0xef6   :  { %14821 = vmatprep.subr.bf16.mxu1 %v14820_v36 }
 0xef9   :  { %14823 = vmatpush3.bf16.msra.mxu1 %v14822_v9 }
 0xefa   :  { %14825 = vmatprep.subr.bf16.mxu1 %v14824_v25 }
 0xefd   :  { %14827 = vmatpush3.bf16.msra.mxu1 %v14826_v38 }
 0xf62   :  { %v10878_v6 = vpop.permute.xlu0 %10877 }
 0xf63   :  { %11981 = vmatmul.mubr.msk.f32.vlgmr.msra.gmra.mrb[0].mxu0 %vm3972_vm1, %v10878_v6 }
0x1036   :  { %v10947_v63 = vpop.f32.mrb[0].mxu0 }
0x1037   :  { %v10949_v27 = vpop.f32.mrb[1].mxu0  ;;  %v10948_v39 = vadd.f32 %v10947_v63, %v10869_v42 }
0x1038   :  { %v10950_v28 = vadd.f32 %v10949_v27, %v10873_v61 }
0x103a   :  { %11055 = vmatprep.mubr.f32.mxu1 %v10950_v28 }
0x103b   :  { %11056 = vmatmul.mubr.f32.vlgmr.msra.gmra.mrb[0].mxu1 %v10948_v39 }
0x110e   :  { %v12982_v23 = vpop.f32.mrb[0].mxu1 }
0x110f   :  { %v12983_v50 = vpop.f32.mrb[1].mxu1 }
0x1110   :  { %v12984_v26 = vadd.f32 %v12983_v50, %v12982_v23 }
0x1112   :  { %v11058_v53 = vadd.f32 %v12984_v26, %v11982_v0 }
0x1114   :  { %11062 = vst.msk [vmem:[%s19220_s15] sm:$0xff] %vm11061_vm5, %v11058_v53 }

</bundles_post_ra>
